<compile_context>
chip_gen: v5e
topology: v5e:2x2
jax: 0.10.0
libtpu: 0.0.40
codegen_flags: <defaults>
</compile_context>

<pallas_src>
import numpy as np
import jax
import jax.numpy as jnp
from jax.experimental import pallas as pl
from jax.experimental.pallas import tpu as pltpu

_LANE = 128
_SUBLANE = 8


def _round_up(x, m):
    return ((x + m - 1) // m) * m


def _vmem_bytes(K, Bp, Hp):
    """Rough VMEM footprint of one grid step (pipelined blocks double-buffered)."""
    gx_blk = K * Bp * 4 * Hp * 2        # bf16 input-projection block
    out_blk = K * Bp * Hp * 4           # f32 output block
    whh_blk = Hp * 4 * Hp * 2           # bf16 recurrent weights
    lens_blk = Bp * _LANE * 4           # int32 lengths (lane-padded)
    fin_blk = 2 * Bp * Hp * 4           # h_n / c_n resident blocks
    scratch = 2 * Bp * Hp * 4           # h / c recurrent state scratch
    return 2 * (gx_blk + out_blk + whh_blk + lens_blk + fin_blk) + scratch


def _pick_time_chunk(T, Bp, Hp, budget=24 << 20):
    """Largest K (<=32, power of two) whose blocks fit the VMEM budget."""
    K = min(32, pl.next_power_of_2(max(T, 1)))
    while K > 1 and _vmem_bytes(K, Bp, Hp) > budget:
        K //= 2
    return K


def _bilstm_kernel(lens_ref, gx_ref, whh_ref,      # inputs
                   out_ref, hn_ref, cn_ref,        # outputs
                   h_scr, c_scr):                  # scratch (recurrent state)
    """Grid = (2, C): axis 0 = direction (0 fwd, 1 rev, 'parallel'),
    axis 1 = time chunk ('arbitrary'; h/c carried in VMEM scratch).

    lens_ref: (Bp, 1)       int32 sequence lengths
    gx_ref  : (K, Bp, 4*Hp) bf16 precomputed x @ Wih^T + b for this
                            direction/chunk (original time order)
    whh_ref : (Hp, 4*Hp)    bf16 recurrent weights, gate-blocked along lanes
    out_ref : (K, Bp, Hp)   f32 per-timestep hidden state (zero where padded)
    hn_ref / cn_ref: (Bp, Hp) final state of this direction
    """
    d = pl.program_id(0)
    c = pl.program_id(1)
    n_chunks = pl.num_programs(1)
    K, Bp, G = gx_ref.shape
    Hp = G // 4

    @pl.when(c == 0)
    def _init():
        h_scr[...] = jnp.zeros_like(h_scr)
        c_scr[...] = jnp.zeros_like(c_scr)

    whh = whh_ref[...]                      # bf16, loaded once per chunk

    def cell(rel, jl):
        # jl is a STATIC python int: static block-row addressing for gx/out,
        # and (chunk_start + jl) < len  <=>  jl < rel  with rel precomputed.
        valid = jnp.broadcast_to(jl < rel, (Bp, Hp))        # one broadcast, reused
        gates = gx_ref[jl].astype(jnp.float32) + jnp.dot(
            h_scr[...].astype(jnp.bfloat16), whh,
            preferred_element_type=jnp.float32)
        # gate blocks are Hp-wide -> lane-aligned slices (Hp % 128 == 0)
        i_g = jax.nn.sigmoid(gates[:, 0 * Hp:1 * Hp])
        f_g = jax.nn.sigmoid(gates[:, 1 * Hp:2 * Hp])
        g_g = jnp.tanh(gates[:, 2 * Hp:3 * Hp])
        o_g = jax.nn.sigmoid(gates[:, 3 * Hp:4 * Hp])
        c_new = f_g * c_scr[...] + i_g * g_g
        h_new = o_g * jnp.tanh(c_new)
        out_ref[jl] = jnp.where(valid, h_new, 0.0).astype(out_ref.dtype)
        h_scr[...] = jnp.where(valid, h_new, h_scr[...])    # freeze past length
        c_scr[...] = jnp.where(valid, c_new, c_scr[...])

    @pl.when(d == 0)
    def _forward():
        rel = lens_ref[...] - c * K                     # (Bp, 1) int32
        for j in range(K):                              # static unroll
            cell(rel, j)

    @pl.when(d == 1)
    def _reverse():
        # This grid step holds original-time chunk (C-1-c); walk it backwards.
        rel = lens_ref[...] - (n_chunks - 1 - c) * K
        for j in range(K):
            cell(rel, K - 1 - j)

    @pl.when(c == n_chunks - 1)
    def _finalize():
        hn_ref[...] = h_scr[...].astype(hn_ref.dtype)
        cn_ref[...] = c_scr[...].astype(cn_ref.dtype)


def _pack_dir(w_ih, w_hh, b_ih, b_hh, H, Hp):
    """Gate-blocked, lane-padded, transposed weights + combined bias (one dir)."""
    D = w_ih.shape[1]
    # (4H, D) -> (D, 4*Hp), per-gate Hp-wide lane blocks, pads zero
    w_ih4 = jnp.asarray(w_ih, jnp.float32).reshape(4, H, D)
    w_ih4 = jnp.pad(w_ih4, ((0, 0), (0, Hp - H), (0, 0)))
    wih_T = jnp.transpose(w_ih4, (2, 0, 1)).reshape(D, 4 * Hp)

    # (4H, H) -> (Hp, 4*Hp); pad rows and pad gate lanes are zero
    w_hh4 = jnp.asarray(w_hh, jnp.float32).reshape(4, H, H)
    w_hh4 = jnp.pad(w_hh4, ((0, 0), (0, Hp - H), (0, Hp - H)))
    whh_T = jnp.transpose(w_hh4, (2, 0, 1)).reshape(Hp, 4 * Hp)

    b = jnp.asarray(b_ih, jnp.float32) + jnp.asarray(b_hh, jnp.float32)
    b = jnp.pad(b.reshape(4, H), ((0, 0), (0, Hp - H))).reshape(4 * Hp)
    return wih_T, whh_T, b


def bi_rnn_block(seq, seq_len, params, *, time_chunk=None):
    """Pallas equivalent of BiRnnBlock.forward for rnn_type='lstm', nlayers=1.

    seq:     (T, B, D) float32, time-major, sorted by descending seq_len
    seq_len: (B,) int
    returns: out (T, B, 2H), (h_n (2, B, H), c_n (2, B, H))
    """
    T, B, D = seq.shape
    H = params["w_hh_f"].shape[1]
    Hp = _round_up(H, _LANE)       # lane-aligned hidden size
    Bp = _round_up(B, _SUBLANE)    # sublane-aligned batch
    K = int(time_chunk) if time_chunk is not None else _pick_time_chunk(T, Bp, Hp)
    C = -(-T // K)                 # number of time chunks
    Tp = C * K

    seq_p = jnp.pad(jnp.asarray(seq, jnp.float32),
                    ((0, Tp - T), (0, Bp - B), (0, 0)))
    lens = jnp.clip(jnp.asarray(seq_len, jnp.int32), 0, T)   # defensive clamp
    lens_p = jnp.pad(lens, (0, Bp - B)).reshape(Bp, 1)

    wih_f, whh_f, b_f = _pack_dir(params["w_ih_f"], params["w_hh_f"],
                                  params["b_ih_f"], params["b_hh_f"], H, Hp)
    wih_b, whh_b, b_b = _pack_dir(params["w_ih_b"], params["w_hh_b"],
                                  params["b_ih_b"], params["b_hh_b"], H, Hp)
    # Both directions concatenated along lanes (fwd = lanes [0,4Hp), rev = rest)
    wih = jnp.concatenate([wih_f, wih_b], axis=1)                        # (D, 8Hp)
    whh = jnp.concatenate([whh_f, whh_b], axis=1).astype(jnp.bfloat16)   # (Hp, 8Hp)
    bias = jnp.concatenate([b_f, b_b]).reshape(1, 1, 8 * Hp)

    # Hoisted input projection over ALL timesteps and BOTH directions:
    # one big bf16 MXU matmul outside the serial recurrence; stream kept bf16.
    gx = (jnp.dot(seq_p.astype(jnp.bfloat16), wih.astype(jnp.bfloat16),
                  preferred_element_type=jnp.float32) + bias).astype(jnp.bfloat16)

    # fwd (d=0) walks chunks left->right; rev (d=1) walks them right->left.
    # The last index selects the direction's lane block.
    def stream_map(d, c):
        return (c + d * (C - 1 - 2 * c), 0, d)

    lens_spec = pl.BlockSpec((Bp, 1), lambda d, c: (0, 0))
    gx_spec = pl.BlockSpec((K, Bp, 4 * Hp), stream_map)
    whh_spec = pl.BlockSpec((Hp, 4 * Hp), lambda d, c: (0, d))
    out_spec = pl.BlockSpec((K, Bp, Hp), stream_map)
    st_spec = pl.BlockSpec((None, Bp, Hp), lambda d, c: (d, 0, 0))

    vmem_limit = int(min(max(2 * _vmem_bytes(K, Bp, Hp), 32 << 20), 60 << 20))

    out_all, h_n, c_n = pl.pallas_call(
        _bilstm_kernel,
        out_shape=(jax.ShapeDtypeStruct((Tp, Bp, 2 * Hp), jnp.float32),
                   jax.ShapeDtypeStruct((2, Bp, Hp), jnp.float32),
                   jax.ShapeDtypeStruct((2, Bp, Hp), jnp.float32)),
        grid_spec=pltpu.PrefetchScalarGridSpec(
            num_scalar_prefetch=0,
            grid=(2, C),
            in_specs=[lens_spec, gx_spec, whh_spec],
            out_specs=[out_spec, st_spec, st_spec],
            scratch_shapes=[pltpu.VMEM((Bp, Hp), jnp.float32),
                            pltpu.VMEM((Bp, Hp), jnp.float32)]),
        compiler_params=pltpu.CompilerParams(
            dimension_semantics=("parallel", "arbitrary"),
            vmem_limit_bytes=vmem_limit),
    )(lens_p, gx, whh)

    # Combined output: fwd in lanes [0,Hp), rev in lanes [Hp,2Hp).
    if H == Hp:
        out = out_all[:T, :B, :]
    else:
        out = jnp.concatenate([out_all[:T, :B, :H],
                               out_all[:T, :B, Hp:Hp + H]], axis=-1)
    return out, (h_n[:, :B, :H], c_n[:, :B, :H])


# ----------------------- pure-numpy reference ------------------------------
def _ref_bilstm(seq, seq_len, params):
    seq = np.asarray(seq, np.float64)
    T, B, D = seq.shape
    H = params["w_hh_f"].shape[1]

    def sig(z):
        return 1.0 / (1.0 + np.exp(-z))

    def cell(x, h, c, wih, whh, bih, bhh):
        g = x @ wih.T + bih + h @ whh.T + bhh
        i, f, gg, o = g[:, :H], g[:, H:2 * H], g[:, 2 * H:3 * H], g[:, 3 * H:]
        c_new = sig(f) * c + sig(i) * np.tanh(gg)
        h_new = sig(o) * np.tanh(c_new)
        return h_new, c_new

    p = {k: np.asarray(v, np.float64) for k, v in params.items()}
    lens = np.asarray(seq_len)

    out = np.zeros((T, B, 2 * H))
    h_n = np.zeros((2, B, H))
    c_n = np.zeros((2, B, H))

    # forward
    h = np.zeros((B, H)); c = np.zeros((B, H))
    for t in range(T):
        m = (t < lens).astype(np.float64)[:, None]
        h_new, c_new = cell(seq[t], h, c, p["w_ih_f"], p["w_hh_f"],
                            p["b_ih_f"], p["b_hh_f"])
        out[t, :, :H] = m * h_new
        h = m * h_new + (1 - m) * h
        c = m * c_new + (1 - m) * c
    h_n[0], c_n[0] = h, c

    # reverse
    h = np.zeros((B, H)); c = np.zeros((B, H))
    for t in range(T - 1, -1, -1):
        m = (t < lens).astype(np.float64)[:, None]
        h_new, c_new = cell(seq[t], h, c, p["w_ih_b"], p["w_hh_b"],
                            p["b_ih_b"], p["b_hh_b"])
        out[t, :, H:] = m * h_new
        h = m * h_new + (1 - m) * h
        c = m * c_new + (1 - m) * c
    h_n[1], c_n[1] = h, c
    return out, h_n, c_n


def init_params(key, D, H):
    """Deterministic init matching nn.LSTM parameter shapes (uniform +-1/sqrt(H))."""
    k = 1.0 / np.sqrt(H)
    ks = jax.random.split(key, 8)

    def u(kk, shape):
        return jax.random.uniform(kk, shape, jnp.float32, -k, k)

    return dict(
        w_ih_f=u(ks[0], (4 * H, D)), w_hh_f=u(ks[1], (4 * H, H)),
        b_ih_f=u(ks[2], (4 * H,)),   b_hh_f=u(ks[3], (4 * H,)),
        w_ih_b=u(ks[4], (4 * H, D)), w_hh_b=u(ks[5], (4 * H, H)),
        b_ih_b=u(ks[6], (4 * H,)),   b_hh_b=u(ks[7], (4 * H,)),
    )


if __name__ == "__main__":
    # seq_len=12 (padded to K=16, one chunk), batch=4, input=16, hidden=32
    T, B, D, H = 12, 4, 16, 32

    key = jax.random.PRNGKey(0)
    k_seq, k_par = jax.random.split(key)
    seq = jax.random.normal(k_seq, (T, B, D), jnp.float32)
    seq_len = jnp.array([12, 9, 7, 3], jnp.int32)   # descending (enforce_sorted)
    params = init_params(k_par, D, H)

    run = jax.jit(bi_rnn_block, static_argnames=("time_chunk",))
    out, (h_n, c_n) = run(seq, seq_len, params)
    out = jax.block_until_ready(out)
    h_n = jax.block_until_ready(h_n)
    c_n = jax.block_until_ready(c_n)

    ref_out, ref_hn, ref_cn = _ref_bilstm(seq, seq_len, params)
    # bf16 MXU operands / bf16 gx stream loosen per-element tolerance vs the
    # f64 reference (gate math and state stay f32).
    np.testing.assert_allclose(np.asarray(out), ref_out, rtol=2e-2, atol=1e-2)
    np.testing.assert_allclose(np.asarray(h_n), ref_hn, rtol=2e-2, atol=1e-2)
    np.testing.assert_allclose(np.asarray(c_n), ref_cn, rtol=2e-2, atol=1e-2)

    print("KERNEL_OK")
</pallas_src>

<mosaic_0001>
module attributes {stable_mosaic.version = 11 : i64} {
  func.func @_bilstm_kernel(%arg0: i32, %arg1: i32, %arg2: memref<8x1xi32, #tpu.memory_space<vmem>>, %arg3: memref<16x8x512xbf16, #tpu.memory_space<vmem>>, %arg4: memref<128x512xbf16, #tpu.memory_space<vmem>>, %arg5: memref<16x8x128xf32, #tpu.memory_space<vmem>>, %arg6: memref<1x8x128xf32, #tpu.memory_space<vmem>>, %arg7: memref<1x8x128xf32, #tpu.memory_space<vmem>>, %arg8: memref<8x128xf32, #tpu.memory_space<vmem>>, %arg9: memref<8x128xf32, #tpu.memory_space<vmem>>) attributes {dimension_semantics = [#tpu.dimension_semantics<parallel>, #tpu.dimension_semantics<arbitrary>], iteration_bounds = array<i64: 2, 1>, scalar_prefetch = 0 : i64, scratch_operands = 2 : i64, tpu.core_type = #tpu.core_type<tc>, window_params = [{pipeline_mode = #tpu.pipeline_mode<synchronous>, transform_indices = @transform_0, window_bounds = array<i64: 8, 1>}, {transform_indices = @transform_1, window_bounds = array<i64: 16, 8, 512>}, {transform_indices = @transform_2, window_bounds = array<i64: 128, 512>}, {transform_indices = @transform_3, window_bounds = array<i64: 16, 8, 128>}, {transform_indices = @transform_4, window_bounds = array<i64: 1, 8, 128>}, {transform_indices = @transform_5, window_bounds = array<i64: 1, 8, 128>}]} {
    %c0_i32 = arith.constant 0 : i32
    %0 = arith.cmpi eq, %arg1, %c0_i32 : i32
    %1 = arith.extui %0 : i1 to i32
    %c0_i32_0 = arith.constant 0 : i32
    %2 = arith.cmpi ne, %1, %c0_i32_0 : i32
    scf.if %2 {
      %cst = arith.constant 0.000000e+00 : f32
      %13 = vector.broadcast %cst : f32 to vector<8x128xf32>
      %c0_7 = arith.constant 0 : index
      %c0_8 = arith.constant 0 : index
      %14 = vector.load %arg8[%c0_7, %c0_8] : memref<8x128xf32, #tpu.memory_space<vmem>>, vector<8x128xf32>
      tpu.vector_store %arg8[%c0_7, %c0_8], %13 {strides = array<i32>} : memref<8x128xf32, #tpu.memory_space<vmem>>, vector<8x128xf32>,
      %cst_9 = arith.constant 0.000000e+00 : f32
      %15 = vector.broadcast %cst_9 : f32 to vector<8x128xf32>
      %c0_10 = arith.constant 0 : index
      %c0_11 = arith.constant 0 : index
      %16 = vector.load %arg9[%c0_10, %c0_11] : memref<8x128xf32, #tpu.memory_space<vmem>>, vector<8x128xf32>
      tpu.vector_store %arg9[%c0_10, %c0_11], %15 {strides = array<i32>} : memref<8x128xf32, #tpu.memory_space<vmem>>, vector<8x128xf32>,
    } else {
    }
    %c0 = arith.constant 0 : index
    %c0_1 = arith.constant 0 : index
    %3 = vector.load %arg4[%c0, %c0_1] : memref<128x512xbf16, #tpu.memory_space<vmem>>, vector<128x512xbf16>
    %c0_i32_2 = arith.constant 0 : i32
    %4 = arith.cmpi eq, %arg0, %c0_i32_2 : i32
    %5 = arith.extui %4 : i1 to i32
    %c0_i32_3 = arith.constant 0 : i32
    %6 = arith.cmpi ne, %5, %c0_i32_3 : i32
    scf.if %6 {
      %c0_7 = arith.constant 0 : index
      %c0_8 = arith.constant 0 : index
      %13 = vector.load %arg2[%c0_7, %c0_8] : memref<8x1xi32, #tpu.memory_space<vmem>>, vector<8x1xi32>
      %c16_i32 = arith.constant 16 : i32
      %14 = arith.muli %arg1, %c16_i32 : i32
      %15 = vector.broadcast %14 : i32 to vector<8x1xi32>
      %16 = arith.subi %13, %15 : vector<8x1xi32>
      %c0_i32_9 = arith.constant 0 : i32
      %17 = vector.broadcast %c0_i32_9 : i32 to vector<8x1xi32>
      %18 = arith.cmpi sgt, %16, %17 : vector<8x1xi32>
      %19 = vector.shape_cast %18 : vector<8x1xi1> to vector<8x1xi1>
      %20 = vector.broadcast %19 : vector<8x1xi1> to vector<8x128xi1>
      %c0_10 = arith.constant 0 : index
      %c0_11 = arith.constant 0 : index
      %c0_12 = arith.constant 0 : index
      %21 = vector.load %arg3[%c0_10, %c0_11, %c0_12] : memref<16x8x512xbf16, #tpu.memory_space<vmem>>, vector<1x8x512xbf16>
      %22 = vector.shape_cast %21 : vector<1x8x512xbf16> to vector<8x512xbf16>
      %23 = arith.extf %22 : vector<8x512xbf16> to vector<8x512xf32>
      %c0_13 = arith.constant 0 : index
      %c0_14 = arith.constant 0 : index
      %24 = vector.load %arg8[%c0_13, %c0_14] : memref<8x128xf32, #tpu.memory_space<vmem>>, vector<8x128xf32>
      %25 = arith.truncf %24 : vector<8x128xf32> to vector<8x128xbf16>
      %cst = arith.constant dense<0.000000e+00> : vector<8x512xf32>
      %26 = tpu.matmul %25, %3, %cst {dimension_numbers = #tpu.dot_dimension_numbers<[1], [0], [0], [1], [0, 0, 1, 1], [], []>} : vector<8x128xbf16>, vector<128x512xbf16>, vector<8x512xf32> -> vector<8x512xf32>
      %27 = arith.addf %23, %26 : vector<8x512xf32>
      %28 = vector.extract_strided_slice %27 {offsets = [0, 0], sizes = [8, 128], strides = [1, 1]} : vector<8x512xf32> to vector<8x128xf32>
      %29 = arith.negf %28 : vector<8x128xf32>
      %30 = math.exp %29 : vector<8x128xf32>
      %cst_15 = arith.constant 1.000000e+00 : f32
      %31 = vector.broadcast %cst_15 : f32 to vector<8x128xf32>
      %32 = arith.addf %31, %30 : vector<8x128xf32>
      %33 = arith.divf %31, %32 : vector<8x128xf32>
      %34 = vector.extract_strided_slice %27 {offsets = [0, 128], sizes = [8, 128], strides = [1, 1]} : vector<8x512xf32> to vector<8x128xf32>
      %35 = arith.negf %34 : vector<8x128xf32>
      %36 = math.exp %35 : vector<8x128xf32>
      %cst_16 = arith.constant 1.000000e+00 : f32
      %37 = vector.broadcast %cst_16 : f32 to vector<8x128xf32>
      %38 = arith.addf %37, %36 : vector<8x128xf32>
      %39 = arith.divf %37, %38 : vector<8x128xf32>
      %40 = vector.extract_strided_slice %27 {offsets = [0, 256], sizes = [8, 128], strides = [1, 1]} : vector<8x512xf32> to vector<8x128xf32>
      %41 = math.tanh %40 : vector<8x128xf32>
      %42 = vector.extract_strided_slice %27 {offsets = [0, 384], sizes = [8, 128], strides = [1, 1]} : vector<8x512xf32> to vector<8x128xf32>
      %43 = arith.negf %42 : vector<8x128xf32>
      %44 = math.exp %43 : vector<8x128xf32>
      %cst_17 = arith.constant 1.000000e+00 : f32
      %45 = vector.broadcast %cst_17 : f32 to vector<8x128xf32>
      %46 = arith.addf %45, %44 : vector<8x128xf32>
      %47 = arith.divf %45, %46 : vector<8x128xf32>
      %c0_18 = arith.constant 0 : index
      %c0_19 = arith.constant 0 : index
      %48 = vector.load %arg9[%c0_18, %c0_19] : memref<8x128xf32, #tpu.memory_space<vmem>>, vector<8x128xf32>
      %49 = arith.mulf %39, %48 : vector<8x128xf32>
      %50 = arith.mulf %33, %41 : vector<8x128xf32>
      %51 = arith.addf %49, %50 : vector<8x128xf32>
      %52 = math.tanh %51 : vector<8x128xf32>
      %53 = arith.mulf %47, %52 : vector<8x128xf32>
      %cst_20 = arith.constant 0.000000e+00 : f32
      %54 = vector.broadcast %cst_20 : f32 to vector<8x128xf32>
      %55 = arith.select %20, %53, %54 : vector<8x128xi1>, vector<8x128xf32>
      %c0_21 = arith.constant 0 : index
      %c0_22 = arith.constant 0 : index
      %c0_23 = arith.constant 0 : index
      %56 = vector.load %arg5[%c0_21, %c0_22, %c0_23] : memref<16x8x128xf32, #tpu.memory_space<vmem>>, vector<1x8x128xf32>
      %57 = vector.shape_cast %56 : vector<1x8x128xf32> to vector<8x128xf32>
      %58 = vector.shape_cast %55 : vector<8x128xf32> to vector<1x8x128xf32>
      tpu.vector_store %arg5[%c0_21, %c0_22, %c0_23], %58 {strides = array<i32>} : memref<16x8x128xf32, #tpu.memory_space<vmem>>, vector<1x8x128xf32>,
      %c0_24 = arith.constant 0 : index
      %c0_25 = arith.constant 0 : index
      %59 = vector.load %arg8[%c0_24, %c0_25] : memref<8x128xf32, #tpu.memory_space<vmem>>, vector<8x128xf32>
      %60 = arith.select %20, %53, %59 : vector<8x128xi1>, vector<8x128xf32>
      %c0_26 = arith.constant 0 : index
      %c0_27 = arith.constant 0 : index
      %61 = vector.load %arg8[%c0_26, %c0_27] : memref<8x128xf32, #tpu.memory_space<vmem>>, vector<8x128xf32>
      tpu.vector_store %arg8[%c0_26, %c0_27], %60 {strides = array<i32>} : memref<8x128xf32, #tpu.memory_space<vmem>>, vector<8x128xf32>,
      %c0_28 = arith.constant 0 : index
      %c0_29 = arith.constant 0 : index
      %62 = vector.load %arg9[%c0_28, %c0_29] : memref<8x128xf32, #tpu.memory_space<vmem>>, vector<8x128xf32>
      %63 = arith.select %20, %51, %62 : vector<8x128xi1>, vector<8x128xf32>
      %c0_30 = arith.constant 0 : index
      %c0_31 = arith.constant 0 : index
      %64 = vector.load %arg9[%c0_30, %c0_31] : memref<8x128xf32, #tpu.memory_space<vmem>>, vector<8x128xf32>
      tpu.vector_store %arg9[%c0_30, %c0_31], %63 {strides = array<i32>} : memref<8x128xf32, #tpu.memory_space<vmem>>, vector<8x128xf32>,
      %c1_i32_32 = arith.constant 1 : i32
      %65 = vector.broadcast %c1_i32_32 : i32 to vector<8x1xi32>
      %66 = arith.cmpi sgt, %16, %65 : vector<8x1xi32>
      %67 = vector.shape_cast %66 : vector<8x1xi1> to vector<8x1xi1>
      %68 = vector.broadcast %67 : vector<8x1xi1> to vector<8x128xi1>
      %c1 = arith.constant 1 : index
      %c0_33 = arith.constant 0 : index
      %c0_34 = arith.constant 0 : index
      %69 = vector.load %arg3[%c1, %c0_33, %c0_34] : memref<16x8x512xbf16, #tpu.memory_space<vmem>>, vector<1x8x512xbf16>
      %70 = vector.shape_cast %69 : vector<1x8x512xbf16> to vector<8x512xbf16>
      %71 = arith.extf %70 : vector<8x512xbf16> to vector<8x512xf32>
      %c0_35 = arith.constant 0 : index
      %c0_36 = arith.constant 0 : index
      %72 = vector.load %arg8[%c0_35, %c0_36] : memref<8x128xf32, #tpu.memory_space<vmem>>, vector<8x128xf32>
      %73 = arith.truncf %72 : vector<8x128xf32> to vector<8x128xbf16>
      %cst_37 = arith.constant dense<0.000000e+00> : vector<8x512xf32>
      %74 = tpu.matmul %73, %3, %cst_37 {dimension_numbers = #tpu.dot_dimension_numbers<[1], [0], [0], [1], [0, 0, 1, 1], [], []>} : vector<8x128xbf16>, vector<128x512xbf16>, vector<8x512xf32> -> vector<8x512xf32>
      %75 = arith.addf %71, %74 : vector<8x512xf32>
      %76 = vector.extract_strided_slice %75 {offsets = [0, 0], sizes = [8, 128], strides = [1, 1]} : vector<8x512xf32> to vector<8x128xf32>
      %77 = arith.negf %76 : vector<8x128xf32>
      %78 = math.exp %77 : vector<8x128xf32>
      %cst_38 = arith.constant 1.000000e+00 : f32
      %79 = vector.broadcast %cst_38 : f32 to vector<8x128xf32>
      %80 = arith.addf %79, %78 : vector<8x128xf32>
      %81 = arith.divf %79, %80 : vector<8x128xf32>
      %82 = vector.extract_strided_slice %75 {offsets = [0, 128], sizes = [8, 128], strides = [1, 1]} : vector<8x512xf32> to vector<8x128xf32>
      %83 = arith.negf %82 : vector<8x128xf32>
      %84 = math.exp %83 : vector<8x128xf32>
      %cst_39 = arith.constant 1.000000e+00 : f32
      %85 = vector.broadcast %cst_39 : f32 to vector<8x128xf32>
      %86 = arith.addf %85, %84 : vector<8x128xf32>
      %87 = arith.divf %85, %86 : vector<8x128xf32>
      %88 = vector.extract_strided_slice %75 {offsets = [0, 256], sizes = [8, 128], strides = [1, 1]} : vector<8x512xf32> to vector<8x128xf32>
      %89 = math.tanh %88 : vector<8x128xf32>
      %90 = vector.extract_strided_slice %75 {offsets = [0, 384], sizes = [8, 128], strides = [1, 1]} : vector<8x512xf32> to vector<8x128xf32>
      %91 = arith.negf %90 : vector<8x128xf32>
      %92 = math.exp %91 : vector<8x128xf32>
      %cst_40 = arith.constant 1.000000e+00 : f32
      %93 = vector.broadcast %cst_40 : f32 to vector<8x128xf32>
      %94 = arith.addf %93, %92 : vector<8x128xf32>
      %95 = arith.divf %93, %94 : vector<8x128xf32>
      %c0_41 = arith.constant 0 : index
      %c0_42 = arith.constant 0 : index
      %96 = vector.load %arg9[%c0_41, %c0_42] : memref<8x128xf32, #tpu.memory_space<vmem>>, vector<8x128xf32>
      %97 = arith.mulf %87, %96 : vector<8x128xf32>
      %98 = arith.mulf %81, %89 : vector<8x128xf32>
      %99 = arith.addf %97, %98 : vector<8x128xf32>
      %100 = math.tanh %99 : vector<8x128xf32>
      %101 = arith.mulf %95, %100 : vector<8x128xf32>
      %cst_43 = arith.constant 0.000000e+00 : f32
      %102 = vector.broadcast %cst_43 : f32 to vector<8x128xf32>
      %103 = arith.select %68, %101, %102 : vector<8x128xi1>, vector<8x128xf32>
      %c1_44 = arith.constant 1 : index
      %c0_45 = arith.constant 0 : index
      %c0_46 = arith.constant 0 : index
      %104 = vector.load %arg5[%c1_44, %c0_45, %c0_46] : memref<16x8x128xf32, #tpu.memory_space<vmem>>, vector<1x8x128xf32>
      %105 = vector.shape_cast %104 : vector<1x8x128xf32> to vector<8x128xf32>
      %106 = vector.shape_cast %103 : vector<8x128xf32> to vector<1x8x128xf32>
      tpu.vector_store %arg5[%c1_44, %c0_45, %c0_46], %106 {strides = array<i32>} : memref<16x8x128xf32, #tpu.memory_space<vmem>>, vector<1x8x128xf32>,
      %c0_47 = arith.constant 0 : index
      %c0_48 = arith.constant 0 : index
      %107 = vector.load %arg8[%c0_47, %c0_48] : memref<8x128xf32, #tpu.memory_space<vmem>>, vector<8x128xf32>
      %108 = arith.select %68, %101, %107 : vector<8x128xi1>, vector<8x128xf32>
      %c0_49 = arith.constant 0 : index
      %c0_50 = arith.constant 0 : index
      %109 = vector.load %arg8[%c0_49, %c0_50] : memref<8x128xf32, #tpu.memory_space<vmem>>, vector<8x128xf32>
      tpu.vector_store %arg8[%c0_49, %c0_50], %108 {strides = array<i32>} : memref<8x128xf32, #tpu.memory_space<vmem>>, vector<8x128xf32>,
      %c0_51 = arith.constant 0 : index
      %c0_52 = arith.constant 0 : index
      %110 = vector.load %arg9[%c0_51, %c0_52] : memref<8x128xf32, #tpu.memory_space<vmem>>, vector<8x128xf32>
      %111 = arith.select %68, %99, %110 : vector<8x128xi1>, vector<8x128xf32>
      %c0_53 = arith.constant 0 : index
      %c0_54 = arith.constant 0 : index
      %112 = vector.load %arg9[%c0_53, %c0_54] : memref<8x128xf32, #tpu.memory_space<vmem>>, vector<8x128xf32>
      tpu.vector_store %arg9[%c0_53, %c0_54], %111 {strides = array<i32>} : memref<8x128xf32, #tpu.memory_space<vmem>>, vector<8x128xf32>,
      %c2_i32 = arith.constant 2 : i32
      %113 = vector.broadcast %c2_i32 : i32 to vector<8x1xi32>
      %114 = arith.cmpi sgt, %16, %113 : vector<8x1xi32>
      %115 = vector.shape_cast %114 : vector<8x1xi1> to vector<8x1xi1>
      %116 = vector.broadcast %115 : vector<8x1xi1> to vector<8x128xi1>
      %c2 = arith.constant 2 : index
      %c0_55 = arith.constant 0 : index
      %c0_56 = arith.constant 0 : index
      %117 = vector.load %arg3[%c2, %c0_55, %c0_56] : memref<16x8x512xbf16, #tpu.memory_space<vmem>>, vector<1x8x512xbf16>
      %118 = vector.shape_cast %117 : vector<1x8x512xbf16> to vector<8x512xbf16>
      %119 = arith.extf %118 : vector<8x512xbf16> to vector<8x512xf32>
      %c0_57 = arith.constant 0 : index
      %c0_58 = arith.constant 0 : index
      %120 = vector.load %arg8[%c0_57, %c0_58] : memref<8x128xf32, #tpu.memory_space<vmem>>, vector<8x128xf32>
      %121 = arith.truncf %120 : vector<8x128xf32> to vector<8x128xbf16>
      %cst_59 = arith.constant dense<0.000000e+00> : vector<8x512xf32>
      %122 = tpu.matmul %121, %3, %cst_59 {dimension_numbers = #tpu.dot_dimension_numbers<[1], [0], [0], [1], [0, 0, 1, 1], [], []>} : vector<8x128xbf16>, vector<128x512xbf16>, vector<8x512xf32> -> vector<8x512xf32>
      %123 = arith.addf %119, %122 : vector<8x512xf32>
      %124 = vector.extract_strided_slice %123 {offsets = [0, 0], sizes = [8, 128], strides = [1, 1]} : vector<8x512xf32> to vector<8x128xf32>
      %125 = arith.negf %124 : vector<8x128xf32>
      %126 = math.exp %125 : vector<8x128xf32>
      %cst_60 = arith.constant 1.000000e+00 : f32
      %127 = vector.broadcast %cst_60 : f32 to vector<8x128xf32>
      %128 = arith.addf %127, %126 : vector<8x128xf32>
      %129 = arith.divf %127, %128 : vector<8x128xf32>
      %130 = vector.extract_strided_slice %123 {offsets = [0, 128], sizes = [8, 128], strides = [1, 1]} : vector<8x512xf32> to vector<8x128xf32>
      %131 = arith.negf %130 : vector<8x128xf32>
      %132 = math.exp %131 : vector<8x128xf32>
      %cst_61 = arith.constant 1.000000e+00 : f32
      %133 = vector.broadcast %cst_61 : f32 to vector<8x128xf32>
      %134 = arith.addf %133, %132 : vector<8x128xf32>
      %135 = arith.divf %133, %134 : vector<8x128xf32>
      %136 = vector.extract_strided_slice %123 {offsets = [0, 256], sizes = [8, 128], strides = [1, 1]} : vector<8x512xf32> to vector<8x128xf32>
      %137 = math.tanh %136 : vector<8x128xf32>
      %138 = vector.extract_strided_slice %123 {offsets = [0, 384], sizes = [8, 128], strides = [1, 1]} : vector<8x512xf32> to vector<8x128xf32>
      %139 = arith.negf %138 : vector<8x128xf32>
      %140 = math.exp %139 : vector<8x128xf32>
      %cst_62 = arith.constant 1.000000e+00 : f32
      %141 = vector.broadcast %cst_62 : f32 to vector<8x128xf32>
      %142 = arith.addf %141, %140 : vector<8x128xf32>
      %143 = arith.divf %141, %142 : vector<8x128xf32>
      %c0_63 = arith.constant 0 : index
      %c0_64 = arith.constant 0 : index
      %144 = vector.load %arg9[%c0_63, %c0_64] : memref<8x128xf32, #tpu.memory_space<vmem>>, vector<8x128xf32>
      %145 = arith.mulf %135, %144 : vector<8x128xf32>
      %146 = arith.mulf %129, %137 : vector<8x128xf32>
      %147 = arith.addf %145, %146 : vector<8x128xf32>
      %148 = math.tanh %147 : vector<8x128xf32>
      %149 = arith.mulf %143, %148 : vector<8x128xf32>
      %cst_65 = arith.constant 0.000000e+00 : f32
      %150 = vector.broadcast %cst_65 : f32 to vector<8x128xf32>
      %151 = arith.select %116, %149, %150 : vector<8x128xi1>, vector<8x128xf32>
      %c2_66 = arith.constant 2 : index
      %c0_67 = arith.constant 0 : index
      %c0_68 = arith.constant 0 : index
      %152 = vector.load %arg5[%c2_66, %c0_67, %c0_68] : memref<16x8x128xf32, #tpu.memory_space<vmem>>, vector<1x8x128xf32>
      %153 = vector.shape_cast %152 : vector<1x8x128xf32> to vector<8x128xf32>
      %154 = vector.shape_cast %151 : vector<8x128xf32> to vector<1x8x128xf32>
      tpu.vector_store %arg5[%c2_66, %c0_67, %c0_68], %154 {strides = array<i32>} : memref<16x8x128xf32, #tpu.memory_space<vmem>>, vector<1x8x128xf32>,
      %c0_69 = arith.constant 0 : index
      %c0_70 = arith.constant 0 : index
      %155 = vector.load %arg8[%c0_69, %c0_70] : memref<8x128xf32, #tpu.memory_space<vmem>>, vector<8x128xf32>
      %156 = arith.select %116, %149, %155 : vector<8x128xi1>, vector<8x128xf32>
      %c0_71 = arith.constant 0 : index
      %c0_72 = arith.constant 0 : index
      %157 = vector.load %arg8[%c0_71, %c0_72] : memref<8x128xf32, #tpu.memory_space<vmem>>, vector<8x128xf32>
      tpu.vector_store %arg8[%c0_71, %c0_72], %156 {strides = array<i32>} : memref<8x128xf32, #tpu.memory_space<vmem>>, vector<8x128xf32>,
      %c0_73 = arith.constant 0 : index
      %c0_74 = arith.constant 0 : index
      %158 = vector.load %arg9[%c0_73, %c0_74] : memref<8x128xf32, #tpu.memory_space<vmem>>, vector<8x128xf32>
      %159 = arith.select %116, %147, %158 : vector<8x128xi1>, vector<8x128xf32>
      %c0_75 = arith.constant 0 : index
      %c0_76 = arith.constant 0 : index
      %160 = vector.load %arg9[%c0_75, %c0_76] : memref<8x128xf32, #tpu.memory_space<vmem>>, vector<8x128xf32>
      tpu.vector_store %arg9[%c0_75, %c0_76], %159 {strides = array<i32>} : memref<8x128xf32, #tpu.memory_space<vmem>>, vector<8x128xf32>,
      %c3_i32 = arith.constant 3 : i32
      %161 = vector.broadcast %c3_i32 : i32 to vector<8x1xi32>
      %162 = arith.cmpi sgt, %16, %161 : vector<8x1xi32>
      %163 = vector.shape_cast %162 : vector<8x1xi1> to vector<8x1xi1>
      %164 = vector.broadcast %163 : vector<8x1xi1> to vector<8x128xi1>
      %c3 = arith.constant 3 : index
      %c0_77 = arith.constant 0 : index
      %c0_78 = arith.constant 0 : index
      %165 = vector.load %arg3[%c3, %c0_77, %c0_78] : memref<16x8x512xbf16, #tpu.memory_space<vmem>>, vector<1x8x512xbf16>
      %166 = vector.shape_cast %165 : vector<1x8x512xbf16> to vector<8x512xbf16>
      %167 = arith.extf %166 : vector<8x512xbf16> to vector<8x512xf32>
      %c0_79 = arith.constant 0 : index
      %c0_80 = arith.constant 0 : index
      %168 = vector.load %arg8[%c0_79, %c0_80] : memref<8x128xf32, #tpu.memory_space<vmem>>, vector<8x128xf32>
      %169 = arith.truncf %168 : vector<8x128xf32> to vector<8x128xbf16>
      %cst_81 = arith.constant dense<0.000000e+00> : vector<8x512xf32>
      %170 = tpu.matmul %169, %3, %cst_81 {dimension_numbers = #tpu.dot_dimension_numbers<[1], [0], [0], [1], [0, 0, 1, 1], [], []>} : vector<8x128xbf16>, vector<128x512xbf16>, vector<8x512xf32> -> vector<8x512xf32>
      %171 = arith.addf %167, %170 : vector<8x512xf32>
      %172 = vector.extract_strided_slice %171 {offsets = [0, 0], sizes = [8, 128], strides = [1, 1]} : vector<8x512xf32> to vector<8x128xf32>
      %173 = arith.negf %172 : vector<8x128xf32>
      %174 = math.exp %173 : vector<8x128xf32>
      %cst_82 = arith.constant 1.000000e+00 : f32
      %175 = vector.broadcast %cst_82 : f32 to vector<8x128xf32>
      %176 = arith.addf %175, %174 : vector<8x128xf32>
      %177 = arith.divf %175, %176 : vector<8x128xf32>
      %178 = vector.extract_strided_slice %171 {offsets = [0, 128], sizes = [8, 128], strides = [1, 1]} : vector<8x512xf32> to vector<8x128xf32>
      %179 = arith.negf %178 : vector<8x128xf32>
      %180 = math.exp %179 : vector<8x128xf32>
      %cst_83 = arith.constant 1.000000e+00 : f32
      %181 = vector.broadcast %cst_83 : f32 to vector<8x128xf32>
      %182 = arith.addf %181, %180 : vector<8x128xf32>
      %183 = arith.divf %181, %182 : vector<8x128xf32>
      %184 = vector.extract_strided_slice %171 {offsets = [0, 256], sizes = [8, 128], strides = [1, 1]} : vector<8x512xf32> to vector<8x128xf32>
      %185 = math.tanh %184 : vector<8x128xf32>
      %186 = vector.extract_strided_slice %171 {offsets = [0, 384], sizes = [8, 128], strides = [1, 1]} : vector<8x512xf32> to vector<8x128xf32>
      %187 = arith.negf %186 : vector<8x128xf32>
      %188 = math.exp %187 : vector<8x128xf32>
      %cst_84 = arith.constant 1.000000e+00 : f32
      %189 = vector.broadcast %cst_84 : f32 to vector<8x128xf32>
      %190 = arith.addf %189, %188 : vector<8x128xf32>
      %191 = arith.divf %189, %190 : vector<8x128xf32>
      %c0_85 = arith.constant 0 : index
      %c0_86 = arith.constant 0 : index
      %192 = vector.load %arg9[%c0_85, %c0_86] : memref<8x128xf32, #tpu.memory_space<vmem>>, vector<8x128xf32>
      %193 = arith.mulf %183, %192 : vector<8x128xf32>
      %194 = arith.mulf %177, %185 : vector<8x128xf32>
      %195 = arith.addf %193, %194 : vector<8x128xf32>
      %196 = math.tanh %195 : vector<8x128xf32>
      %197 = arith.mulf %191, %196 : vector<8x128xf32>
      %cst_87 = arith.constant 0.000000e+00 : f32
      %198 = vector.broadcast %cst_87 : f32 to vector<8x128xf32>
      %199 = arith.select %164, %197, %198 : vector<8x128xi1>, vector<8x128xf32>
      %c3_88 = arith.constant 3 : index
      %c0_89 = arith.constant 0 : index
      %c0_90 = arith.constant 0 : index
      %200 = vector.load %arg5[%c3_88, %c0_89, %c0_90] : memref<16x8x128xf32, #tpu.memory_space<vmem>>, vector<1x8x128xf32>
      %201 = vector.shape_cast %200 : vector<1x8x128xf32> to vector<8x128xf32>
      %202 = vector.shape_cast %199 : vector<8x128xf32> to vector<1x8x128xf32>
      tpu.vector_store %arg5[%c3_88, %c0_89, %c0_90], %202 {strides = array<i32>} : memref<16x8x128xf32, #tpu.memory_space<vmem>>, vector<1x8x128xf32>,
      %c0_91 = arith.constant 0 : index
      %c0_92 = arith.constant 0 : index
      %203 = vector.load %arg8[%c0_91, %c0_92] : memref<8x128xf32, #tpu.memory_space<vmem>>, vector<8x128xf32>
      %204 = arith.select %164, %197, %203 : vector<8x128xi1>, vector<8x128xf32>
      %c0_93 = arith.constant 0 : index
      %c0_94 = arith.constant 0 : index
      %205 = vector.load %arg8[%c0_93, %c0_94] : memref<8x128xf32, #tpu.memory_space<vmem>>, vector<8x128xf32>
      tpu.vector_store %arg8[%c0_93, %c0_94], %204 {strides = array<i32>} : memref<8x128xf32, #tpu.memory_space<vmem>>, vector<8x128xf32>,
      %c0_95 = arith.constant 0 : index
      %c0_96 = arith.constant 0 : index
      %206 = vector.load %arg9[%c0_95, %c0_96] : memref<8x128xf32, #tpu.memory_space<vmem>>, vector<8x128xf32>
      %207 = arith.select %164, %195, %206 : vector<8x128xi1>, vector<8x128xf32>
      %c0_97 = arith.constant 0 : index
      %c0_98 = arith.constant 0 : index
      %208 = vector.load %arg9[%c0_97, %c0_98] : memref<8x128xf32, #tpu.memory_space<vmem>>, vector<8x128xf32>
      tpu.vector_store %arg9[%c0_97, %c0_98], %207 {strides = array<i32>} : memref<8x128xf32, #tpu.memory_space<vmem>>, vector<8x128xf32>,
      %c4_i32 = arith.constant 4 : i32
      %209 = vector.broadcast %c4_i32 : i32 to vector<8x1xi32>
      %210 = arith.cmpi sgt, %16, %209 : vector<8x1xi32>
      %211 = vector.shape_cast %210 : vector<8x1xi1> to vector<8x1xi1>
      %212 = vector.broadcast %211 : vector<8x1xi1> to vector<8x128xi1>
      %c4 = arith.constant 4 : index
      %c0_99 = arith.constant 0 : index
      %c0_100 = arith.constant 0 : index
      %213 = vector.load %arg3[%c4, %c0_99, %c0_100] : memref<16x8x512xbf16, #tpu.memory_space<vmem>>, vector<1x8x512xbf16>
      %214 = vector.shape_cast %213 : vector<1x8x512xbf16> to vector<8x512xbf16>
      %215 = arith.extf %214 : vector<8x512xbf16> to vector<8x512xf32>
      %c0_101 = arith.constant 0 : index
      %c0_102 = arith.constant 0 : index
      %216 = vector.load %arg8[%c0_101, %c0_102] : memref<8x128xf32, #tpu.memory_space<vmem>>, vector<8x128xf32>
      %217 = arith.truncf %216 : vector<8x128xf32> to vector<8x128xbf16>
      %cst_103 = arith.constant dense<0.000000e+00> : vector<8x512xf32>
      %218 = tpu.matmul %217, %3, %cst_103 {dimension_numbers = #tpu.dot_dimension_numbers<[1], [0], [0], [1], [0, 0, 1, 1], [], []>} : vector<8x128xbf16>, vector<128x512xbf16>, vector<8x512xf32> -> vector<8x512xf32>
      %219 = arith.addf %215, %218 : vector<8x512xf32>
      %220 = vector.extract_strided_slice %219 {offsets = [0, 0], sizes = [8, 128], strides = [1, 1]} : vector<8x512xf32> to vector<8x128xf32>
      %221 = arith.negf %220 : vector<8x128xf32>
      %222 = math.exp %221 : vector<8x128xf32>
      %cst_104 = arith.constant 1.000000e+00 : f32
      %223 = vector.broadcast %cst_104 : f32 to vector<8x128xf32>
      %224 = arith.addf %223, %222 : vector<8x128xf32>
      %225 = arith.divf %223, %224 : vector<8x128xf32>
      %226 = vector.extract_strided_slice %219 {offsets = [0, 128], sizes = [8, 128], strides = [1, 1]} : vector<8x512xf32> to vector<8x128xf32>
      %227 = arith.negf %226 : vector<8x128xf32>
      %228 = math.exp %227 : vector<8x128xf32>
      %cst_105 = arith.constant 1.000000e+00 : f32
      %229 = vector.broadcast %cst_105 : f32 to vector<8x128xf32>
      %230 = arith.addf %229, %228 : vector<8x128xf32>
      %231 = arith.divf %229, %230 : vector<8x128xf32>
      %232 = vector.extract_strided_slice %219 {offsets = [0, 256], sizes = [8, 128], strides = [1, 1]} : vector<8x512xf32> to vector<8x128xf32>
      %233 = math.tanh %232 : vector<8x128xf32>
      %234 = vector.extract_strided_slice %219 {offsets = [0, 384], sizes = [8, 128], strides = [1, 1]} : vector<8x512xf32> to vector<8x128xf32>
      %235 = arith.negf %234 : vector<8x128xf32>
      %236 = math.exp %235 : vector<8x128xf32>
      %cst_106 = arith.constant 1.000000e+00 : f32
      %237 = vector.broadcast %cst_106 : f32 to vector<8x128xf32>
      %238 = arith.addf %237, %236 : vector<8x128xf32>
      %239 = arith.divf %237, %238 : vector<8x128xf32>
      %c0_107 = arith.constant 0 : index
      %c0_108 = arith.constant 0 : index
      %240 = vector.load %arg9[%c0_107, %c0_108] : memref<8x128xf32, #tpu.memory_space<vmem>>, vector<8x128xf32>
      %241 = arith.mulf %231, %240 : vector<8x128xf32>
      %242 = arith.mulf %225, %233 : vector<8x128xf32>
      %243 = arith.addf %241, %242 : vector<8x128xf32>
      %244 = math.tanh %243 : vector<8x128xf32>
      %245 = arith.mulf %239, %244 : vector<8x128xf32>
      %cst_109 = arith.constant 0.000000e+00 : f32
      %246 = vector.broadcast %cst_109 : f32 to vector<8x128xf32>
      %247 = arith.select %212, %245, %246 : vector<8x128xi1>, vector<8x128xf32>
      %c4_110 = arith.constant 4 : index
      %c0_111 = arith.constant 0 : index
      %c0_112 = arith.constant 0 : index
      %248 = vector.load %arg5[%c4_110, %c0_111, %c0_112] : memref<16x8x128xf32, #tpu.memory_space<vmem>>, vector<1x8x128xf32>
      %249 = vector.shape_cast %248 : vector<1x8x128xf32> to vector<8x128xf32>
      %250 = vector.shape_cast %247 : vector<8x128xf32> to vector<1x8x128xf32>
      tpu.vector_store %arg5[%c4_110, %c0_111, %c0_112], %250 {strides = array<i32>} : memref<16x8x128xf32, #tpu.memory_space<vmem>>, vector<1x8x128xf32>,
      %c0_113 = arith.constant 0 : index
      %c0_114 = arith.constant 0 : index
      %251 = vector.load %arg8[%c0_113, %c0_114] : memref<8x128xf32, #tpu.memory_space<vmem>>, vector<8x128xf32>
      %252 = arith.select %212, %245, %251 : vector<8x128xi1>, vector<8x128xf32>
      %c0_115 = arith.constant 0 : index
      %c0_116 = arith.constant 0 : index
      %253 = vector.load %arg8[%c0_115, %c0_116] : memref<8x128xf32, #tpu.memory_space<vmem>>, vector<8x128xf32>
      tpu.vector_store %arg8[%c0_115, %c0_116], %252 {strides = array<i32>} : memref<8x128xf32, #tpu.memory_space<vmem>>, vector<8x128xf32>,
      %c0_117 = arith.constant 0 : index
      %c0_118 = arith.constant 0 : index
      %254 = vector.load %arg9[%c0_117, %c0_118] : memref<8x128xf32, #tpu.memory_space<vmem>>, vector<8x128xf32>
      %255 = arith.select %212, %243, %254 : vector<8x128xi1>, vector<8x128xf32>
      %c0_119 = arith.constant 0 : index
      %c0_120 = arith.constant 0 : index
      %256 = vector.load %arg9[%c0_119, %c0_120] : memref<8x128xf32, #tpu.memory_space<vmem>>, vector<8x128xf32>
      tpu.vector_store %arg9[%c0_119, %c0_120], %255 {strides = array<i32>} : memref<8x128xf32, #tpu.memory_space<vmem>>, vector<8x128xf32>,
      %c5_i32 = arith.constant 5 : i32
      %257 = vector.broadcast %c5_i32 : i32 to vector<8x1xi32>
      %258 = arith.cmpi sgt, %16, %257 : vector<8x1xi32>
      %259 = vector.shape_cast %258 : vector<8x1xi1> to vector<8x1xi1>
      %260 = vector.broadcast %259 : vector<8x1xi1> to vector<8x128xi1>
      %c5 = arith.constant 5 : index
      %c0_121 = arith.constant 0 : index
      %c0_122 = arith.constant 0 : index
      %261 = vector.load %arg3[%c5, %c0_121, %c0_122] : memref<16x8x512xbf16, #tpu.memory_space<vmem>>, vector<1x8x512xbf16>
      %262 = vector.shape_cast %261 : vector<1x8x512xbf16> to vector<8x512xbf16>
      %263 = arith.extf %262 : vector<8x512xbf16> to vector<8x512xf32>
      %c0_123 = arith.constant 0 : index
      %c0_124 = arith.constant 0 : index
      %264 = vector.load %arg8[%c0_123, %c0_124] : memref<8x128xf32, #tpu.memory_space<vmem>>, vector<8x128xf32>
      %265 = arith.truncf %264 : vector<8x128xf32> to vector<8x128xbf16>
      %cst_125 = arith.constant dense<0.000000e+00> : vector<8x512xf32>
      %266 = tpu.matmul %265, %3, %cst_125 {dimension_numbers = #tpu.dot_dimension_numbers<[1], [0], [0], [1], [0, 0, 1, 1], [], []>} : vector<8x128xbf16>, vector<128x512xbf16>, vector<8x512xf32> -> vector<8x512xf32>
      %267 = arith.addf %263, %266 : vector<8x512xf32>
      %268 = vector.extract_strided_slice %267 {offsets = [0, 0], sizes = [8, 128], strides = [1, 1]} : vector<8x512xf32> to vector<8x128xf32>
      %269 = arith.negf %268 : vector<8x128xf32>
      %270 = math.exp %269 : vector<8x128xf32>
      %cst_126 = arith.constant 1.000000e+00 : f32
      %271 = vector.broadcast %cst_126 : f32 to vector<8x128xf32>
      %272 = arith.addf %271, %270 : vector<8x128xf32>
      %273 = arith.divf %271, %272 : vector<8x128xf32>
      %274 = vector.extract_strided_slice %267 {offsets = [0, 128], sizes = [8, 128], strides = [1, 1]} : vector<8x512xf32> to vector<8x128xf32>
      %275 = arith.negf %274 : vector<8x128xf32>
      %276 = math.exp %275 : vector<8x128xf32>
      %cst_127 = arith.constant 1.000000e+00 : f32
      %277 = vector.broadcast %cst_127 : f32 to vector<8x128xf32>
      %278 = arith.addf %277, %276 : vector<8x128xf32>
      %279 = arith.divf %277, %278 : vector<8x128xf32>
      %280 = vector.extract_strided_slice %267 {offsets = [0, 256], sizes = [8, 128], strides = [1, 1]} : vector<8x512xf32> to vector<8x128xf32>
      %281 = math.tanh %280 : vector<8x128xf32>
      %282 = vector.extract_strided_slice %267 {offsets = [0, 384], sizes = [8, 128], strides = [1, 1]} : vector<8x512xf32> to vector<8x128xf32>
      %283 = arith.negf %282 : vector<8x128xf32>
      %284 = math.exp %283 : vector<8x128xf32>
      %cst_128 = arith.constant 1.000000e+00 : f32
      %285 = vector.broadcast %cst_128 : f32 to vector<8x128xf32>
      %286 = arith.addf %285, %284 : vector<8x128xf32>
      %287 = arith.divf %285, %286 : vector<8x128xf32>
      %c0_129 = arith.constant 0 : index
      %c0_130 = arith.constant 0 : index
      %288 = vector.load %arg9[%c0_129, %c0_130] : memref<8x128xf32, #tpu.memory_space<vmem>>, vector<8x128xf32>
      %289 = arith.mulf %279, %288 : vector<8x128xf32>
      %290 = arith.mulf %273, %281 : vector<8x128xf32>
      %291 = arith.addf %289, %290 : vector<8x128xf32>
      %292 = math.tanh %291 : vector<8x128xf32>
      %293 = arith.mulf %287, %292 : vector<8x128xf32>
      %cst_131 = arith.constant 0.000000e+00 : f32
      %294 = vector.broadcast %cst_131 : f32 to vector<8x128xf32>
      %295 = arith.select %260, %293, %294 : vector<8x128xi1>, vector<8x128xf32>
      %c5_132 = arith.constant 5 : index
      %c0_133 = arith.constant 0 : index
      %c0_134 = arith.constant 0 : index
      %296 = vector.load %arg5[%c5_132, %c0_133, %c0_134] : memref<16x8x128xf32, #tpu.memory_space<vmem>>, vector<1x8x128xf32>
      %297 = vector.shape_cast %296 : vector<1x8x128xf32> to vector<8x128xf32>
      %298 = vector.shape_cast %295 : vector<8x128xf32> to vector<1x8x128xf32>
      tpu.vector_store %arg5[%c5_132, %c0_133, %c0_134], %298 {strides = array<i32>} : memref<16x8x128xf32, #tpu.memory_space<vmem>>, vector<1x8x128xf32>,
      %c0_135 = arith.constant 0 : index
      %c0_136 = arith.constant 0 : index
      %299 = vector.load %arg8[%c0_135, %c0_136] : memref<8x128xf32, #tpu.memory_space<vmem>>, vector<8x128xf32>
      %300 = arith.select %260, %293, %299 : vector<8x128xi1>, vector<8x128xf32>
      %c0_137 = arith.constant 0 : index
      %c0_138 = arith.constant 0 : index
      %301 = vector.load %arg8[%c0_137, %c0_138] : memref<8x128xf32, #tpu.memory_space<vmem>>, vector<8x128xf32>
      tpu.vector_store %arg8[%c0_137, %c0_138], %300 {strides = array<i32>} : memref<8x128xf32, #tpu.memory_space<vmem>>, vector<8x128xf32>,
      %c0_139 = arith.constant 0 : index
      %c0_140 = arith.constant 0 : index
      %302 = vector.load %arg9[%c0_139, %c0_140] : memref<8x128xf32, #tpu.memory_space<vmem>>, vector<8x128xf32>
      %303 = arith.select %260, %291, %302 : vector<8x128xi1>, vector<8x128xf32>
      %c0_141 = arith.constant 0 : index
      %c0_142 = arith.constant 0 : index
      %304 = vector.load %arg9[%c0_141, %c0_142] : memref<8x128xf32, #tpu.memory_space<vmem>>, vector<8x128xf32>
      tpu.vector_store %arg9[%c0_141, %c0_142], %303 {strides = array<i32>} : memref<8x128xf32, #tpu.memory_space<vmem>>, vector<8x128xf32>,
      %c6_i32 = arith.constant 6 : i32
      %305 = vector.broadcast %c6_i32 : i32 to vector<8x1xi32>
      %306 = arith.cmpi sgt, %16, %305 : vector<8x1xi32>
      %307 = vector.shape_cast %306 : vector<8x1xi1> to vector<8x1xi1>
      %308 = vector.broadcast %307 : vector<8x1xi1> to vector<8x128xi1>
      %c6 = arith.constant 6 : index
      %c0_143 = arith.constant 0 : index
      %c0_144 = arith.constant 0 : index
      %309 = vector.load %arg3[%c6, %c0_143, %c0_144] : memref<16x8x512xbf16, #tpu.memory_space<vmem>>, vector<1x8x512xbf16>
      %310 = vector.shape_cast %309 : vector<1x8x512xbf16> to vector<8x512xbf16>
      %311 = arith.extf %310 : vector<8x512xbf16> to vector<8x512xf32>
      %c0_145 = arith.constant 0 : index
      %c0_146 = arith.constant 0 : index
      %312 = vector.load %arg8[%c0_145, %c0_146] : memref<8x128xf32, #tpu.memory_space<vmem>>, vector<8x128xf32>
      %313 = arith.truncf %312 : vector<8x128xf32> to vector<8x128xbf16>
      %cst_147 = arith.constant dense<0.000000e+00> : vector<8x512xf32>
      %314 = tpu.matmul %313, %3, %cst_147 {dimension_numbers = #tpu.dot_dimension_numbers<[1], [0], [0], [1], [0, 0, 1, 1], [], []>} : vector<8x128xbf16>, vector<128x512xbf16>, vector<8x512xf32> -> vector<8x512xf32>
      %315 = arith.addf %311, %314 : vector<8x512xf32>
      %316 = vector.extract_strided_slice %315 {offsets = [0, 0], sizes = [8, 128], strides = [1, 1]} : vector<8x512xf32> to vector<8x128xf32>
      %317 = arith.negf %316 : vector<8x128xf32>
      %318 = math.exp %317 : vector<8x128xf32>
      %cst_148 = arith.constant 1.000000e+00 : f32
      %319 = vector.broadcast %cst_148 : f32 to vector<8x128xf32>
      %320 = arith.addf %319, %318 : vector<8x128xf32>
      %321 = arith.divf %319, %320 : vector<8x128xf32>
      %322 = vector.extract_strided_slice %315 {offsets = [0, 128], sizes = [8, 128], strides = [1, 1]} : vector<8x512xf32> to vector<8x128xf32>
      %323 = arith.negf %322 : vector<8x128xf32>
      %324 = math.exp %323 : vector<8x128xf32>
      %cst_149 = arith.constant 1.000000e+00 : f32
      %325 = vector.broadcast %cst_149 : f32 to vector<8x128xf32>
      %326 = arith.addf %325, %324 : vector<8x128xf32>
      %327 = arith.divf %325, %326 : vector<8x128xf32>
      %328 = vector.extract_strided_slice %315 {offsets = [0, 256], sizes = [8, 128], strides = [1, 1]} : vector<8x512xf32> to vector<8x128xf32>
      %329 = math.tanh %328 : vector<8x128xf32>
      %330 = vector.extract_strided_slice %315 {offsets = [0, 384], sizes = [8, 128], strides = [1, 1]} : vector<8x512xf32> to vector<8x128xf32>
      %331 = arith.negf %330 : vector<8x128xf32>
      %332 = math.exp %331 : vector<8x128xf32>
      %cst_150 = arith.constant 1.000000e+00 : f32
      %333 = vector.broadcast %cst_150 : f32 to vector<8x128xf32>
      %334 = arith.addf %333, %332 : vector<8x128xf32>
      %335 = arith.divf %333, %334 : vector<8x128xf32>
      %c0_151 = arith.constant 0 : index
      %c0_152 = arith.constant 0 : index
      %336 = vector.load %arg9[%c0_151, %c0_152] : memref<8x128xf32, #tpu.memory_space<vmem>>, vector<8x128xf32>
      %337 = arith.mulf %327, %336 : vector<8x128xf32>
      %338 = arith.mulf %321, %329 : vector<8x128xf32>
      %339 = arith.addf %337, %338 : vector<8x128xf32>
      %340 = math.tanh %339 : vector<8x128xf32>
      %341 = arith.mulf %335, %340 : vector<8x128xf32>
      %cst_153 = arith.constant 0.000000e+00 : f32
      %342 = vector.broadcast %cst_153 : f32 to vector<8x128xf32>
      %343 = arith.select %308, %341, %342 : vector<8x128xi1>, vector<8x128xf32>
      %c6_154 = arith.constant 6 : index
      %c0_155 = arith.constant 0 : index
      %c0_156 = arith.constant 0 : index
      %344 = vector.load %arg5[%c6_154, %c0_155, %c0_156] : memref<16x8x128xf32, #tpu.memory_space<vmem>>, vector<1x8x128xf32>
      %345 = vector.shape_cast %344 : vector<1x8x128xf32> to vector<8x128xf32>
      %346 = vector.shape_cast %343 : vector<8x128xf32> to vector<1x8x128xf32>
      tpu.vector_store %arg5[%c6_154, %c0_155, %c0_156], %346 {strides = array<i32>} : memref<16x8x128xf32, #tpu.memory_space<vmem>>, vector<1x8x128xf32>,
      %c0_157 = arith.constant 0 : index
      %c0_158 = arith.constant 0 : index
      %347 = vector.load %arg8[%c0_157, %c0_158] : memref<8x128xf32, #tpu.memory_space<vmem>>, vector<8x128xf32>
      %348 = arith.select %308, %341, %347 : vector<8x128xi1>, vector<8x128xf32>
      %c0_159 = arith.constant 0 : index
      %c0_160 = arith.constant 0 : index
      %349 = vector.load %arg8[%c0_159, %c0_160] : memref<8x128xf32, #tpu.memory_space<vmem>>, vector<8x128xf32>
      tpu.vector_store %arg8[%c0_159, %c0_160], %348 {strides = array<i32>} : memref<8x128xf32, #tpu.memory_space<vmem>>, vector<8x128xf32>,
      %c0_161 = arith.constant 0 : index
      %c0_162 = arith.constant 0 : index
      %350 = vector.load %arg9[%c0_161, %c0_162] : memref<8x128xf32, #tpu.memory_space<vmem>>, vector<8x128xf32>
      %351 = arith.select %308, %339, %350 : vector<8x128xi1>, vector<8x128xf32>
      %c0_163 = arith.constant 0 : index
      %c0_164 = arith.constant 0 : index
      %352 = vector.load %arg9[%c0_163, %c0_164] : memref<8x128xf32, #tpu.memory_space<vmem>>, vector<8x128xf32>
      tpu.vector_store %arg9[%c0_163, %c0_164], %351 {strides = array<i32>} : memref<8x128xf32, #tpu.memory_space<vmem>>, vector<8x128xf32>,
      %c7_i32 = arith.constant 7 : i32
      %353 = vector.broadcast %c7_i32 : i32 to vector<8x1xi32>
      %354 = arith.cmpi sgt, %16, %353 : vector<8x1xi32>
      %355 = vector.shape_cast %354 : vector<8x1xi1> to vector<8x1xi1>
      %356 = vector.broadcast %355 : vector<8x1xi1> to vector<8x128xi1>
      %c7 = arith.constant 7 : index
      %c0_165 = arith.constant 0 : index
      %c0_166 = arith.constant 0 : index
      %357 = vector.load %arg3[%c7, %c0_165, %c0_166] : memref<16x8x512xbf16, #tpu.memory_space<vmem>>, vector<1x8x512xbf16>
      %358 = vector.shape_cast %357 : vector<1x8x512xbf16> to vector<8x512xbf16>
      %359 = arith.extf %358 : vector<8x512xbf16> to vector<8x512xf32>
      %c0_167 = arith.constant 0 : index
      %c0_168 = arith.constant 0 : index
      %360 = vector.load %arg8[%c0_167, %c0_168] : memref<8x128xf32, #tpu.memory_space<vmem>>, vector<8x128xf32>
      %361 = arith.truncf %360 : vector<8x128xf32> to vector<8x128xbf16>
      %cst_169 = arith.constant dense<0.000000e+00> : vector<8x512xf32>
      %362 = tpu.matmul %361, %3, %cst_169 {dimension_numbers = #tpu.dot_dimension_numbers<[1], [0], [0], [1], [0, 0, 1, 1], [], []>} : vector<8x128xbf16>, vector<128x512xbf16>, vector<8x512xf32> -> vector<8x512xf32>
      %363 = arith.addf %359, %362 : vector<8x512xf32>
      %364 = vector.extract_strided_slice %363 {offsets = [0, 0], sizes = [8, 128], strides = [1, 1]} : vector<8x512xf32> to vector<8x128xf32>
      %365 = arith.negf %364 : vector<8x128xf32>
      %366 = math.exp %365 : vector<8x128xf32>
      %cst_170 = arith.constant 1.000000e+00 : f32
      %367 = vector.broadcast %cst_170 : f32 to vector<8x128xf32>
      %368 = arith.addf %367, %366 : vector<8x128xf32>
      %369 = arith.divf %367, %368 : vector<8x128xf32>
      %370 = vector.extract_strided_slice %363 {offsets = [0, 128], sizes = [8, 128], strides = [1, 1]} : vector<8x512xf32> to vector<8x128xf32>
      %371 = arith.negf %370 : vector<8x128xf32>
      %372 = math.exp %371 : vector<8x128xf32>
      %cst_171 = arith.constant 1.000000e+00 : f32
      %373 = vector.broadcast %cst_171 : f32 to vector<8x128xf32>
      %374 = arith.addf %373, %372 : vector<8x128xf32>
      %375 = arith.divf %373, %374 : vector<8x128xf32>
      %376 = vector.extract_strided_slice %363 {offsets = [0, 256], sizes = [8, 128], strides = [1, 1]} : vector<8x512xf32> to vector<8x128xf32>
      %377 = math.tanh %376 : vector<8x128xf32>
      %378 = vector.extract_strided_slice %363 {offsets = [0, 384], sizes = [8, 128], strides = [1, 1]} : vector<8x512xf32> to vector<8x128xf32>
      %379 = arith.negf %378 : vector<8x128xf32>
      %380 = math.exp %379 : vector<8x128xf32>
      %cst_172 = arith.constant 1.000000e+00 : f32
      %381 = vector.broadcast %cst_172 : f32 to vector<8x128xf32>
      %382 = arith.addf %381, %380 : vector<8x128xf32>
      %383 = arith.divf %381, %382 : vector<8x128xf32>
      %c0_173 = arith.constant 0 : index
      %c0_174 = arith.constant 0 : index
      %384 = vector.load %arg9[%c0_173, %c0_174] : memref<8x128xf32, #tpu.memory_space<vmem>>, vector<8x128xf32>
      %385 = arith.mulf %375, %384 : vector<8x128xf32>
      %386 = arith.mulf %369, %377 : vector<8x128xf32>
      %387 = arith.addf %385, %386 : vector<8x128xf32>
      %388 = math.tanh %387 : vector<8x128xf32>
      %389 = arith.mulf %383, %388 : vector<8x128xf32>
      %cst_175 = arith.constant 0.000000e+00 : f32
      %390 = vector.broadcast %cst_175 : f32 to vector<8x128xf32>
      %391 = arith.select %356, %389, %390 : vector<8x128xi1>, vector<8x128xf32>
      %c7_176 = arith.constant 7 : index
      %c0_177 = arith.constant 0 : index
      %c0_178 = arith.constant 0 : index
      %392 = vector.load %arg5[%c7_176, %c0_177, %c0_178] : memref<16x8x128xf32, #tpu.memory_space<vmem>>, vector<1x8x128xf32>
      %393 = vector.shape_cast %392 : vector<1x8x128xf32> to vector<8x128xf32>
      %394 = vector.shape_cast %391 : vector<8x128xf32> to vector<1x8x128xf32>
      tpu.vector_store %arg5[%c7_176, %c0_177, %c0_178], %394 {strides = array<i32>} : memref<16x8x128xf32, #tpu.memory_space<vmem>>, vector<1x8x128xf32>,
      %c0_179 = arith.constant 0 : index
      %c0_180 = arith.constant 0 : index
      %395 = vector.load %arg8[%c0_179, %c0_180] : memref<8x128xf32, #tpu.memory_space<vmem>>, vector<8x128xf32>
      %396 = arith.select %356, %389, %395 : vector<8x128xi1>, vector<8x128xf32>
      %c0_181 = arith.constant 0 : index
      %c0_182 = arith.constant 0 : index
      %397 = vector.load %arg8[%c0_181, %c0_182] : memref<8x128xf32, #tpu.memory_space<vmem>>, vector<8x128xf32>
      tpu.vector_store %arg8[%c0_181, %c0_182], %396 {strides = array<i32>} : memref<8x128xf32, #tpu.memory_space<vmem>>, vector<8x128xf32>,
      %c0_183 = arith.constant 0 : index
      %c0_184 = arith.constant 0 : index
      %398 = vector.load %arg9[%c0_183, %c0_184] : memref<8x128xf32, #tpu.memory_space<vmem>>, vector<8x128xf32>
      %399 = arith.select %356, %387, %398 : vector<8x128xi1>, vector<8x128xf32>
      %c0_185 = arith.constant 0 : index
      %c0_186 = arith.constant 0 : index
      %400 = vector.load %arg9[%c0_185, %c0_186] : memref<8x128xf32, #tpu.memory_space<vmem>>, vector<8x128xf32>
      tpu.vector_store %arg9[%c0_185, %c0_186], %399 {strides = array<i32>} : memref<8x128xf32, #tpu.memory_space<vmem>>, vector<8x128xf32>,
      %c8_i32 = arith.constant 8 : i32
      %401 = vector.broadcast %c8_i32 : i32 to vector<8x1xi32>
      %402 = arith.cmpi sgt, %16, %401 : vector<8x1xi32>
      %403 = vector.shape_cast %402 : vector<8x1xi1> to vector<8x1xi1>
      %404 = vector.broadcast %403 : vector<8x1xi1> to vector<8x128xi1>
      %c8 = arith.constant 8 : index
      %c0_187 = arith.constant 0 : index
      %c0_188 = arith.constant 0 : index
      %405 = vector.load %arg3[%c8, %c0_187, %c0_188] : memref<16x8x512xbf16, #tpu.memory_space<vmem>>, vector<1x8x512xbf16>
      %406 = vector.shape_cast %405 : vector<1x8x512xbf16> to vector<8x512xbf16>
      %407 = arith.extf %406 : vector<8x512xbf16> to vector<8x512xf32>
      %c0_189 = arith.constant 0 : index
      %c0_190 = arith.constant 0 : index
      %408 = vector.load %arg8[%c0_189, %c0_190] : memref<8x128xf32, #tpu.memory_space<vmem>>, vector<8x128xf32>
      %409 = arith.truncf %408 : vector<8x128xf32> to vector<8x128xbf16>
      %cst_191 = arith.constant dense<0.000000e+00> : vector<8x512xf32>
      %410 = tpu.matmul %409, %3, %cst_191 {dimension_numbers = #tpu.dot_dimension_numbers<[1], [0], [0], [1], [0, 0, 1, 1], [], []>} : vector<8x128xbf16>, vector<128x512xbf16>, vector<8x512xf32> -> vector<8x512xf32>
      %411 = arith.addf %407, %410 : vector<8x512xf32>
      %412 = vector.extract_strided_slice %411 {offsets = [0, 0], sizes = [8, 128], strides = [1, 1]} : vector<8x512xf32> to vector<8x128xf32>
      %413 = arith.negf %412 : vector<8x128xf32>
      %414 = math.exp %413 : vector<8x128xf32>
      %cst_192 = arith.constant 1.000000e+00 : f32
      %415 = vector.broadcast %cst_192 : f32 to vector<8x128xf32>
      %416 = arith.addf %415, %414 : vector<8x128xf32>
      %417 = arith.divf %415, %416 : vector<8x128xf32>
      %418 = vector.extract_strided_slice %411 {offsets = [0, 128], sizes = [8, 128], strides = [1, 1]} : vector<8x512xf32> to vector<8x128xf32>
      %419 = arith.negf %418 : vector<8x128xf32>
      %420 = math.exp %419 : vector<8x128xf32>
      %cst_193 = arith.constant 1.000000e+00 : f32
      %421 = vector.broadcast %cst_193 : f32 to vector<8x128xf32>
      %422 = arith.addf %421, %420 : vector<8x128xf32>
      %423 = arith.divf %421, %422 : vector<8x128xf32>
      %424 = vector.extract_strided_slice %411 {offsets = [0, 256], sizes = [8, 128], strides = [1, 1]} : vector<8x512xf32> to vector<8x128xf32>
      %425 = math.tanh %424 : vector<8x128xf32>
      %426 = vector.extract_strided_slice %411 {offsets = [0, 384], sizes = [8, 128], strides = [1, 1]} : vector<8x512xf32> to vector<8x128xf32>
      %427 = arith.negf %426 : vector<8x128xf32>
      %428 = math.exp %427 : vector<8x128xf32>
      %cst_194 = arith.constant 1.000000e+00 : f32
      %429 = vector.broadcast %cst_194 : f32 to vector<8x128xf32>
      %430 = arith.addf %429, %428 : vector<8x128xf32>
      %431 = arith.divf %429, %430 : vector<8x128xf32>
      %c0_195 = arith.constant 0 : index
      %c0_196 = arith.constant 0 : index
      %432 = vector.load %arg9[%c0_195, %c0_196] : memref<8x128xf32, #tpu.memory_space<vmem>>, vector<8x128xf32>
      %433 = arith.mulf %423, %432 : vector<8x128xf32>
      %434 = arith.mulf %417, %425 : vector<8x128xf32>
      %435 = arith.addf %433, %434 : vector<8x128xf32>
      %436 = math.tanh %435 : vector<8x128xf32>
      %437 = arith.mulf %431, %436 : vector<8x128xf32>
      %cst_197 = arith.constant 0.000000e+00 : f32
      %438 = vector.broadcast %cst_197 : f32 to vector<8x128xf32>
      %439 = arith.select %404, %437, %438 : vector<8x128xi1>, vector<8x128xf32>
      %c8_198 = arith.constant 8 : index
      %c0_199 = arith.constant 0 : index
      %c0_200 = arith.constant 0 : index
      %440 = vector.load %arg5[%c8_198, %c0_199, %c0_200] : memref<16x8x128xf32, #tpu.memory_space<vmem>>, vector<1x8x128xf32>
      %441 = vector.shape_cast %440 : vector<1x8x128xf32> to vector<8x128xf32>
      %442 = vector.shape_cast %439 : vector<8x128xf32> to vector<1x8x128xf32>
      tpu.vector_store %arg5[%c8_198, %c0_199, %c0_200], %442 {strides = array<i32>} : memref<16x8x128xf32, #tpu.memory_space<vmem>>, vector<1x8x128xf32>,
      %c0_201 = arith.constant 0 : index
      %c0_202 = arith.constant 0 : index
      %443 = vector.load %arg8[%c0_201, %c0_202] : memref<8x128xf32, #tpu.memory_space<vmem>>, vector<8x128xf32>
      %444 = arith.select %404, %437, %443 : vector<8x128xi1>, vector<8x128xf32>
      %c0_203 = arith.constant 0 : index
      %c0_204 = arith.constant 0 : index
      %445 = vector.load %arg8[%c0_203, %c0_204] : memref<8x128xf32, #tpu.memory_space<vmem>>, vector<8x128xf32>
      tpu.vector_store %arg8[%c0_203, %c0_204], %444 {strides = array<i32>} : memref<8x128xf32, #tpu.memory_space<vmem>>, vector<8x128xf32>,
      %c0_205 = arith.constant 0 : index
      %c0_206 = arith.constant 0 : index
      %446 = vector.load %arg9[%c0_205, %c0_206] : memref<8x128xf32, #tpu.memory_space<vmem>>, vector<8x128xf32>
      %447 = arith.select %404, %435, %446 : vector<8x128xi1>, vector<8x128xf32>
      %c0_207 = arith.constant 0 : index
      %c0_208 = arith.constant 0 : index
      %448 = vector.load %arg9[%c0_207, %c0_208] : memref<8x128xf32, #tpu.memory_space<vmem>>, vector<8x128xf32>
      tpu.vector_store %arg9[%c0_207, %c0_208], %447 {strides = array<i32>} : memref<8x128xf32, #tpu.memory_space<vmem>>, vector<8x128xf32>,
      %c9_i32 = arith.constant 9 : i32
      %449 = vector.broadcast %c9_i32 : i32 to vector<8x1xi32>
      %450 = arith.cmpi sgt, %16, %449 : vector<8x1xi32>
      %451 = vector.shape_cast %450 : vector<8x1xi1> to vector<8x1xi1>
      %452 = vector.broadcast %451 : vector<8x1xi1> to vector<8x128xi1>
      %c9 = arith.constant 9 : index
      %c0_209 = arith.constant 0 : index
      %c0_210 = arith.constant 0 : index
      %453 = vector.load %arg3[%c9, %c0_209, %c0_210] : memref<16x8x512xbf16, #tpu.memory_space<vmem>>, vector<1x8x512xbf16>
      %454 = vector.shape_cast %453 : vector<1x8x512xbf16> to vector<8x512xbf16>
      %455 = arith.extf %454 : vector<8x512xbf16> to vector<8x512xf32>
      %c0_211 = arith.constant 0 : index
      %c0_212 = arith.constant 0 : index
      %456 = vector.load %arg8[%c0_211, %c0_212] : memref<8x128xf32, #tpu.memory_space<vmem>>, vector<8x128xf32>
      %457 = arith.truncf %456 : vector<8x128xf32> to vector<8x128xbf16>
      %cst_213 = arith.constant dense<0.000000e+00> : vector<8x512xf32>
      %458 = tpu.matmul %457, %3, %cst_213 {dimension_numbers = #tpu.dot_dimension_numbers<[1], [0], [0], [1], [0, 0, 1, 1], [], []>} : vector<8x128xbf16>, vector<128x512xbf16>, vector<8x512xf32> -> vector<8x512xf32>
      %459 = arith.addf %455, %458 : vector<8x512xf32>
      %460 = vector.extract_strided_slice %459 {offsets = [0, 0], sizes = [8, 128], strides = [1, 1]} : vector<8x512xf32> to vector<8x128xf32>
      %461 = arith.negf %460 : vector<8x128xf32>
      %462 = math.exp %461 : vector<8x128xf32>
      %cst_214 = arith.constant 1.000000e+00 : f32
      %463 = vector.broadcast %cst_214 : f32 to vector<8x128xf32>
      %464 = arith.addf %463, %462 : vector<8x128xf32>
      %465 = arith.divf %463, %464 : vector<8x128xf32>
      %466 = vector.extract_strided_slice %459 {offsets = [0, 128], sizes = [8, 128], strides = [1, 1]} : vector<8x512xf32> to vector<8x128xf32>
      %467 = arith.negf %466 : vector<8x128xf32>
      %468 = math.exp %467 : vector<8x128xf32>
      %cst_215 = arith.constant 1.000000e+00 : f32
      %469 = vector.broadcast %cst_215 : f32 to vector<8x128xf32>
      %470 = arith.addf %469, %468 : vector<8x128xf32>
      %471 = arith.divf %469, %470 : vector<8x128xf32>
      %472 = vector.extract_strided_slice %459 {offsets = [0, 256], sizes = [8, 128], strides = [1, 1]} : vector<8x512xf32> to vector<8x128xf32>
      %473 = math.tanh %472 : vector<8x128xf32>
      %474 = vector.extract_strided_slice %459 {offsets = [0, 384], sizes = [8, 128], strides = [1, 1]} : vector<8x512xf32> to vector<8x128xf32>
      %475 = arith.negf %474 : vector<8x128xf32>
      %476 = math.exp %475 : vector<8x128xf32>
      %cst_216 = arith.constant 1.000000e+00 : f32
      %477 = vector.broadcast %cst_216 : f32 to vector<8x128xf32>
      %478 = arith.addf %477, %476 : vector<8x128xf32>
      %479 = arith.divf %477, %478 : vector<8x128xf32>
      %c0_217 = arith.constant 0 : index
      %c0_218 = arith.constant 0 : index
      %480 = vector.load %arg9[%c0_217, %c0_218] : memref<8x128xf32, #tpu.memory_space<vmem>>, vector<8x128xf32>
      %481 = arith.mulf %471, %480 : vector<8x128xf32>
      %482 = arith.mulf %465, %473 : vector<8x128xf32>
      %483 = arith.addf %481, %482 : vector<8x128xf32>
      %484 = math.tanh %483 : vector<8x128xf32>
      %485 = arith.mulf %479, %484 : vector<8x128xf32>
      %cst_219 = arith.constant 0.000000e+00 : f32
      %486 = vector.broadcast %cst_219 : f32 to vector<8x128xf32>
      %487 = arith.select %452, %485, %486 : vector<8x128xi1>, vector<8x128xf32>
      %c9_220 = arith.constant 9 : index
      %c0_221 = arith.constant 0 : index
      %c0_222 = arith.constant 0 : index
      %488 = vector.load %arg5[%c9_220, %c0_221, %c0_222] : memref<16x8x128xf32, #tpu.memory_space<vmem>>, vector<1x8x128xf32>
      %489 = vector.shape_cast %488 : vector<1x8x128xf32> to vector<8x128xf32>
      %490 = vector.shape_cast %487 : vector<8x128xf32> to vector<1x8x128xf32>
      tpu.vector_store %arg5[%c9_220, %c0_221, %c0_222], %490 {strides = array<i32>} : memref<16x8x128xf32, #tpu.memory_space<vmem>>, vector<1x8x128xf32>,
      %c0_223 = arith.constant 0 : index
      %c0_224 = arith.constant 0 : index
      %491 = vector.load %arg8[%c0_223, %c0_224] : memref<8x128xf32, #tpu.memory_space<vmem>>, vector<8x128xf32>
      %492 = arith.select %452, %485, %491 : vector<8x128xi1>, vector<8x128xf32>
      %c0_225 = arith.constant 0 : index
      %c0_226 = arith.constant 0 : index
      %493 = vector.load %arg8[%c0_225, %c0_226] : memref<8x128xf32, #tpu.memory_space<vmem>>, vector<8x128xf32>
      tpu.vector_store %arg8[%c0_225, %c0_226], %492 {strides = array<i32>} : memref<8x128xf32, #tpu.memory_space<vmem>>, vector<8x128xf32>,
      %c0_227 = arith.constant 0 : index
      %c0_228 = arith.constant 0 : index
      %494 = vector.load %arg9[%c0_227, %c0_228] : memref<8x128xf32, #tpu.memory_space<vmem>>, vector<8x128xf32>
      %495 = arith.select %452, %483, %494 : vector<8x128xi1>, vector<8x128xf32>
      %c0_229 = arith.constant 0 : index
      %c0_230 = arith.constant 0 : index
      %496 = vector.load %arg9[%c0_229, %c0_230] : memref<8x128xf32, #tpu.memory_space<vmem>>, vector<8x128xf32>
      tpu.vector_store %arg9[%c0_229, %c0_230], %495 {strides = array<i32>} : memref<8x128xf32, #tpu.memory_space<vmem>>, vector<8x128xf32>,
      %c10_i32 = arith.constant 10 : i32
      %497 = vector.broadcast %c10_i32 : i32 to vector<8x1xi32>
      %498 = arith.cmpi sgt, %16, %497 : vector<8x1xi32>
      %499 = vector.shape_cast %498 : vector<8x1xi1> to vector<8x1xi1>
      %500 = vector.broadcast %499 : vector<8x1xi1> to vector<8x128xi1>
      %c10 = arith.constant 10 : index
      %c0_231 = arith.constant 0 : index
      %c0_232 = arith.constant 0 : index
      %501 = vector.load %arg3[%c10, %c0_231, %c0_232] : memref<16x8x512xbf16, #tpu.memory_space<vmem>>, vector<1x8x512xbf16>
      %502 = vector.shape_cast %501 : vector<1x8x512xbf16> to vector<8x512xbf16>
      %503 = arith.extf %502 : vector<8x512xbf16> to vector<8x512xf32>
      %c0_233 = arith.constant 0 : index
      %c0_234 = arith.constant 0 : index
      %504 = vector.load %arg8[%c0_233, %c0_234] : memref<8x128xf32, #tpu.memory_space<vmem>>, vector<8x128xf32>
      %505 = arith.truncf %504 : vector<8x128xf32> to vector<8x128xbf16>
      %cst_235 = arith.constant dense<0.000000e+00> : vector<8x512xf32>
      %506 = tpu.matmul %505, %3, %cst_235 {dimension_numbers = #tpu.dot_dimension_numbers<[1], [0], [0], [1], [0, 0, 1, 1], [], []>} : vector<8x128xbf16>, vector<128x512xbf16>, vector<8x512xf32> -> vector<8x512xf32>
      %507 = arith.addf %503, %506 : vector<8x512xf32>
      %508 = vector.extract_strided_slice %507 {offsets = [0, 0], sizes = [8, 128], strides = [1, 1]} : vector<8x512xf32> to vector<8x128xf32>
      %509 = arith.negf %508 : vector<8x128xf32>
      %510 = math.exp %509 : vector<8x128xf32>
      %cst_236 = arith.constant 1.000000e+00 : f32
      %511 = vector.broadcast %cst_236 : f32 to vector<8x128xf32>
      %512 = arith.addf %511, %510 : vector<8x128xf32>
      %513 = arith.divf %511, %512 : vector<8x128xf32>
      %514 = vector.extract_strided_slice %507 {offsets = [0, 128], sizes = [8, 128], strides = [1, 1]} : vector<8x512xf32> to vector<8x128xf32>
      %515 = arith.negf %514 : vector<8x128xf32>
      %516 = math.exp %515 : vector<8x128xf32>
      %cst_237 = arith.constant 1.000000e+00 : f32
      %517 = vector.broadcast %cst_237 : f32 to vector<8x128xf32>
      %518 = arith.addf %517, %516 : vector<8x128xf32>
      %519 = arith.divf %517, %518 : vector<8x128xf32>
      %520 = vector.extract_strided_slice %507 {offsets = [0, 256], sizes = [8, 128], strides = [1, 1]} : vector<8x512xf32> to vector<8x128xf32>
      %521 = math.tanh %520 : vector<8x128xf32>
      %522 = vector.extract_strided_slice %507 {offsets = [0, 384], sizes = [8, 128], strides = [1, 1]} : vector<8x512xf32> to vector<8x128xf32>
      %523 = arith.negf %522 : vector<8x128xf32>
      %524 = math.exp %523 : vector<8x128xf32>
      %cst_238 = arith.constant 1.000000e+00 : f32
      %525 = vector.broadcast %cst_238 : f32 to vector<8x128xf32>
      %526 = arith.addf %525, %524 : vector<8x128xf32>
      %527 = arith.divf %525, %526 : vector<8x128xf32>
      %c0_239 = arith.constant 0 : index
      %c0_240 = arith.constant 0 : index
      %528 = vector.load %arg9[%c0_239, %c0_240] : memref<8x128xf32, #tpu.memory_space<vmem>>, vector<8x128xf32>
      %529 = arith.mulf %519, %528 : vector<8x128xf32>
      %530 = arith.mulf %513, %521 : vector<8x128xf32>
      %531 = arith.addf %529, %530 : vector<8x128xf32>
      %532 = math.tanh %531 : vector<8x128xf32>
      %533 = arith.mulf %527, %532 : vector<8x128xf32>
      %cst_241 = arith.constant 0.000000e+00 : f32
      %534 = vector.broadcast %cst_241 : f32 to vector<8x128xf32>
      %535 = arith.select %500, %533, %534 : vector<8x128xi1>, vector<8x128xf32>
      %c10_242 = arith.constant 10 : index
      %c0_243 = arith.constant 0 : index
      %c0_244 = arith.constant 0 : index
      %536 = vector.load %arg5[%c10_242, %c0_243, %c0_244] : memref<16x8x128xf32, #tpu.memory_space<vmem>>, vector<1x8x128xf32>
      %537 = vector.shape_cast %536 : vector<1x8x128xf32> to vector<8x128xf32>
      %538 = vector.shape_cast %535 : vector<8x128xf32> to vector<1x8x128xf32>
      tpu.vector_store %arg5[%c10_242, %c0_243, %c0_244], %538 {strides = array<i32>} : memref<16x8x128xf32, #tpu.memory_space<vmem>>, vector<1x8x128xf32>,
      %c0_245 = arith.constant 0 : index
      %c0_246 = arith.constant 0 : index
      %539 = vector.load %arg8[%c0_245, %c0_246] : memref<8x128xf32, #tpu.memory_space<vmem>>, vector<8x128xf32>
      %540 = arith.select %500, %533, %539 : vector<8x128xi1>, vector<8x128xf32>
      %c0_247 = arith.constant 0 : index
      %c0_248 = arith.constant 0 : index
      %541 = vector.load %arg8[%c0_247, %c0_248] : memref<8x128xf32, #tpu.memory_space<vmem>>, vector<8x128xf32>
      tpu.vector_store %arg8[%c0_247, %c0_248], %540 {strides = array<i32>} : memref<8x128xf32, #tpu.memory_space<vmem>>, vector<8x128xf32>,
      %c0_249 = arith.constant 0 : index
      %c0_250 = arith.constant 0 : index
      %542 = vector.load %arg9[%c0_249, %c0_250] : memref<8x128xf32, #tpu.memory_space<vmem>>, vector<8x128xf32>
      %543 = arith.select %500, %531, %542 : vector<8x128xi1>, vector<8x128xf32>
      %c0_251 = arith.constant 0 : index
      %c0_252 = arith.constant 0 : index
      %544 = vector.load %arg9[%c0_251, %c0_252] : memref<8x128xf32, #tpu.memory_space<vmem>>, vector<8x128xf32>
      tpu.vector_store %arg9[%c0_251, %c0_252], %543 {strides = array<i32>} : memref<8x128xf32, #tpu.memory_space<vmem>>, vector<8x128xf32>,
      %c11_i32 = arith.constant 11 : i32
      %545 = vector.broadcast %c11_i32 : i32 to vector<8x1xi32>
      %546 = arith.cmpi sgt, %16, %545 : vector<8x1xi32>
      %547 = vector.shape_cast %546 : vector<8x1xi1> to vector<8x1xi1>
      %548 = vector.broadcast %547 : vector<8x1xi1> to vector<8x128xi1>
      %c11 = arith.constant 11 : index
      %c0_253 = arith.constant 0 : index
      %c0_254 = arith.constant 0 : index
      %549 = vector.load %arg3[%c11, %c0_253, %c0_254] : memref<16x8x512xbf16, #tpu.memory_space<vmem>>, vector<1x8x512xbf16>
      %550 = vector.shape_cast %549 : vector<1x8x512xbf16> to vector<8x512xbf16>
      %551 = arith.extf %550 : vector<8x512xbf16> to vector<8x512xf32>
      %c0_255 = arith.constant 0 : index
      %c0_256 = arith.constant 0 : index
      %552 = vector.load %arg8[%c0_255, %c0_256] : memref<8x128xf32, #tpu.memory_space<vmem>>, vector<8x128xf32>
      %553 = arith.truncf %552 : vector<8x128xf32> to vector<8x128xbf16>
      %cst_257 = arith.constant dense<0.000000e+00> : vector<8x512xf32>
      %554 = tpu.matmul %553, %3, %cst_257 {dimension_numbers = #tpu.dot_dimension_numbers<[1], [0], [0], [1], [0, 0, 1, 1], [], []>} : vector<8x128xbf16>, vector<128x512xbf16>, vector<8x512xf32> -> vector<8x512xf32>
      %555 = arith.addf %551, %554 : vector<8x512xf32>
      %556 = vector.extract_strided_slice %555 {offsets = [0, 0], sizes = [8, 128], strides = [1, 1]} : vector<8x512xf32> to vector<8x128xf32>
      %557 = arith.negf %556 : vector<8x128xf32>
      %558 = math.exp %557 : vector<8x128xf32>
      %cst_258 = arith.constant 1.000000e+00 : f32
      %559 = vector.broadcast %cst_258 : f32 to vector<8x128xf32>
      %560 = arith.addf %559, %558 : vector<8x128xf32>
      %561 = arith.divf %559, %560 : vector<8x128xf32>
      %562 = vector.extract_strided_slice %555 {offsets = [0, 128], sizes = [8, 128], strides = [1, 1]} : vector<8x512xf32> to vector<8x128xf32>
      %563 = arith.negf %562 : vector<8x128xf32>
      %564 = math.exp %563 : vector<8x128xf32>
      %cst_259 = arith.constant 1.000000e+00 : f32
      %565 = vector.broadcast %cst_259 : f32 to vector<8x128xf32>
      %566 = arith.addf %565, %564 : vector<8x128xf32>
      %567 = arith.divf %565, %566 : vector<8x128xf32>
      %568 = vector.extract_strided_slice %555 {offsets = [0, 256], sizes = [8, 128], strides = [1, 1]} : vector<8x512xf32> to vector<8x128xf32>
      %569 = math.tanh %568 : vector<8x128xf32>
      %570 = vector.extract_strided_slice %555 {offsets = [0, 384], sizes = [8, 128], strides = [1, 1]} : vector<8x512xf32> to vector<8x128xf32>
      %571 = arith.negf %570 : vector<8x128xf32>
      %572 = math.exp %571 : vector<8x128xf32>
      %cst_260 = arith.constant 1.000000e+00 : f32
      %573 = vector.broadcast %cst_260 : f32 to vector<8x128xf32>
      %574 = arith.addf %573, %572 : vector<8x128xf32>
      %575 = arith.divf %573, %574 : vector<8x128xf32>
      %c0_261 = arith.constant 0 : index
      %c0_262 = arith.constant 0 : index
      %576 = vector.load %arg9[%c0_261, %c0_262] : memref<8x128xf32, #tpu.memory_space<vmem>>, vector<8x128xf32>
      %577 = arith.mulf %567, %576 : vector<8x128xf32>
      %578 = arith.mulf %561, %569 : vector<8x128xf32>
      %579 = arith.addf %577, %578 : vector<8x128xf32>
      %580 = math.tanh %579 : vector<8x128xf32>
      %581 = arith.mulf %575, %580 : vector<8x128xf32>
      %cst_263 = arith.constant 0.000000e+00 : f32
      %582 = vector.broadcast %cst_263 : f32 to vector<8x128xf32>
      %583 = arith.select %548, %581, %582 : vector<8x128xi1>, vector<8x128xf32>
      %c11_264 = arith.constant 11 : index
      %c0_265 = arith.constant 0 : index
      %c0_266 = arith.constant 0 : index
      %584 = vector.load %arg5[%c11_264, %c0_265, %c0_266] : memref<16x8x128xf32, #tpu.memory_space<vmem>>, vector<1x8x128xf32>
      %585 = vector.shape_cast %584 : vector<1x8x128xf32> to vector<8x128xf32>
      %586 = vector.shape_cast %583 : vector<8x128xf32> to vector<1x8x128xf32>
      tpu.vector_store %arg5[%c11_264, %c0_265, %c0_266], %586 {strides = array<i32>} : memref<16x8x128xf32, #tpu.memory_space<vmem>>, vector<1x8x128xf32>,
      %c0_267 = arith.constant 0 : index
      %c0_268 = arith.constant 0 : index
      %587 = vector.load %arg8[%c0_267, %c0_268] : memref<8x128xf32, #tpu.memory_space<vmem>>, vector<8x128xf32>
      %588 = arith.select %548, %581, %587 : vector<8x128xi1>, vector<8x128xf32>
      %c0_269 = arith.constant 0 : index
      %c0_270 = arith.constant 0 : index
      %589 = vector.load %arg8[%c0_269, %c0_270] : memref<8x128xf32, #tpu.memory_space<vmem>>, vector<8x128xf32>
      tpu.vector_store %arg8[%c0_269, %c0_270], %588 {strides = array<i32>} : memref<8x128xf32, #tpu.memory_space<vmem>>, vector<8x128xf32>,
      %c0_271 = arith.constant 0 : index
      %c0_272 = arith.constant 0 : index
      %590 = vector.load %arg9[%c0_271, %c0_272] : memref<8x128xf32, #tpu.memory_space<vmem>>, vector<8x128xf32>
      %591 = arith.select %548, %579, %590 : vector<8x128xi1>, vector<8x128xf32>
      %c0_273 = arith.constant 0 : index
      %c0_274 = arith.constant 0 : index
      %592 = vector.load %arg9[%c0_273, %c0_274] : memref<8x128xf32, #tpu.memory_space<vmem>>, vector<8x128xf32>
      tpu.vector_store %arg9[%c0_273, %c0_274], %591 {strides = array<i32>} : memref<8x128xf32, #tpu.memory_space<vmem>>, vector<8x128xf32>,
      %c12_i32 = arith.constant 12 : i32
      %593 = vector.broadcast %c12_i32 : i32 to vector<8x1xi32>
      %594 = arith.cmpi sgt, %16, %593 : vector<8x1xi32>
      %595 = vector.shape_cast %594 : vector<8x1xi1> to vector<8x1xi1>
      %596 = vector.broadcast %595 : vector<8x1xi1> to vector<8x128xi1>
      %c12 = arith.constant 12 : index
      %c0_275 = arith.constant 0 : index
      %c0_276 = arith.constant 0 : index
      %597 = vector.load %arg3[%c12, %c0_275, %c0_276] : memref<16x8x512xbf16, #tpu.memory_space<vmem>>, vector<1x8x512xbf16>
      %598 = vector.shape_cast %597 : vector<1x8x512xbf16> to vector<8x512xbf16>
      %599 = arith.extf %598 : vector<8x512xbf16> to vector<8x512xf32>
      %c0_277 = arith.constant 0 : index
      %c0_278 = arith.constant 0 : index
      %600 = vector.load %arg8[%c0_277, %c0_278] : memref<8x128xf32, #tpu.memory_space<vmem>>, vector<8x128xf32>
      %601 = arith.truncf %600 : vector<8x128xf32> to vector<8x128xbf16>
      %cst_279 = arith.constant dense<0.000000e+00> : vector<8x512xf32>
      %602 = tpu.matmul %601, %3, %cst_279 {dimension_numbers = #tpu.dot_dimension_numbers<[1], [0], [0], [1], [0, 0, 1, 1], [], []>} : vector<8x128xbf16>, vector<128x512xbf16>, vector<8x512xf32> -> vector<8x512xf32>
      %603 = arith.addf %599, %602 : vector<8x512xf32>
      %604 = vector.extract_strided_slice %603 {offsets = [0, 0], sizes = [8, 128], strides = [1, 1]} : vector<8x512xf32> to vector<8x128xf32>
      %605 = arith.negf %604 : vector<8x128xf32>
      %606 = math.exp %605 : vector<8x128xf32>
      %cst_280 = arith.constant 1.000000e+00 : f32
      %607 = vector.broadcast %cst_280 : f32 to vector<8x128xf32>
      %608 = arith.addf %607, %606 : vector<8x128xf32>
      %609 = arith.divf %607, %608 : vector<8x128xf32>
      %610 = vector.extract_strided_slice %603 {offsets = [0, 128], sizes = [8, 128], strides = [1, 1]} : vector<8x512xf32> to vector<8x128xf32>
      %611 = arith.negf %610 : vector<8x128xf32>
      %612 = math.exp %611 : vector<8x128xf32>
      %cst_281 = arith.constant 1.000000e+00 : f32
      %613 = vector.broadcast %cst_281 : f32 to vector<8x128xf32>
      %614 = arith.addf %613, %612 : vector<8x128xf32>
      %615 = arith.divf %613, %614 : vector<8x128xf32>
      %616 = vector.extract_strided_slice %603 {offsets = [0, 256], sizes = [8, 128], strides = [1, 1]} : vector<8x512xf32> to vector<8x128xf32>
      %617 = math.tanh %616 : vector<8x128xf32>
      %618 = vector.extract_strided_slice %603 {offsets = [0, 384], sizes = [8, 128], strides = [1, 1]} : vector<8x512xf32> to vector<8x128xf32>
      %619 = arith.negf %618 : vector<8x128xf32>
      %620 = math.exp %619 : vector<8x128xf32>
      %cst_282 = arith.constant 1.000000e+00 : f32
      %621 = vector.broadcast %cst_282 : f32 to vector<8x128xf32>
      %622 = arith.addf %621, %620 : vector<8x128xf32>
      %623 = arith.divf %621, %622 : vector<8x128xf32>
      %c0_283 = arith.constant 0 : index
      %c0_284 = arith.constant 0 : index
      %624 = vector.load %arg9[%c0_283, %c0_284] : memref<8x128xf32, #tpu.memory_space<vmem>>, vector<8x128xf32>
      %625 = arith.mulf %615, %624 : vector<8x128xf32>
      %626 = arith.mulf %609, %617 : vector<8x128xf32>
      %627 = arith.addf %625, %626 : vector<8x128xf32>
      %628 = math.tanh %627 : vector<8x128xf32>
      %629 = arith.mulf %623, %628 : vector<8x128xf32>
      %cst_285 = arith.constant 0.000000e+00 : f32
      %630 = vector.broadcast %cst_285 : f32 to vector<8x128xf32>
      %631 = arith.select %596, %629, %630 : vector<8x128xi1>, vector<8x128xf32>
      %c12_286 = arith.constant 12 : index
      %c0_287 = arith.constant 0 : index
      %c0_288 = arith.constant 0 : index
      %632 = vector.load %arg5[%c12_286, %c0_287, %c0_288] : memref<16x8x128xf32, #tpu.memory_space<vmem>>, vector<1x8x128xf32>
      %633 = vector.shape_cast %632 : vector<1x8x128xf32> to vector<8x128xf32>
      %634 = vector.shape_cast %631 : vector<8x128xf32> to vector<1x8x128xf32>
      tpu.vector_store %arg5[%c12_286, %c0_287, %c0_288], %634 {strides = array<i32>} : memref<16x8x128xf32, #tpu.memory_space<vmem>>, vector<1x8x128xf32>,
      %c0_289 = arith.constant 0 : index
      %c0_290 = arith.constant 0 : index
      %635 = vector.load %arg8[%c0_289, %c0_290] : memref<8x128xf32, #tpu.memory_space<vmem>>, vector<8x128xf32>
      %636 = arith.select %596, %629, %635 : vector<8x128xi1>, vector<8x128xf32>
      %c0_291 = arith.constant 0 : index
      %c0_292 = arith.constant 0 : index
      %637 = vector.load %arg8[%c0_291, %c0_292] : memref<8x128xf32, #tpu.memory_space<vmem>>, vector<8x128xf32>
      tpu.vector_store %arg8[%c0_291, %c0_292], %636 {strides = array<i32>} : memref<8x128xf32, #tpu.memory_space<vmem>>, vector<8x128xf32>,
      %c0_293 = arith.constant 0 : index
      %c0_294 = arith.constant 0 : index
      %638 = vector.load %arg9[%c0_293, %c0_294] : memref<8x128xf32, #tpu.memory_space<vmem>>, vector<8x128xf32>
      %639 = arith.select %596, %627, %638 : vector<8x128xi1>, vector<8x128xf32>
      %c0_295 = arith.constant 0 : index
      %c0_296 = arith.constant 0 : index
      %640 = vector.load %arg9[%c0_295, %c0_296] : memref<8x128xf32, #tpu.memory_space<vmem>>, vector<8x128xf32>
      tpu.vector_store %arg9[%c0_295, %c0_296], %639 {strides = array<i32>} : memref<8x128xf32, #tpu.memory_space<vmem>>, vector<8x128xf32>,
      %c13_i32 = arith.constant 13 : i32
      %641 = vector.broadcast %c13_i32 : i32 to vector<8x1xi32>
      %642 = arith.cmpi sgt, %16, %641 : vector<8x1xi32>
      %643 = vector.shape_cast %642 : vector<8x1xi1> to vector<8x1xi1>
      %644 = vector.broadcast %643 : vector<8x1xi1> to vector<8x128xi1>
      %c13 = arith.constant 13 : index
      %c0_297 = arith.constant 0 : index
      %c0_298 = arith.constant 0 : index
      %645 = vector.load %arg3[%c13, %c0_297, %c0_298] : memref<16x8x512xbf16, #tpu.memory_space<vmem>>, vector<1x8x512xbf16>
      %646 = vector.shape_cast %645 : vector<1x8x512xbf16> to vector<8x512xbf16>
      %647 = arith.extf %646 : vector<8x512xbf16> to vector<8x512xf32>
      %c0_299 = arith.constant 0 : index
      %c0_300 = arith.constant 0 : index
      %648 = vector.load %arg8[%c0_299, %c0_300] : memref<8x128xf32, #tpu.memory_space<vmem>>, vector<8x128xf32>
      %649 = arith.truncf %648 : vector<8x128xf32> to vector<8x128xbf16>
      %cst_301 = arith.constant dense<0.000000e+00> : vector<8x512xf32>
      %650 = tpu.matmul %649, %3, %cst_301 {dimension_numbers = #tpu.dot_dimension_numbers<[1], [0], [0], [1], [0, 0, 1, 1], [], []>} : vector<8x128xbf16>, vector<128x512xbf16>, vector<8x512xf32> -> vector<8x512xf32>
      %651 = arith.addf %647, %650 : vector<8x512xf32>
      %652 = vector.extract_strided_slice %651 {offsets = [0, 0], sizes = [8, 128], strides = [1, 1]} : vector<8x512xf32> to vector<8x128xf32>
      %653 = arith.negf %652 : vector<8x128xf32>
      %654 = math.exp %653 : vector<8x128xf32>
      %cst_302 = arith.constant 1.000000e+00 : f32
      %655 = vector.broadcast %cst_302 : f32 to vector<8x128xf32>
      %656 = arith.addf %655, %654 : vector<8x128xf32>
      %657 = arith.divf %655, %656 : vector<8x128xf32>
      %658 = vector.extract_strided_slice %651 {offsets = [0, 128], sizes = [8, 128], strides = [1, 1]} : vector<8x512xf32> to vector<8x128xf32>
      %659 = arith.negf %658 : vector<8x128xf32>
      %660 = math.exp %659 : vector<8x128xf32>
      %cst_303 = arith.constant 1.000000e+00 : f32
      %661 = vector.broadcast %cst_303 : f32 to vector<8x128xf32>
      %662 = arith.addf %661, %660 : vector<8x128xf32>
      %663 = arith.divf %661, %662 : vector<8x128xf32>
      %664 = vector.extract_strided_slice %651 {offsets = [0, 256], sizes = [8, 128], strides = [1, 1]} : vector<8x512xf32> to vector<8x128xf32>
      %665 = math.tanh %664 : vector<8x128xf32>
      %666 = vector.extract_strided_slice %651 {offsets = [0, 384], sizes = [8, 128], strides = [1, 1]} : vector<8x512xf32> to vector<8x128xf32>
      %667 = arith.negf %666 : vector<8x128xf32>
      %668 = math.exp %667 : vector<8x128xf32>
      %cst_304 = arith.constant 1.000000e+00 : f32
      %669 = vector.broadcast %cst_304 : f32 to vector<8x128xf32>
      %670 = arith.addf %669, %668 : vector<8x128xf32>
      %671 = arith.divf %669, %670 : vector<8x128xf32>
      %c0_305 = arith.constant 0 : index
      %c0_306 = arith.constant 0 : index
      %672 = vector.load %arg9[%c0_305, %c0_306] : memref<8x128xf32, #tpu.memory_space<vmem>>, vector<8x128xf32>
      %673 = arith.mulf %663, %672 : vector<8x128xf32>
      %674 = arith.mulf %657, %665 : vector<8x128xf32>
      %675 = arith.addf %673, %674 : vector<8x128xf32>
      %676 = math.tanh %675 : vector<8x128xf32>
      %677 = arith.mulf %671, %676 : vector<8x128xf32>
      %cst_307 = arith.constant 0.000000e+00 : f32
      %678 = vector.broadcast %cst_307 : f32 to vector<8x128xf32>
      %679 = arith.select %644, %677, %678 : vector<8x128xi1>, vector<8x128xf32>
      %c13_308 = arith.constant 13 : index
      %c0_309 = arith.constant 0 : index
      %c0_310 = arith.constant 0 : index
      %680 = vector.load %arg5[%c13_308, %c0_309, %c0_310] : memref<16x8x128xf32, #tpu.memory_space<vmem>>, vector<1x8x128xf32>
      %681 = vector.shape_cast %680 : vector<1x8x128xf32> to vector<8x128xf32>
      %682 = vector.shape_cast %679 : vector<8x128xf32> to vector<1x8x128xf32>
      tpu.vector_store %arg5[%c13_308, %c0_309, %c0_310], %682 {strides = array<i32>} : memref<16x8x128xf32, #tpu.memory_space<vmem>>, vector<1x8x128xf32>,
      %c0_311 = arith.constant 0 : index
      %c0_312 = arith.constant 0 : index
      %683 = vector.load %arg8[%c0_311, %c0_312] : memref<8x128xf32, #tpu.memory_space<vmem>>, vector<8x128xf32>
      %684 = arith.select %644, %677, %683 : vector<8x128xi1>, vector<8x128xf32>
      %c0_313 = arith.constant 0 : index
      %c0_314 = arith.constant 0 : index
      %685 = vector.load %arg8[%c0_313, %c0_314] : memref<8x128xf32, #tpu.memory_space<vmem>>, vector<8x128xf32>
      tpu.vector_store %arg8[%c0_313, %c0_314], %684 {strides = array<i32>} : memref<8x128xf32, #tpu.memory_space<vmem>>, vector<8x128xf32>,
      %c0_315 = arith.constant 0 : index
      %c0_316 = arith.constant 0 : index
      %686 = vector.load %arg9[%c0_315, %c0_316] : memref<8x128xf32, #tpu.memory_space<vmem>>, vector<8x128xf32>
      %687 = arith.select %644, %675, %686 : vector<8x128xi1>, vector<8x128xf32>
      %c0_317 = arith.constant 0 : index
      %c0_318 = arith.constant 0 : index
      %688 = vector.load %arg9[%c0_317, %c0_318] : memref<8x128xf32, #tpu.memory_space<vmem>>, vector<8x128xf32>
      tpu.vector_store %arg9[%c0_317, %c0_318], %687 {strides = array<i32>} : memref<8x128xf32, #tpu.memory_space<vmem>>, vector<8x128xf32>,
      %c14_i32 = arith.constant 14 : i32
      %689 = vector.broadcast %c14_i32 : i32 to vector<8x1xi32>
      %690 = arith.cmpi sgt, %16, %689 : vector<8x1xi32>
      %691 = vector.shape_cast %690 : vector<8x1xi1> to vector<8x1xi1>
      %692 = vector.broadcast %691 : vector<8x1xi1> to vector<8x128xi1>
      %c14 = arith.constant 14 : index
      %c0_319 = arith.constant 0 : index
      %c0_320 = arith.constant 0 : index
      %693 = vector.load %arg3[%c14, %c0_319, %c0_320] : memref<16x8x512xbf16, #tpu.memory_space<vmem>>, vector<1x8x512xbf16>
      %694 = vector.shape_cast %693 : vector<1x8x512xbf16> to vector<8x512xbf16>
      %695 = arith.extf %694 : vector<8x512xbf16> to vector<8x512xf32>
      %c0_321 = arith.constant 0 : index
      %c0_322 = arith.constant 0 : index
      %696 = vector.load %arg8[%c0_321, %c0_322] : memref<8x128xf32, #tpu.memory_space<vmem>>, vector<8x128xf32>
      %697 = arith.truncf %696 : vector<8x128xf32> to vector<8x128xbf16>
      %cst_323 = arith.constant dense<0.000000e+00> : vector<8x512xf32>
      %698 = tpu.matmul %697, %3, %cst_323 {dimension_numbers = #tpu.dot_dimension_numbers<[1], [0], [0], [1], [0, 0, 1, 1], [], []>} : vector<8x128xbf16>, vector<128x512xbf16>, vector<8x512xf32> -> vector<8x512xf32>
      %699 = arith.addf %695, %698 : vector<8x512xf32>
      %700 = vector.extract_strided_slice %699 {offsets = [0, 0], sizes = [8, 128], strides = [1, 1]} : vector<8x512xf32> to vector<8x128xf32>
      %701 = arith.negf %700 : vector<8x128xf32>
      %702 = math.exp %701 : vector<8x128xf32>
      %cst_324 = arith.constant 1.000000e+00 : f32
      %703 = vector.broadcast %cst_324 : f32 to vector<8x128xf32>
      %704 = arith.addf %703, %702 : vector<8x128xf32>
      %705 = arith.divf %703, %704 : vector<8x128xf32>
      %706 = vector.extract_strided_slice %699 {offsets = [0, 128], sizes = [8, 128], strides = [1, 1]} : vector<8x512xf32> to vector<8x128xf32>
      %707 = arith.negf %706 : vector<8x128xf32>
      %708 = math.exp %707 : vector<8x128xf32>
      %cst_325 = arith.constant 1.000000e+00 : f32
      %709 = vector.broadcast %cst_325 : f32 to vector<8x128xf32>
      %710 = arith.addf %709, %708 : vector<8x128xf32>
      %711 = arith.divf %709, %710 : vector<8x128xf32>
      %712 = vector.extract_strided_slice %699 {offsets = [0, 256], sizes = [8, 128], strides = [1, 1]} : vector<8x512xf32> to vector<8x128xf32>
      %713 = math.tanh %712 : vector<8x128xf32>
      %714 = vector.extract_strided_slice %699 {offsets = [0, 384], sizes = [8, 128], strides = [1, 1]} : vector<8x512xf32> to vector<8x128xf32>
      %715 = arith.negf %714 : vector<8x128xf32>
      %716 = math.exp %715 : vector<8x128xf32>
      %cst_326 = arith.constant 1.000000e+00 : f32
      %717 = vector.broadcast %cst_326 : f32 to vector<8x128xf32>
      %718 = arith.addf %717, %716 : vector<8x128xf32>
      %719 = arith.divf %717, %718 : vector<8x128xf32>
      %c0_327 = arith.constant 0 : index
      %c0_328 = arith.constant 0 : index
      %720 = vector.load %arg9[%c0_327, %c0_328] : memref<8x128xf32, #tpu.memory_space<vmem>>, vector<8x128xf32>
      %721 = arith.mulf %711, %720 : vector<8x128xf32>
      %722 = arith.mulf %705, %713 : vector<8x128xf32>
      %723 = arith.addf %721, %722 : vector<8x128xf32>
      %724 = math.tanh %723 : vector<8x128xf32>
      %725 = arith.mulf %719, %724 : vector<8x128xf32>
      %cst_329 = arith.constant 0.000000e+00 : f32
      %726 = vector.broadcast %cst_329 : f32 to vector<8x128xf32>
      %727 = arith.select %692, %725, %726 : vector<8x128xi1>, vector<8x128xf32>
      %c14_330 = arith.constant 14 : index
      %c0_331 = arith.constant 0 : index
      %c0_332 = arith.constant 0 : index
      %728 = vector.load %arg5[%c14_330, %c0_331, %c0_332] : memref<16x8x128xf32, #tpu.memory_space<vmem>>, vector<1x8x128xf32>
      %729 = vector.shape_cast %728 : vector<1x8x128xf32> to vector<8x128xf32>
      %730 = vector.shape_cast %727 : vector<8x128xf32> to vector<1x8x128xf32>
      tpu.vector_store %arg5[%c14_330, %c0_331, %c0_332], %730 {strides = array<i32>} : memref<16x8x128xf32, #tpu.memory_space<vmem>>, vector<1x8x128xf32>,
      %c0_333 = arith.constant 0 : index
      %c0_334 = arith.constant 0 : index
      %731 = vector.load %arg8[%c0_333, %c0_334] : memref<8x128xf32, #tpu.memory_space<vmem>>, vector<8x128xf32>
      %732 = arith.select %692, %725, %731 : vector<8x128xi1>, vector<8x128xf32>
      %c0_335 = arith.constant 0 : index
      %c0_336 = arith.constant 0 : index
      %733 = vector.load %arg8[%c0_335, %c0_336] : memref<8x128xf32, #tpu.memory_space<vmem>>, vector<8x128xf32>
      tpu.vector_store %arg8[%c0_335, %c0_336], %732 {strides = array<i32>} : memref<8x128xf32, #tpu.memory_space<vmem>>, vector<8x128xf32>,
      %c0_337 = arith.constant 0 : index
      %c0_338 = arith.constant 0 : index
      %734 = vector.load %arg9[%c0_337, %c0_338] : memref<8x128xf32, #tpu.memory_space<vmem>>, vector<8x128xf32>
      %735 = arith.select %692, %723, %734 : vector<8x128xi1>, vector<8x128xf32>
      %c0_339 = arith.constant 0 : index
      %c0_340 = arith.constant 0 : index
      %736 = vector.load %arg9[%c0_339, %c0_340] : memref<8x128xf32, #tpu.memory_space<vmem>>, vector<8x128xf32>
      tpu.vector_store %arg9[%c0_339, %c0_340], %735 {strides = array<i32>} : memref<8x128xf32, #tpu.memory_space<vmem>>, vector<8x128xf32>,
      %c15_i32 = arith.constant 15 : i32
      %737 = vector.broadcast %c15_i32 : i32 to vector<8x1xi32>
      %738 = arith.cmpi sgt, %16, %737 : vector<8x1xi32>
      %739 = vector.shape_cast %738 : vector<8x1xi1> to vector<8x1xi1>
      %740 = vector.broadcast %739 : vector<8x1xi1> to vector<8x128xi1>
      %c15 = arith.constant 15 : index
      %c0_341 = arith.constant 0 : index
      %c0_342 = arith.constant 0 : index
      %741 = vector.load %arg3[%c15, %c0_341, %c0_342] : memref<16x8x512xbf16, #tpu.memory_space<vmem>>, vector<1x8x512xbf16>
      %742 = vector.shape_cast %741 : vector<1x8x512xbf16> to vector<8x512xbf16>
      %743 = arith.extf %742 : vector<8x512xbf16> to vector<8x512xf32>
      %c0_343 = arith.constant 0 : index
      %c0_344 = arith.constant 0 : index
      %744 = vector.load %arg8[%c0_343, %c0_344] : memref<8x128xf32, #tpu.memory_space<vmem>>, vector<8x128xf32>
      %745 = arith.truncf %744 : vector<8x128xf32> to vector<8x128xbf16>
      %cst_345 = arith.constant dense<0.000000e+00> : vector<8x512xf32>
      %746 = tpu.matmul %745, %3, %cst_345 {dimension_numbers = #tpu.dot_dimension_numbers<[1], [0], [0], [1], [0, 0, 1, 1], [], []>} : vector<8x128xbf16>, vector<128x512xbf16>, vector<8x512xf32> -> vector<8x512xf32>
      %747 = arith.addf %743, %746 : vector<8x512xf32>
      %748 = vector.extract_strided_slice %747 {offsets = [0, 0], sizes = [8, 128], strides = [1, 1]} : vector<8x512xf32> to vector<8x128xf32>
      %749 = arith.negf %748 : vector<8x128xf32>
      %750 = math.exp %749 : vector<8x128xf32>
      %cst_346 = arith.constant 1.000000e+00 : f32
      %751 = vector.broadcast %cst_346 : f32 to vector<8x128xf32>
      %752 = arith.addf %751, %750 : vector<8x128xf32>
      %753 = arith.divf %751, %752 : vector<8x128xf32>
      %754 = vector.extract_strided_slice %747 {offsets = [0, 128], sizes = [8, 128], strides = [1, 1]} : vector<8x512xf32> to vector<8x128xf32>
      %755 = arith.negf %754 : vector<8x128xf32>
      %756 = math.exp %755 : vector<8x128xf32>
      %cst_347 = arith.constant 1.000000e+00 : f32
      %757 = vector.broadcast %cst_347 : f32 to vector<8x128xf32>
      %758 = arith.addf %757, %756 : vector<8x128xf32>
      %759 = arith.divf %757, %758 : vector<8x128xf32>
      %760 = vector.extract_strided_slice %747 {offsets = [0, 256], sizes = [8, 128], strides = [1, 1]} : vector<8x512xf32> to vector<8x128xf32>
      %761 = math.tanh %760 : vector<8x128xf32>
      %762 = vector.extract_strided_slice %747 {offsets = [0, 384], sizes = [8, 128], strides = [1, 1]} : vector<8x512xf32> to vector<8x128xf32>
      %763 = arith.negf %762 : vector<8x128xf32>
      %764 = math.exp %763 : vector<8x128xf32>
      %cst_348 = arith.constant 1.000000e+00 : f32
      %765 = vector.broadcast %cst_348 : f32 to vector<8x128xf32>
      %766 = arith.addf %765, %764 : vector<8x128xf32>
      %767 = arith.divf %765, %766 : vector<8x128xf32>
      %c0_349 = arith.constant 0 : index
      %c0_350 = arith.constant 0 : index
      %768 = vector.load %arg9[%c0_349, %c0_350] : memref<8x128xf32, #tpu.memory_space<vmem>>, vector<8x128xf32>
      %769 = arith.mulf %759, %768 : vector<8x128xf32>
      %770 = arith.mulf %753, %761 : vector<8x128xf32>
      %771 = arith.addf %769, %770 : vector<8x128xf32>
      %772 = math.tanh %771 : vector<8x128xf32>
      %773 = arith.mulf %767, %772 : vector<8x128xf32>
      %cst_351 = arith.constant 0.000000e+00 : f32
      %774 = vector.broadcast %cst_351 : f32 to vector<8x128xf32>
      %775 = arith.select %740, %773, %774 : vector<8x128xi1>, vector<8x128xf32>
      %c15_352 = arith.constant 15 : index
      %c0_353 = arith.constant 0 : index
      %c0_354 = arith.constant 0 : index
      %776 = vector.load %arg5[%c15_352, %c0_353, %c0_354] : memref<16x8x128xf32, #tpu.memory_space<vmem>>, vector<1x8x128xf32>
      %777 = vector.shape_cast %776 : vector<1x8x128xf32> to vector<8x128xf32>
      %778 = vector.shape_cast %775 : vector<8x128xf32> to vector<1x8x128xf32>
      tpu.vector_store %arg5[%c15_352, %c0_353, %c0_354], %778 {strides = array<i32>} : memref<16x8x128xf32, #tpu.memory_space<vmem>>, vector<1x8x128xf32>,
      %c0_355 = arith.constant 0 : index
      %c0_356 = arith.constant 0 : index
      %779 = vector.load %arg8[%c0_355, %c0_356] : memref<8x128xf32, #tpu.memory_space<vmem>>, vector<8x128xf32>
      %780 = arith.select %740, %773, %779 : vector<8x128xi1>, vector<8x128xf32>
      %c0_357 = arith.constant 0 : index
      %c0_358 = arith.constant 0 : index
      %781 = vector.load %arg8[%c0_357, %c0_358] : memref<8x128xf32, #tpu.memory_space<vmem>>, vector<8x128xf32>
      tpu.vector_store %arg8[%c0_357, %c0_358], %780 {strides = array<i32>} : memref<8x128xf32, #tpu.memory_space<vmem>>, vector<8x128xf32>,
      %c0_359 = arith.constant 0 : index
      %c0_360 = arith.constant 0 : index
      %782 = vector.load %arg9[%c0_359, %c0_360] : memref<8x128xf32, #tpu.memory_space<vmem>>, vector<8x128xf32>
      %783 = arith.select %740, %771, %782 : vector<8x128xi1>, vector<8x128xf32>
      %c0_361 = arith.constant 0 : index
      %c0_362 = arith.constant 0 : index
      %784 = vector.load %arg9[%c0_361, %c0_362] : memref<8x128xf32, #tpu.memory_space<vmem>>, vector<8x128xf32>
      tpu.vector_store %arg9[%c0_361, %c0_362], %783 {strides = array<i32>} : memref<8x128xf32, #tpu.memory_space<vmem>>, vector<8x128xf32>,
    } else {
    }
    %c1_i32 = arith.constant 1 : i32
    %7 = arith.cmpi eq, %arg0, %c1_i32 : i32
    %8 = arith.extui %7 : i1 to i32
    %c0_i32_4 = arith.constant 0 : i32
    %9 = arith.cmpi ne, %8, %c0_i32_4 : i32
    scf.if %9 {
      %c0_7 = arith.constant 0 : index
      %c0_8 = arith.constant 0 : index
      %13 = vector.load %arg2[%c0_7, %c0_8] : memref<8x1xi32, #tpu.memory_space<vmem>>, vector<8x1xi32>
      %c0_i32_9 = arith.constant 0 : i32
      %14 = arith.subi %c0_i32_9, %arg1 : i32
      %c16_i32 = arith.constant 16 : i32
      %15 = arith.muli %14, %c16_i32 : i32
      %16 = vector.broadcast %15 : i32 to vector<8x1xi32>
      %17 = arith.subi %13, %16 : vector<8x1xi32>
      %c15_i32 = arith.constant 15 : i32
      %18 = vector.broadcast %c15_i32 : i32 to vector<8x1xi32>
      %19 = arith.cmpi sgt, %17, %18 : vector<8x1xi32>
      %20 = vector.shape_cast %19 : vector<8x1xi1> to vector<8x1xi1>
      %21 = vector.broadcast %20 : vector<8x1xi1> to vector<8x128xi1>
      %c15 = arith.constant 15 : index
      %c0_10 = arith.constant 0 : index
      %c0_11 = arith.constant 0 : index
      %22 = vector.load %arg3[%c15, %c0_10, %c0_11] : memref<16x8x512xbf16, #tpu.memory_space<vmem>>, vector<1x8x512xbf16>
      %23 = vector.shape_cast %22 : vector<1x8x512xbf16> to vector<8x512xbf16>
      %24 = arith.extf %23 : vector<8x512xbf16> to vector<8x512xf32>
      %c0_12 = arith.constant 0 : index
      %c0_13 = arith.constant 0 : index
      %25 = vector.load %arg8[%c0_12, %c0_13] : memref<8x128xf32, #tpu.memory_space<vmem>>, vector<8x128xf32>
      %26 = arith.truncf %25 : vector<8x128xf32> to vector<8x128xbf16>
      %cst = arith.constant dense<0.000000e+00> : vector<8x512xf32>
      %27 = tpu.matmul %26, %3, %cst {dimension_numbers = #tpu.dot_dimension_numbers<[1], [0], [0], [1], [0, 0, 1, 1], [], []>} : vector<8x128xbf16>, vector<128x512xbf16>, vector<8x512xf32> -> vector<8x512xf32>
      %28 = arith.addf %24, %27 : vector<8x512xf32>
      %29 = vector.extract_strided_slice %28 {offsets = [0, 0], sizes = [8, 128], strides = [1, 1]} : vector<8x512xf32> to vector<8x128xf32>
      %30 = arith.negf %29 : vector<8x128xf32>
      %31 = math.exp %30 : vector<8x128xf32>
      %cst_14 = arith.constant 1.000000e+00 : f32
      %32 = vector.broadcast %cst_14 : f32 to vector<8x128xf32>
      %33 = arith.addf %32, %31 : vector<8x128xf32>
      %34 = arith.divf %32, %33 : vector<8x128xf32>
      %35 = vector.extract_strided_slice %28 {offsets = [0, 128], sizes = [8, 128], strides = [1, 1]} : vector<8x512xf32> to vector<8x128xf32>
      %36 = arith.negf %35 : vector<8x128xf32>
      %37 = math.exp %36 : vector<8x128xf32>
      %cst_15 = arith.constant 1.000000e+00 : f32
      %38 = vector.broadcast %cst_15 : f32 to vector<8x128xf32>
      %39 = arith.addf %38, %37 : vector<8x128xf32>
      %40 = arith.divf %38, %39 : vector<8x128xf32>
      %41 = vector.extract_strided_slice %28 {offsets = [0, 256], sizes = [8, 128], strides = [1, 1]} : vector<8x512xf32> to vector<8x128xf32>
      %42 = math.tanh %41 : vector<8x128xf32>
      %43 = vector.extract_strided_slice %28 {offsets = [0, 384], sizes = [8, 128], strides = [1, 1]} : vector<8x512xf32> to vector<8x128xf32>
      %44 = arith.negf %43 : vector<8x128xf32>
      %45 = math.exp %44 : vector<8x128xf32>
      %cst_16 = arith.constant 1.000000e+00 : f32
      %46 = vector.broadcast %cst_16 : f32 to vector<8x128xf32>
      %47 = arith.addf %46, %45 : vector<8x128xf32>
      %48 = arith.divf %46, %47 : vector<8x128xf32>
      %c0_17 = arith.constant 0 : index
      %c0_18 = arith.constant 0 : index
      %49 = vector.load %arg9[%c0_17, %c0_18] : memref<8x128xf32, #tpu.memory_space<vmem>>, vector<8x128xf32>
      %50 = arith.mulf %40, %49 : vector<8x128xf32>
      %51 = arith.mulf %34, %42 : vector<8x128xf32>
      %52 = arith.addf %50, %51 : vector<8x128xf32>
      %53 = math.tanh %52 : vector<8x128xf32>
      %54 = arith.mulf %48, %53 : vector<8x128xf32>
      %cst_19 = arith.constant 0.000000e+00 : f32
      %55 = vector.broadcast %cst_19 : f32 to vector<8x128xf32>
      %56 = arith.select %21, %54, %55 : vector<8x128xi1>, vector<8x128xf32>
      %c15_20 = arith.constant 15 : index
      %c0_21 = arith.constant 0 : index
      %c0_22 = arith.constant 0 : index
      %57 = vector.load %arg5[%c15_20, %c0_21, %c0_22] : memref<16x8x128xf32, #tpu.memory_space<vmem>>, vector<1x8x128xf32>
      %58 = vector.shape_cast %57 : vector<1x8x128xf32> to vector<8x128xf32>
      %59 = vector.shape_cast %56 : vector<8x128xf32> to vector<1x8x128xf32>
      tpu.vector_store %arg5[%c15_20, %c0_21, %c0_22], %59 {strides = array<i32>} : memref<16x8x128xf32, #tpu.memory_space<vmem>>, vector<1x8x128xf32>,
      %c0_23 = arith.constant 0 : index
      %c0_24 = arith.constant 0 : index
      %60 = vector.load %arg8[%c0_23, %c0_24] : memref<8x128xf32, #tpu.memory_space<vmem>>, vector<8x128xf32>
      %61 = arith.select %21, %54, %60 : vector<8x128xi1>, vector<8x128xf32>
      %c0_25 = arith.constant 0 : index
      %c0_26 = arith.constant 0 : index
      %62 = vector.load %arg8[%c0_25, %c0_26] : memref<8x128xf32, #tpu.memory_space<vmem>>, vector<8x128xf32>
      tpu.vector_store %arg8[%c0_25, %c0_26], %61 {strides = array<i32>} : memref<8x128xf32, #tpu.memory_space<vmem>>, vector<8x128xf32>,
      %c0_27 = arith.constant 0 : index
      %c0_28 = arith.constant 0 : index
      %63 = vector.load %arg9[%c0_27, %c0_28] : memref<8x128xf32, #tpu.memory_space<vmem>>, vector<8x128xf32>
      %64 = arith.select %21, %52, %63 : vector<8x128xi1>, vector<8x128xf32>
      %c0_29 = arith.constant 0 : index
      %c0_30 = arith.constant 0 : index
      %65 = vector.load %arg9[%c0_29, %c0_30] : memref<8x128xf32, #tpu.memory_space<vmem>>, vector<8x128xf32>
      tpu.vector_store %arg9[%c0_29, %c0_30], %64 {strides = array<i32>} : memref<8x128xf32, #tpu.memory_space<vmem>>, vector<8x128xf32>,
      %c14_i32 = arith.constant 14 : i32
      %66 = vector.broadcast %c14_i32 : i32 to vector<8x1xi32>
      %67 = arith.cmpi sgt, %17, %66 : vector<8x1xi32>
      %68 = vector.shape_cast %67 : vector<8x1xi1> to vector<8x1xi1>
      %69 = vector.broadcast %68 : vector<8x1xi1> to vector<8x128xi1>
      %c14 = arith.constant 14 : index
      %c0_31 = arith.constant 0 : index
      %c0_32 = arith.constant 0 : index
      %70 = vector.load %arg3[%c14, %c0_31, %c0_32] : memref<16x8x512xbf16, #tpu.memory_space<vmem>>, vector<1x8x512xbf16>
      %71 = vector.shape_cast %70 : vector<1x8x512xbf16> to vector<8x512xbf16>
      %72 = arith.extf %71 : vector<8x512xbf16> to vector<8x512xf32>
      %c0_33 = arith.constant 0 : index
      %c0_34 = arith.constant 0 : index
      %73 = vector.load %arg8[%c0_33, %c0_34] : memref<8x128xf32, #tpu.memory_space<vmem>>, vector<8x128xf32>
      %74 = arith.truncf %73 : vector<8x128xf32> to vector<8x128xbf16>
      %cst_35 = arith.constant dense<0.000000e+00> : vector<8x512xf32>
      %75 = tpu.matmul %74, %3, %cst_35 {dimension_numbers = #tpu.dot_dimension_numbers<[1], [0], [0], [1], [0, 0, 1, 1], [], []>} : vector<8x128xbf16>, vector<128x512xbf16>, vector<8x512xf32> -> vector<8x512xf32>
      %76 = arith.addf %72, %75 : vector<8x512xf32>
      %77 = vector.extract_strided_slice %76 {offsets = [0, 0], sizes = [8, 128], strides = [1, 1]} : vector<8x512xf32> to vector<8x128xf32>
      %78 = arith.negf %77 : vector<8x128xf32>
      %79 = math.exp %78 : vector<8x128xf32>
      %cst_36 = arith.constant 1.000000e+00 : f32
      %80 = vector.broadcast %cst_36 : f32 to vector<8x128xf32>
      %81 = arith.addf %80, %79 : vector<8x128xf32>
      %82 = arith.divf %80, %81 : vector<8x128xf32>
      %83 = vector.extract_strided_slice %76 {offsets = [0, 128], sizes = [8, 128], strides = [1, 1]} : vector<8x512xf32> to vector<8x128xf32>
      %84 = arith.negf %83 : vector<8x128xf32>
      %85 = math.exp %84 : vector<8x128xf32>
      %cst_37 = arith.constant 1.000000e+00 : f32
      %86 = vector.broadcast %cst_37 : f32 to vector<8x128xf32>
      %87 = arith.addf %86, %85 : vector<8x128xf32>
      %88 = arith.divf %86, %87 : vector<8x128xf32>
      %89 = vector.extract_strided_slice %76 {offsets = [0, 256], sizes = [8, 128], strides = [1, 1]} : vector<8x512xf32> to vector<8x128xf32>
      %90 = math.tanh %89 : vector<8x128xf32>
      %91 = vector.extract_strided_slice %76 {offsets = [0, 384], sizes = [8, 128], strides = [1, 1]} : vector<8x512xf32> to vector<8x128xf32>
      %92 = arith.negf %91 : vector<8x128xf32>
      %93 = math.exp %92 : vector<8x128xf32>
      %cst_38 = arith.constant 1.000000e+00 : f32
      %94 = vector.broadcast %cst_38 : f32 to vector<8x128xf32>
      %95 = arith.addf %94, %93 : vector<8x128xf32>
      %96 = arith.divf %94, %95 : vector<8x128xf32>
      %c0_39 = arith.constant 0 : index
      %c0_40 = arith.constant 0 : index
      %97 = vector.load %arg9[%c0_39, %c0_40] : memref<8x128xf32, #tpu.memory_space<vmem>>, vector<8x128xf32>
      %98 = arith.mulf %88, %97 : vector<8x128xf32>
      %99 = arith.mulf %82, %90 : vector<8x128xf32>
      %100 = arith.addf %98, %99 : vector<8x128xf32>
      %101 = math.tanh %100 : vector<8x128xf32>
      %102 = arith.mulf %96, %101 : vector<8x128xf32>
      %cst_41 = arith.constant 0.000000e+00 : f32
      %103 = vector.broadcast %cst_41 : f32 to vector<8x128xf32>
      %104 = arith.select %69, %102, %103 : vector<8x128xi1>, vector<8x128xf32>
      %c14_42 = arith.constant 14 : index
      %c0_43 = arith.constant 0 : index
      %c0_44 = arith.constant 0 : index
      %105 = vector.load %arg5[%c14_42, %c0_43, %c0_44] : memref<16x8x128xf32, #tpu.memory_space<vmem>>, vector<1x8x128xf32>
      %106 = vector.shape_cast %105 : vector<1x8x128xf32> to vector<8x128xf32>
      %107 = vector.shape_cast %104 : vector<8x128xf32> to vector<1x8x128xf32>
      tpu.vector_store %arg5[%c14_42, %c0_43, %c0_44], %107 {strides = array<i32>} : memref<16x8x128xf32, #tpu.memory_space<vmem>>, vector<1x8x128xf32>,
      %c0_45 = arith.constant 0 : index
      %c0_46 = arith.constant 0 : index
      %108 = vector.load %arg8[%c0_45, %c0_46] : memref<8x128xf32, #tpu.memory_space<vmem>>, vector<8x128xf32>
      %109 = arith.select %69, %102, %108 : vector<8x128xi1>, vector<8x128xf32>
      %c0_47 = arith.constant 0 : index
      %c0_48 = arith.constant 0 : index
      %110 = vector.load %arg8[%c0_47, %c0_48] : memref<8x128xf32, #tpu.memory_space<vmem>>, vector<8x128xf32>
      tpu.vector_store %arg8[%c0_47, %c0_48], %109 {strides = array<i32>} : memref<8x128xf32, #tpu.memory_space<vmem>>, vector<8x128xf32>,
      %c0_49 = arith.constant 0 : index
      %c0_50 = arith.constant 0 : index
      %111 = vector.load %arg9[%c0_49, %c0_50] : memref<8x128xf32, #tpu.memory_space<vmem>>, vector<8x128xf32>
      %112 = arith.select %69, %100, %111 : vector<8x128xi1>, vector<8x128xf32>
      %c0_51 = arith.constant 0 : index
      %c0_52 = arith.constant 0 : index
      %113 = vector.load %arg9[%c0_51, %c0_52] : memref<8x128xf32, #tpu.memory_space<vmem>>, vector<8x128xf32>
      tpu.vector_store %arg9[%c0_51, %c0_52], %112 {strides = array<i32>} : memref<8x128xf32, #tpu.memory_space<vmem>>, vector<8x128xf32>,
      %c13_i32 = arith.constant 13 : i32
      %114 = vector.broadcast %c13_i32 : i32 to vector<8x1xi32>
      %115 = arith.cmpi sgt, %17, %114 : vector<8x1xi32>
      %116 = vector.shape_cast %115 : vector<8x1xi1> to vector<8x1xi1>
      %117 = vector.broadcast %116 : vector<8x1xi1> to vector<8x128xi1>
      %c13 = arith.constant 13 : index
      %c0_53 = arith.constant 0 : index
      %c0_54 = arith.constant 0 : index
      %118 = vector.load %arg3[%c13, %c0_53, %c0_54] : memref<16x8x512xbf16, #tpu.memory_space<vmem>>, vector<1x8x512xbf16>
      %119 = vector.shape_cast %118 : vector<1x8x512xbf16> to vector<8x512xbf16>
      %120 = arith.extf %119 : vector<8x512xbf16> to vector<8x512xf32>
      %c0_55 = arith.constant 0 : index
      %c0_56 = arith.constant 0 : index
      %121 = vector.load %arg8[%c0_55, %c0_56] : memref<8x128xf32, #tpu.memory_space<vmem>>, vector<8x128xf32>
      %122 = arith.truncf %121 : vector<8x128xf32> to vector<8x128xbf16>
      %cst_57 = arith.constant dense<0.000000e+00> : vector<8x512xf32>
      %123 = tpu.matmul %122, %3, %cst_57 {dimension_numbers = #tpu.dot_dimension_numbers<[1], [0], [0], [1], [0, 0, 1, 1], [], []>} : vector<8x128xbf16>, vector<128x512xbf16>, vector<8x512xf32> -> vector<8x512xf32>
      %124 = arith.addf %120, %123 : vector<8x512xf32>
      %125 = vector.extract_strided_slice %124 {offsets = [0, 0], sizes = [8, 128], strides = [1, 1]} : vector<8x512xf32> to vector<8x128xf32>
      %126 = arith.negf %125 : vector<8x128xf32>
      %127 = math.exp %126 : vector<8x128xf32>
      %cst_58 = arith.constant 1.000000e+00 : f32
      %128 = vector.broadcast %cst_58 : f32 to vector<8x128xf32>
      %129 = arith.addf %128, %127 : vector<8x128xf32>
      %130 = arith.divf %128, %129 : vector<8x128xf32>
      %131 = vector.extract_strided_slice %124 {offsets = [0, 128], sizes = [8, 128], strides = [1, 1]} : vector<8x512xf32> to vector<8x128xf32>
      %132 = arith.negf %131 : vector<8x128xf32>
      %133 = math.exp %132 : vector<8x128xf32>
      %cst_59 = arith.constant 1.000000e+00 : f32
      %134 = vector.broadcast %cst_59 : f32 to vector<8x128xf32>
      %135 = arith.addf %134, %133 : vector<8x128xf32>
      %136 = arith.divf %134, %135 : vector<8x128xf32>
      %137 = vector.extract_strided_slice %124 {offsets = [0, 256], sizes = [8, 128], strides = [1, 1]} : vector<8x512xf32> to vector<8x128xf32>
      %138 = math.tanh %137 : vector<8x128xf32>
      %139 = vector.extract_strided_slice %124 {offsets = [0, 384], sizes = [8, 128], strides = [1, 1]} : vector<8x512xf32> to vector<8x128xf32>
      %140 = arith.negf %139 : vector<8x128xf32>
      %141 = math.exp %140 : vector<8x128xf32>
      %cst_60 = arith.constant 1.000000e+00 : f32
      %142 = vector.broadcast %cst_60 : f32 to vector<8x128xf32>
      %143 = arith.addf %142, %141 : vector<8x128xf32>
      %144 = arith.divf %142, %143 : vector<8x128xf32>
      %c0_61 = arith.constant 0 : index
      %c0_62 = arith.constant 0 : index
      %145 = vector.load %arg9[%c0_61, %c0_62] : memref<8x128xf32, #tpu.memory_space<vmem>>, vector<8x128xf32>
      %146 = arith.mulf %136, %145 : vector<8x128xf32>
      %147 = arith.mulf %130, %138 : vector<8x128xf32>
      %148 = arith.addf %146, %147 : vector<8x128xf32>
      %149 = math.tanh %148 : vector<8x128xf32>
      %150 = arith.mulf %144, %149 : vector<8x128xf32>
      %cst_63 = arith.constant 0.000000e+00 : f32
      %151 = vector.broadcast %cst_63 : f32 to vector<8x128xf32>
      %152 = arith.select %117, %150, %151 : vector<8x128xi1>, vector<8x128xf32>
      %c13_64 = arith.constant 13 : index
      %c0_65 = arith.constant 0 : index
      %c0_66 = arith.constant 0 : index
      %153 = vector.load %arg5[%c13_64, %c0_65, %c0_66] : memref<16x8x128xf32, #tpu.memory_space<vmem>>, vector<1x8x128xf32>
      %154 = vector.shape_cast %153 : vector<1x8x128xf32> to vector<8x128xf32>
      %155 = vector.shape_cast %152 : vector<8x128xf32> to vector<1x8x128xf32>
      tpu.vector_store %arg5[%c13_64, %c0_65, %c0_66], %155 {strides = array<i32>} : memref<16x8x128xf32, #tpu.memory_space<vmem>>, vector<1x8x128xf32>,
      %c0_67 = arith.constant 0 : index
      %c0_68 = arith.constant 0 : index
      %156 = vector.load %arg8[%c0_67, %c0_68] : memref<8x128xf32, #tpu.memory_space<vmem>>, vector<8x128xf32>
      %157 = arith.select %117, %150, %156 : vector<8x128xi1>, vector<8x128xf32>
      %c0_69 = arith.constant 0 : index
      %c0_70 = arith.constant 0 : index
      %158 = vector.load %arg8[%c0_69, %c0_70] : memref<8x128xf32, #tpu.memory_space<vmem>>, vector<8x128xf32>
      tpu.vector_store %arg8[%c0_69, %c0_70], %157 {strides = array<i32>} : memref<8x128xf32, #tpu.memory_space<vmem>>, vector<8x128xf32>,
      %c0_71 = arith.constant 0 : index
      %c0_72 = arith.constant 0 : index
      %159 = vector.load %arg9[%c0_71, %c0_72] : memref<8x128xf32, #tpu.memory_space<vmem>>, vector<8x128xf32>
      %160 = arith.select %117, %148, %159 : vector<8x128xi1>, vector<8x128xf32>
      %c0_73 = arith.constant 0 : index
      %c0_74 = arith.constant 0 : index
      %161 = vector.load %arg9[%c0_73, %c0_74] : memref<8x128xf32, #tpu.memory_space<vmem>>, vector<8x128xf32>
      tpu.vector_store %arg9[%c0_73, %c0_74], %160 {strides = array<i32>} : memref<8x128xf32, #tpu.memory_space<vmem>>, vector<8x128xf32>,
      %c12_i32 = arith.constant 12 : i32
      %162 = vector.broadcast %c12_i32 : i32 to vector<8x1xi32>
      %163 = arith.cmpi sgt, %17, %162 : vector<8x1xi32>
      %164 = vector.shape_cast %163 : vector<8x1xi1> to vector<8x1xi1>
      %165 = vector.broadcast %164 : vector<8x1xi1> to vector<8x128xi1>
      %c12 = arith.constant 12 : index
      %c0_75 = arith.constant 0 : index
      %c0_76 = arith.constant 0 : index
      %166 = vector.load %arg3[%c12, %c0_75, %c0_76] : memref<16x8x512xbf16, #tpu.memory_space<vmem>>, vector<1x8x512xbf16>
      %167 = vector.shape_cast %166 : vector<1x8x512xbf16> to vector<8x512xbf16>
      %168 = arith.extf %167 : vector<8x512xbf16> to vector<8x512xf32>
      %c0_77 = arith.constant 0 : index
      %c0_78 = arith.constant 0 : index
      %169 = vector.load %arg8[%c0_77, %c0_78] : memref<8x128xf32, #tpu.memory_space<vmem>>, vector<8x128xf32>
      %170 = arith.truncf %169 : vector<8x128xf32> to vector<8x128xbf16>
      %cst_79 = arith.constant dense<0.000000e+00> : vector<8x512xf32>
      %171 = tpu.matmul %170, %3, %cst_79 {dimension_numbers = #tpu.dot_dimension_numbers<[1], [0], [0], [1], [0, 0, 1, 1], [], []>} : vector<8x128xbf16>, vector<128x512xbf16>, vector<8x512xf32> -> vector<8x512xf32>
      %172 = arith.addf %168, %171 : vector<8x512xf32>
      %173 = vector.extract_strided_slice %172 {offsets = [0, 0], sizes = [8, 128], strides = [1, 1]} : vector<8x512xf32> to vector<8x128xf32>
      %174 = arith.negf %173 : vector<8x128xf32>
      %175 = math.exp %174 : vector<8x128xf32>
      %cst_80 = arith.constant 1.000000e+00 : f32
      %176 = vector.broadcast %cst_80 : f32 to vector<8x128xf32>
      %177 = arith.addf %176, %175 : vector<8x128xf32>
      %178 = arith.divf %176, %177 : vector<8x128xf32>
      %179 = vector.extract_strided_slice %172 {offsets = [0, 128], sizes = [8, 128], strides = [1, 1]} : vector<8x512xf32> to vector<8x128xf32>
      %180 = arith.negf %179 : vector<8x128xf32>
      %181 = math.exp %180 : vector<8x128xf32>
      %cst_81 = arith.constant 1.000000e+00 : f32
      %182 = vector.broadcast %cst_81 : f32 to vector<8x128xf32>
      %183 = arith.addf %182, %181 : vector<8x128xf32>
      %184 = arith.divf %182, %183 : vector<8x128xf32>
      %185 = vector.extract_strided_slice %172 {offsets = [0, 256], sizes = [8, 128], strides = [1, 1]} : vector<8x512xf32> to vector<8x128xf32>
      %186 = math.tanh %185 : vector<8x128xf32>
      %187 = vector.extract_strided_slice %172 {offsets = [0, 384], sizes = [8, 128], strides = [1, 1]} : vector<8x512xf32> to vector<8x128xf32>
      %188 = arith.negf %187 : vector<8x128xf32>
      %189 = math.exp %188 : vector<8x128xf32>
      %cst_82 = arith.constant 1.000000e+00 : f32
      %190 = vector.broadcast %cst_82 : f32 to vector<8x128xf32>
      %191 = arith.addf %190, %189 : vector<8x128xf32>
      %192 = arith.divf %190, %191 : vector<8x128xf32>
      %c0_83 = arith.constant 0 : index
      %c0_84 = arith.constant 0 : index
      %193 = vector.load %arg9[%c0_83, %c0_84] : memref<8x128xf32, #tpu.memory_space<vmem>>, vector<8x128xf32>
      %194 = arith.mulf %184, %193 : vector<8x128xf32>
      %195 = arith.mulf %178, %186 : vector<8x128xf32>
      %196 = arith.addf %194, %195 : vector<8x128xf32>
      %197 = math.tanh %196 : vector<8x128xf32>
      %198 = arith.mulf %192, %197 : vector<8x128xf32>
      %cst_85 = arith.constant 0.000000e+00 : f32
      %199 = vector.broadcast %cst_85 : f32 to vector<8x128xf32>
      %200 = arith.select %165, %198, %199 : vector<8x128xi1>, vector<8x128xf32>
      %c12_86 = arith.constant 12 : index
      %c0_87 = arith.constant 0 : index
      %c0_88 = arith.constant 0 : index
      %201 = vector.load %arg5[%c12_86, %c0_87, %c0_88] : memref<16x8x128xf32, #tpu.memory_space<vmem>>, vector<1x8x128xf32>
      %202 = vector.shape_cast %201 : vector<1x8x128xf32> to vector<8x128xf32>
      %203 = vector.shape_cast %200 : vector<8x128xf32> to vector<1x8x128xf32>
      tpu.vector_store %arg5[%c12_86, %c0_87, %c0_88], %203 {strides = array<i32>} : memref<16x8x128xf32, #tpu.memory_space<vmem>>, vector<1x8x128xf32>,
      %c0_89 = arith.constant 0 : index
      %c0_90 = arith.constant 0 : index
      %204 = vector.load %arg8[%c0_89, %c0_90] : memref<8x128xf32, #tpu.memory_space<vmem>>, vector<8x128xf32>
      %205 = arith.select %165, %198, %204 : vector<8x128xi1>, vector<8x128xf32>
      %c0_91 = arith.constant 0 : index
      %c0_92 = arith.constant 0 : index
      %206 = vector.load %arg8[%c0_91, %c0_92] : memref<8x128xf32, #tpu.memory_space<vmem>>, vector<8x128xf32>
      tpu.vector_store %arg8[%c0_91, %c0_92], %205 {strides = array<i32>} : memref<8x128xf32, #tpu.memory_space<vmem>>, vector<8x128xf32>,
      %c0_93 = arith.constant 0 : index
      %c0_94 = arith.constant 0 : index
      %207 = vector.load %arg9[%c0_93, %c0_94] : memref<8x128xf32, #tpu.memory_space<vmem>>, vector<8x128xf32>
      %208 = arith.select %165, %196, %207 : vector<8x128xi1>, vector<8x128xf32>
      %c0_95 = arith.constant 0 : index
      %c0_96 = arith.constant 0 : index
      %209 = vector.load %arg9[%c0_95, %c0_96] : memref<8x128xf32, #tpu.memory_space<vmem>>, vector<8x128xf32>
      tpu.vector_store %arg9[%c0_95, %c0_96], %208 {strides = array<i32>} : memref<8x128xf32, #tpu.memory_space<vmem>>, vector<8x128xf32>,
      %c11_i32 = arith.constant 11 : i32
      %210 = vector.broadcast %c11_i32 : i32 to vector<8x1xi32>
      %211 = arith.cmpi sgt, %17, %210 : vector<8x1xi32>
      %212 = vector.shape_cast %211 : vector<8x1xi1> to vector<8x1xi1>
      %213 = vector.broadcast %212 : vector<8x1xi1> to vector<8x128xi1>
      %c11 = arith.constant 11 : index
      %c0_97 = arith.constant 0 : index
      %c0_98 = arith.constant 0 : index
      %214 = vector.load %arg3[%c11, %c0_97, %c0_98] : memref<16x8x512xbf16, #tpu.memory_space<vmem>>, vector<1x8x512xbf16>
      %215 = vector.shape_cast %214 : vector<1x8x512xbf16> to vector<8x512xbf16>
      %216 = arith.extf %215 : vector<8x512xbf16> to vector<8x512xf32>
      %c0_99 = arith.constant 0 : index
      %c0_100 = arith.constant 0 : index
      %217 = vector.load %arg8[%c0_99, %c0_100] : memref<8x128xf32, #tpu.memory_space<vmem>>, vector<8x128xf32>
      %218 = arith.truncf %217 : vector<8x128xf32> to vector<8x128xbf16>
      %cst_101 = arith.constant dense<0.000000e+00> : vector<8x512xf32>
      %219 = tpu.matmul %218, %3, %cst_101 {dimension_numbers = #tpu.dot_dimension_numbers<[1], [0], [0], [1], [0, 0, 1, 1], [], []>} : vector<8x128xbf16>, vector<128x512xbf16>, vector<8x512xf32> -> vector<8x512xf32>
      %220 = arith.addf %216, %219 : vector<8x512xf32>
      %221 = vector.extract_strided_slice %220 {offsets = [0, 0], sizes = [8, 128], strides = [1, 1]} : vector<8x512xf32> to vector<8x128xf32>
      %222 = arith.negf %221 : vector<8x128xf32>
      %223 = math.exp %222 : vector<8x128xf32>
      %cst_102 = arith.constant 1.000000e+00 : f32
      %224 = vector.broadcast %cst_102 : f32 to vector<8x128xf32>
      %225 = arith.addf %224, %223 : vector<8x128xf32>
      %226 = arith.divf %224, %225 : vector<8x128xf32>
      %227 = vector.extract_strided_slice %220 {offsets = [0, 128], sizes = [8, 128], strides = [1, 1]} : vector<8x512xf32> to vector<8x128xf32>
      %228 = arith.negf %227 : vector<8x128xf32>
      %229 = math.exp %228 : vector<8x128xf32>
      %cst_103 = arith.constant 1.000000e+00 : f32
      %230 = vector.broadcast %cst_103 : f32 to vector<8x128xf32>
      %231 = arith.addf %230, %229 : vector<8x128xf32>
      %232 = arith.divf %230, %231 : vector<8x128xf32>
      %233 = vector.extract_strided_slice %220 {offsets = [0, 256], sizes = [8, 128], strides = [1, 1]} : vector<8x512xf32> to vector<8x128xf32>
      %234 = math.tanh %233 : vector<8x128xf32>
      %235 = vector.extract_strided_slice %220 {offsets = [0, 384], sizes = [8, 128], strides = [1, 1]} : vector<8x512xf32> to vector<8x128xf32>
      %236 = arith.negf %235 : vector<8x128xf32>
      %237 = math.exp %236 : vector<8x128xf32>
      %cst_104 = arith.constant 1.000000e+00 : f32
      %238 = vector.broadcast %cst_104 : f32 to vector<8x128xf32>
      %239 = arith.addf %238, %237 : vector<8x128xf32>
      %240 = arith.divf %238, %239 : vector<8x128xf32>
      %c0_105 = arith.constant 0 : index
      %c0_106 = arith.constant 0 : index
      %241 = vector.load %arg9[%c0_105, %c0_106] : memref<8x128xf32, #tpu.memory_space<vmem>>, vector<8x128xf32>
      %242 = arith.mulf %232, %241 : vector<8x128xf32>
      %243 = arith.mulf %226, %234 : vector<8x128xf32>
      %244 = arith.addf %242, %243 : vector<8x128xf32>
      %245 = math.tanh %244 : vector<8x128xf32>
      %246 = arith.mulf %240, %245 : vector<8x128xf32>
      %cst_107 = arith.constant 0.000000e+00 : f32
      %247 = vector.broadcast %cst_107 : f32 to vector<8x128xf32>
      %248 = arith.select %213, %246, %247 : vector<8x128xi1>, vector<8x128xf32>
      %c11_108 = arith.constant 11 : index
      %c0_109 = arith.constant 0 : index
      %c0_110 = arith.constant 0 : index
      %249 = vector.load %arg5[%c11_108, %c0_109, %c0_110] : memref<16x8x128xf32, #tpu.memory_space<vmem>>, vector<1x8x128xf32>
      %250 = vector.shape_cast %249 : vector<1x8x128xf32> to vector<8x128xf32>
      %251 = vector.shape_cast %248 : vector<8x128xf32> to vector<1x8x128xf32>
      tpu.vector_store %arg5[%c11_108, %c0_109, %c0_110], %251 {strides = array<i32>} : memref<16x8x128xf32, #tpu.memory_space<vmem>>, vector<1x8x128xf32>,
      %c0_111 = arith.constant 0 : index
      %c0_112 = arith.constant 0 : index
      %252 = vector.load %arg8[%c0_111, %c0_112] : memref<8x128xf32, #tpu.memory_space<vmem>>, vector<8x128xf32>
      %253 = arith.select %213, %246, %252 : vector<8x128xi1>, vector<8x128xf32>
      %c0_113 = arith.constant 0 : index
      %c0_114 = arith.constant 0 : index
      %254 = vector.load %arg8[%c0_113, %c0_114] : memref<8x128xf32, #tpu.memory_space<vmem>>, vector<8x128xf32>
      tpu.vector_store %arg8[%c0_113, %c0_114], %253 {strides = array<i32>} : memref<8x128xf32, #tpu.memory_space<vmem>>, vector<8x128xf32>,
      %c0_115 = arith.constant 0 : index
      %c0_116 = arith.constant 0 : index
      %255 = vector.load %arg9[%c0_115, %c0_116] : memref<8x128xf32, #tpu.memory_space<vmem>>, vector<8x128xf32>
      %256 = arith.select %213, %244, %255 : vector<8x128xi1>, vector<8x128xf32>
      %c0_117 = arith.constant 0 : index
      %c0_118 = arith.constant 0 : index
      %257 = vector.load %arg9[%c0_117, %c0_118] : memref<8x128xf32, #tpu.memory_space<vmem>>, vector<8x128xf32>
      tpu.vector_store %arg9[%c0_117, %c0_118], %256 {strides = array<i32>} : memref<8x128xf32, #tpu.memory_space<vmem>>, vector<8x128xf32>,
      %c10_i32 = arith.constant 10 : i32
      %258 = vector.broadcast %c10_i32 : i32 to vector<8x1xi32>
      %259 = arith.cmpi sgt, %17, %258 : vector<8x1xi32>
      %260 = vector.shape_cast %259 : vector<8x1xi1> to vector<8x1xi1>
      %261 = vector.broadcast %260 : vector<8x1xi1> to vector<8x128xi1>
      %c10 = arith.constant 10 : index
      %c0_119 = arith.constant 0 : index
      %c0_120 = arith.constant 0 : index
      %262 = vector.load %arg3[%c10, %c0_119, %c0_120] : memref<16x8x512xbf16, #tpu.memory_space<vmem>>, vector<1x8x512xbf16>
      %263 = vector.shape_cast %262 : vector<1x8x512xbf16> to vector<8x512xbf16>
      %264 = arith.extf %263 : vector<8x512xbf16> to vector<8x512xf32>
      %c0_121 = arith.constant 0 : index
      %c0_122 = arith.constant 0 : index
      %265 = vector.load %arg8[%c0_121, %c0_122] : memref<8x128xf32, #tpu.memory_space<vmem>>, vector<8x128xf32>
      %266 = arith.truncf %265 : vector<8x128xf32> to vector<8x128xbf16>
      %cst_123 = arith.constant dense<0.000000e+00> : vector<8x512xf32>
      %267 = tpu.matmul %266, %3, %cst_123 {dimension_numbers = #tpu.dot_dimension_numbers<[1], [0], [0], [1], [0, 0, 1, 1], [], []>} : vector<8x128xbf16>, vector<128x512xbf16>, vector<8x512xf32> -> vector<8x512xf32>
      %268 = arith.addf %264, %267 : vector<8x512xf32>
      %269 = vector.extract_strided_slice %268 {offsets = [0, 0], sizes = [8, 128], strides = [1, 1]} : vector<8x512xf32> to vector<8x128xf32>
      %270 = arith.negf %269 : vector<8x128xf32>
      %271 = math.exp %270 : vector<8x128xf32>
      %cst_124 = arith.constant 1.000000e+00 : f32
      %272 = vector.broadcast %cst_124 : f32 to vector<8x128xf32>
      %273 = arith.addf %272, %271 : vector<8x128xf32>
      %274 = arith.divf %272, %273 : vector<8x128xf32>
      %275 = vector.extract_strided_slice %268 {offsets = [0, 128], sizes = [8, 128], strides = [1, 1]} : vector<8x512xf32> to vector<8x128xf32>
      %276 = arith.negf %275 : vector<8x128xf32>
      %277 = math.exp %276 : vector<8x128xf32>
      %cst_125 = arith.constant 1.000000e+00 : f32
      %278 = vector.broadcast %cst_125 : f32 to vector<8x128xf32>
      %279 = arith.addf %278, %277 : vector<8x128xf32>
      %280 = arith.divf %278, %279 : vector<8x128xf32>
      %281 = vector.extract_strided_slice %268 {offsets = [0, 256], sizes = [8, 128], strides = [1, 1]} : vector<8x512xf32> to vector<8x128xf32>
      %282 = math.tanh %281 : vector<8x128xf32>
      %283 = vector.extract_strided_slice %268 {offsets = [0, 384], sizes = [8, 128], strides = [1, 1]} : vector<8x512xf32> to vector<8x128xf32>
      %284 = arith.negf %283 : vector<8x128xf32>
      %285 = math.exp %284 : vector<8x128xf32>
      %cst_126 = arith.constant 1.000000e+00 : f32
      %286 = vector.broadcast %cst_126 : f32 to vector<8x128xf32>
      %287 = arith.addf %286, %285 : vector<8x128xf32>
      %288 = arith.divf %286, %287 : vector<8x128xf32>
      %c0_127 = arith.constant 0 : index
      %c0_128 = arith.constant 0 : index
      %289 = vector.load %arg9[%c0_127, %c0_128] : memref<8x128xf32, #tpu.memory_space<vmem>>, vector<8x128xf32>
      %290 = arith.mulf %280, %289 : vector<8x128xf32>
      %291 = arith.mulf %274, %282 : vector<8x128xf32>
      %292 = arith.addf %290, %291 : vector<8x128xf32>
      %293 = math.tanh %292 : vector<8x128xf32>
      %294 = arith.mulf %288, %293 : vector<8x128xf32>
      %cst_129 = arith.constant 0.000000e+00 : f32
      %295 = vector.broadcast %cst_129 : f32 to vector<8x128xf32>
      %296 = arith.select %261, %294, %295 : vector<8x128xi1>, vector<8x128xf32>
      %c10_130 = arith.constant 10 : index
      %c0_131 = arith.constant 0 : index
      %c0_132 = arith.constant 0 : index
      %297 = vector.load %arg5[%c10_130, %c0_131, %c0_132] : memref<16x8x128xf32, #tpu.memory_space<vmem>>, vector<1x8x128xf32>
      %298 = vector.shape_cast %297 : vector<1x8x128xf32> to vector<8x128xf32>
      %299 = vector.shape_cast %296 : vector<8x128xf32> to vector<1x8x128xf32>
      tpu.vector_store %arg5[%c10_130, %c0_131, %c0_132], %299 {strides = array<i32>} : memref<16x8x128xf32, #tpu.memory_space<vmem>>, vector<1x8x128xf32>,
      %c0_133 = arith.constant 0 : index
      %c0_134 = arith.constant 0 : index
      %300 = vector.load %arg8[%c0_133, %c0_134] : memref<8x128xf32, #tpu.memory_space<vmem>>, vector<8x128xf32>
      %301 = arith.select %261, %294, %300 : vector<8x128xi1>, vector<8x128xf32>
      %c0_135 = arith.constant 0 : index
      %c0_136 = arith.constant 0 : index
      %302 = vector.load %arg8[%c0_135, %c0_136] : memref<8x128xf32, #tpu.memory_space<vmem>>, vector<8x128xf32>
      tpu.vector_store %arg8[%c0_135, %c0_136], %301 {strides = array<i32>} : memref<8x128xf32, #tpu.memory_space<vmem>>, vector<8x128xf32>,
      %c0_137 = arith.constant 0 : index
      %c0_138 = arith.constant 0 : index
      %303 = vector.load %arg9[%c0_137, %c0_138] : memref<8x128xf32, #tpu.memory_space<vmem>>, vector<8x128xf32>
      %304 = arith.select %261, %292, %303 : vector<8x128xi1>, vector<8x128xf32>
      %c0_139 = arith.constant 0 : index
      %c0_140 = arith.constant 0 : index
      %305 = vector.load %arg9[%c0_139, %c0_140] : memref<8x128xf32, #tpu.memory_space<vmem>>, vector<8x128xf32>
      tpu.vector_store %arg9[%c0_139, %c0_140], %304 {strides = array<i32>} : memref<8x128xf32, #tpu.memory_space<vmem>>, vector<8x128xf32>,
      %c9_i32 = arith.constant 9 : i32
      %306 = vector.broadcast %c9_i32 : i32 to vector<8x1xi32>
      %307 = arith.cmpi sgt, %17, %306 : vector<8x1xi32>
      %308 = vector.shape_cast %307 : vector<8x1xi1> to vector<8x1xi1>
      %309 = vector.broadcast %308 : vector<8x1xi1> to vector<8x128xi1>
      %c9 = arith.constant 9 : index
      %c0_141 = arith.constant 0 : index
      %c0_142 = arith.constant 0 : index
      %310 = vector.load %arg3[%c9, %c0_141, %c0_142] : memref<16x8x512xbf16, #tpu.memory_space<vmem>>, vector<1x8x512xbf16>
      %311 = vector.shape_cast %310 : vector<1x8x512xbf16> to vector<8x512xbf16>
      %312 = arith.extf %311 : vector<8x512xbf16> to vector<8x512xf32>
      %c0_143 = arith.constant 0 : index
      %c0_144 = arith.constant 0 : index
      %313 = vector.load %arg8[%c0_143, %c0_144] : memref<8x128xf32, #tpu.memory_space<vmem>>, vector<8x128xf32>
      %314 = arith.truncf %313 : vector<8x128xf32> to vector<8x128xbf16>
      %cst_145 = arith.constant dense<0.000000e+00> : vector<8x512xf32>
      %315 = tpu.matmul %314, %3, %cst_145 {dimension_numbers = #tpu.dot_dimension_numbers<[1], [0], [0], [1], [0, 0, 1, 1], [], []>} : vector<8x128xbf16>, vector<128x512xbf16>, vector<8x512xf32> -> vector<8x512xf32>
      %316 = arith.addf %312, %315 : vector<8x512xf32>
      %317 = vector.extract_strided_slice %316 {offsets = [0, 0], sizes = [8, 128], strides = [1, 1]} : vector<8x512xf32> to vector<8x128xf32>
      %318 = arith.negf %317 : vector<8x128xf32>
      %319 = math.exp %318 : vector<8x128xf32>
      %cst_146 = arith.constant 1.000000e+00 : f32
      %320 = vector.broadcast %cst_146 : f32 to vector<8x128xf32>
      %321 = arith.addf %320, %319 : vector<8x128xf32>
      %322 = arith.divf %320, %321 : vector<8x128xf32>
      %323 = vector.extract_strided_slice %316 {offsets = [0, 128], sizes = [8, 128], strides = [1, 1]} : vector<8x512xf32> to vector<8x128xf32>
      %324 = arith.negf %323 : vector<8x128xf32>
      %325 = math.exp %324 : vector<8x128xf32>
      %cst_147 = arith.constant 1.000000e+00 : f32
      %326 = vector.broadcast %cst_147 : f32 to vector<8x128xf32>
      %327 = arith.addf %326, %325 : vector<8x128xf32>
      %328 = arith.divf %326, %327 : vector<8x128xf32>
      %329 = vector.extract_strided_slice %316 {offsets = [0, 256], sizes = [8, 128], strides = [1, 1]} : vector<8x512xf32> to vector<8x128xf32>
      %330 = math.tanh %329 : vector<8x128xf32>
      %331 = vector.extract_strided_slice %316 {offsets = [0, 384], sizes = [8, 128], strides = [1, 1]} : vector<8x512xf32> to vector<8x128xf32>
      %332 = arith.negf %331 : vector<8x128xf32>
      %333 = math.exp %332 : vector<8x128xf32>
      %cst_148 = arith.constant 1.000000e+00 : f32
      %334 = vector.broadcast %cst_148 : f32 to vector<8x128xf32>
      %335 = arith.addf %334, %333 : vector<8x128xf32>
      %336 = arith.divf %334, %335 : vector<8x128xf32>
      %c0_149 = arith.constant 0 : index
      %c0_150 = arith.constant 0 : index
      %337 = vector.load %arg9[%c0_149, %c0_150] : memref<8x128xf32, #tpu.memory_space<vmem>>, vector<8x128xf32>
      %338 = arith.mulf %328, %337 : vector<8x128xf32>
      %339 = arith.mulf %322, %330 : vector<8x128xf32>
      %340 = arith.addf %338, %339 : vector<8x128xf32>
      %341 = math.tanh %340 : vector<8x128xf32>
      %342 = arith.mulf %336, %341 : vector<8x128xf32>
      %cst_151 = arith.constant 0.000000e+00 : f32
      %343 = vector.broadcast %cst_151 : f32 to vector<8x128xf32>
      %344 = arith.select %309, %342, %343 : vector<8x128xi1>, vector<8x128xf32>
      %c9_152 = arith.constant 9 : index
      %c0_153 = arith.constant 0 : index
      %c0_154 = arith.constant 0 : index
      %345 = vector.load %arg5[%c9_152, %c0_153, %c0_154] : memref<16x8x128xf32, #tpu.memory_space<vmem>>, vector<1x8x128xf32>
      %346 = vector.shape_cast %345 : vector<1x8x128xf32> to vector<8x128xf32>
      %347 = vector.shape_cast %344 : vector<8x128xf32> to vector<1x8x128xf32>
      tpu.vector_store %arg5[%c9_152, %c0_153, %c0_154], %347 {strides = array<i32>} : memref<16x8x128xf32, #tpu.memory_space<vmem>>, vector<1x8x128xf32>,
      %c0_155 = arith.constant 0 : index
      %c0_156 = arith.constant 0 : index
      %348 = vector.load %arg8[%c0_155, %c0_156] : memref<8x128xf32, #tpu.memory_space<vmem>>, vector<8x128xf32>
      %349 = arith.select %309, %342, %348 : vector<8x128xi1>, vector<8x128xf32>
      %c0_157 = arith.constant 0 : index
      %c0_158 = arith.constant 0 : index
      %350 = vector.load %arg8[%c0_157, %c0_158] : memref<8x128xf32, #tpu.memory_space<vmem>>, vector<8x128xf32>
      tpu.vector_store %arg8[%c0_157, %c0_158], %349 {strides = array<i32>} : memref<8x128xf32, #tpu.memory_space<vmem>>, vector<8x128xf32>,
      %c0_159 = arith.constant 0 : index
      %c0_160 = arith.constant 0 : index
      %351 = vector.load %arg9[%c0_159, %c0_160] : memref<8x128xf32, #tpu.memory_space<vmem>>, vector<8x128xf32>
      %352 = arith.select %309, %340, %351 : vector<8x128xi1>, vector<8x128xf32>
      %c0_161 = arith.constant 0 : index
      %c0_162 = arith.constant 0 : index
      %353 = vector.load %arg9[%c0_161, %c0_162] : memref<8x128xf32, #tpu.memory_space<vmem>>, vector<8x128xf32>
      tpu.vector_store %arg9[%c0_161, %c0_162], %352 {strides = array<i32>} : memref<8x128xf32, #tpu.memory_space<vmem>>, vector<8x128xf32>,
      %c8_i32 = arith.constant 8 : i32
      %354 = vector.broadcast %c8_i32 : i32 to vector<8x1xi32>
      %355 = arith.cmpi sgt, %17, %354 : vector<8x1xi32>
      %356 = vector.shape_cast %355 : vector<8x1xi1> to vector<8x1xi1>
      %357 = vector.broadcast %356 : vector<8x1xi1> to vector<8x128xi1>
      %c8 = arith.constant 8 : index
      %c0_163 = arith.constant 0 : index
      %c0_164 = arith.constant 0 : index
      %358 = vector.load %arg3[%c8, %c0_163, %c0_164] : memref<16x8x512xbf16, #tpu.memory_space<vmem>>, vector<1x8x512xbf16>
      %359 = vector.shape_cast %358 : vector<1x8x512xbf16> to vector<8x512xbf16>
      %360 = arith.extf %359 : vector<8x512xbf16> to vector<8x512xf32>
      %c0_165 = arith.constant 0 : index
      %c0_166 = arith.constant 0 : index
      %361 = vector.load %arg8[%c0_165, %c0_166] : memref<8x128xf32, #tpu.memory_space<vmem>>, vector<8x128xf32>
      %362 = arith.truncf %361 : vector<8x128xf32> to vector<8x128xbf16>
      %cst_167 = arith.constant dense<0.000000e+00> : vector<8x512xf32>
      %363 = tpu.matmul %362, %3, %cst_167 {dimension_numbers = #tpu.dot_dimension_numbers<[1], [0], [0], [1], [0, 0, 1, 1], [], []>} : vector<8x128xbf16>, vector<128x512xbf16>, vector<8x512xf32> -> vector<8x512xf32>
      %364 = arith.addf %360, %363 : vector<8x512xf32>
      %365 = vector.extract_strided_slice %364 {offsets = [0, 0], sizes = [8, 128], strides = [1, 1]} : vector<8x512xf32> to vector<8x128xf32>
      %366 = arith.negf %365 : vector<8x128xf32>
      %367 = math.exp %366 : vector<8x128xf32>
      %cst_168 = arith.constant 1.000000e+00 : f32
      %368 = vector.broadcast %cst_168 : f32 to vector<8x128xf32>
      %369 = arith.addf %368, %367 : vector<8x128xf32>
      %370 = arith.divf %368, %369 : vector<8x128xf32>
      %371 = vector.extract_strided_slice %364 {offsets = [0, 128], sizes = [8, 128], strides = [1, 1]} : vector<8x512xf32> to vector<8x128xf32>
      %372 = arith.negf %371 : vector<8x128xf32>
      %373 = math.exp %372 : vector<8x128xf32>
      %cst_169 = arith.constant 1.000000e+00 : f32
      %374 = vector.broadcast %cst_169 : f32 to vector<8x128xf32>
      %375 = arith.addf %374, %373 : vector<8x128xf32>
      %376 = arith.divf %374, %375 : vector<8x128xf32>
      %377 = vector.extract_strided_slice %364 {offsets = [0, 256], sizes = [8, 128], strides = [1, 1]} : vector<8x512xf32> to vector<8x128xf32>
      %378 = math.tanh %377 : vector<8x128xf32>
      %379 = vector.extract_strided_slice %364 {offsets = [0, 384], sizes = [8, 128], strides = [1, 1]} : vector<8x512xf32> to vector<8x128xf32>
      %380 = arith.negf %379 : vector<8x128xf32>
      %381 = math.exp %380 : vector<8x128xf32>
      %cst_170 = arith.constant 1.000000e+00 : f32
      %382 = vector.broadcast %cst_170 : f32 to vector<8x128xf32>
      %383 = arith.addf %382, %381 : vector<8x128xf32>
      %384 = arith.divf %382, %383 : vector<8x128xf32>
      %c0_171 = arith.constant 0 : index
      %c0_172 = arith.constant 0 : index
      %385 = vector.load %arg9[%c0_171, %c0_172] : memref<8x128xf32, #tpu.memory_space<vmem>>, vector<8x128xf32>
      %386 = arith.mulf %376, %385 : vector<8x128xf32>
      %387 = arith.mulf %370, %378 : vector<8x128xf32>
      %388 = arith.addf %386, %387 : vector<8x128xf32>
      %389 = math.tanh %388 : vector<8x128xf32>
      %390 = arith.mulf %384, %389 : vector<8x128xf32>
      %cst_173 = arith.constant 0.000000e+00 : f32
      %391 = vector.broadcast %cst_173 : f32 to vector<8x128xf32>
      %392 = arith.select %357, %390, %391 : vector<8x128xi1>, vector<8x128xf32>
      %c8_174 = arith.constant 8 : index
      %c0_175 = arith.constant 0 : index
      %c0_176 = arith.constant 0 : index
      %393 = vector.load %arg5[%c8_174, %c0_175, %c0_176] : memref<16x8x128xf32, #tpu.memory_space<vmem>>, vector<1x8x128xf32>
      %394 = vector.shape_cast %393 : vector<1x8x128xf32> to vector<8x128xf32>
      %395 = vector.shape_cast %392 : vector<8x128xf32> to vector<1x8x128xf32>
      tpu.vector_store %arg5[%c8_174, %c0_175, %c0_176], %395 {strides = array<i32>} : memref<16x8x128xf32, #tpu.memory_space<vmem>>, vector<1x8x128xf32>,
      %c0_177 = arith.constant 0 : index
      %c0_178 = arith.constant 0 : index
      %396 = vector.load %arg8[%c0_177, %c0_178] : memref<8x128xf32, #tpu.memory_space<vmem>>, vector<8x128xf32>
      %397 = arith.select %357, %390, %396 : vector<8x128xi1>, vector<8x128xf32>
      %c0_179 = arith.constant 0 : index
      %c0_180 = arith.constant 0 : index
      %398 = vector.load %arg8[%c0_179, %c0_180] : memref<8x128xf32, #tpu.memory_space<vmem>>, vector<8x128xf32>
      tpu.vector_store %arg8[%c0_179, %c0_180], %397 {strides = array<i32>} : memref<8x128xf32, #tpu.memory_space<vmem>>, vector<8x128xf32>,
      %c0_181 = arith.constant 0 : index
      %c0_182 = arith.constant 0 : index
      %399 = vector.load %arg9[%c0_181, %c0_182] : memref<8x128xf32, #tpu.memory_space<vmem>>, vector<8x128xf32>
      %400 = arith.select %357, %388, %399 : vector<8x128xi1>, vector<8x128xf32>
      %c0_183 = arith.constant 0 : index
      %c0_184 = arith.constant 0 : index
      %401 = vector.load %arg9[%c0_183, %c0_184] : memref<8x128xf32, #tpu.memory_space<vmem>>, vector<8x128xf32>
      tpu.vector_store %arg9[%c0_183, %c0_184], %400 {strides = array<i32>} : memref<8x128xf32, #tpu.memory_space<vmem>>, vector<8x128xf32>,
      %c7_i32 = arith.constant 7 : i32
      %402 = vector.broadcast %c7_i32 : i32 to vector<8x1xi32>
      %403 = arith.cmpi sgt, %17, %402 : vector<8x1xi32>
      %404 = vector.shape_cast %403 : vector<8x1xi1> to vector<8x1xi1>
      %405 = vector.broadcast %404 : vector<8x1xi1> to vector<8x128xi1>
      %c7 = arith.constant 7 : index
      %c0_185 = arith.constant 0 : index
      %c0_186 = arith.constant 0 : index
      %406 = vector.load %arg3[%c7, %c0_185, %c0_186] : memref<16x8x512xbf16, #tpu.memory_space<vmem>>, vector<1x8x512xbf16>
      %407 = vector.shape_cast %406 : vector<1x8x512xbf16> to vector<8x512xbf16>
      %408 = arith.extf %407 : vector<8x512xbf16> to vector<8x512xf32>
      %c0_187 = arith.constant 0 : index
      %c0_188 = arith.constant 0 : index
      %409 = vector.load %arg8[%c0_187, %c0_188] : memref<8x128xf32, #tpu.memory_space<vmem>>, vector<8x128xf32>
      %410 = arith.truncf %409 : vector<8x128xf32> to vector<8x128xbf16>
      %cst_189 = arith.constant dense<0.000000e+00> : vector<8x512xf32>
      %411 = tpu.matmul %410, %3, %cst_189 {dimension_numbers = #tpu.dot_dimension_numbers<[1], [0], [0], [1], [0, 0, 1, 1], [], []>} : vector<8x128xbf16>, vector<128x512xbf16>, vector<8x512xf32> -> vector<8x512xf32>
      %412 = arith.addf %408, %411 : vector<8x512xf32>
      %413 = vector.extract_strided_slice %412 {offsets = [0, 0], sizes = [8, 128], strides = [1, 1]} : vector<8x512xf32> to vector<8x128xf32>
      %414 = arith.negf %413 : vector<8x128xf32>
      %415 = math.exp %414 : vector<8x128xf32>
      %cst_190 = arith.constant 1.000000e+00 : f32
      %416 = vector.broadcast %cst_190 : f32 to vector<8x128xf32>
      %417 = arith.addf %416, %415 : vector<8x128xf32>
      %418 = arith.divf %416, %417 : vector<8x128xf32>
      %419 = vector.extract_strided_slice %412 {offsets = [0, 128], sizes = [8, 128], strides = [1, 1]} : vector<8x512xf32> to vector<8x128xf32>
      %420 = arith.negf %419 : vector<8x128xf32>
      %421 = math.exp %420 : vector<8x128xf32>
      %cst_191 = arith.constant 1.000000e+00 : f32
      %422 = vector.broadcast %cst_191 : f32 to vector<8x128xf32>
      %423 = arith.addf %422, %421 : vector<8x128xf32>
      %424 = arith.divf %422, %423 : vector<8x128xf32>
      %425 = vector.extract_strided_slice %412 {offsets = [0, 256], sizes = [8, 128], strides = [1, 1]} : vector<8x512xf32> to vector<8x128xf32>
      %426 = math.tanh %425 : vector<8x128xf32>
      %427 = vector.extract_strided_slice %412 {offsets = [0, 384], sizes = [8, 128], strides = [1, 1]} : vector<8x512xf32> to vector<8x128xf32>
      %428 = arith.negf %427 : vector<8x128xf32>
      %429 = math.exp %428 : vector<8x128xf32>
      %cst_192 = arith.constant 1.000000e+00 : f32
      %430 = vector.broadcast %cst_192 : f32 to vector<8x128xf32>
      %431 = arith.addf %430, %429 : vector<8x128xf32>
      %432 = arith.divf %430, %431 : vector<8x128xf32>
      %c0_193 = arith.constant 0 : index
      %c0_194 = arith.constant 0 : index
      %433 = vector.load %arg9[%c0_193, %c0_194] : memref<8x128xf32, #tpu.memory_space<vmem>>, vector<8x128xf32>
      %434 = arith.mulf %424, %433 : vector<8x128xf32>
      %435 = arith.mulf %418, %426 : vector<8x128xf32>
      %436 = arith.addf %434, %435 : vector<8x128xf32>
      %437 = math.tanh %436 : vector<8x128xf32>
      %438 = arith.mulf %432, %437 : vector<8x128xf32>
      %cst_195 = arith.constant 0.000000e+00 : f32
      %439 = vector.broadcast %cst_195 : f32 to vector<8x128xf32>
      %440 = arith.select %405, %438, %439 : vector<8x128xi1>, vector<8x128xf32>
      %c7_196 = arith.constant 7 : index
      %c0_197 = arith.constant 0 : index
      %c0_198 = arith.constant 0 : index
      %441 = vector.load %arg5[%c7_196, %c0_197, %c0_198] : memref<16x8x128xf32, #tpu.memory_space<vmem>>, vector<1x8x128xf32>
      %442 = vector.shape_cast %441 : vector<1x8x128xf32> to vector<8x128xf32>
      %443 = vector.shape_cast %440 : vector<8x128xf32> to vector<1x8x128xf32>
      tpu.vector_store %arg5[%c7_196, %c0_197, %c0_198], %443 {strides = array<i32>} : memref<16x8x128xf32, #tpu.memory_space<vmem>>, vector<1x8x128xf32>,
      %c0_199 = arith.constant 0 : index
      %c0_200 = arith.constant 0 : index
      %444 = vector.load %arg8[%c0_199, %c0_200] : memref<8x128xf32, #tpu.memory_space<vmem>>, vector<8x128xf32>
      %445 = arith.select %405, %438, %444 : vector<8x128xi1>, vector<8x128xf32>
      %c0_201 = arith.constant 0 : index
      %c0_202 = arith.constant 0 : index
      %446 = vector.load %arg8[%c0_201, %c0_202] : memref<8x128xf32, #tpu.memory_space<vmem>>, vector<8x128xf32>
      tpu.vector_store %arg8[%c0_201, %c0_202], %445 {strides = array<i32>} : memref<8x128xf32, #tpu.memory_space<vmem>>, vector<8x128xf32>,
      %c0_203 = arith.constant 0 : index
      %c0_204 = arith.constant 0 : index
      %447 = vector.load %arg9[%c0_203, %c0_204] : memref<8x128xf32, #tpu.memory_space<vmem>>, vector<8x128xf32>
      %448 = arith.select %405, %436, %447 : vector<8x128xi1>, vector<8x128xf32>
      %c0_205 = arith.constant 0 : index
      %c0_206 = arith.constant 0 : index
      %449 = vector.load %arg9[%c0_205, %c0_206] : memref<8x128xf32, #tpu.memory_space<vmem>>, vector<8x128xf32>
      tpu.vector_store %arg9[%c0_205, %c0_206], %448 {strides = array<i32>} : memref<8x128xf32, #tpu.memory_space<vmem>>, vector<8x128xf32>,
      %c6_i32 = arith.constant 6 : i32
      %450 = vector.broadcast %c6_i32 : i32 to vector<8x1xi32>
      %451 = arith.cmpi sgt, %17, %450 : vector<8x1xi32>
      %452 = vector.shape_cast %451 : vector<8x1xi1> to vector<8x1xi1>
      %453 = vector.broadcast %452 : vector<8x1xi1> to vector<8x128xi1>
      %c6 = arith.constant 6 : index
      %c0_207 = arith.constant 0 : index
      %c0_208 = arith.constant 0 : index
      %454 = vector.load %arg3[%c6, %c0_207, %c0_208] : memref<16x8x512xbf16, #tpu.memory_space<vmem>>, vector<1x8x512xbf16>
      %455 = vector.shape_cast %454 : vector<1x8x512xbf16> to vector<8x512xbf16>
      %456 = arith.extf %455 : vector<8x512xbf16> to vector<8x512xf32>
      %c0_209 = arith.constant 0 : index
      %c0_210 = arith.constant 0 : index
      %457 = vector.load %arg8[%c0_209, %c0_210] : memref<8x128xf32, #tpu.memory_space<vmem>>, vector<8x128xf32>
      %458 = arith.truncf %457 : vector<8x128xf32> to vector<8x128xbf16>
      %cst_211 = arith.constant dense<0.000000e+00> : vector<8x512xf32>
      %459 = tpu.matmul %458, %3, %cst_211 {dimension_numbers = #tpu.dot_dimension_numbers<[1], [0], [0], [1], [0, 0, 1, 1], [], []>} : vector<8x128xbf16>, vector<128x512xbf16>, vector<8x512xf32> -> vector<8x512xf32>
      %460 = arith.addf %456, %459 : vector<8x512xf32>
      %461 = vector.extract_strided_slice %460 {offsets = [0, 0], sizes = [8, 128], strides = [1, 1]} : vector<8x512xf32> to vector<8x128xf32>
      %462 = arith.negf %461 : vector<8x128xf32>
      %463 = math.exp %462 : vector<8x128xf32>
      %cst_212 = arith.constant 1.000000e+00 : f32
      %464 = vector.broadcast %cst_212 : f32 to vector<8x128xf32>
      %465 = arith.addf %464, %463 : vector<8x128xf32>
      %466 = arith.divf %464, %465 : vector<8x128xf32>
      %467 = vector.extract_strided_slice %460 {offsets = [0, 128], sizes = [8, 128], strides = [1, 1]} : vector<8x512xf32> to vector<8x128xf32>
      %468 = arith.negf %467 : vector<8x128xf32>
      %469 = math.exp %468 : vector<8x128xf32>
      %cst_213 = arith.constant 1.000000e+00 : f32
      %470 = vector.broadcast %cst_213 : f32 to vector<8x128xf32>
      %471 = arith.addf %470, %469 : vector<8x128xf32>
      %472 = arith.divf %470, %471 : vector<8x128xf32>
      %473 = vector.extract_strided_slice %460 {offsets = [0, 256], sizes = [8, 128], strides = [1, 1]} : vector<8x512xf32> to vector<8x128xf32>
      %474 = math.tanh %473 : vector<8x128xf32>
      %475 = vector.extract_strided_slice %460 {offsets = [0, 384], sizes = [8, 128], strides = [1, 1]} : vector<8x512xf32> to vector<8x128xf32>
      %476 = arith.negf %475 : vector<8x128xf32>
      %477 = math.exp %476 : vector<8x128xf32>
      %cst_214 = arith.constant 1.000000e+00 : f32
      %478 = vector.broadcast %cst_214 : f32 to vector<8x128xf32>
      %479 = arith.addf %478, %477 : vector<8x128xf32>
      %480 = arith.divf %478, %479 : vector<8x128xf32>
      %c0_215 = arith.constant 0 : index
      %c0_216 = arith.constant 0 : index
      %481 = vector.load %arg9[%c0_215, %c0_216] : memref<8x128xf32, #tpu.memory_space<vmem>>, vector<8x128xf32>
      %482 = arith.mulf %472, %481 : vector<8x128xf32>
      %483 = arith.mulf %466, %474 : vector<8x128xf32>
      %484 = arith.addf %482, %483 : vector<8x128xf32>
      %485 = math.tanh %484 : vector<8x128xf32>
      %486 = arith.mulf %480, %485 : vector<8x128xf32>
      %cst_217 = arith.constant 0.000000e+00 : f32
      %487 = vector.broadcast %cst_217 : f32 to vector<8x128xf32>
      %488 = arith.select %453, %486, %487 : vector<8x128xi1>, vector<8x128xf32>
      %c6_218 = arith.constant 6 : index
      %c0_219 = arith.constant 0 : index
      %c0_220 = arith.constant 0 : index
      %489 = vector.load %arg5[%c6_218, %c0_219, %c0_220] : memref<16x8x128xf32, #tpu.memory_space<vmem>>, vector<1x8x128xf32>
      %490 = vector.shape_cast %489 : vector<1x8x128xf32> to vector<8x128xf32>
      %491 = vector.shape_cast %488 : vector<8x128xf32> to vector<1x8x128xf32>
      tpu.vector_store %arg5[%c6_218, %c0_219, %c0_220], %491 {strides = array<i32>} : memref<16x8x128xf32, #tpu.memory_space<vmem>>, vector<1x8x128xf32>,
      %c0_221 = arith.constant 0 : index
      %c0_222 = arith.constant 0 : index
      %492 = vector.load %arg8[%c0_221, %c0_222] : memref<8x128xf32, #tpu.memory_space<vmem>>, vector<8x128xf32>
      %493 = arith.select %453, %486, %492 : vector<8x128xi1>, vector<8x128xf32>
      %c0_223 = arith.constant 0 : index
      %c0_224 = arith.constant 0 : index
      %494 = vector.load %arg8[%c0_223, %c0_224] : memref<8x128xf32, #tpu.memory_space<vmem>>, vector<8x128xf32>
      tpu.vector_store %arg8[%c0_223, %c0_224], %493 {strides = array<i32>} : memref<8x128xf32, #tpu.memory_space<vmem>>, vector<8x128xf32>,
      %c0_225 = arith.constant 0 : index
      %c0_226 = arith.constant 0 : index
      %495 = vector.load %arg9[%c0_225, %c0_226] : memref<8x128xf32, #tpu.memory_space<vmem>>, vector<8x128xf32>
      %496 = arith.select %453, %484, %495 : vector<8x128xi1>, vector<8x128xf32>
      %c0_227 = arith.constant 0 : index
      %c0_228 = arith.constant 0 : index
      %497 = vector.load %arg9[%c0_227, %c0_228] : memref<8x128xf32, #tpu.memory_space<vmem>>, vector<8x128xf32>
      tpu.vector_store %arg9[%c0_227, %c0_228], %496 {strides = array<i32>} : memref<8x128xf32, #tpu.memory_space<vmem>>, vector<8x128xf32>,
      %c5_i32 = arith.constant 5 : i32
      %498 = vector.broadcast %c5_i32 : i32 to vector<8x1xi32>
      %499 = arith.cmpi sgt, %17, %498 : vector<8x1xi32>
      %500 = vector.shape_cast %499 : vector<8x1xi1> to vector<8x1xi1>
      %501 = vector.broadcast %500 : vector<8x1xi1> to vector<8x128xi1>
      %c5 = arith.constant 5 : index
      %c0_229 = arith.constant 0 : index
      %c0_230 = arith.constant 0 : index
      %502 = vector.load %arg3[%c5, %c0_229, %c0_230] : memref<16x8x512xbf16, #tpu.memory_space<vmem>>, vector<1x8x512xbf16>
      %503 = vector.shape_cast %502 : vector<1x8x512xbf16> to vector<8x512xbf16>
      %504 = arith.extf %503 : vector<8x512xbf16> to vector<8x512xf32>
      %c0_231 = arith.constant 0 : index
      %c0_232 = arith.constant 0 : index
      %505 = vector.load %arg8[%c0_231, %c0_232] : memref<8x128xf32, #tpu.memory_space<vmem>>, vector<8x128xf32>
      %506 = arith.truncf %505 : vector<8x128xf32> to vector<8x128xbf16>
      %cst_233 = arith.constant dense<0.000000e+00> : vector<8x512xf32>
      %507 = tpu.matmul %506, %3, %cst_233 {dimension_numbers = #tpu.dot_dimension_numbers<[1], [0], [0], [1], [0, 0, 1, 1], [], []>} : vector<8x128xbf16>, vector<128x512xbf16>, vector<8x512xf32> -> vector<8x512xf32>
      %508 = arith.addf %504, %507 : vector<8x512xf32>
      %509 = vector.extract_strided_slice %508 {offsets = [0, 0], sizes = [8, 128], strides = [1, 1]} : vector<8x512xf32> to vector<8x128xf32>
      %510 = arith.negf %509 : vector<8x128xf32>
      %511 = math.exp %510 : vector<8x128xf32>
      %cst_234 = arith.constant 1.000000e+00 : f32
      %512 = vector.broadcast %cst_234 : f32 to vector<8x128xf32>
      %513 = arith.addf %512, %511 : vector<8x128xf32>
      %514 = arith.divf %512, %513 : vector<8x128xf32>
      %515 = vector.extract_strided_slice %508 {offsets = [0, 128], sizes = [8, 128], strides = [1, 1]} : vector<8x512xf32> to vector<8x128xf32>
      %516 = arith.negf %515 : vector<8x128xf32>
      %517 = math.exp %516 : vector<8x128xf32>
      %cst_235 = arith.constant 1.000000e+00 : f32
      %518 = vector.broadcast %cst_235 : f32 to vector<8x128xf32>
      %519 = arith.addf %518, %517 : vector<8x128xf32>
      %520 = arith.divf %518, %519 : vector<8x128xf32>
      %521 = vector.extract_strided_slice %508 {offsets = [0, 256], sizes = [8, 128], strides = [1, 1]} : vector<8x512xf32> to vector<8x128xf32>
      %522 = math.tanh %521 : vector<8x128xf32>
      %523 = vector.extract_strided_slice %508 {offsets = [0, 384], sizes = [8, 128], strides = [1, 1]} : vector<8x512xf32> to vector<8x128xf32>
      %524 = arith.negf %523 : vector<8x128xf32>
      %525 = math.exp %524 : vector<8x128xf32>
      %cst_236 = arith.constant 1.000000e+00 : f32
      %526 = vector.broadcast %cst_236 : f32 to vector<8x128xf32>
      %527 = arith.addf %526, %525 : vector<8x128xf32>
      %528 = arith.divf %526, %527 : vector<8x128xf32>
      %c0_237 = arith.constant 0 : index
      %c0_238 = arith.constant 0 : index
      %529 = vector.load %arg9[%c0_237, %c0_238] : memref<8x128xf32, #tpu.memory_space<vmem>>, vector<8x128xf32>
      %530 = arith.mulf %520, %529 : vector<8x128xf32>
      %531 = arith.mulf %514, %522 : vector<8x128xf32>
      %532 = arith.addf %530, %531 : vector<8x128xf32>
      %533 = math.tanh %532 : vector<8x128xf32>
      %534 = arith.mulf %528, %533 : vector<8x128xf32>
      %cst_239 = arith.constant 0.000000e+00 : f32
      %535 = vector.broadcast %cst_239 : f32 to vector<8x128xf32>
      %536 = arith.select %501, %534, %535 : vector<8x128xi1>, vector<8x128xf32>
      %c5_240 = arith.constant 5 : index
      %c0_241 = arith.constant 0 : index
      %c0_242 = arith.constant 0 : index
      %537 = vector.load %arg5[%c5_240, %c0_241, %c0_242] : memref<16x8x128xf32, #tpu.memory_space<vmem>>, vector<1x8x128xf32>
      %538 = vector.shape_cast %537 : vector<1x8x128xf32> to vector<8x128xf32>
      %539 = vector.shape_cast %536 : vector<8x128xf32> to vector<1x8x128xf32>
      tpu.vector_store %arg5[%c5_240, %c0_241, %c0_242], %539 {strides = array<i32>} : memref<16x8x128xf32, #tpu.memory_space<vmem>>, vector<1x8x128xf32>,
      %c0_243 = arith.constant 0 : index
      %c0_244 = arith.constant 0 : index
      %540 = vector.load %arg8[%c0_243, %c0_244] : memref<8x128xf32, #tpu.memory_space<vmem>>, vector<8x128xf32>
      %541 = arith.select %501, %534, %540 : vector<8x128xi1>, vector<8x128xf32>
      %c0_245 = arith.constant 0 : index
      %c0_246 = arith.constant 0 : index
      %542 = vector.load %arg8[%c0_245, %c0_246] : memref<8x128xf32, #tpu.memory_space<vmem>>, vector<8x128xf32>
      tpu.vector_store %arg8[%c0_245, %c0_246], %541 {strides = array<i32>} : memref<8x128xf32, #tpu.memory_space<vmem>>, vector<8x128xf32>,
      %c0_247 = arith.constant 0 : index
      %c0_248 = arith.constant 0 : index
      %543 = vector.load %arg9[%c0_247, %c0_248] : memref<8x128xf32, #tpu.memory_space<vmem>>, vector<8x128xf32>
      %544 = arith.select %501, %532, %543 : vector<8x128xi1>, vector<8x128xf32>
      %c0_249 = arith.constant 0 : index
      %c0_250 = arith.constant 0 : index
      %545 = vector.load %arg9[%c0_249, %c0_250] : memref<8x128xf32, #tpu.memory_space<vmem>>, vector<8x128xf32>
      tpu.vector_store %arg9[%c0_249, %c0_250], %544 {strides = array<i32>} : memref<8x128xf32, #tpu.memory_space<vmem>>, vector<8x128xf32>,
      %c4_i32 = arith.constant 4 : i32
      %546 = vector.broadcast %c4_i32 : i32 to vector<8x1xi32>
      %547 = arith.cmpi sgt, %17, %546 : vector<8x1xi32>
      %548 = vector.shape_cast %547 : vector<8x1xi1> to vector<8x1xi1>
      %549 = vector.broadcast %548 : vector<8x1xi1> to vector<8x128xi1>
      %c4 = arith.constant 4 : index
      %c0_251 = arith.constant 0 : index
      %c0_252 = arith.constant 0 : index
      %550 = vector.load %arg3[%c4, %c0_251, %c0_252] : memref<16x8x512xbf16, #tpu.memory_space<vmem>>, vector<1x8x512xbf16>
      %551 = vector.shape_cast %550 : vector<1x8x512xbf16> to vector<8x512xbf16>
      %552 = arith.extf %551 : vector<8x512xbf16> to vector<8x512xf32>
      %c0_253 = arith.constant 0 : index
      %c0_254 = arith.constant 0 : index
      %553 = vector.load %arg8[%c0_253, %c0_254] : memref<8x128xf32, #tpu.memory_space<vmem>>, vector<8x128xf32>
      %554 = arith.truncf %553 : vector<8x128xf32> to vector<8x128xbf16>
      %cst_255 = arith.constant dense<0.000000e+00> : vector<8x512xf32>
      %555 = tpu.matmul %554, %3, %cst_255 {dimension_numbers = #tpu.dot_dimension_numbers<[1], [0], [0], [1], [0, 0, 1, 1], [], []>} : vector<8x128xbf16>, vector<128x512xbf16>, vector<8x512xf32> -> vector<8x512xf32>
      %556 = arith.addf %552, %555 : vector<8x512xf32>
      %557 = vector.extract_strided_slice %556 {offsets = [0, 0], sizes = [8, 128], strides = [1, 1]} : vector<8x512xf32> to vector<8x128xf32>
      %558 = arith.negf %557 : vector<8x128xf32>
      %559 = math.exp %558 : vector<8x128xf32>
      %cst_256 = arith.constant 1.000000e+00 : f32
      %560 = vector.broadcast %cst_256 : f32 to vector<8x128xf32>
      %561 = arith.addf %560, %559 : vector<8x128xf32>
      %562 = arith.divf %560, %561 : vector<8x128xf32>
      %563 = vector.extract_strided_slice %556 {offsets = [0, 128], sizes = [8, 128], strides = [1, 1]} : vector<8x512xf32> to vector<8x128xf32>
      %564 = arith.negf %563 : vector<8x128xf32>
      %565 = math.exp %564 : vector<8x128xf32>
      %cst_257 = arith.constant 1.000000e+00 : f32
      %566 = vector.broadcast %cst_257 : f32 to vector<8x128xf32>
      %567 = arith.addf %566, %565 : vector<8x128xf32>
      %568 = arith.divf %566, %567 : vector<8x128xf32>
      %569 = vector.extract_strided_slice %556 {offsets = [0, 256], sizes = [8, 128], strides = [1, 1]} : vector<8x512xf32> to vector<8x128xf32>
      %570 = math.tanh %569 : vector<8x128xf32>
      %571 = vector.extract_strided_slice %556 {offsets = [0, 384], sizes = [8, 128], strides = [1, 1]} : vector<8x512xf32> to vector<8x128xf32>
      %572 = arith.negf %571 : vector<8x128xf32>
      %573 = math.exp %572 : vector<8x128xf32>
      %cst_258 = arith.constant 1.000000e+00 : f32
      %574 = vector.broadcast %cst_258 : f32 to vector<8x128xf32>
      %575 = arith.addf %574, %573 : vector<8x128xf32>
      %576 = arith.divf %574, %575 : vector<8x128xf32>
      %c0_259 = arith.constant 0 : index
      %c0_260 = arith.constant 0 : index
      %577 = vector.load %arg9[%c0_259, %c0_260] : memref<8x128xf32, #tpu.memory_space<vmem>>, vector<8x128xf32>
      %578 = arith.mulf %568, %577 : vector<8x128xf32>
      %579 = arith.mulf %562, %570 : vector<8x128xf32>
      %580 = arith.addf %578, %579 : vector<8x128xf32>
      %581 = math.tanh %580 : vector<8x128xf32>
      %582 = arith.mulf %576, %581 : vector<8x128xf32>
      %cst_261 = arith.constant 0.000000e+00 : f32
      %583 = vector.broadcast %cst_261 : f32 to vector<8x128xf32>
      %584 = arith.select %549, %582, %583 : vector<8x128xi1>, vector<8x128xf32>
      %c4_262 = arith.constant 4 : index
      %c0_263 = arith.constant 0 : index
      %c0_264 = arith.constant 0 : index
      %585 = vector.load %arg5[%c4_262, %c0_263, %c0_264] : memref<16x8x128xf32, #tpu.memory_space<vmem>>, vector<1x8x128xf32>
      %586 = vector.shape_cast %585 : vector<1x8x128xf32> to vector<8x128xf32>
      %587 = vector.shape_cast %584 : vector<8x128xf32> to vector<1x8x128xf32>
      tpu.vector_store %arg5[%c4_262, %c0_263, %c0_264], %587 {strides = array<i32>} : memref<16x8x128xf32, #tpu.memory_space<vmem>>, vector<1x8x128xf32>,
      %c0_265 = arith.constant 0 : index
      %c0_266 = arith.constant 0 : index
      %588 = vector.load %arg8[%c0_265, %c0_266] : memref<8x128xf32, #tpu.memory_space<vmem>>, vector<8x128xf32>
      %589 = arith.select %549, %582, %588 : vector<8x128xi1>, vector<8x128xf32>
      %c0_267 = arith.constant 0 : index
      %c0_268 = arith.constant 0 : index
      %590 = vector.load %arg8[%c0_267, %c0_268] : memref<8x128xf32, #tpu.memory_space<vmem>>, vector<8x128xf32>
      tpu.vector_store %arg8[%c0_267, %c0_268], %589 {strides = array<i32>} : memref<8x128xf32, #tpu.memory_space<vmem>>, vector<8x128xf32>,
      %c0_269 = arith.constant 0 : index
      %c0_270 = arith.constant 0 : index
      %591 = vector.load %arg9[%c0_269, %c0_270] : memref<8x128xf32, #tpu.memory_space<vmem>>, vector<8x128xf32>
      %592 = arith.select %549, %580, %591 : vector<8x128xi1>, vector<8x128xf32>
      %c0_271 = arith.constant 0 : index
      %c0_272 = arith.constant 0 : index
      %593 = vector.load %arg9[%c0_271, %c0_272] : memref<8x128xf32, #tpu.memory_space<vmem>>, vector<8x128xf32>
      tpu.vector_store %arg9[%c0_271, %c0_272], %592 {strides = array<i32>} : memref<8x128xf32, #tpu.memory_space<vmem>>, vector<8x128xf32>,
      %c3_i32 = arith.constant 3 : i32
      %594 = vector.broadcast %c3_i32 : i32 to vector<8x1xi32>
      %595 = arith.cmpi sgt, %17, %594 : vector<8x1xi32>
      %596 = vector.shape_cast %595 : vector<8x1xi1> to vector<8x1xi1>
      %597 = vector.broadcast %596 : vector<8x1xi1> to vector<8x128xi1>
      %c3 = arith.constant 3 : index
      %c0_273 = arith.constant 0 : index
      %c0_274 = arith.constant 0 : index
      %598 = vector.load %arg3[%c3, %c0_273, %c0_274] : memref<16x8x512xbf16, #tpu.memory_space<vmem>>, vector<1x8x512xbf16>
      %599 = vector.shape_cast %598 : vector<1x8x512xbf16> to vector<8x512xbf16>
      %600 = arith.extf %599 : vector<8x512xbf16> to vector<8x512xf32>
      %c0_275 = arith.constant 0 : index
      %c0_276 = arith.constant 0 : index
      %601 = vector.load %arg8[%c0_275, %c0_276] : memref<8x128xf32, #tpu.memory_space<vmem>>, vector<8x128xf32>
      %602 = arith.truncf %601 : vector<8x128xf32> to vector<8x128xbf16>
      %cst_277 = arith.constant dense<0.000000e+00> : vector<8x512xf32>
      %603 = tpu.matmul %602, %3, %cst_277 {dimension_numbers = #tpu.dot_dimension_numbers<[1], [0], [0], [1], [0, 0, 1, 1], [], []>} : vector<8x128xbf16>, vector<128x512xbf16>, vector<8x512xf32> -> vector<8x512xf32>
      %604 = arith.addf %600, %603 : vector<8x512xf32>
      %605 = vector.extract_strided_slice %604 {offsets = [0, 0], sizes = [8, 128], strides = [1, 1]} : vector<8x512xf32> to vector<8x128xf32>
      %606 = arith.negf %605 : vector<8x128xf32>
      %607 = math.exp %606 : vector<8x128xf32>
      %cst_278 = arith.constant 1.000000e+00 : f32
      %608 = vector.broadcast %cst_278 : f32 to vector<8x128xf32>
      %609 = arith.addf %608, %607 : vector<8x128xf32>
      %610 = arith.divf %608, %609 : vector<8x128xf32>
      %611 = vector.extract_strided_slice %604 {offsets = [0, 128], sizes = [8, 128], strides = [1, 1]} : vector<8x512xf32> to vector<8x128xf32>
      %612 = arith.negf %611 : vector<8x128xf32>
      %613 = math.exp %612 : vector<8x128xf32>
      %cst_279 = arith.constant 1.000000e+00 : f32
      %614 = vector.broadcast %cst_279 : f32 to vector<8x128xf32>
      %615 = arith.addf %614, %613 : vector<8x128xf32>
      %616 = arith.divf %614, %615 : vector<8x128xf32>
      %617 = vector.extract_strided_slice %604 {offsets = [0, 256], sizes = [8, 128], strides = [1, 1]} : vector<8x512xf32> to vector<8x128xf32>
      %618 = math.tanh %617 : vector<8x128xf32>
      %619 = vector.extract_strided_slice %604 {offsets = [0, 384], sizes = [8, 128], strides = [1, 1]} : vector<8x512xf32> to vector<8x128xf32>
      %620 = arith.negf %619 : vector<8x128xf32>
      %621 = math.exp %620 : vector<8x128xf32>
      %cst_280 = arith.constant 1.000000e+00 : f32
      %622 = vector.broadcast %cst_280 : f32 to vector<8x128xf32>
      %623 = arith.addf %622, %621 : vector<8x128xf32>
      %624 = arith.divf %622, %623 : vector<8x128xf32>
      %c0_281 = arith.constant 0 : index
      %c0_282 = arith.constant 0 : index
      %625 = vector.load %arg9[%c0_281, %c0_282] : memref<8x128xf32, #tpu.memory_space<vmem>>, vector<8x128xf32>
      %626 = arith.mulf %616, %625 : vector<8x128xf32>
      %627 = arith.mulf %610, %618 : vector<8x128xf32>
      %628 = arith.addf %626, %627 : vector<8x128xf32>
      %629 = math.tanh %628 : vector<8x128xf32>
      %630 = arith.mulf %624, %629 : vector<8x128xf32>
      %cst_283 = arith.constant 0.000000e+00 : f32
      %631 = vector.broadcast %cst_283 : f32 to vector<8x128xf32>
      %632 = arith.select %597, %630, %631 : vector<8x128xi1>, vector<8x128xf32>
      %c3_284 = arith.constant 3 : index
      %c0_285 = arith.constant 0 : index
      %c0_286 = arith.constant 0 : index
      %633 = vector.load %arg5[%c3_284, %c0_285, %c0_286] : memref<16x8x128xf32, #tpu.memory_space<vmem>>, vector<1x8x128xf32>
      %634 = vector.shape_cast %633 : vector<1x8x128xf32> to vector<8x128xf32>
      %635 = vector.shape_cast %632 : vector<8x128xf32> to vector<1x8x128xf32>
      tpu.vector_store %arg5[%c3_284, %c0_285, %c0_286], %635 {strides = array<i32>} : memref<16x8x128xf32, #tpu.memory_space<vmem>>, vector<1x8x128xf32>,
      %c0_287 = arith.constant 0 : index
      %c0_288 = arith.constant 0 : index
      %636 = vector.load %arg8[%c0_287, %c0_288] : memref<8x128xf32, #tpu.memory_space<vmem>>, vector<8x128xf32>
      %637 = arith.select %597, %630, %636 : vector<8x128xi1>, vector<8x128xf32>
      %c0_289 = arith.constant 0 : index
      %c0_290 = arith.constant 0 : index
      %638 = vector.load %arg8[%c0_289, %c0_290] : memref<8x128xf32, #tpu.memory_space<vmem>>, vector<8x128xf32>
      tpu.vector_store %arg8[%c0_289, %c0_290], %637 {strides = array<i32>} : memref<8x128xf32, #tpu.memory_space<vmem>>, vector<8x128xf32>,
      %c0_291 = arith.constant 0 : index
      %c0_292 = arith.constant 0 : index
      %639 = vector.load %arg9[%c0_291, %c0_292] : memref<8x128xf32, #tpu.memory_space<vmem>>, vector<8x128xf32>
      %640 = arith.select %597, %628, %639 : vector<8x128xi1>, vector<8x128xf32>
      %c0_293 = arith.constant 0 : index
      %c0_294 = arith.constant 0 : index
      %641 = vector.load %arg9[%c0_293, %c0_294] : memref<8x128xf32, #tpu.memory_space<vmem>>, vector<8x128xf32>
      tpu.vector_store %arg9[%c0_293, %c0_294], %640 {strides = array<i32>} : memref<8x128xf32, #tpu.memory_space<vmem>>, vector<8x128xf32>,
      %c2_i32 = arith.constant 2 : i32
      %642 = vector.broadcast %c2_i32 : i32 to vector<8x1xi32>
      %643 = arith.cmpi sgt, %17, %642 : vector<8x1xi32>
      %644 = vector.shape_cast %643 : vector<8x1xi1> to vector<8x1xi1>
      %645 = vector.broadcast %644 : vector<8x1xi1> to vector<8x128xi1>
      %c2 = arith.constant 2 : index
      %c0_295 = arith.constant 0 : index
      %c0_296 = arith.constant 0 : index
      %646 = vector.load %arg3[%c2, %c0_295, %c0_296] : memref<16x8x512xbf16, #tpu.memory_space<vmem>>, vector<1x8x512xbf16>
      %647 = vector.shape_cast %646 : vector<1x8x512xbf16> to vector<8x512xbf16>
      %648 = arith.extf %647 : vector<8x512xbf16> to vector<8x512xf32>
      %c0_297 = arith.constant 0 : index
      %c0_298 = arith.constant 0 : index
      %649 = vector.load %arg8[%c0_297, %c0_298] : memref<8x128xf32, #tpu.memory_space<vmem>>, vector<8x128xf32>
      %650 = arith.truncf %649 : vector<8x128xf32> to vector<8x128xbf16>
      %cst_299 = arith.constant dense<0.000000e+00> : vector<8x512xf32>
      %651 = tpu.matmul %650, %3, %cst_299 {dimension_numbers = #tpu.dot_dimension_numbers<[1], [0], [0], [1], [0, 0, 1, 1], [], []>} : vector<8x128xbf16>, vector<128x512xbf16>, vector<8x512xf32> -> vector<8x512xf32>
      %652 = arith.addf %648, %651 : vector<8x512xf32>
      %653 = vector.extract_strided_slice %652 {offsets = [0, 0], sizes = [8, 128], strides = [1, 1]} : vector<8x512xf32> to vector<8x128xf32>
      %654 = arith.negf %653 : vector<8x128xf32>
      %655 = math.exp %654 : vector<8x128xf32>
      %cst_300 = arith.constant 1.000000e+00 : f32
      %656 = vector.broadcast %cst_300 : f32 to vector<8x128xf32>
      %657 = arith.addf %656, %655 : vector<8x128xf32>
      %658 = arith.divf %656, %657 : vector<8x128xf32>
      %659 = vector.extract_strided_slice %652 {offsets = [0, 128], sizes = [8, 128], strides = [1, 1]} : vector<8x512xf32> to vector<8x128xf32>
      %660 = arith.negf %659 : vector<8x128xf32>
      %661 = math.exp %660 : vector<8x128xf32>
      %cst_301 = arith.constant 1.000000e+00 : f32
      %662 = vector.broadcast %cst_301 : f32 to vector<8x128xf32>
      %663 = arith.addf %662, %661 : vector<8x128xf32>
      %664 = arith.divf %662, %663 : vector<8x128xf32>
      %665 = vector.extract_strided_slice %652 {offsets = [0, 256], sizes = [8, 128], strides = [1, 1]} : vector<8x512xf32> to vector<8x128xf32>
      %666 = math.tanh %665 : vector<8x128xf32>
      %667 = vector.extract_strided_slice %652 {offsets = [0, 384], sizes = [8, 128], strides = [1, 1]} : vector<8x512xf32> to vector<8x128xf32>
      %668 = arith.negf %667 : vector<8x128xf32>
      %669 = math.exp %668 : vector<8x128xf32>
      %cst_302 = arith.constant 1.000000e+00 : f32
      %670 = vector.broadcast %cst_302 : f32 to vector<8x128xf32>
      %671 = arith.addf %670, %669 : vector<8x128xf32>
      %672 = arith.divf %670, %671 : vector<8x128xf32>
      %c0_303 = arith.constant 0 : index
      %c0_304 = arith.constant 0 : index
      %673 = vector.load %arg9[%c0_303, %c0_304] : memref<8x128xf32, #tpu.memory_space<vmem>>, vector<8x128xf32>
      %674 = arith.mulf %664, %673 : vector<8x128xf32>
      %675 = arith.mulf %658, %666 : vector<8x128xf32>
      %676 = arith.addf %674, %675 : vector<8x128xf32>
      %677 = math.tanh %676 : vector<8x128xf32>
      %678 = arith.mulf %672, %677 : vector<8x128xf32>
      %cst_305 = arith.constant 0.000000e+00 : f32
      %679 = vector.broadcast %cst_305 : f32 to vector<8x128xf32>
      %680 = arith.select %645, %678, %679 : vector<8x128xi1>, vector<8x128xf32>
      %c2_306 = arith.constant 2 : index
      %c0_307 = arith.constant 0 : index
      %c0_308 = arith.constant 0 : index
      %681 = vector.load %arg5[%c2_306, %c0_307, %c0_308] : memref<16x8x128xf32, #tpu.memory_space<vmem>>, vector<1x8x128xf32>
      %682 = vector.shape_cast %681 : vector<1x8x128xf32> to vector<8x128xf32>
      %683 = vector.shape_cast %680 : vector<8x128xf32> to vector<1x8x128xf32>
      tpu.vector_store %arg5[%c2_306, %c0_307, %c0_308], %683 {strides = array<i32>} : memref<16x8x128xf32, #tpu.memory_space<vmem>>, vector<1x8x128xf32>,
      %c0_309 = arith.constant 0 : index
      %c0_310 = arith.constant 0 : index
      %684 = vector.load %arg8[%c0_309, %c0_310] : memref<8x128xf32, #tpu.memory_space<vmem>>, vector<8x128xf32>
      %685 = arith.select %645, %678, %684 : vector<8x128xi1>, vector<8x128xf32>
      %c0_311 = arith.constant 0 : index
      %c0_312 = arith.constant 0 : index
      %686 = vector.load %arg8[%c0_311, %c0_312] : memref<8x128xf32, #tpu.memory_space<vmem>>, vector<8x128xf32>
      tpu.vector_store %arg8[%c0_311, %c0_312], %685 {strides = array<i32>} : memref<8x128xf32, #tpu.memory_space<vmem>>, vector<8x128xf32>,
      %c0_313 = arith.constant 0 : index
      %c0_314 = arith.constant 0 : index
      %687 = vector.load %arg9[%c0_313, %c0_314] : memref<8x128xf32, #tpu.memory_space<vmem>>, vector<8x128xf32>
      %688 = arith.select %645, %676, %687 : vector<8x128xi1>, vector<8x128xf32>
      %c0_315 = arith.constant 0 : index
      %c0_316 = arith.constant 0 : index
      %689 = vector.load %arg9[%c0_315, %c0_316] : memref<8x128xf32, #tpu.memory_space<vmem>>, vector<8x128xf32>
      tpu.vector_store %arg9[%c0_315, %c0_316], %688 {strides = array<i32>} : memref<8x128xf32, #tpu.memory_space<vmem>>, vector<8x128xf32>,
      %c1_i32_317 = arith.constant 1 : i32
      %690 = vector.broadcast %c1_i32_317 : i32 to vector<8x1xi32>
      %691 = arith.cmpi sgt, %17, %690 : vector<8x1xi32>
      %692 = vector.shape_cast %691 : vector<8x1xi1> to vector<8x1xi1>
      %693 = vector.broadcast %692 : vector<8x1xi1> to vector<8x128xi1>
      %c1 = arith.constant 1 : index
      %c0_318 = arith.constant 0 : index
      %c0_319 = arith.constant 0 : index
      %694 = vector.load %arg3[%c1, %c0_318, %c0_319] : memref<16x8x512xbf16, #tpu.memory_space<vmem>>, vector<1x8x512xbf16>
      %695 = vector.shape_cast %694 : vector<1x8x512xbf16> to vector<8x512xbf16>
      %696 = arith.extf %695 : vector<8x512xbf16> to vector<8x512xf32>
      %c0_320 = arith.constant 0 : index
      %c0_321 = arith.constant 0 : index
      %697 = vector.load %arg8[%c0_320, %c0_321] : memref<8x128xf32, #tpu.memory_space<vmem>>, vector<8x128xf32>
      %698 = arith.truncf %697 : vector<8x128xf32> to vector<8x128xbf16>
      %cst_322 = arith.constant dense<0.000000e+00> : vector<8x512xf32>
      %699 = tpu.matmul %698, %3, %cst_322 {dimension_numbers = #tpu.dot_dimension_numbers<[1], [0], [0], [1], [0, 0, 1, 1], [], []>} : vector<8x128xbf16>, vector<128x512xbf16>, vector<8x512xf32> -> vector<8x512xf32>
      %700 = arith.addf %696, %699 : vector<8x512xf32>
      %701 = vector.extract_strided_slice %700 {offsets = [0, 0], sizes = [8, 128], strides = [1, 1]} : vector<8x512xf32> to vector<8x128xf32>
      %702 = arith.negf %701 : vector<8x128xf32>
      %703 = math.exp %702 : vector<8x128xf32>
      %cst_323 = arith.constant 1.000000e+00 : f32
      %704 = vector.broadcast %cst_323 : f32 to vector<8x128xf32>
      %705 = arith.addf %704, %703 : vector<8x128xf32>
      %706 = arith.divf %704, %705 : vector<8x128xf32>
      %707 = vector.extract_strided_slice %700 {offsets = [0, 128], sizes = [8, 128], strides = [1, 1]} : vector<8x512xf32> to vector<8x128xf32>
      %708 = arith.negf %707 : vector<8x128xf32>
      %709 = math.exp %708 : vector<8x128xf32>
      %cst_324 = arith.constant 1.000000e+00 : f32
      %710 = vector.broadcast %cst_324 : f32 to vector<8x128xf32>
      %711 = arith.addf %710, %709 : vector<8x128xf32>
      %712 = arith.divf %710, %711 : vector<8x128xf32>
      %713 = vector.extract_strided_slice %700 {offsets = [0, 256], sizes = [8, 128], strides = [1, 1]} : vector<8x512xf32> to vector<8x128xf32>
      %714 = math.tanh %713 : vector<8x128xf32>
      %715 = vector.extract_strided_slice %700 {offsets = [0, 384], sizes = [8, 128], strides = [1, 1]} : vector<8x512xf32> to vector<8x128xf32>
      %716 = arith.negf %715 : vector<8x128xf32>
      %717 = math.exp %716 : vector<8x128xf32>
      %cst_325 = arith.constant 1.000000e+00 : f32
      %718 = vector.broadcast %cst_325 : f32 to vector<8x128xf32>
      %719 = arith.addf %718, %717 : vector<8x128xf32>
      %720 = arith.divf %718, %719 : vector<8x128xf32>
      %c0_326 = arith.constant 0 : index
      %c0_327 = arith.constant 0 : index
      %721 = vector.load %arg9[%c0_326, %c0_327] : memref<8x128xf32, #tpu.memory_space<vmem>>, vector<8x128xf32>
      %722 = arith.mulf %712, %721 : vector<8x128xf32>
      %723 = arith.mulf %706, %714 : vector<8x128xf32>
      %724 = arith.addf %722, %723 : vector<8x128xf32>
      %725 = math.tanh %724 : vector<8x128xf32>
      %726 = arith.mulf %720, %725 : vector<8x128xf32>
      %cst_328 = arith.constant 0.000000e+00 : f32
      %727 = vector.broadcast %cst_328 : f32 to vector<8x128xf32>
      %728 = arith.select %693, %726, %727 : vector<8x128xi1>, vector<8x128xf32>
      %c1_329 = arith.constant 1 : index
      %c0_330 = arith.constant 0 : index
      %c0_331 = arith.constant 0 : index
      %729 = vector.load %arg5[%c1_329, %c0_330, %c0_331] : memref<16x8x128xf32, #tpu.memory_space<vmem>>, vector<1x8x128xf32>
      %730 = vector.shape_cast %729 : vector<1x8x128xf32> to vector<8x128xf32>
      %731 = vector.shape_cast %728 : vector<8x128xf32> to vector<1x8x128xf32>
      tpu.vector_store %arg5[%c1_329, %c0_330, %c0_331], %731 {strides = array<i32>} : memref<16x8x128xf32, #tpu.memory_space<vmem>>, vector<1x8x128xf32>,
      %c0_332 = arith.constant 0 : index
      %c0_333 = arith.constant 0 : index
      %732 = vector.load %arg8[%c0_332, %c0_333] : memref<8x128xf32, #tpu.memory_space<vmem>>, vector<8x128xf32>
      %733 = arith.select %693, %726, %732 : vector<8x128xi1>, vector<8x128xf32>
      %c0_334 = arith.constant 0 : index
      %c0_335 = arith.constant 0 : index
      %734 = vector.load %arg8[%c0_334, %c0_335] : memref<8x128xf32, #tpu.memory_space<vmem>>, vector<8x128xf32>
      tpu.vector_store %arg8[%c0_334, %c0_335], %733 {strides = array<i32>} : memref<8x128xf32, #tpu.memory_space<vmem>>, vector<8x128xf32>,
      %c0_336 = arith.constant 0 : index
      %c0_337 = arith.constant 0 : index
      %735 = vector.load %arg9[%c0_336, %c0_337] : memref<8x128xf32, #tpu.memory_space<vmem>>, vector<8x128xf32>
      %736 = arith.select %693, %724, %735 : vector<8x128xi1>, vector<8x128xf32>
      %c0_338 = arith.constant 0 : index
      %c0_339 = arith.constant 0 : index
      %737 = vector.load %arg9[%c0_338, %c0_339] : memref<8x128xf32, #tpu.memory_space<vmem>>, vector<8x128xf32>
      tpu.vector_store %arg9[%c0_338, %c0_339], %736 {strides = array<i32>} : memref<8x128xf32, #tpu.memory_space<vmem>>, vector<8x128xf32>,
      %c0_i32_340 = arith.constant 0 : i32
      %738 = vector.broadcast %c0_i32_340 : i32 to vector<8x1xi32>
      %739 = arith.cmpi sgt, %17, %738 : vector<8x1xi32>
      %740 = vector.shape_cast %739 : vector<8x1xi1> to vector<8x1xi1>
      %741 = vector.broadcast %740 : vector<8x1xi1> to vector<8x128xi1>
      %c0_341 = arith.constant 0 : index
      %c0_342 = arith.constant 0 : index
      %c0_343 = arith.constant 0 : index
      %742 = vector.load %arg3[%c0_341, %c0_342, %c0_343] : memref<16x8x512xbf16, #tpu.memory_space<vmem>>, vector<1x8x512xbf16>
      %743 = vector.shape_cast %742 : vector<1x8x512xbf16> to vector<8x512xbf16>
      %744 = arith.extf %743 : vector<8x512xbf16> to vector<8x512xf32>
      %c0_344 = arith.constant 0 : index
      %c0_345 = arith.constant 0 : index
      %745 = vector.load %arg8[%c0_344, %c0_345] : memref<8x128xf32, #tpu.memory_space<vmem>>, vector<8x128xf32>
      %746 = arith.truncf %745 : vector<8x128xf32> to vector<8x128xbf16>
      %cst_346 = arith.constant dense<0.000000e+00> : vector<8x512xf32>
      %747 = tpu.matmul %746, %3, %cst_346 {dimension_numbers = #tpu.dot_dimension_numbers<[1], [0], [0], [1], [0, 0, 1, 1], [], []>} : vector<8x128xbf16>, vector<128x512xbf16>, vector<8x512xf32> -> vector<8x512xf32>
      %748 = arith.addf %744, %747 : vector<8x512xf32>
      %749 = vector.extract_strided_slice %748 {offsets = [0, 0], sizes = [8, 128], strides = [1, 1]} : vector<8x512xf32> to vector<8x128xf32>
      %750 = arith.negf %749 : vector<8x128xf32>
      %751 = math.exp %750 : vector<8x128xf32>
      %cst_347 = arith.constant 1.000000e+00 : f32
      %752 = vector.broadcast %cst_347 : f32 to vector<8x128xf32>
      %753 = arith.addf %752, %751 : vector<8x128xf32>
      %754 = arith.divf %752, %753 : vector<8x128xf32>
      %755 = vector.extract_strided_slice %748 {offsets = [0, 128], sizes = [8, 128], strides = [1, 1]} : vector<8x512xf32> to vector<8x128xf32>
      %756 = arith.negf %755 : vector<8x128xf32>
      %757 = math.exp %756 : vector<8x128xf32>
      %cst_348 = arith.constant 1.000000e+00 : f32
      %758 = vector.broadcast %cst_348 : f32 to vector<8x128xf32>
      %759 = arith.addf %758, %757 : vector<8x128xf32>
      %760 = arith.divf %758, %759 : vector<8x128xf32>
      %761 = vector.extract_strided_slice %748 {offsets = [0, 256], sizes = [8, 128], strides = [1, 1]} : vector<8x512xf32> to vector<8x128xf32>
      %762 = math.tanh %761 : vector<8x128xf32>
      %763 = vector.extract_strided_slice %748 {offsets = [0, 384], sizes = [8, 128], strides = [1, 1]} : vector<8x512xf32> to vector<8x128xf32>
      %764 = arith.negf %763 : vector<8x128xf32>
      %765 = math.exp %764 : vector<8x128xf32>
      %cst_349 = arith.constant 1.000000e+00 : f32
      %766 = vector.broadcast %cst_349 : f32 to vector<8x128xf32>
      %767 = arith.addf %766, %765 : vector<8x128xf32>
      %768 = arith.divf %766, %767 : vector<8x128xf32>
      %c0_350 = arith.constant 0 : index
      %c0_351 = arith.constant 0 : index
      %769 = vector.load %arg9[%c0_350, %c0_351] : memref<8x128xf32, #tpu.memory_space<vmem>>, vector<8x128xf32>
      %770 = arith.mulf %760, %769 : vector<8x128xf32>
      %771 = arith.mulf %754, %762 : vector<8x128xf32>
      %772 = arith.addf %770, %771 : vector<8x128xf32>
      %773 = math.tanh %772 : vector<8x128xf32>
      %774 = arith.mulf %768, %773 : vector<8x128xf32>
      %cst_352 = arith.constant 0.000000e+00 : f32
      %775 = vector.broadcast %cst_352 : f32 to vector<8x128xf32>
      %776 = arith.select %741, %774, %775 : vector<8x128xi1>, vector<8x128xf32>
      %c0_353 = arith.constant 0 : index
      %c0_354 = arith.constant 0 : index
      %c0_355 = arith.constant 0 : index
      %777 = vector.load %arg5[%c0_353, %c0_354, %c0_355] : memref<16x8x128xf32, #tpu.memory_space<vmem>>, vector<1x8x128xf32>
      %778 = vector.shape_cast %777 : vector<1x8x128xf32> to vector<8x128xf32>
      %779 = vector.shape_cast %776 : vector<8x128xf32> to vector<1x8x128xf32>
      tpu.vector_store %arg5[%c0_353, %c0_354, %c0_355], %779 {strides = array<i32>} : memref<16x8x128xf32, #tpu.memory_space<vmem>>, vector<1x8x128xf32>,
      %c0_356 = arith.constant 0 : index
      %c0_357 = arith.constant 0 : index
      %780 = vector.load %arg8[%c0_356, %c0_357] : memref<8x128xf32, #tpu.memory_space<vmem>>, vector<8x128xf32>
      %781 = arith.select %741, %774, %780 : vector<8x128xi1>, vector<8x128xf32>
      %c0_358 = arith.constant 0 : index
      %c0_359 = arith.constant 0 : index
      %782 = vector.load %arg8[%c0_358, %c0_359] : memref<8x128xf32, #tpu.memory_space<vmem>>, vector<8x128xf32>
      tpu.vector_store %arg8[%c0_358, %c0_359], %781 {strides = array<i32>} : memref<8x128xf32, #tpu.memory_space<vmem>>, vector<8x128xf32>,
      %c0_360 = arith.constant 0 : index
      %c0_361 = arith.constant 0 : index
      %783 = vector.load %arg9[%c0_360, %c0_361] : memref<8x128xf32, #tpu.memory_space<vmem>>, vector<8x128xf32>
      %784 = arith.select %741, %772, %783 : vector<8x128xi1>, vector<8x128xf32>
      %c0_362 = arith.constant 0 : index
      %c0_363 = arith.constant 0 : index
      %785 = vector.load %arg9[%c0_362, %c0_363] : memref<8x128xf32, #tpu.memory_space<vmem>>, vector<8x128xf32>
      tpu.vector_store %arg9[%c0_362, %c0_363], %784 {strides = array<i32>} : memref<8x128xf32, #tpu.memory_space<vmem>>, vector<8x128xf32>,
    } else {
    }
    %c0_i32_5 = arith.constant 0 : i32
    %10 = arith.cmpi eq, %arg1, %c0_i32_5 : i32
    %11 = arith.extui %10 : i1 to i32
    %c0_i32_6 = arith.constant 0 : i32
    %12 = arith.cmpi ne, %11, %c0_i32_6 : i32
    scf.if %12 {
      %c0_7 = arith.constant 0 : index
      %c0_8 = arith.constant 0 : index
      %13 = vector.load %arg8[%c0_7, %c0_8] : memref<8x128xf32, #tpu.memory_space<vmem>>, vector<8x128xf32>
      %c0_9 = arith.constant 0 : index
      %c0_10 = arith.constant 0 : index
      %c0_11 = arith.constant 0 : index
      %14 = vector.load %arg6[%c0_9, %c0_10, %c0_11] : memref<1x8x128xf32, #tpu.memory_space<vmem>>, vector<1x8x128xf32>
      %15 = vector.shape_cast %14 : vector<1x8x128xf32> to vector<8x128xf32>
      %16 = vector.shape_cast %13 : vector<8x128xf32> to vector<1x8x128xf32>
      tpu.vector_store %arg6[%c0_9, %c0_10, %c0_11], %16 {strides = array<i32>} : memref<1x8x128xf32, #tpu.memory_space<vmem>>, vector<1x8x128xf32>,
      %c0_12 = arith.constant 0 : index
      %c0_13 = arith.constant 0 : index
      %17 = vector.load %arg9[%c0_12, %c0_13] : memref<8x128xf32, #tpu.memory_space<vmem>>, vector<8x128xf32>
      %c0_14 = arith.constant 0 : index
      %c0_15 = arith.constant 0 : index
      %c0_16 = arith.constant 0 : index
      %18 = vector.load %arg7[%c0_14, %c0_15, %c0_16] : memref<1x8x128xf32, #tpu.memory_space<vmem>>, vector<1x8x128xf32>
      %19 = vector.shape_cast %18 : vector<1x8x128xf32> to vector<8x128xf32>
      %20 = vector.shape_cast %17 : vector<8x128xf32> to vector<1x8x128xf32>
      tpu.vector_store %arg7[%c0_14, %c0_15, %c0_16], %20 {strides = array<i32>} : memref<1x8x128xf32, #tpu.memory_space<vmem>>, vector<1x8x128xf32>,
    } else {
    }
    return
  }
  func.func @transform_0(%arg0: i32, %arg1: i32) -> (i32, i32) {
    %c0_i32 = arith.constant 0 : i32
    %c0_i32_0 = arith.constant 0 : i32
    %c0_i32_1 = arith.constant 0 : i32
    return %c0_i32, %c0_i32_0 : i32, i32
  }
  func.func @transform_1(%arg0: i32, %arg1: i32) -> (i32, i32, i32) {
    %c2_i32 = arith.constant 2 : i32
    %0 = arith.muli %c2_i32, %arg1 : i32
    %c0_i32 = arith.constant 0 : i32
    %1 = arith.subi %c0_i32, %0 : i32
    %2 = arith.muli %arg0, %1 : i32
    %3 = arith.addi %arg1, %2 : i32
    %c0_i32_0 = arith.constant 0 : i32
    %c0_i32_1 = arith.constant 0 : i32
    return %3, %c0_i32_0, %arg0 : i32, i32, i32
  }
  func.func @transform_2(%arg0: i32, %arg1: i32) -> (i32, i32) {
    %c0_i32 = arith.constant 0 : i32
    %c0_i32_0 = arith.constant 0 : i32
    return %c0_i32, %arg0 : i32, i32
  }
  func.func @transform_3(%arg0: i32, %arg1: i32) -> (i32, i32, i32) {
    %c2_i32 = arith.constant 2 : i32
    %0 = arith.muli %c2_i32, %arg1 : i32
    %c0_i32 = arith.constant 0 : i32
    %1 = arith.subi %c0_i32, %0 : i32
    %2 = arith.muli %arg0, %1 : i32
    %3 = arith.addi %arg1, %2 : i32
    %c0_i32_0 = arith.constant 0 : i32
    %c0_i32_1 = arith.constant 0 : i32
    return %3, %c0_i32_0, %arg0 : i32, i32, i32
  }
  func.func @transform_4(%arg0: i32, %arg1: i32) -> (i32, i32, i32) {
    %c0_i32 = arith.constant 0 : i32
    %c0_i32_0 = arith.constant 0 : i32
    %c0_i32_1 = arith.constant 0 : i32
    return %arg0, %c0_i32, %c0_i32_0 : i32, i32, i32
  }
  func.func @transform_5(%arg0: i32, %arg1: i32) -> (i32, i32, i32) {
    %c0_i32 = arith.constant 0 : i32
    %c0_i32_0 = arith.constant 0 : i32
    %c0_i32_1 = arith.constant 0 : i32
    return %arg0, %c0_i32, %c0_i32_0 : i32, i32, i32
  }
}

</mosaic_0001>

<bundles_post_ra>
// kernel: bi_rnn_block.1
= control target key start
LH: loop header
LB: loop body
LE: loop exit
PB: predicated region body
PF: predicated region fallthrough
CT: control target
= control target key end

     0   :  { %s6888_s18 = smov 0   ;;  %s6890_s19 = smov 0   ;;  %s9320_s0 = inlined_call_operand.vmem [shape: s32[8,1], index: 0, kind: input, shape index: {}]   ;;  %s9321_s1 = inlined_call_operand.vmem [shape: bf16[16,8,1024], index: 1, kind: input, shape index: {}]   ;;  %s9322_s2 = inlined_call_operand.vmem [shape: bf16[128,1024], index: 2, kind: input, shape index: {}]   ;;  %s9323_s3 = inlined_call_operand.vmem [shape: f32[16,8,256], index: 3, kind: output, shape index: {0}]   ;;  %s9324_s4 = inlined_call_operand.vmem [shape: f32[2,8,128], index: 4, kind: output, shape index: {1}]   ;;  %s9325_s5 = inlined_call_operand.vmem [shape: f32[2,8,128], index: 5, kind: output, shape index: {2}]  }
   0x1   :  { %s6892_s20 = smov 0   ;;  %s6894_s21 = smov 0  }
   0x2   :  { %s6896_s22 = smov 0  }
   0x3 LB: > { %s28_s23 = sadd.s32 1, %s6849_s21  ;;  %s5722_s24 = sadd.s32 4294967295, %s6853_s22   ;;  %s6853_s22 = sphi %s6896_s22, %s16_s22   ;;  %s6849_s21 = sphi %s6894_s21, %s9473_s21   ;;  %s6845_s20 = sphi %s6892_s20, %s9472_s20   ;;  %s6841_s19 = sphi %s6890_s19, %s9471_s19   ;;  %s6837_s18 = sphi %s6888_s18, %s9470_s18  }
   0x4   : > { %p30_p0 = scmp.ge.s32.totalorder %s28_s23, 2  ;;  %p73_p1 = scmp.ne.s32.totalorder %s6841_s19, %s6837_s18 }
   0x5   : > { %p74_p2 = scmp.eq.s32.totalorder %s6853_s22, 0  ;;  %p139_p4 = scmp.eq.s32.totalorder %s5722_s24, 1 }
   0x6   : > { %s9475_s23 = smov (%p30_p0, %s28_s23), 0  ;;  %s66_s27 = sadd.s32 1, %s6841_s19 }
   0x7   : > { %p6920_p3 = por %p74_p2, %p73_p1  ;;  %s62_s26 = ssub.s32 %s6849_s21, %s9475_s23 }
   0x8   : > { %p64_p5 = scmp.eq.s32.totalorder %s62_s26, 0  ;;  %p6927_p6 = por %p139_p4, %p73_p1 }
   0x9   : > { %p5725_p7 = scmp.ge.s32.totalorder %s6853_s22, 2 }
   0xa   : > { %s6932_s29 = scalar_select %p64_p5, %s6841_s19, %s66_s27  }
   0xb   : > { %216 = sbr.rel (%p5725_p7) target bundleno = 88 (0x58), region = 20 }
  0x10   : > { %219 = sbr.rel (!%p6920_p3) target bundleno = 52 (0x34), region = 24  ;;  %s221_s30 = sand.u32 (%p6920_p3), 1, %s6841_s19  }
  0x11   : > { %s6186_s6 = sshll.u32 (%p6920_p3), %s6849_s21, 4  ;;  %s5726_s7 = sshll.u32 (%p6920_p3), %s221_s30, 8 }
  0x12   : > { %s6942_s10 = scalar_lea.vmem (%p6920_p3), %s9321_s1, %s6186_s6  ;;  %s6947_s11 = scalar_lea.vmem (%p6920_p3), [#allocation4], %s5726_s7 }
  0x13   : > { %v246_v0 = vld [vmem:[%s6942_s10] sm:$0xff] (%p6920_p3)  ;;  %v248_v1 = vld [vmem:[%s6942_s10 + $0x8] sm:$0xff] (%p6920_p3) }
  0x14   : > { %v250_v2 = vld [vmem:[%s6942_s10 + $0x20] sm:$0xff] (%p6920_p3)  ;;  %247 = vst [vmem:[%s6947_s11] sm:$0xff] (%p6920_p3), %v246_v0  ;;  %v252_v3 = vld [vmem:[%s6942_s10 + $0x28] sm:$0xff] (%p6920_p3) }
  0x15   : > { %249 = vst [vmem:[%s6947_s11 + $0x8] sm:$0xff] %v248_v1  ;;  %v254_v4 = vld [vmem:[%s6942_s10 + $0x40] sm:$0xff]  ;;  %v256_v5 = vld [vmem:[%s6942_s10 + $0x48] sm:$0xff] }
  0x16   : > { %251 = vst [vmem:[%s6947_s11 + $0x10] sm:$0xff] %v250_v2  ;;  %v258_v6 = vld [vmem:[%s6942_s10 + $0x60] sm:$0xff]  ;;  %v260_v7 = vld [vmem:[%s6942_s10 + $0x68] sm:$0xff] }
  0x17   : > { %253 = vst [vmem:[%s6947_s11 + $0x18] sm:$0xff] %v252_v3  ;;  %v262_v8 = vld [vmem:[%s6942_s10 + $0x80] sm:$0xff]  ;;  %v264_v9 = vld [vmem:[%s6942_s10 + $0x88] sm:$0xff] }
  0x18   : > { %255 = vst [vmem:[%s6947_s11 + $0x20] sm:$0xff] %v254_v4  ;;  %v266_v10 = vld [vmem:[%s6942_s10 + $0xa0] sm:$0xff]  ;;  %v268_v11 = vld [vmem:[%s6942_s10 + $0xa8] sm:$0xff] }
  0x19   : > { %257 = vst [vmem:[%s6947_s11 + $0x28] sm:$0xff] %v256_v5  ;;  %v270_v12 = vld [vmem:[%s6942_s10 + $0xc0] sm:$0xff]  ;;  %v272_v13 = vld [vmem:[%s6942_s10 + $0xc8] sm:$0xff] }
  0x1a   : > { %259 = vst [vmem:[%s6947_s11 + $0x30] sm:$0xff] %v258_v6  ;;  %v274_v14 = vld [vmem:[%s6942_s10 + $0xe0] sm:$0xff]  ;;  %v276_v15 = vld [vmem:[%s6942_s10 + $0xe8] sm:$0xff] }
  0x1b   : > { %261 = vst [vmem:[%s6947_s11 + $0x38] sm:$0xff] %v260_v7  ;;  %v278_v16 = vld [vmem:[%s6942_s10 + $0x100] sm:$0xff]  ;;  %v280_v17 = vld [vmem:[%s6942_s10 + $0x108] sm:$0xff] }
  0x1c   : > { %263 = vst [vmem:[%s6947_s11 + $0x40] sm:$0xff] %v262_v8  ;;  %v282_v18 = vld [vmem:[%s6942_s10 + $0x120] sm:$0xff]  ;;  %v284_v19 = vld [vmem:[%s6942_s10 + $0x128] sm:$0xff] }
  0x1d   : > { %265 = vst [vmem:[%s6947_s11 + $0x48] sm:$0xff] %v264_v9  ;;  %v286_v20 = vld [vmem:[%s6942_s10 + $0x140] sm:$0xff]  ;;  %v288_v21 = vld [vmem:[%s6942_s10 + $0x148] sm:$0xff] }
  0x1e   : > { %267 = vst [vmem:[%s6947_s11 + $0x50] sm:$0xff] %v266_v10  ;;  %v290_v22 = vld [vmem:[%s6942_s10 + $0x160] sm:$0xff]  ;;  %v292_v23 = vld [vmem:[%s6942_s10 + $0x168] sm:$0xff] }
  0x1f   : > { %269 = vst [vmem:[%s6947_s11 + $0x58] sm:$0xff] %v268_v11  ;;  %v294_v24 = vld [vmem:[%s6942_s10 + $0x180] sm:$0xff]  ;;  %v296_v25 = vld [vmem:[%s6942_s10 + $0x188] sm:$0xff] }
  0x20   : > { %271 = vst [vmem:[%s6947_s11 + $0x60] sm:$0xff] %v270_v12  ;;  %v298_v26 = vld [vmem:[%s6942_s10 + $0x1a0] sm:$0xff]  ;;  %v300_v27 = vld [vmem:[%s6942_s10 + $0x1a8] sm:$0xff] }
  0x21   : > { %273 = vst [vmem:[%s6947_s11 + $0x68] sm:$0xff] %v272_v13  ;;  %v302_v28 = vld [vmem:[%s6942_s10 + $0x1c0] sm:$0xff]  ;;  %v304_v29 = vld [vmem:[%s6942_s10 + $0x1c8] sm:$0xff] }
  0x22   : > { %275 = vst [vmem:[%s6947_s11 + $0x70] sm:$0xff] %v274_v14  ;;  %v306_v30 = vld [vmem:[%s6942_s10 + $0x1e0] sm:$0xff]  ;;  %v308_v31 = vld [vmem:[%s6942_s10 + $0x1e8] sm:$0xff] }
  0x23   : > { %277 = vst [vmem:[%s6947_s11 + $0x78] sm:$0xff] %v276_v15 }
  0x24   : > { %279 = vst [vmem:[%s6947_s11 + $0x80] sm:$0xff] %v278_v16 }
  0x25   : > { %281 = vst [vmem:[%s6947_s11 + $0x88] sm:$0xff] %v280_v17 }
  0x26   : > { %283 = vst [vmem:[%s6947_s11 + $0x90] sm:$0xff] %v282_v18 }
  0x27   : > { %285 = vst [vmem:[%s6947_s11 + $0x98] sm:$0xff] %v284_v19 }
  0x28   : > { %287 = vst [vmem:[%s6947_s11 + $0xa0] sm:$0xff] %v286_v20 }
  0x29   : > { %289 = vst [vmem:[%s6947_s11 + $0xa8] sm:$0xff] %v288_v21 }
  0x2a   : > { %291 = vst [vmem:[%s6947_s11 + $0xb0] sm:$0xff] %v290_v22 }
  0x2b   : > { %293 = vst [vmem:[%s6947_s11 + $0xb8] sm:$0xff] %v292_v23 }
  0x2c   : > { %295 = vst [vmem:[%s6947_s11 + $0xc0] sm:$0xff] %v294_v24 }
  0x2d   : > { %297 = vst [vmem:[%s6947_s11 + $0xc8] sm:$0xff] %v296_v25 }
  0x2e   : > { %299 = vst [vmem:[%s6947_s11 + $0xd0] sm:$0xff] %v298_v26 }
  0x2f   : > { %301 = vst [vmem:[%s6947_s11 + $0xd8] sm:$0xff] %v300_v27 }
  0x30   : > { %303 = vst [vmem:[%s6947_s11 + $0xe0] sm:$0xff] %v302_v28 }
  0x31   : > { %305 = vst [vmem:[%s6947_s11 + $0xe8] sm:$0xff] %v304_v29 }
  0x32   : > { %307 = vst [vmem:[%s6947_s11 + $0xf0] sm:$0xff] %v306_v30 }
  0x33   : > { %309 = vst [vmem:[%s6947_s11 + $0xf8] sm:$0xff] %v308_v31 }
  0x34 PF: > { %315 = sbr.rel (!%p6920_p3) target bundleno = 88 (0x58), region = 47  ;;  %s317_s12 = sand.u32 (%p6920_p3), 1, %s6841_s19  }
  0x35   : > { %s6187_s13 = sshll.u32 (%p6920_p3), %s6849_s21, 4  ;;  %s5729_s14 = sshll.u32 (%p6920_p3), %s317_s12, 8 }
  0x36   : > { %s7017_s17 = scalar_lea.vmem (%p6920_p3), %s9322_s2, %s6187_s13  ;;  %s7022_s24 = scalar_lea.vmem (%p6920_p3), [#allocation5], %s5729_s14 }
  0x37   : > { %v335_v32 = vld [vmem:[%s7017_s17] sm:$0xff] (%p6920_p3)  ;;  %v337_v33 = vld [vmem:[%s7017_s17 + $0x8] sm:$0xff] (%p6920_p3) }
  0x38   : > { %v339_v34 = vld [vmem:[%s7017_s17 + $0x20] sm:$0xff] (%p6920_p3)  ;;  %336 = vst [vmem:[%s7022_s24] sm:$0xff] (%p6920_p3), %v335_v32  ;;  %v341_v35 = vld [vmem:[%s7017_s17 + $0x28] sm:$0xff] (%p6920_p3) }
  0x39   : > { %338 = vst [vmem:[%s7022_s24 + $0x8] sm:$0xff] %v337_v33  ;;  %v343_v36 = vld [vmem:[%s7017_s17 + $0x40] sm:$0xff]  ;;  %v345_v37 = vld [vmem:[%s7017_s17 + $0x48] sm:$0xff] }
  0x3a   : > { %340 = vst [vmem:[%s7022_s24 + $0x10] sm:$0xff] %v339_v34  ;;  %v347_v38 = vld [vmem:[%s7017_s17 + $0x60] sm:$0xff]  ;;  %v349_v39 = vld [vmem:[%s7017_s17 + $0x68] sm:$0xff] }
  0x3b   : > { %342 = vst [vmem:[%s7022_s24 + $0x18] sm:$0xff] %v341_v35  ;;  %v351_v40 = vld [vmem:[%s7017_s17 + $0x80] sm:$0xff]  ;;  %v353_v41 = vld [vmem:[%s7017_s17 + $0x88] sm:$0xff] }
  0x3c   : > { %344 = vst [vmem:[%s7022_s24 + $0x20] sm:$0xff] %v343_v36  ;;  %v355_v42 = vld [vmem:[%s7017_s17 + $0xa0] sm:$0xff]  ;;  %v357_v43 = vld [vmem:[%s7017_s17 + $0xa8] sm:$0xff] }
  0x3d   : > { %346 = vst [vmem:[%s7022_s24 + $0x28] sm:$0xff] %v345_v37  ;;  %v359_v44 = vld [vmem:[%s7017_s17 + $0xc0] sm:$0xff]  ;;  %v361_v45 = vld [vmem:[%s7017_s17 + $0xc8] sm:$0xff] }
  0x3e   : > { %348 = vst [vmem:[%s7022_s24 + $0x30] sm:$0xff] %v347_v38  ;;  %v363_v46 = vld [vmem:[%s7017_s17 + $0xe0] sm:$0xff]  ;;  %v365_v47 = vld [vmem:[%s7017_s17 + $0xe8] sm:$0xff] }
  0x3f   : > { %350 = vst [vmem:[%s7022_s24 + $0x38] sm:$0xff] %v349_v39  ;;  %v367_v48 = vld [vmem:[%s7017_s17 + $0x100] sm:$0xff]  ;;  %v369_v49 = vld [vmem:[%s7017_s17 + $0x108] sm:$0xff] }
  0x40   : > { %352 = vst [vmem:[%s7022_s24 + $0x40] sm:$0xff] %v351_v40  ;;  %v371_v50 = vld [vmem:[%s7017_s17 + $0x120] sm:$0xff]  ;;  %v373_v51 = vld [vmem:[%s7017_s17 + $0x128] sm:$0xff] }
  0x41   : > { %354 = vst [vmem:[%s7022_s24 + $0x48] sm:$0xff] %v353_v41  ;;  %v375_v52 = vld [vmem:[%s7017_s17 + $0x140] sm:$0xff]  ;;  %v377_v53 = vld [vmem:[%s7017_s17 + $0x148] sm:$0xff] }
  0x42   : > { %356 = vst [vmem:[%s7022_s24 + $0x50] sm:$0xff] %v355_v42  ;;  %v379_v54 = vld [vmem:[%s7017_s17 + $0x160] sm:$0xff]  ;;  %v381_v55 = vld [vmem:[%s7017_s17 + $0x168] sm:$0xff] }
  0x43   : > { %358 = vst [vmem:[%s7022_s24 + $0x58] sm:$0xff] %v357_v43  ;;  %v383_v56 = vld [vmem:[%s7017_s17 + $0x180] sm:$0xff]  ;;  %v385_v57 = vld [vmem:[%s7017_s17 + $0x188] sm:$0xff] }
  0x44   : > { %360 = vst [vmem:[%s7022_s24 + $0x60] sm:$0xff] %v359_v44  ;;  %v387_v58 = vld [vmem:[%s7017_s17 + $0x1a0] sm:$0xff]  ;;  %v389_v59 = vld [vmem:[%s7017_s17 + $0x1a8] sm:$0xff] }
  0x45   : > { %362 = vst [vmem:[%s7022_s24 + $0x68] sm:$0xff] %v361_v45  ;;  %v391_v60 = vld [vmem:[%s7017_s17 + $0x1c0] sm:$0xff]  ;;  %v393_v61 = vld [vmem:[%s7017_s17 + $0x1c8] sm:$0xff] }
  0x46   : > { %364 = vst [vmem:[%s7022_s24 + $0x70] sm:$0xff] %v363_v46  ;;  %v395_v62 = vld [vmem:[%s7017_s17 + $0x1e0] sm:$0xff]  ;;  %v397_v63 = vld [vmem:[%s7017_s17 + $0x1e8] sm:$0xff] }
  0x47   : > { %366 = vst [vmem:[%s7022_s24 + $0x78] sm:$0xff] %v365_v47 }
  0x48   : > { %368 = vst [vmem:[%s7022_s24 + $0x80] sm:$0xff] %v367_v48 }
  0x49   : > { %370 = vst [vmem:[%s7022_s24 + $0x88] sm:$0xff] %v369_v49 }
  0x4a   : > { %372 = vst [vmem:[%s7022_s24 + $0x90] sm:$0xff] %v371_v50 }
  0x4b   : > { %374 = vst [vmem:[%s7022_s24 + $0x98] sm:$0xff] %v373_v51 }
  0x4c   : > { %376 = vst [vmem:[%s7022_s24 + $0xa0] sm:$0xff] %v375_v52 }
  0x4d   : > { %378 = vst [vmem:[%s7022_s24 + $0xa8] sm:$0xff] %v377_v53 }
  0x4e   : > { %380 = vst [vmem:[%s7022_s24 + $0xb0] sm:$0xff] %v379_v54 }
  0x4f   : > { %382 = vst [vmem:[%s7022_s24 + $0xb8] sm:$0xff] %v381_v55 }
  0x50   : > { %384 = vst [vmem:[%s7022_s24 + $0xc0] sm:$0xff] %v383_v56 }
  0x51   : > { %386 = vst [vmem:[%s7022_s24 + $0xc8] sm:$0xff] %v385_v57 }
  0x52   : > { %388 = vst [vmem:[%s7022_s24 + $0xd0] sm:$0xff] %v387_v58 }
  0x53   : > { %390 = vst [vmem:[%s7022_s24 + $0xd8] sm:$0xff] %v389_v59 }
  0x54   : > { %392 = vst [vmem:[%s7022_s24 + $0xe0] sm:$0xff] %v391_v60 }
  0x55   : > { %394 = vst [vmem:[%s7022_s24 + $0xe8] sm:$0xff] %v393_v61 }
  0x56   : > { %396 = vst [vmem:[%s7022_s24 + $0xf0] sm:$0xff] %v395_v62 }
  0x57   : > { %398 = vst [vmem:[%s7022_s24 + $0xf8] sm:$0xff] %v397_v63 }
  0x58 PF: > { %p5732_p8 = scmp.ge.s32.totalorder %s6853_s22, 1  ;;  %p403_p9 = scmp.lt.s32.totalorder %s6853_s22, 3 }
  0x5a   : > { %p404_p10 = pnand %p5732_p8, %p403_p9 }
  0x5c   : > { %407 = sbr.rel (%p404_p10) target bundleno = 5802 (0x16aa), region = 70 }
  0x61   : > { %s410_s25 = sand.u32 1, %s6837_s18   ;;  %p467_p11 = scmp.lt.s32.totalorder %s6845_s20, 1  ;;  %v6855_v0 = vmov 0.0  }
  0x62   : > { %s7089_s26 = sshll.u32 %s410_s25, 8  ;;  %s7091_s27 = sshll.u32 %s410_s25, 7  ;;  %479 = vst [vmem:[#allocation2] sm:$0xff] %v6855_v0 }
  0x63   : > { %480 = vst [vmem:[#allocation3] sm:$0xff] %v6855_v0  ;;  %s7094_s30 = scalar_lea.vmem [#allocation5], %s7089_s26  ;;  %s7452_s13 = scalar_lea.vmem [#allocation4], %s7089_s26 }
  0x64   : > { %v7097_v1 = vld [vmem:[%s7094_s30 + $0x4] sm:$0xf]  ;;  %v7100_v2 = vld [vmem:[%s7094_s30] sm:$0xf]  ;;  %s468_s18 = scalar_select %p467_p11, %s6845_s20, 1 }
  0x65   : > { %9328 = vst [vmem:[#allocation7_spill] sm:$0xff] %v7097_v1  ;;  %v7104_v3 = vld [vmem:[%s7094_s30 + $0x4] sm:$0xf]  ;;  %v7107_v4 = vld [vmem:[%s7094_s30] sm:$0xf]  ;;  %s7455_s14 = scalar_lea.vmem [#allocation6], %s7091_s27 }
  0x66   : > { %9329 = vst [vmem:[#allocation8_spill] sm:$0xff] %v7100_v2  ;;  %v7110_v5 = vld [vmem:[%s7094_s30 + $0xc] sm:$0xf]  ;;  %v7113_v6 = vld [vmem:[%s7094_s30 + $0x8] sm:$0xf]  ;;  %s5736_s6 = sshll.u32 %s468_s18, 3 }
  0x67   : > { %9330 = vst [vmem:[#allocation9_spill] sm:$0xff] %v7104_v3  ;;  %v7116_v7 = vld [vmem:[%s7094_s30 + $0xc] sm:$0xf]  ;;  %v7119_v8 = vld [vmem:[%s7094_s30 + $0x8] sm:$0xf]  ;;  %s7127_s9 = scalar_lea.vmem %s9324_s4, %s5736_s6  ;;  %s7132_s12 = scalar_lea.vmem %s9325_s5, %s5736_s6 }
  0x68   : > { %9331 = vst [vmem:[#allocation10_spill] sm:$0xff] %v7110_v5  ;;  %v7122_v9 = vld [vmem:[%s7094_s30 + $0x10] sm:$0xf0]  ;;  %v7135_v10 = vld [vmem:[%s7094_s30 + $0xc] sm:$0xf0]  ;;  %p5738_p12 = scmp.ne.s32.totalorder %s6845_s20, 0 }
  0x69   : > { %9332 = vst [vmem:[#allocation11_spill] sm:$0xff] %v7113_v6  ;;  %v7138_v11 = vld [vmem:[%s7094_s30 + $0x10] sm:$0xf0]  ;;  %v7141_v12 = vld [vmem:[%s7094_s30 + $0xc] sm:$0xf0] }
  0x6a   : > { %9333 = vst [vmem:[#allocation12_spill] sm:$0xff] %v7116_v7  ;;  %v7144_v13 = vld [vmem:[%s7094_s30 + $0x18] sm:$0xf0]  ;;  %v7147_v14 = vld [vmem:[%s7094_s30 + $0x14] sm:$0xf0] }
  0x6b   : > { %9334 = vst [vmem:[#allocation13_spill] sm:$0xff] %v7119_v8  ;;  %v7150_v15 = vld [vmem:[%s7094_s30 + $0x18] sm:$0xf0]  ;;  %v7153_v16 = vld [vmem:[%s7094_s30 + $0x14] sm:$0xf0] }
  0x6c   : > { %9335 = vst [vmem:[#allocation14_spill] sm:$0xff] %v7122_v9  ;;  %v7156_v17 = vld [vmem:[%s7094_s30 + $0x24] sm:$0xf]  ;;  %v7159_v18 = vld [vmem:[%s7094_s30 + $0x20] sm:$0xf] }
  0x6d   : > { %9336 = vst [vmem:[#allocation15_spill] sm:$0xff] %v7135_v10  ;;  %v7162_v19 = vld [vmem:[%s7094_s30 + $0x24] sm:$0xf]  ;;  %v7165_v20 = vld [vmem:[%s7094_s30 + $0x20] sm:$0xf] }
  0x6e   : > { %9337 = vst [vmem:[#allocation16_spill] sm:$0xff] %v7138_v11  ;;  %v7168_v21 = vld [vmem:[%s7094_s30 + $0x2c] sm:$0xf]  ;;  %v7171_v22 = vld [vmem:[%s7094_s30 + $0x28] sm:$0xf] }
  0x6f   : > { %9338 = vst [vmem:[#allocation17_spill] sm:$0xff] %v7141_v12  ;;  %v7174_v23 = vld [vmem:[%s7094_s30 + $0x2c] sm:$0xf]  ;;  %v7177_v24 = vld [vmem:[%s7094_s30 + $0x28] sm:$0xf] }
  0x70   : > { %9339 = vst [vmem:[#allocation18_spill] sm:$0xff] %v7144_v13  ;;  %v7180_v25 = vld [vmem:[%s7094_s30 + $0x30] sm:$0xf0]  ;;  %v7183_v26 = vld [vmem:[%s7094_s30 + $0x2c] sm:$0xf0] }
  0x71   : > { %9340 = vst [vmem:[#allocation19_spill] sm:$0xff] %v7147_v14  ;;  %v7186_v27 = vld [vmem:[%s7094_s30 + $0x30] sm:$0xf0]  ;;  %v7189_v28 = vld [vmem:[%s7094_s30 + $0x2c] sm:$0xf0] }
  0x72   : > { %9341 = vst [vmem:[#allocation20_spill] sm:$0xff] %v7150_v15  ;;  %v7192_v29 = vld [vmem:[%s7094_s30 + $0x38] sm:$0xf0]  ;;  %v7195_v30 = vld [vmem:[%s7094_s30 + $0x34] sm:$0xf0] }
  0x73   : > { %9342 = vst [vmem:[#allocation21_spill] sm:$0xff] %v7153_v16  ;;  %v7198_v31 = vld [vmem:[%s7094_s30 + $0x38] sm:$0xf0]  ;;  %v7201_v32 = vld [vmem:[%s7094_s30 + $0x34] sm:$0xf0] }
  0x74   : > { %9343 = vst [vmem:[#allocation22_spill] sm:$0xff] %v7156_v17  ;;  %v7204_v33 = vld [vmem:[%s7094_s30 + $0x44] sm:$0xf]  ;;  %v7207_v34 = vld [vmem:[%s7094_s30 + $0x40] sm:$0xf] }
  0x75   : > { %9344 = vst [vmem:[#allocation23_spill] sm:$0xff] %v7159_v18  ;;  %v7210_v35 = vld [vmem:[%s7094_s30 + $0x44] sm:$0xf]  ;;  %v7213_v36 = vld [vmem:[%s7094_s30 + $0x40] sm:$0xf] }
  0x76   : > { %9345 = vst [vmem:[#allocation24_spill] sm:$0xff] %v7168_v21  ;;  %v7216_v37 = vld [vmem:[%s7094_s30 + $0x4c] sm:$0xf]  ;;  %v7219_v38 = vld [vmem:[%s7094_s30 + $0x48] sm:$0xf] }
  0x77   : > { %9346 = vst [vmem:[#allocation25_spill] sm:$0xff] %v7171_v22  ;;  %v7222_v39 = vld [vmem:[%s7094_s30 + $0x4c] sm:$0xf]  ;;  %v7225_v40 = vld [vmem:[%s7094_s30 + $0x48] sm:$0xf] }
  0x78   : > { %9347 = vst [vmem:[#allocation26_spill] sm:$0xff] %v7180_v25  ;;  %v7228_v41 = vld [vmem:[%s7094_s30 + $0x50] sm:$0xf0]  ;;  %v7231_v42 = vld [vmem:[%s7094_s30 + $0x4c] sm:$0xf0] }
  0x79   : > { %9348 = vst [vmem:[#allocation27_spill] sm:$0xff] %v7183_v26  ;;  %v7234_v43 = vld [vmem:[%s7094_s30 + $0x50] sm:$0xf0]  ;;  %v7237_v44 = vld [vmem:[%s7094_s30 + $0x4c] sm:$0xf0] }
  0x7a   : > { %9349 = vst [vmem:[#allocation28_spill] sm:$0xff] %v7192_v29  ;;  %v7240_v45 = vld [vmem:[%s7094_s30 + $0x58] sm:$0xf0]  ;;  %v7243_v46 = vld [vmem:[%s7094_s30 + $0x54] sm:$0xf0] }
  0x7b   : > { %9350 = vst [vmem:[#allocation29_spill] sm:$0xff] %v7195_v30  ;;  %v7246_v47 = vld [vmem:[%s7094_s30 + $0x58] sm:$0xf0]  ;;  %v7249_v48 = vld [vmem:[%s7094_s30 + $0x54] sm:$0xf0] }
  0x7c   : > { %9351 = vst [vmem:[#allocation30_spill] sm:$0xff] %v7204_v33  ;;  %v7252_v49 = vld [vmem:[%s7094_s30 + $0x64] sm:$0xf]  ;;  %v7255_v50 = vld [vmem:[%s7094_s30 + $0x60] sm:$0xf] }
  0x7d   : > { %9352 = vst [vmem:[#allocation31_spill] sm:$0xff] %v7207_v34  ;;  %v7258_v51 = vld [vmem:[%s7094_s30 + $0x64] sm:$0xf]  ;;  %v7261_v52 = vld [vmem:[%s7094_s30 + $0x60] sm:$0xf] }
  0x7e   : > { %9353 = vst [vmem:[#allocation32_spill] sm:$0xff] %v7216_v37  ;;  %v7264_v53 = vld [vmem:[%s7094_s30 + $0x6c] sm:$0xf]  ;;  %v7267_v54 = vld [vmem:[%s7094_s30 + $0x68] sm:$0xf] }
  0x7f   : > { %9354 = vst [vmem:[#allocation33_spill] sm:$0xff] %v7219_v38  ;;  %v7270_v55 = vld [vmem:[%s7094_s30 + $0x6c] sm:$0xf]  ;;  %v7273_v56 = vld [vmem:[%s7094_s30 + $0x68] sm:$0xf] }
  0x80   : > { %9355 = vst [vmem:[#allocation34_spill] sm:$0xff] %v7228_v41  ;;  %v7276_v57 = vld [vmem:[%s7094_s30 + $0x70] sm:$0xf0]  ;;  %v7279_v58 = vld [vmem:[%s7094_s30 + $0x6c] sm:$0xf0] }
  0x81   : > { %9356 = vst [vmem:[#allocation35_spill] sm:$0xff] %v7231_v42  ;;  %v7282_v59 = vld [vmem:[%s7094_s30 + $0x70] sm:$0xf0]  ;;  %v7285_v60 = vld [vmem:[%s7094_s30 + $0x6c] sm:$0xf0] }
  0x82   : > { %9357 = vst [vmem:[#allocation36_spill] sm:$0xff] %v7240_v45  ;;  %v7288_v61 = vld [vmem:[%s7094_s30 + $0x78] sm:$0xf0]  ;;  %v7291_v62 = vld [vmem:[%s7094_s30 + $0x74] sm:$0xf0] }
  0x83   : > { %9358 = vst [vmem:[#allocation37_spill] sm:$0xff] %v7243_v46  ;;  %v7294_v63 = vld [vmem:[%s7094_s30 + $0x78] sm:$0xf0]  ;;  %v7297_v0 = vld [vmem:[%s7094_s30 + $0x74] sm:$0xf0] }
  0x84   : > { %9359 = vst [vmem:[#allocation38_spill] sm:$0xff] %v7252_v49  ;;  %v7300_v14 = vld [vmem:[%s7094_s30 + $0x84] sm:$0xf]  ;;  %v7303_v6 = vld [vmem:[%s7094_s30 + $0x80] sm:$0xf] }
  0x85   : > { %9360 = vst [vmem:[#allocation39_spill] sm:$0xff] %v7255_v50  ;;  %v7306_v5 = vld [vmem:[%s7094_s30 + $0x84] sm:$0xf]  ;;  %v7309_v13 = vld [vmem:[%s7094_s30 + $0x80] sm:$0xf] }
  0x86   : > { %9361 = vst [vmem:[#allocation40_spill] sm:$0xff] %v7264_v53  ;;  %v7312_v1 = vld [vmem:[%s7094_s30 + $0x8c] sm:$0xf]  ;;  %v7315_v9 = vld [vmem:[%s7094_s30 + $0x88] sm:$0xf] }
  0x87   : > { %9362 = vst [vmem:[#allocation41_spill] sm:$0xff] %v7267_v54  ;;  %v7318_v10 = vld [vmem:[%s7094_s30 + $0x8c] sm:$0xf]  ;;  %v7321_v2 = vld [vmem:[%s7094_s30 + $0x88] sm:$0xf] }
  0x88   : > { %9363 = vst [vmem:[#allocation42_spill] sm:$0xff] %v7276_v57  ;;  %v7324_v30 = vld [vmem:[%s7094_s30 + $0x90] sm:$0xf0]  ;;  %v7327_v22 = vld [vmem:[%s7094_s30 + $0x8c] sm:$0xf0] }
  0x89   : > { %9364 = vst [vmem:[#allocation43_spill] sm:$0xff] %v7279_v58  ;;  %v7330_v21 = vld [vmem:[%s7094_s30 + $0x90] sm:$0xf0]  ;;  %v7333_v29 = vld [vmem:[%s7094_s30 + $0x8c] sm:$0xf0] }
  0x8a   : > { %9365 = vst [vmem:[#allocation44_spill] sm:$0xff] %v7288_v61  ;;  %v7336_v17 = vld [vmem:[%s7094_s30 + $0x98] sm:$0xf0]  ;;  %v7339_v25 = vld [vmem:[%s7094_s30 + $0x94] sm:$0xf0] }
  0x8b   : > { %9366 = vst [vmem:[#allocation45_spill] sm:$0xff] %v7291_v62  ;;  %v7342_v26 = vld [vmem:[%s7094_s30 + $0x98] sm:$0xf0]  ;;  %v7345_v18 = vld [vmem:[%s7094_s30 + $0x94] sm:$0xf0] }
  0x8c   : > { %9367 = vst [vmem:[#allocation46_spill] sm:$0xff] %v7300_v14  ;;  %v7348_v46 = vld [vmem:[%s7094_s30 + $0xa4] sm:$0xf]  ;;  %v7351_v38 = vld [vmem:[%s7094_s30 + $0xa0] sm:$0xf] }
  0x8d   : > { %9368 = vst [vmem:[#allocation47_spill] sm:$0xff] %v7303_v6  ;;  %v7354_v37 = vld [vmem:[%s7094_s30 + $0xa4] sm:$0xf]  ;;  %v7357_v45 = vld [vmem:[%s7094_s30 + $0xa0] sm:$0xf] }
  0x8e   : > { %9369 = vst [vmem:[#allocation48_spill] sm:$0xff] %v7312_v1  ;;  %v7360_v33 = vld [vmem:[%s7094_s30 + $0xac] sm:$0xf]  ;;  %v7363_v41 = vld [vmem:[%s7094_s30 + $0xa8] sm:$0xf] }
  0x8f   : > { %9370 = vst [vmem:[#allocation49_spill] sm:$0xff] %v7315_v9  ;;  %v7366_v42 = vld [vmem:[%s7094_s30 + $0xac] sm:$0xf]  ;;  %v7369_v34 = vld [vmem:[%s7094_s30 + $0xa8] sm:$0xf] }
  0x90   : > { %9371 = vst [vmem:[#allocation50_spill] sm:$0xff] %v7324_v30  ;;  %v7372_v62 = vld [vmem:[%s7094_s30 + $0xb0] sm:$0xf0]  ;;  %v7375_v54 = vld [vmem:[%s7094_s30 + $0xac] sm:$0xf0] }
  0x91   : > { %9372 = vst [vmem:[#allocation51_spill] sm:$0xff] %v7327_v22  ;;  %v5823_v53 = vld [vmem:[%s7094_s30 + $0xb0] sm:$0xf0]  ;;  %v6233_v61 = vld [vmem:[%s7094_s30 + $0xac] sm:$0xf0] }
  0x92   : > { %9373 = vst [vmem:[#allocation52_spill] sm:$0xff] %v7336_v17  ;;  %v7380_v49 = vld [vmem:[%s7094_s30 + $0xb8] sm:$0xf0]  ;;  %v7383_v57 = vld [vmem:[%s7094_s30 + $0xb4] sm:$0xf0] }
  0x93   : > { %9374 = vst [vmem:[#allocation53_spill] sm:$0xff] %v7339_v25  ;;  %v5831_v58 = vld [vmem:[%s7094_s30 + $0xb8] sm:$0xf0]  ;;  %v6235_v50 = vld [vmem:[%s7094_s30 + $0xb4] sm:$0xf0] }
  0x94   : > { %9375 = vst [vmem:[#allocation54_spill] sm:$0xff] %v7348_v46  ;;  %v7388_v25 = vld [vmem:[%s7094_s30 + $0xc4] sm:$0xf]  ;;  %v7391_v9 = vld [vmem:[%s7094_s30 + $0xc0] sm:$0xf] }
  0x95   : > { %9376 = vst [vmem:[#allocation55_spill] sm:$0xff] %v7351_v38  ;;  %v6237_v1 = vld [vmem:[%s7094_s30 + $0xc4] sm:$0xf]  ;;  %v5837_v17 = vld [vmem:[%s7094_s30 + $0xc0] sm:$0xf] }
  0x96   : > { %9377 = vst [vmem:[#allocation56_spill] sm:$0xff] %v7360_v33  ;;  %v7396_v14 = vld [vmem:[%s7094_s30 + $0xcc] sm:$0xf]  ;;  %v7399_v30 = vld [vmem:[%s7094_s30 + $0xc8] sm:$0xf] }
  0x97   : > { %9378 = vst [vmem:[#allocation57_spill] sm:$0xff] %v7363_v41  ;;  %v6239_v22 = vld [vmem:[%s7094_s30 + $0xcc] sm:$0xf]  ;;  %v5845_v6 = vld [vmem:[%s7094_s30 + $0xc8] sm:$0xf] }
  0x98   : > { %9379 = vst [vmem:[#allocation58_spill] sm:$0xff] %v7372_v62  ;;  %v7407_v41 = vld [vmem:[%s7094_s30 + $0xcc] sm:$0xf0]  ;;  %v5839_v33 = vld [vmem:[%s7094_s30 + $0xd0] sm:$0xf0] }
  0x99   : > { %9380 = vst [vmem:[#allocation59_spill] sm:$0xff] %v7375_v54  ;;  %v7412_v46 = vld [vmem:[%s7094_s30 + $0xd8] sm:$0xf0]  ;;  %v7415_v62 = vld [vmem:[%s7094_s30 + $0xd4] sm:$0xf0] }
  0x9a   : > { %9381 = vst [vmem:[#allocation60_spill] sm:$0xff] %v7380_v49  ;;  %v6241_v49 = vld [vmem:[%s7094_s30 + $0xcc] sm:$0xf0]  ;;  %v5847_v54 = vld [vmem:[%s7094_s30 + $0xd8] sm:$0xf0] }
  0x9b   : > { %9382 = vst [vmem:[#allocation61_spill] sm:$0xff] %v7383_v57  ;;  %v7404_v57 = vld [vmem:[%s7094_s30 + $0xd0] sm:$0xf0]  ;;  %v6243_v38 = vld [vmem:[%s7094_s30 + $0xd4] sm:$0xf0] }
  0x9c   : > { %9383 = vst [vmem:[#allocation62_spill] sm:$0xff] %v7388_v25  ;;  %v6245_v25 = vld [vmem:[%s7094_s30 + $0xe4] sm:$0xf]  ;;  %v5861_v16 = vld [vmem:[%s7094_s30 + $0xe8] sm:$0xf] }
  0x9d   : > { %9384 = vst [vmem:[#allocation63_spill] sm:$0xff] %v7391_v9  ;;  %v7431_v9 = vld [vmem:[%s7094_s30 + $0xe8] sm:$0xf]  ;;  %v7439_v8 = vld [vmem:[%s7094_s30 + $0xec] sm:$0xf0] }
  0x9e   : > { %9385 = vst [vmem:[#allocation64_spill] sm:$0xff] %v7396_v14  ;;  %v7423_v14 = vld [vmem:[%s7094_s30 + $0xe0] sm:$0xf]  ;;  %v5855_v7 = vld [vmem:[%s7094_s30 + $0xf0] sm:$0xf0] }
  0x9f   : > { %9386 = vst [vmem:[#allocation65_spill] sm:$0xff] %v7399_v30  ;;  %v7420_v30 = vld [vmem:[%s7094_s30 + $0xe4] sm:$0xf]  ;;  %v6249_v15 = vld [vmem:[%s7094_s30 + $0xec] sm:$0xf0] }
  0xa0   : > { %9387 = vst [vmem:[#allocation66_spill] sm:$0xff] %v7404_v57  ;;  %v5853_v57 = vld [vmem:[%s7094_s30 + $0xe0] sm:$0xf]  ;;  %v7444_v3 = vld [vmem:[%s7094_s30 + $0xf8] sm:$0xf0] }
  0xa1   : > { %9388 = vst [vmem:[#allocation67_spill] sm:$0xff] %v7407_v41  ;;  %v7428_v41 = vld [vmem:[%s7094_s30 + $0xec] sm:$0xf]  ;;  %v6251_v11 = vld [vmem:[%s7094_s30 + $0xf4] sm:$0xf0] }
  0xa2   : > { %9389 = vst [vmem:[#allocation68_spill] sm:$0xff] %v7412_v46  ;;  %v6247_v46 = vld [vmem:[%s7094_s30 + $0xec] sm:$0xf] }
  0xa3   : > { %9390 = vst [vmem:[#allocation69_spill] sm:$0xff] %v7415_v62  ;;  %v7436_v62 = vld [vmem:[%s7094_s30 + $0xf0] sm:$0xf0] }
  0xa4   : > { %9391 = vst [vmem:[#allocation70_spill] sm:$0xff] %v7420_v30  ;;  %v7447_v30 = vld [vmem:[%s7094_s30 + $0xf4] sm:$0xf0] }
  0xa5   : > { %9392 = vst [vmem:[#allocation71_spill] sm:$0xff] %v7423_v14  ;;  %v5863_v14 = vld [vmem:[%s7094_s30 + $0xf8] sm:$0xf0] }
  0xa6   : > { %9393 = vst [vmem:[#allocation72_spill] sm:$0xff] %v7428_v41 }
  0xa7   : > { %9394 = vst [vmem:[#allocation73_spill] sm:$0xff] %v7431_v9  ;;  %516 = sbr.rel (%p5738_p12) target bundleno = 2973 (0xb9d), region = 86 }
  0xa8   : > { %9395 = vst [vmem:[#allocation74_spill] sm:$0xff] %v7436_v62 }
  0xa9   : > { %9396 = vst [vmem:[#allocation75_spill] sm:$0xff] %v7439_v8 }
  0xaa   : > { %9397 = vst [vmem:[#allocation76_spill] sm:$0xff] %v7444_v3 }
  0xab   : > { %9398 = vst [vmem:[#allocation77_spill] sm:$0xff] %v7447_v30 }
  0xac   : > { %v7458_v9 = vor.u32 %v6249_v15, %v5853_v57  ;;  %v7460_v41 = vor.u32 %v6245_v25, %v5855_v7  ;;  %v7462_v62 = vor.u32 %v6247_v46, %v5863_v14  ;;  %v7464_v8 = vor.u32 %v6251_v11, %v5861_v16  ;;  %v7475_v12 = vld [vmem:[%s9320_s0] sm:$0xff] }
  0xad   : > { %v7468_v30 = vor.u32 %v6241_v49, %v5837_v17  ;;  %v7470_v3 = vor.u32 %v6237_v1, %v5839_v33  ;;  %v7478_v7 = vor.u32 %v6239_v22, %v5847_v54  ;;  %v7481_v11 = vor.u32 %v6243_v38, %v5845_v6  ;;  %v527_v49 = vld [vmem:[%s7452_s13] sm:$0xff] }
  0xae   : > { %695 = vmatpush.bf16.msra.mxu0 %v7458_v9  ;;  %708 = vmatpush.bf16.msra.mxu1 %v7460_v41  ;;  %vm521_vm0 = vcmp.gt.s32.totalorder %v7475_v12, 0  ;;  %v6856_v14 = vmov 0   ;;  %v7489_v1 = vor.u32 %v6233_v61, %v7357_v45  ;;  %v7492_v15 = vor.u32 %v7354_v37, %v5823_v53 }
  0xaf   : > { %734 = vmatpush.bf16.msra.mxu3 %v7462_v62  ;;  %721 = vmatpush.bf16.msra.mxu2 %v7464_v8  ;;  %v522_v6 = vsel %vm521_vm0, 1, %v6856_v14  ;;  %v7497_v16 = vor.u32 %v7366_v42, %v5831_v58  ;;  %v7501_v17 = vor.u32 %v6235_v50, %v7369_v34  ;;  %v7508_v22 = vor.u32 %v7333_v29, %v7309_v13 }
  0xb0   : > { %6295 = vset.pattern.permute.xlu0 %v6856_v14  ;;  %6296 = vset.pattern.permute.xlu1 %v6856_v14  ;;  %v7512_v25 = vor.u32 %v7306_v5, %v7330_v21  ;;  %vm823_vm1 = vcmp.gt.s32.totalorder %v7475_v12, 1  ;;  %v7518_v33 = vor.u32 %v7318_v10, %v7342_v26  ;;  %v7523_v34 = vor.u32 %v7345_v18, %v7321_v2 }
  0xb1   : > { %524 = vperm.xlu0 %6295, %v522_v6   ;;  %6297 = vset.pattern.permute.xlu2 %v6856_v14  ;;  %v824_v13 = vsel %vm823_vm1, 1, %v6856_v14  ;;  %v7530_v5 = vor.u32 %v7285_v60, %v7261_v52  ;;  %v7534_v10 = vor.u32 %v7258_v51, %v7282_v59  ;;  %v7539_v2 = vor.u32 %v7270_v55, %v7294_v63 }
  0xb2   : > { %696 = vmatpush.bf16.msra.mxu0 %v7468_v30  ;;  %709 = vmatpush.bf16.msra.mxu1 %v7470_v3  ;;  %v7544_v18 = vor.u32 %v7297_v0, %v7273_v56  ;;  %v7550_v21 = vor.u32 %v7237_v44, %v7213_v36  ;;  %v7554_v26 = vor.u32 %v7210_v35, %v7234_v43  ;;  %vm1543_vm2 = vcmp.gt.s32.totalorder %v7475_v12, 6  ;;  %v9404_v43 = vld [vmem:[#allocation13_spill] sm:$0xff]  ;;  %v528_v56 = vld [vmem:[%s7452_s13 + $0x8] sm:$0xff] }
  0xb3   : > { %735 = vmatpush.bf16.msra.mxu3 %v7478_v7  ;;  %722 = vmatpush.bf16.msra.mxu2 %v7481_v11  ;;  %v7560_v29 = vor.u32 %v7222_v39, %v7246_v47  ;;  %v7565_v37 = vor.u32 %v7249_v48, %v7225_v40  ;;  %v1544_v36 = vsel %vm1543_vm2, 1, %v6856_v14  ;;  %v7572_v35 = vor.u32 %v7189_v28, %v7165_v20  ;;  %v9401_v28 = vld [vmem:[#allocation9_spill] sm:$0xff] }
  0xb4   : > { %v7576_v38 = vor.u32 %v7162_v19, %v7186_v27  ;;  %v7581_v39 = vor.u32 %v7174_v23, %v7198_v31  ;;  %v7586_v40 = vor.u32 %v7201_v32, %v7177_v24  ;;  %v9399_v19 = vld [vmem:[#allocation17_spill] sm:$0xff]  ;;  %v9400_v27 = vld [vmem:[#allocation16_spill] sm:$0xff]  ;;  %vm1975_vm3 = vcmp.gt.s32.totalorder %v7475_v12, 9 }
  0xb5   : > { %v7592_v20 = vor.u32 %v9399_v19, %v7107_v4  ;;  %v7596_v42 = vor.u32 %v9401_v28, %v9400_v27  ;;  %v7598_v23 = vld [vmem:[#allocation2] sm:$0xff]  ;;  %v9402_v24 = vld [vmem:[#allocation20_spill] sm:$0xff]  ;;  %v1976_v46 = vsel %vm1975_vm3, 1, %v6856_v14  ;;  %vm2407_vm4 = vcmp.gt.s32.totalorder %v7475_v12, 12 }
  0xb6   : > { %697 = vmatpush.bf16.msra.mxu0 %v7489_v1  ;;  %710 = vmatpush.bf16.msra.mxu1 %v7492_v15  ;;  %v9403_v31 = vld [vmem:[#allocation12_spill] sm:$0xff]  ;;  %v9405_v44 = vld [vmem:[#allocation21_spill] sm:$0xff]  ;;  %v534_v45 = vpack.c.bf16 %v7598_v23, %v7598_v23  ;;  %v2408_v47 = vsel %vm2407_vm4, 1, %v6856_v14  ;;  %vm2839_vm5 = vcmp.gt.s32.totalorder %v7475_v12, 15  ;;  %v529_v50 = vunpack.c.l.bf16 %v527_v49 }
  0xb7   : > { %736 = vmatpush.bf16.msra.mxu3 %v7497_v16  ;;  %723 = vmatpush.bf16.msra.mxu2 %v7501_v17  ;;  %v7604_v32 = vor.u32 %v9403_v31, %v9402_v24  ;;  %v7609_v4 = vor.u32 %v9405_v44, %v9404_v43  ;;  %v2840_v48 = vsel %vm2839_vm5, 1, %v6856_v14  ;;  %v530_v51 = vunpack.c.h.bf16 %v527_v49 }
  0xb8   : > { %v532_v59 = vunpack.c.h.bf16 %v528_v56  ;;  %v531_v24 = vunpack.c.l.bf16 %v528_v56  ;;  %vm967_vm3 = vcmp.gt.s32.totalorder %v7475_v12, 2  ;;  %vm1111_vm4 = vcmp.gt.s32.totalorder %v7475_v12, 3 }
  0xb9   : > { %826 = vperm.xlu0 %6295, %v824_v13  }
  0xba   : > { %698 = vmatpush.bf16.msra.mxu0 %v7508_v22  ;;  %711 = vmatpush.bf16.msra.mxu1 %v7512_v25 }
  0xbb   : > { %737 = vmatpush.bf16.msra.mxu3 %v7518_v33  ;;  %724 = vmatpush.bf16.msra.mxu2 %v7523_v34 }
  0xbe   : > { %699 = vmatpush.bf16.msra.mxu0 %v7530_v5  ;;  %712 = vmatpush.bf16.msra.mxu1 %v7534_v10 }
  0xbf   : > { %738 = vmatpush.bf16.msra.mxu3 %v7539_v2  ;;  %725 = vmatpush.bf16.msra.mxu2 %v7544_v18 }
  0xc1   : > { %1546 = vperm.xlu0 %6295, %v1544_v36  }
  0xc2   : > { %700 = vmatpush.bf16.msra.mxu0 %v7550_v21  ;;  %713 = vmatpush.bf16.msra.mxu1 %v7554_v26 }
  0xc3   : > { %739 = vmatpush.bf16.msra.mxu3 %v7560_v29  ;;  %726 = vmatpush.bf16.msra.mxu2 %v7565_v37 }
  0xc6   : > { %701 = vmatpush.bf16.msra.mxu0 %v7572_v35  ;;  %714 = vmatpush.bf16.msra.mxu1 %v7576_v38 }
  0xc7   : > { %740 = vmatpush.bf16.msra.mxu3 %v7581_v39  ;;  %727 = vmatpush.bf16.msra.mxu2 %v7586_v40 }
  0xc9   : > { %1978 = vperm.xlu0 %6295, %v1976_v46  }
  0xca   : > { %702 = vmatpush.bf16.msra.mxu0 %v7592_v20  ;;  %715 = vmatpush.bf16.msra.mxu1 %v7596_v42 }
  0xcb   : > { %741 = vmatpush.bf16.msra.mxu3 %v7604_v32  ;;  %728 = vmatpush.bf16.msra.mxu2 %v7609_v4 }
  0xcd   : > { %703 = vmatmul.bf16.vlgmr.msra.gmra.mxu0 %v534_v45  ;;  %716 = vmatmul.bf16.vlgmr.msra.gmra.mxu1 %v534_v45 }
  0xce   : > { %838 = vmatpush.bf16.msrb.mxu0 %v7458_v9  ;;  %742 = vmatmul.bf16.vlgmr.msra.gmra.mxu3 %v534_v45 }
  0xcf   : > { %729 = vmatmul.bf16.vlgmr.msra.gmra.mxu2 %v534_v45  ;;  %851 = vmatpush.bf16.msrb.mxu1 %v7460_v41 }
  0xd0   : > { %864 = vmatpush.bf16.msrb.mxu2 %v7464_v8  ;;  %877 = vmatpush.bf16.msrb.mxu3 %v7462_v62 }
  0xd1   : > { %2410 = vperm.xlu0 %6295, %v2408_v47  }
  0xd2   : > { %839 = vmatpush.bf16.msrb.mxu0 %v7468_v30 }
  0xd3   : > { %852 = vmatpush.bf16.msrb.mxu1 %v7470_v3 }
  0xd4   : > { %865 = vmatpush.bf16.msrb.mxu2 %v7481_v11  ;;  %878 = vmatpush.bf16.msrb.mxu3 %v7478_v7 }
  0xd6   : > { %840 = vmatpush.bf16.msrb.mxu0 %v7489_v1 }
  0xd7   : > { %853 = vmatpush.bf16.msrb.mxu1 %v7492_v15 }
  0xd8   : > { %866 = vmatpush.bf16.msrb.mxu2 %v7501_v17  ;;  %879 = vmatpush.bf16.msrb.mxu3 %v7497_v16 }
  0xd9   : > { %2842 = vperm.xlu0 %6295, %v2840_v48  }
  0xda   : > { %841 = vmatpush.bf16.msrb.mxu0 %v7508_v22 }
  0xdb   : > { %854 = vmatpush.bf16.msrb.mxu1 %v7512_v25 }
  0xdc   : > { %867 = vmatpush.bf16.msrb.mxu2 %v7523_v34  ;;  %880 = vmatpush.bf16.msrb.mxu3 %v7518_v33 }
  0xde   : > { %842 = vmatpush.bf16.msrb.mxu0 %v7530_v5 }
  0xdf   : > { %855 = vmatpush.bf16.msrb.mxu1 %v7534_v10 }
  0xe0   : > { %868 = vmatpush.bf16.msrb.mxu2 %v7544_v18  ;;  %881 = vmatpush.bf16.msrb.mxu3 %v7539_v2 }
  0xe2   : > { %843 = vmatpush.bf16.msrb.mxu0 %v7550_v21 }
  0xe3   : > { %856 = vmatpush.bf16.msrb.mxu1 %v7554_v26 }
  0xe4   : > { %869 = vmatpush.bf16.msrb.mxu2 %v7565_v37  ;;  %882 = vmatpush.bf16.msrb.mxu3 %v7560_v29 }
  0xe6   : > { %844 = vmatpush.bf16.msrb.mxu0 %v7572_v35 }
  0xe7   : > { %857 = vmatpush.bf16.msrb.mxu1 %v7576_v38 }
  0xe8   : > { %870 = vmatpush.bf16.msrb.mxu2 %v7586_v40  ;;  %883 = vmatpush.bf16.msrb.mxu3 %v7581_v39 }
  0xea   : > { %845 = vmatpush.bf16.msrb.mxu0 %v7592_v20 }
  0xeb   : > { %858 = vmatpush.bf16.msrb.mxu1 %v7596_v42 }
  0xec   : > { %871 = vmatpush.bf16.msrb.mxu2 %v7609_v4  ;;  %884 = vmatpush.bf16.msrb.mxu3 %v7604_v32 }
  0xee   : > { %982 = vmatpush.bf16.msra.mxu0 %v7458_v9 }
  0xef   : > { %995 = vmatpush.bf16.msra.mxu1 %v7460_v41 }
  0xf0   : > { %1008 = vmatpush.bf16.msra.mxu2 %v7464_v8  ;;  %1021 = vmatpush.bf16.msra.mxu3 %v7462_v62 }
  0xf2   : > { %983 = vmatpush.bf16.msra.mxu0 %v7468_v30 }
  0xf3   : > { %996 = vmatpush.bf16.msra.mxu1 %v7470_v3 }
  0xf4   : > { %1009 = vmatpush.bf16.msra.mxu2 %v7481_v11  ;;  %1022 = vmatpush.bf16.msra.mxu3 %v7478_v7 }
  0xf6   : > { %984 = vmatpush.bf16.msra.mxu0 %v7489_v1 }
  0xf7   : > { %997 = vmatpush.bf16.msra.mxu1 %v7492_v15 }
  0xf8   : > { %1010 = vmatpush.bf16.msra.mxu2 %v7501_v17  ;;  %1023 = vmatpush.bf16.msra.mxu3 %v7497_v16 }
  0xfa   : > { %985 = vmatpush.bf16.msra.mxu0 %v7508_v22 }
  0xfb   : > { %998 = vmatpush.bf16.msra.mxu1 %v7512_v25 }
  0xfc   : > { %1011 = vmatpush.bf16.msra.mxu2 %v7523_v34  ;;  %1024 = vmatpush.bf16.msra.mxu3 %v7518_v33 }
  0xfe   : > { %986 = vmatpush.bf16.msra.mxu0 %v7530_v5 }
  0xff   : > { %999 = vmatpush.bf16.msra.mxu1 %v7534_v10 }
 0x100   : > { %1012 = vmatpush.bf16.msra.mxu2 %v7544_v18  ;;  %1025 = vmatpush.bf16.msra.mxu3 %v7539_v2 }
 0x102   : > { %987 = vmatpush.bf16.msra.mxu0 %v7550_v21 }
 0x103   : > { %1000 = vmatpush.bf16.msra.mxu1 %v7554_v26 }
 0x104   : > { %1013 = vmatpush.bf16.msra.mxu2 %v7565_v37  ;;  %1026 = vmatpush.bf16.msra.mxu3 %v7560_v29 }
 0x106   : > { %988 = vmatpush.bf16.msra.mxu0 %v7572_v35 }
 0x107   : > { %1001 = vmatpush.bf16.msra.mxu1 %v7576_v38 }
 0x108   : > { %1014 = vmatpush.bf16.msra.mxu2 %v7586_v40  ;;  %1027 = vmatpush.bf16.msra.mxu3 %v7581_v39 }
 0x10a   : > { %989 = vmatpush.bf16.msra.mxu0 %v7592_v20 }
 0x10b   : > { %1002 = vmatpush.bf16.msra.mxu1 %v7596_v42 }
 0x10c   : > { %1015 = vmatpush.bf16.msra.mxu2 %v7609_v4  ;;  %1028 = vmatpush.bf16.msra.mxu3 %v7604_v32 }
 0x14a   : > { %v704_v52 = vpop.f32.mrf.mxu0  ;;  %v717_v53 = vpop.f32.mrf.mxu1 }
 0x14b   : > { %v747_v54 = vadd.f32 %v704_v52, %v529_v50  ;;  %v748_v55 = vadd.f32 %v717_v53, %v530_v51 }
 0x14d   : > { %v5867_v57 = vmul.f32 -1.442695, %v747_v54  ;;  %v5868_v58 = vmul.f32 -1.442695, %v748_v55 }
 0x14f   : > { %6298 = vpow2.f32 %v5867_v57 }
 0x150   : > { %6300 = vpow2.f32 %v5868_v58 }
 0x151   : > { %v743_v60 = vpop.f32.mrf.mxu3 }
 0x152   : > { %v730_v61 = vpop.f32.mrf.mxu2  ;;  %v750_v63 = vadd.f32 %v743_v60, %v532_v59  ;;  %v706_v0 = vpop.f32.mrf.mxu0 }
 0x153   : > { %v719_v6 = vpop.f32.mrf.mxu1  ;;  %v749_v45 = vadd.f32 %v730_v61, %v531_v24 }
 0x154   : > { %v5869_v13 = vmul.f32 -1.442695, %v750_v63 }
 0x155   : > { %v6299_v36 = vpop.eup %6298 }
 0x156   : > { %v6301_v19 = vpop.eup %6300  ;;  %v754_v27 = vadd.f32 1.0, %v6299_v36  ;;  %6302 = vpow2.f32 %v5869_v13 }
 0x157   : > { %v773_v28 = vadd.f32 1.0, %v6301_v19  ;;  %v809_v19 = vld [vmem:[#allocation3] sm:$0xff] }
 0x158   : > { %6304 = vrcp.f32 %v754_v27  ;;  %v766_v53 = vand.u32 2147483648, %v754_v27  ;;  %v764_v57 = vand.u32 2147483647, %v754_v27  ;;  %vm760_vm8 = vweird.f32 %v754_v27 }
 0x159   : > { %6306 = vrcp.f32 %v773_v28  ;;  %v745_v31 = vpop.f32.mrf.mxu3  ;;  %v785_v54 = vand.u32 2147483648, %v773_v28  ;;  %v783_v58 = vand.u32 2147483647, %v773_v28  ;;  %vm779_vm9 = vweird.f32 %v773_v28 }
 0x15a   : > { %v732_v43 = vpop.f32.mrf.mxu2  ;;  %v767_v0 = vor.u32 1.1754944e-38, %v766_v53  ;;  %vm765_vm12 = vcmp.eq.f32.partialorder %v764_v57, 8.507059e+37 }
 0x15b   : > { %v786_v13 = vor.u32 1.1754944e-38, %v785_v54  ;;  %vm784_vm13 = vcmp.eq.f32.partialorder %v783_v58, 8.507059e+37 }
 0x15c   : > { %v6303_v44 = vpop.eup %6302 }
 0x15d   : > { %v793_v46 = vadd.f32 1.0, %v6303_v44 }
 0x15e   : > { %v6305_v47 = vpop.eup %6304 }
 0x15f   : > { %v6307_v48 = vpop.eup %6306  ;;  %v756_v49 = vmul.f32 %v6305_v47, %v754_v27  ;;  %6308 = vrcp.f32 %v793_v46  ;;  %vm761_vm6 = vweird.f32 %v6305_v47  ;;  %vm799_vm0 = vweird.f32 %v793_v46 }
 0x160   : > { %v775_v50 = vmul.f32 %v6307_v48, %v773_v28  ;;  %6310 = vtanh.f32 %v749_v45  ;;  %vm780_vm7 = vweird.f32 %v6307_v48  ;;  %vm762_vm10 = vmor %vm760_vm8, %vm761_vm6  ;;  %v803_v53 = vand.u32 2147483647, %v793_v46 }
 0x161   : > { %v757_v51 = vsub.f32 1.0, %v756_v49  ;;  %vm781_vm11 = vmor %vm779_vm9, %vm780_vm7  ;;  %v525_v49 = vpop.permute.xlu0 %524 }
 0x162   : > { %v776_v52 = vsub.f32 1.0, %v775_v50  ;;  %vm526_vm14 = vcmp.eq.s32.totalorder %v525_v49, 1  ;;  %vm804_vm2 = vcmp.eq.f32.partialorder %v803_v53, 8.507059e+37 }
 0x163   : > { %v758_v55 = vmul.f32 %v6305_v47, %v757_v51 }
 0x164   : > { %v777_v56 = vmul.f32 %v6307_v48, %v776_v52  ;;  %v805_v52 = vand.u32 2147483648, %v793_v46 }
 0x165   : > { %v6309_v59 = vpop.eup %6308  ;;  %v759_v60 = vadd.f32 %v6305_v47, %v758_v55 }
 0x166   : > { %v6311_v61 = vpop.eup %6310  ;;  %v795_v63 = vmul.f32 %v6309_v59, %v793_v46  ;;  %v778_v6 = vadd.f32 %v6307_v48, %v777_v56  ;;  %vm800_vm15 = vweird.f32 %v6309_v59  ;;  %v806_v54 = vor.u32 1.1754944e-38, %v805_v52 }
 0x167   : > { %v763_v36 = vsel %vm762_vm10, %v6305_v47, %v759_v60  ;;  %vm801_vm1 = vmor %vm799_vm0, %vm800_vm15 }
 0x168   : > { %v796_v24 = vsub.f32 1.0, %v795_v63  ;;  %v768_v31 = vsel %vm765_vm12, %v767_v0, %v763_v36  ;;  %v782_v43 = vsel %vm781_vm11, %v6307_v48, %v778_v6  ;;  %v5871_v36 = vld [vmem:[%s7452_s13 + $0x18] sm:$0xff]  ;;  %vm1687_vm12 = vcmp.gt.s32.totalorder %v7475_v12, 7 }
 0x169   : > { %v787_v44 = vsel %vm784_vm13, %v786_v13, %v782_v43  ;;  %v811_v45 = vmul.f32 %v6311_v61, %v768_v31  ;;  %v835_v31 = vunpack.c.h.bf16 %v5871_v36 }
 0x16a   : > { %v797_v50 = vmul.f32 %v6309_v59, %v796_v24  ;;  %v810_v27 = vmul.f32 %v809_v19, %v787_v44 }
 0x16c   : > { %v812_v28 = vadd.f32 %v811_v45, %v810_v27  ;;  %v798_v51 = vadd.f32 %v6309_v59, %v797_v50 }
 0x16e   : > { %6312 = vtanh.f32 %v812_v28  ;;  %v7689_v47 = vsel %vm526_vm14, %v812_v28, %v809_v19  ;;  %v802_v48 = vsel %vm801_vm1, %v6309_v59, %v798_v51  ;;  %vm2119_vm1 = vcmp.gt.s32.totalorder %v7475_v12, 10 }
 0x16f   : > { %v807_v57 = vsel %vm804_vm2, %v806_v54, %v802_v48 }
 0x174   : > { %v6313_v55 = vpop.eup %6312 }
 0x175   : > { %v814_v56 = vmul.f32 %v6313_v55, %v807_v57  ;;  %v834_v55 = vunpack.c.l.bf16 %v5871_v36  ;;  %v1112_v36 = vsel %vm1111_vm4, 1, %v6856_v14  ;;  %vm2551_vm4 = vcmp.gt.s32.totalorder %v7475_v12, 13  ;;  %v5876_v12 = vld [vmem:[%s7452_s13 + $0x20] sm:$0xff] }
 0x177   : > { %v815_v58 = vsel %vm526_vm14, %v814_v56, 0.0  ;;  %v7694_v60 = vsel %vm526_vm14, %v814_v56, %v7598_v23  ;;  %v5870_v23 = vld [vmem:[%s7452_s13 + $0x10] sm:$0xff]  ;;  %v968_v56 = vsel %vm967_vm3, 1, %v6856_v14 }
 0x178   : > { %816 = vst [vmem:[%s7455_s14] sm:$0xff] %v815_v58  ;;  %v837_v61 = vpack.c.bf16 %v7694_v60, %v7694_v60  ;;  %v832_v46 = vunpack.c.l.bf16 %v5870_v23  ;;  %v833_v59 = vunpack.c.h.bf16 %v5870_v23  ;;  %970 = vperm.xlu1 %6296, %v968_v56  }
 0x17a   : > { %846 = vmatmul.bf16.vlgmr.msrb.gmra.mxu0 %v837_v61  ;;  %859 = vmatmul.bf16.vlgmr.msrb.gmra.mxu1 %v837_v61 }
 0x17b   : > { %872 = vmatmul.bf16.vlgmr.msrb.gmra.mxu2 %v837_v61  ;;  %885 = vmatmul.bf16.vlgmr.msrb.gmra.mxu3 %v837_v61 }
 0x17c   : > { %1126 = vmatpush.bf16.msrb.mxu0 %v7458_v9  ;;  %1139 = vmatpush.bf16.msrb.mxu1 %v7460_v41 }
 0x17d   : > { %1152 = vmatpush.bf16.msrb.mxu2 %v7464_v8  ;;  %1165 = vmatpush.bf16.msrb.mxu3 %v7462_v62 }
 0x180   : > { %1127 = vmatpush.bf16.msrb.mxu0 %v7468_v30  ;;  %1140 = vmatpush.bf16.msrb.mxu1 %v7470_v3 }
 0x181   : > { %1153 = vmatpush.bf16.msrb.mxu2 %v7481_v11  ;;  %1166 = vmatpush.bf16.msrb.mxu3 %v7478_v7 }
 0x182   : > { %1114 = vperm.xlu1 %6296, %v1112_v36  }
 0x184   : > { %1128 = vmatpush.bf16.msrb.mxu0 %v7489_v1  ;;  %1141 = vmatpush.bf16.msrb.mxu1 %v7492_v15 }
 0x185   : > { %1154 = vmatpush.bf16.msrb.mxu2 %v7501_v17  ;;  %1167 = vmatpush.bf16.msrb.mxu3 %v7497_v16 }
 0x188   : > { %1129 = vmatpush.bf16.msrb.mxu0 %v7508_v22  ;;  %1142 = vmatpush.bf16.msrb.mxu1 %v7512_v25 }
 0x189   : > { %1155 = vmatpush.bf16.msrb.mxu2 %v7523_v34  ;;  %1168 = vmatpush.bf16.msrb.mxu3 %v7518_v33 }
 0x18c   : > { %1130 = vmatpush.bf16.msrb.mxu0 %v7530_v5  ;;  %1143 = vmatpush.bf16.msrb.mxu1 %v7534_v10 }
 0x18d   : > { %1156 = vmatpush.bf16.msrb.mxu2 %v7544_v18  ;;  %1169 = vmatpush.bf16.msrb.mxu3 %v7539_v2 }
 0x190   : > { %1131 = vmatpush.bf16.msrb.mxu0 %v7550_v21  ;;  %1144 = vmatpush.bf16.msrb.mxu1 %v7554_v26 }
 0x191   : > { %1157 = vmatpush.bf16.msrb.mxu2 %v7565_v37  ;;  %1170 = vmatpush.bf16.msrb.mxu3 %v7560_v29 }
 0x194   : > { %1132 = vmatpush.bf16.msrb.mxu0 %v7572_v35  ;;  %1145 = vmatpush.bf16.msrb.mxu1 %v7576_v38 }
 0x195   : > { %1158 = vmatpush.bf16.msrb.mxu2 %v7586_v40  ;;  %1171 = vmatpush.bf16.msrb.mxu3 %v7581_v39 }
 0x198   : > { %1133 = vmatpush.bf16.msrb.mxu0 %v7592_v20  ;;  %1146 = vmatpush.bf16.msrb.mxu1 %v7596_v42 }
 0x199   : > { %1159 = vmatpush.bf16.msrb.mxu2 %v7609_v4  ;;  %1172 = vmatpush.bf16.msrb.mxu3 %v7604_v32 }
 0x1f7   : > { %v847_v63 = vpop.f32.mrf.mxu0  ;;  %v860_v0 = vpop.f32.mrf.mxu1 }
 0x1f8   : > { %v890_v6 = vadd.f32 %v847_v63, %v832_v46  ;;  %v891_v13 = vadd.f32 %v860_v0, %v833_v59 }
 0x1fa   : > { %v5872_v19 = vmul.f32 -1.442695, %v890_v6  ;;  %v5873_v24 = vmul.f32 -1.442695, %v891_v13 }
 0x1fc   : > { %6314 = vpow2.f32 %v5872_v19 }
 0x1fd   : > { %6316 = vpow2.f32 %v5873_v24 }
 0x1fe   : > { %v873_v43 = vpop.f32.mrf.mxu2  ;;  %v886_v44 = vpop.f32.mrf.mxu3 }
 0x1ff   : > { %v893_v45 = vadd.f32 %v886_v44, %v835_v31  ;;  %v849_v49 = vpop.f32.mrf.mxu0  ;;  %v862_v50 = vpop.f32.mrf.mxu1  ;;  %v892_v23 = vadd.f32 %v873_v43, %v834_v55 }
 0x201   : > { %v5874_v27 = vmul.f32 -1.442695, %v893_v45 }
 0x202   : > { %v6315_v28 = vpop.eup %6314 }
 0x203   : > { %v6317_v51 = vpop.eup %6316  ;;  %v897_v52 = vadd.f32 1.0, %v6315_v28  ;;  %6318 = vpow2.f32 %v5874_v27 }
 0x204   : > { %v916_v53 = vadd.f32 1.0, %v6317_v51 }
 0x205   : > { %6320 = vrcp.f32 %v897_v52  ;;  %v909_v13 = vand.u32 2147483648, %v897_v52  ;;  %v907_v31 = vand.u32 2147483647, %v897_v52  ;;  %vm903_vm7 = vweird.f32 %v897_v52 }
 0x206   : > { %6322 = vrcp.f32 %v916_v53  ;;  %v875_v48 = vpop.f32.mrf.mxu2  ;;  %v888_v54 = vpop.f32.mrf.mxu3  ;;  %v928_v19 = vand.u32 2147483648, %v916_v53  ;;  %v926_v45 = vand.u32 2147483647, %v916_v53  ;;  %vm922_vm8 = vweird.f32 %v916_v53 }
 0x207   : > { %v910_v50 = vor.u32 1.1754944e-38, %v909_v13  ;;  %vm908_vm11 = vcmp.eq.f32.partialorder %v907_v31, 8.507059e+37  ;;  %v2120_v31 = vsel %vm2119_vm1, 1, %v6856_v14 }
 0x208   : > { %v929_v51 = vor.u32 1.1754944e-38, %v928_v19  ;;  %vm927_vm13 = vcmp.eq.f32.partialorder %v926_v45, 8.507059e+37 }
 0x209   : > { %v6319_v57 = vpop.eup %6318 }
 0x20a   : > { %v936_v58 = vadd.f32 1.0, %v6319_v57 }
 0x20b   : > { %v6321_v61 = vpop.eup %6320 }
 0x20c   : > { %v6323_v46 = vpop.eup %6322  ;;  %v899_v59 = vmul.f32 %v6321_v61, %v897_v52  ;;  %6324 = vrcp.f32 %v936_v58  ;;  %vm904_vm5 = vweird.f32 %v6321_v61  ;;  %vm942_vm0 = vweird.f32 %v936_v58 }
 0x20d   : > { %v918_v63 = vmul.f32 %v6323_v46, %v916_v53  ;;  %6326 = vtanh.f32 %v892_v23  ;;  %vm923_vm6 = vweird.f32 %v6323_v46  ;;  %vm905_vm9 = vmor %vm903_vm7, %vm904_vm5  ;;  %v946_v36 = vand.u32 2147483647, %v936_v58 }
 0x20e   : > { %v900_v0 = vsub.f32 1.0, %v899_v59  ;;  %vm924_vm10 = vmor %vm922_vm8, %vm923_vm6 }
 0x20f   : > { %v919_v6 = vsub.f32 1.0, %v918_v63  ;;  %v1688_v63 = vsel %vm1687_vm12, 1, %v6856_v14  ;;  %vm947_vm3 = vcmp.eq.f32.partialorder %v946_v36, 8.507059e+37 }
 0x210   : > { %v901_v24 = vmul.f32 %v6321_v61, %v900_v0  ;;  %v827_v0 = vpop.permute.xlu0 %826  ;;  %1690 = vperm.xlu1 %6296, %v1688_v63  }
 0x211   : > { %v920_v44 = vmul.f32 %v6323_v46, %v919_v6  ;;  %vm828_vm14 = vcmp.eq.s32.totalorder %v827_v0, 1 }
 0x212   : > { %v6325_v43 = vpop.eup %6324  ;;  %v902_v49 = vadd.f32 %v6321_v61, %v901_v24 }
 0x213   : > { %v921_v27 = vadd.f32 %v6323_v46, %v920_v44  ;;  %v938_v28 = vmul.f32 %v6325_v43, %v936_v58  ;;  %v6327_v54 = vpop.eup %6326  ;;  %vm943_vm15 = vweird.f32 %v6325_v43 }
 0x214   : > { %v906_v48 = vsel %vm905_vm9, %v6321_v61, %v902_v49  ;;  %vm944_vm2 = vmor %vm942_vm0, %vm943_vm15 }
 0x215   : > { %v911_v55 = vsel %vm908_vm11, %v910_v50, %v906_v48  ;;  %v925_v57 = vsel %vm924_vm10, %v6323_v46, %v921_v27  ;;  %v939_v56 = vsub.f32 1.0, %v938_v28  ;;  %v948_v46 = vand.u32 2147483648, %v936_v58 }
 0x216   : > { %v930_v23 = vsel %vm927_vm13, %v929_v51, %v925_v57  ;;  %v954_v59 = vmul.f32 %v6327_v54, %v911_v55  ;;  %v977_v27 = vunpack.c.h.bf16 %v5876_v12  ;;  %v5877_v55 = vld [vmem:[%s7452_s13 + $0x28] sm:$0xff] }
 0x217   : > { %v953_v52 = vmul.f32 %v930_v23, %v7689_v47  ;;  %v940_v53 = vmul.f32 %v6325_v43, %v939_v56  ;;  %v949_v24 = vor.u32 1.1754944e-38, %v948_v46  ;;  %v979_v23 = vunpack.c.h.bf16 %v5877_v55 }
 0x218   : > { %2122 = vperm.xlu1 %6296, %v2120_v31  }
 0x219   : > { %v955_v6 = vadd.f32 %v954_v59, %v953_v52  ;;  %v941_v13 = vadd.f32 %v6325_v43, %v940_v53 }
 0x21b   : > { %6328 = vtanh.f32 %v955_v6  ;;  %v7742_v61 = vsel %vm828_vm14, %v955_v6, %v7689_v47  ;;  %v945_v19 = vsel %vm944_vm2, %v6325_v43, %v941_v13  ;;  %v2552_v43 = vsel %vm2551_vm4, 1, %v6856_v14 }
 0x21c   : > { %v950_v45 = vsel %vm947_vm3, %v949_v24, %v945_v19 }
 0x220   : > { %2554 = vperm.xlu1 %6296, %v2552_v43  }
 0x221   : > { %v6329_v44 = vpop.eup %6328 }
 0x222   : > { %v957_v49 = vmul.f32 %v6329_v44, %v950_v45  ;;  %v978_v44 = vunpack.c.l.bf16 %v5877_v55 }
 0x224   : > { %v958_v50 = vsel %vm828_vm14, %v957_v49, 0.0  ;;  %v7749_v47 = vsel %vm828_vm14, %v957_v49, %v7694_v60  ;;  %v976_v60 = vunpack.c.l.bf16 %v5876_v12 }
 0x225   : > { %5875 = vst [vmem:[%s7455_s14 + $0x8] sm:$0xff] %v958_v50  ;;  %v981_v58 = vpack.c.bf16 %v7749_v47, %v7749_v47 }
 0x227   : > { %990 = vmatmul.bf16.vlgmr.msra.gmra.mxu0 %v981_v58  ;;  %1003 = vmatmul.bf16.vlgmr.msra.gmra.mxu1 %v981_v58 }
 0x228   : > { %1016 = vmatmul.bf16.vlgmr.msra.gmra.mxu2 %v981_v58  ;;  %1029 = vmatmul.bf16.vlgmr.msra.gmra.mxu3 %v981_v58 }
 0x229   : > { %1270 = vmatpush.bf16.msra.mxu0 %v7458_v9  ;;  %1283 = vmatpush.bf16.msra.mxu1 %v7460_v41 }
 0x22a   : > { %1296 = vmatpush.bf16.msra.mxu2 %v7464_v8  ;;  %1309 = vmatpush.bf16.msra.mxu3 %v7462_v62 }
 0x22d   : > { %1271 = vmatpush.bf16.msra.mxu0 %v7468_v30  ;;  %1284 = vmatpush.bf16.msra.mxu1 %v7470_v3 }
 0x22e   : > { %1297 = vmatpush.bf16.msra.mxu2 %v7481_v11  ;;  %1310 = vmatpush.bf16.msra.mxu3 %v7478_v7 }
 0x231   : > { %1272 = vmatpush.bf16.msra.mxu0 %v7489_v1  ;;  %1285 = vmatpush.bf16.msra.mxu1 %v7492_v15 }
 0x232   : > { %1298 = vmatpush.bf16.msra.mxu2 %v7501_v17  ;;  %1311 = vmatpush.bf16.msra.mxu3 %v7497_v16 }
 0x235   : > { %1273 = vmatpush.bf16.msra.mxu0 %v7508_v22  ;;  %1286 = vmatpush.bf16.msra.mxu1 %v7512_v25 }
 0x236   : > { %1299 = vmatpush.bf16.msra.mxu2 %v7523_v34  ;;  %1312 = vmatpush.bf16.msra.mxu3 %v7518_v33 }
 0x239   : > { %1274 = vmatpush.bf16.msra.mxu0 %v7530_v5  ;;  %1287 = vmatpush.bf16.msra.mxu1 %v7534_v10 }
 0x23a   : > { %1300 = vmatpush.bf16.msra.mxu2 %v7544_v18  ;;  %1313 = vmatpush.bf16.msra.mxu3 %v7539_v2 }
 0x23d   : > { %1275 = vmatpush.bf16.msra.mxu0 %v7550_v21  ;;  %1288 = vmatpush.bf16.msra.mxu1 %v7554_v26 }
 0x23e   : > { %1301 = vmatpush.bf16.msra.mxu2 %v7565_v37  ;;  %1314 = vmatpush.bf16.msra.mxu3 %v7560_v29 }
 0x241   : > { %1276 = vmatpush.bf16.msra.mxu0 %v7572_v35  ;;  %1289 = vmatpush.bf16.msra.mxu1 %v7576_v38 }
 0x242   : > { %1302 = vmatpush.bf16.msra.mxu2 %v7586_v40  ;;  %1315 = vmatpush.bf16.msra.mxu3 %v7581_v39 }
 0x245   : > { %1277 = vmatpush.bf16.msra.mxu0 %v7592_v20  ;;  %1290 = vmatpush.bf16.msra.mxu1 %v7596_v42 }
 0x246   : > { %1303 = vmatpush.bf16.msra.mxu2 %v7609_v4  ;;  %1316 = vmatpush.bf16.msra.mxu3 %v7604_v32 }
 0x2a4   : > { %v991_v28 = vpop.f32.mrf.mxu0  ;;  %v1004_v51 = vpop.f32.mrf.mxu1 }
 0x2a5   : > { %v1034_v48 = vadd.f32 %v991_v28, %v976_v60  ;;  %v1035_v54 = vadd.f32 %v1004_v51, %v977_v27 }
 0x2a7   : > { %v5878_v57 = vmul.f32 -1.442695, %v1034_v48  ;;  %v5879_v56 = vmul.f32 -1.442695, %v1035_v54 }
 0x2a9   : > { %6330 = vpow2.f32 %v5878_v57 }
 0x2aa   : > { %6332 = vpow2.f32 %v5879_v56 }
 0x2ab   : > { %v1017_v59 = vpop.f32.mrf.mxu2  ;;  %v1030_v52 = vpop.f32.mrf.mxu3 }
 0x2ac   : > { %v1037_v53 = vadd.f32 %v1030_v52, %v979_v23  ;;  %v993_v63 = vpop.f32.mrf.mxu0  ;;  %v1006_v0 = vpop.f32.mrf.mxu1  ;;  %v1036_v58 = vadd.f32 %v1017_v59, %v978_v44 }
 0x2ae   : > { %v5880_v6 = vmul.f32 -1.442695, %v1037_v53 }
 0x2af   : > { %v6331_v13 = vpop.eup %6330 }
 0x2b0   : > { %v6333_v46 = vpop.eup %6332  ;;  %v1041_v36 = vadd.f32 1.0, %v6331_v13  ;;  %6334 = vpow2.f32 %v5880_v6 }
 0x2b1   : > { %v1060_v19 = vadd.f32 1.0, %v6333_v46 }
 0x2b2   : > { %6336 = vrcp.f32 %v1041_v36  ;;  %v1053_v51 = vand.u32 2147483648, %v1041_v36  ;;  %v1051_v54 = vand.u32 2147483647, %v1041_v36  ;;  %vm1047_vm7 = vweird.f32 %v1041_v36 }
 0x2b3   : > { %6338 = vrcp.f32 %v1060_v19  ;;  %v1019_v24 = vpop.f32.mrf.mxu2  ;;  %v1032_v31 = vpop.f32.mrf.mxu3  ;;  %v1072_v57 = vand.u32 2147483648, %v1060_v19  ;;  %v1070_v23 = vand.u32 2147483647, %v1060_v19  ;;  %vm1066_vm9 = vweird.f32 %v1060_v19 }
 0x2b4   : > { %v1054_v59 = vor.u32 1.1754944e-38, %v1053_v51  ;;  %vm1052_vm10 = vcmp.eq.f32.partialorder %v1051_v54, 8.507059e+37 }
 0x2b5   : > { %v1073_v6 = vor.u32 1.1754944e-38, %v1072_v57  ;;  %vm1071_vm12 = vcmp.eq.f32.partialorder %v1070_v23, 8.507059e+37 }
 0x2b6   : > { %v6335_v45 = vpop.eup %6334 }
 0x2b7   : > { %v1080_v49 = vadd.f32 1.0, %v6335_v45 }
 0x2b8   : > { %v6337_v50 = vpop.eup %6336 }
 0x2b9   : > { %v6339_v43 = vpop.eup %6338  ;;  %v1043_v12 = vmul.f32 %v6337_v50, %v1041_v36  ;;  %6340 = vrcp.f32 %v1080_v49  ;;  %vm1048_vm5 = vweird.f32 %v6337_v50  ;;  %vm1086_vm15 = vweird.f32 %v1080_v49 }
 0x2ba   : > { %v1062_v60 = vmul.f32 %v6339_v43, %v1060_v19  ;;  %6342 = vtanh.f32 %v1036_v58  ;;  %vm1067_vm6 = vweird.f32 %v6339_v43  ;;  %vm1049_vm8 = vmor %vm1047_vm7, %vm1048_vm5  ;;  %v971_v58 = vpop.permute.xlu1 %970  ;;  %v1092_v19 = vand.u32 2147483648, %v1080_v49 }
 0x2bb   : > { %v1044_v27 = vsub.f32 1.0, %v1043_v12  ;;  %vm1068_vm11 = vmor %vm1066_vm9, %vm1067_vm6  ;;  %vm972_vm13 = vcmp.eq.s32.totalorder %v971_v58, 1 }
 0x2bc   : > { %v1063_v28 = vsub.f32 1.0, %v1062_v60  ;;  %v1093_v51 = vor.u32 1.1754944e-38, %v1092_v19 }
 0x2bd   : > { %v1045_v48 = vmul.f32 %v6337_v50, %v1044_v27 }
 0x2be   : > { %v1064_v56 = vmul.f32 %v6339_v43, %v1063_v28 }
 0x2bf   : > { %v6341_v55 = vpop.eup %6340  ;;  %v1046_v52 = vadd.f32 %v6337_v50, %v1045_v48 }
 0x2c0   : > { %v1082_v53 = vmul.f32 %v6341_v55, %v1080_v49  ;;  %v1065_v63 = vadd.f32 %v6339_v43, %v1064_v56  ;;  %v6343_v13 = vpop.eup %6342  ;;  %vm1087_vm14 = vweird.f32 %v6341_v55 }
 0x2c1   : > { %v1050_v0 = vsel %vm1049_vm8, %v6337_v50, %v1046_v52  ;;  %vm1088_vm0 = vmor %vm1086_vm15, %vm1087_vm14 }
 0x2c2   : > { %v1055_v46 = vsel %vm1052_vm10, %v1054_v59, %v1050_v0  ;;  %v1083_v24 = vsub.f32 1.0, %v1082_v53  ;;  %v1069_v31 = vsel %vm1068_vm11, %v6339_v43, %v1065_v63  ;;  %v1090_v43 = vand.u32 2147483647, %v1080_v49  ;;  %v5883_v0 = vld [vmem:[%s7452_s13 + $0x38] sm:$0xff] }
 0x2c3   : > { %v1098_v44 = vmul.f32 %v6343_v13, %v1055_v46  ;;  %v1074_v45 = vsel %vm1071_vm12, %v1073_v6, %v1069_v31  ;;  %v1123_v46 = vunpack.c.h.bf16 %v5883_v0 }
 0x2c4   : > { %v1084_v12 = vmul.f32 %v6341_v55, %v1083_v24  ;;  %v1097_v36 = vmul.f32 %v1074_v45, %v7742_v61  ;;  %vm1091_vm1 = vcmp.eq.f32.partialorder %v1090_v43, 8.507059e+37 }
 0x2c6   : > { %v1099_v60 = vadd.f32 %v1098_v44, %v1097_v36  ;;  %v1085_v27 = vadd.f32 %v6341_v55, %v1084_v12 }
 0x2c8   : > { %6344 = vtanh.f32 %v1099_v60  ;;  %v7793_v50 = vsel %vm972_vm13, %v1099_v60, %v7742_v61  ;;  %v1089_v28 = vsel %vm1088_vm0, %v6341_v55, %v1085_v27 }
 0x2c9   : > { %v1094_v54 = vsel %vm1091_vm1, %v1093_v51, %v1089_v28  ;;  %v1122_v51 = vunpack.c.l.bf16 %v5883_v0 }
 0x2ce   : > { %v6345_v48 = vpop.eup %6344 }
 0x2cf   : > { %v1101_v57 = vmul.f32 %v6345_v48, %v1094_v54  ;;  %v7840_v48 = vld [vmem:[%s9320_s0] sm:$0xff] }
 0x2d0   : > { %vm1255_vm2 = vcmp.gt.s32.totalorder %v7840_v48, 4  ;;  %vm1399_vm3 = vcmp.gt.s32.totalorder %v7840_v48, 5  ;;  %vm1831_vm11 = vcmp.gt.s32.totalorder %v7840_v48, 8  ;;  %vm2263_vm0 = vcmp.gt.s32.totalorder %v7840_v48, 11 }
 0x2d1   : > { %v1102_v56 = vsel %vm972_vm13, %v1101_v57, 0.0  ;;  %v7798_v23 = vsel %vm972_vm13, %v1101_v57, %v7749_v47  ;;  %v5882_v47 = vld [vmem:[%s7452_s13 + $0x30] sm:$0xff]  ;;  %v1256_v57 = vsel %vm1255_vm2, 1, %v6856_v14  ;;  %v1400_v0 = vsel %vm1399_vm3, 1, %v6856_v14 }
 0x2d2   : > { %5881 = vst [vmem:[%s7455_s14 + $0x10] sm:$0xff] %v1102_v56  ;;  %v1125_v61 = vpack.c.bf16 %v7798_v23, %v7798_v23  ;;  %v1120_v49 = vunpack.c.l.bf16 %v5882_v47  ;;  %v1121_v55 = vunpack.c.h.bf16 %v5882_v47  ;;  %1258 = vperm.xlu2 %6297, %v1256_v57   ;;  %vm2695_vm3 = vcmp.gt.s32.totalorder %v7840_v48, 14 }
 0x2d4   : > { %1134 = vmatmul.bf16.vlgmr.msrb.gmra.mxu0 %v1125_v61  ;;  %1147 = vmatmul.bf16.vlgmr.msrb.gmra.mxu1 %v1125_v61 }
 0x2d5   : > { %1160 = vmatmul.bf16.vlgmr.msrb.gmra.mxu2 %v1125_v61  ;;  %1173 = vmatmul.bf16.vlgmr.msrb.gmra.mxu3 %v1125_v61 }
 0x2d6   : > { %1414 = vmatpush.bf16.msrb.mxu0 %v7458_v9  ;;  %1427 = vmatpush.bf16.msrb.mxu1 %v7460_v41 }
 0x2d7   : > { %1440 = vmatpush.bf16.msrb.mxu2 %v7464_v8  ;;  %1453 = vmatpush.bf16.msrb.mxu3 %v7462_v62 }
 0x2da   : > { %1415 = vmatpush.bf16.msrb.mxu0 %v7468_v30  ;;  %1428 = vmatpush.bf16.msrb.mxu1 %v7470_v3 }
 0x2db   : > { %1441 = vmatpush.bf16.msrb.mxu2 %v7481_v11  ;;  %1454 = vmatpush.bf16.msrb.mxu3 %v7478_v7 }
 0x2dc   : > { %1402 = vperm.xlu2 %6297, %v1400_v0  }
 0x2de   : > { %1416 = vmatpush.bf16.msrb.mxu0 %v7489_v1  ;;  %1429 = vmatpush.bf16.msrb.mxu1 %v7492_v15 }
 0x2df   : > { %1442 = vmatpush.bf16.msrb.mxu2 %v7501_v17  ;;  %1455 = vmatpush.bf16.msrb.mxu3 %v7497_v16 }
 0x2e2   : > { %1417 = vmatpush.bf16.msrb.mxu0 %v7508_v22  ;;  %1430 = vmatpush.bf16.msrb.mxu1 %v7512_v25 }
 0x2e3   : > { %1443 = vmatpush.bf16.msrb.mxu2 %v7523_v34  ;;  %1456 = vmatpush.bf16.msrb.mxu3 %v7518_v33 }
 0x2e6   : > { %1418 = vmatpush.bf16.msrb.mxu0 %v7530_v5  ;;  %1431 = vmatpush.bf16.msrb.mxu1 %v7534_v10 }
 0x2e7   : > { %1444 = vmatpush.bf16.msrb.mxu2 %v7544_v18  ;;  %1457 = vmatpush.bf16.msrb.mxu3 %v7539_v2 }
 0x2ea   : > { %1419 = vmatpush.bf16.msrb.mxu0 %v7550_v21  ;;  %1432 = vmatpush.bf16.msrb.mxu1 %v7554_v26 }
 0x2eb   : > { %1445 = vmatpush.bf16.msrb.mxu2 %v7565_v37  ;;  %1458 = vmatpush.bf16.msrb.mxu3 %v7560_v29 }
 0x2ee   : > { %1420 = vmatpush.bf16.msrb.mxu0 %v7572_v35  ;;  %1433 = vmatpush.bf16.msrb.mxu1 %v7576_v38 }
 0x2ef   : > { %1446 = vmatpush.bf16.msrb.mxu2 %v7586_v40  ;;  %1459 = vmatpush.bf16.msrb.mxu3 %v7581_v39 }
 0x2f2   : > { %1421 = vmatpush.bf16.msrb.mxu0 %v7592_v20  ;;  %1434 = vmatpush.bf16.msrb.mxu1 %v7596_v42 }
 0x2f3   : > { %1447 = vmatpush.bf16.msrb.mxu2 %v7609_v4  ;;  %1460 = vmatpush.bf16.msrb.mxu3 %v7604_v32 }
 0x351   : > { %v1135_v52 = vpop.f32.mrf.mxu0  ;;  %v1148_v59 = vpop.f32.mrf.mxu1 }
 0x352   : > { %v1178_v53 = vadd.f32 %v1135_v52, %v1120_v49  ;;  %v1179_v63 = vadd.f32 %v1148_v59, %v1121_v55 }
 0x354   : > { %v5884_v6 = vmul.f32 -1.442695, %v1178_v53  ;;  %v5885_v13 = vmul.f32 -1.442695, %v1179_v63 }
 0x356   : > { %6346 = vpow2.f32 %v5884_v6 }
 0x357   : > { %6348 = vpow2.f32 %v5885_v13 }
 0x358   : > { %v1161_v24 = vpop.f32.mrf.mxu2  ;;  %v1174_v31 = vpop.f32.mrf.mxu3 }
 0x359   : > { %v1181_v44 = vadd.f32 %v1174_v31, %v1123_v46  ;;  %v1137_v45 = vpop.f32.mrf.mxu0  ;;  %v1150_v58 = vpop.f32.mrf.mxu1  ;;  %v1180_v47 = vadd.f32 %v1161_v24, %v1122_v51 }
 0x35b   : > { %v5886_v12 = vmul.f32 -1.442695, %v1181_v44 }
 0x35c   : > { %v6347_v36 = vpop.eup %6346 }
 0x35d   : > { %v6349_v60 = vpop.eup %6348  ;;  %v1185_v27 = vadd.f32 1.0, %v6347_v36  ;;  %6350 = vpow2.f32 %v5886_v12 }
 0x35e   : > { %v1204_v19 = vadd.f32 1.0, %v6349_v60 }
 0x35f   : > { %6352 = vrcp.f32 %v1185_v27  ;;  %v1197_v63 = vand.u32 2147483648, %v1185_v27  ;;  %v1195_v46 = vand.u32 2147483647, %v1185_v27  ;;  %vm1191_vm6 = vweird.f32 %v1185_v27 }
 0x360   : > { %6354 = vrcp.f32 %v1204_v19  ;;  %v1163_v43 = vpop.f32.mrf.mxu2  ;;  %v1176_v28 = vpop.f32.mrf.mxu3  ;;  %v1216_v6 = vand.u32 2147483648, %v1204_v19  ;;  %v1214_v44 = vand.u32 2147483647, %v1204_v19  ;;  %vm1210_vm7 = vweird.f32 %v1204_v19 }
 0x361   : > { %v1198_v58 = vor.u32 1.1754944e-38, %v1197_v63  ;;  %vm1196_vm10 = vcmp.eq.f32.partialorder %v1195_v46, 8.507059e+37  ;;  %v2264_v46 = vsel %vm2263_vm0, 1, %v6856_v14 }
 0x362   : > { %v1217_v60 = vor.u32 1.1754944e-38, %v1216_v6  ;;  %vm1215_vm12 = vcmp.eq.f32.partialorder %v1214_v44, 8.507059e+37 }
 0x363   : > { %v6351_v54 = vpop.eup %6350 }
 0x364   : > { %v1224_v56 = vadd.f32 1.0, %v6351_v54 }
 0x365   : > { %v6353_v61 = vpop.eup %6352 }
 0x366   : > { %v6355_v49 = vpop.eup %6354  ;;  %v1187_v55 = vmul.f32 %v6353_v61, %v1185_v27  ;;  %6356 = vrcp.f32 %v1224_v56  ;;  %vm1192_vm4 = vweird.f32 %v6353_v61  ;;  %vm1230_vm15 = vweird.f32 %v1224_v56 }
 0x367   : > { %v1206_v52 = vmul.f32 %v6355_v49, %v1204_v19  ;;  %6358 = vtanh.f32 %v1180_v47  ;;  %vm1211_vm5 = vweird.f32 %v6355_v49  ;;  %vm1193_vm8 = vmor %vm1191_vm6, %vm1192_vm4  ;;  %v1234_v0 = vand.u32 2147483647, %v1224_v56 }
 0x368   : > { %v1188_v59 = vsub.f32 1.0, %v1187_v55  ;;  %vm1212_vm9 = vmor %vm1210_vm7, %vm1211_vm5 }
 0x369   : > { %v1207_v53 = vsub.f32 1.0, %v1206_v52  ;;  %v1832_v52 = vsel %vm1831_vm11, 1, %v6856_v14  ;;  %vm1235_vm2 = vcmp.eq.f32.partialorder %v1234_v0, 8.507059e+37 }
 0x36a   : > { %v1189_v13 = vmul.f32 %v6353_v61, %v1188_v59  ;;  %v1115_v59 = vpop.permute.xlu1 %1114  ;;  %1834 = vperm.xlu2 %6297, %v1832_v52  }
 0x36b   : > { %v1208_v31 = vmul.f32 %v6355_v49, %v1207_v53  ;;  %vm1116_vm13 = vcmp.eq.s32.totalorder %v1115_v59, 1 }
 0x36c   : > { %v6357_v24 = vpop.eup %6356  ;;  %v1190_v45 = vadd.f32 %v6353_v61, %v1189_v13 }
 0x36d   : > { %v1209_v12 = vadd.f32 %v6355_v49, %v1208_v31  ;;  %v1226_v36 = vmul.f32 %v6357_v24, %v1224_v56  ;;  %v6359_v28 = vpop.eup %6358  ;;  %vm1231_vm14 = vweird.f32 %v6357_v24 }
 0x36e   : > { %v1194_v43 = vsel %vm1193_vm8, %v6353_v61, %v1190_v45  ;;  %vm1232_vm1 = vmor %vm1230_vm15, %vm1231_vm14 }
 0x36f   : > { %v1199_v51 = vsel %vm1196_vm10, %v1198_v58, %v1194_v43  ;;  %v1213_v54 = vsel %vm1212_vm9, %v6355_v49, %v1209_v12  ;;  %v1227_v57 = vsub.f32 1.0, %v1226_v36  ;;  %v1236_v49 = vand.u32 2147483648, %v1224_v56 }
 0x370   : > { %v1218_v47 = vsel %vm1215_vm12, %v1217_v60, %v1213_v54  ;;  %v1242_v55 = vmul.f32 %v6359_v28, %v1199_v51  ;;  %v5889_v28 = vld [vmem:[%s7452_s13 + $0x48] sm:$0xff] }
 0x371   : > { %v1241_v27 = vmul.f32 %v1218_v47, %v7793_v50  ;;  %v1228_v19 = vmul.f32 %v6357_v24, %v1227_v57  ;;  %v1237_v13 = vor.u32 1.1754944e-38, %v1236_v49  ;;  %v1267_v57 = vunpack.c.h.bf16 %v5889_v28 }
 0x372   : > { %2266 = vperm.xlu2 %6297, %v2264_v46   ;;  %v1266_v46 = vunpack.c.l.bf16 %v5889_v28 }
 0x373   : > { %v1243_v53 = vadd.f32 %v1242_v55, %v1241_v27  ;;  %v1229_v63 = vadd.f32 %v6357_v24, %v1228_v19 }
 0x375   : > { %6360 = vtanh.f32 %v1243_v53  ;;  %v7851_v61 = vsel %vm1116_vm13, %v1243_v53, %v7793_v50  ;;  %v1233_v6 = vsel %vm1232_vm1, %v6357_v24, %v1229_v63  ;;  %v2696_v24 = vsel %vm2695_vm3, 1, %v6856_v14  ;;  %v5888_v14 = vld [vmem:[%s7452_s13 + $0x40] sm:$0xff] }
 0x376   : > { %v1238_v44 = vsel %vm1235_vm2, %v1237_v13, %v1233_v6  ;;  %v1265_v48 = vunpack.c.h.bf16 %v5888_v14 }
 0x37a   : > { %2698 = vperm.xlu2 %6297, %v2696_v24  }
 0x37b   : > { %v6361_v31 = vpop.eup %6360 }
 0x37c   : > { %v1245_v45 = vmul.f32 %v6361_v31, %v1238_v44 }
 0x37e   : > { %v1246_v58 = vsel %vm1116_vm13, %v1245_v45, 0.0  ;;  %v7858_v50 = vsel %vm1116_vm13, %v1245_v45, %v7798_v23  ;;  %v1264_v23 = vunpack.c.l.bf16 %v5888_v14 }
 0x37f   : > { %5887 = vst [vmem:[%s7455_s14 + $0x18] sm:$0xff] %v1246_v58  ;;  %v1269_v56 = vpack.c.bf16 %v7858_v50, %v7858_v50 }
 0x381   : > { %1278 = vmatmul.bf16.vlgmr.msra.gmra.mxu0 %v1269_v56  ;;  %1291 = vmatmul.bf16.vlgmr.msra.gmra.mxu1 %v1269_v56 }
 0x382   : > { %1304 = vmatmul.bf16.vlgmr.msra.gmra.mxu2 %v1269_v56  ;;  %1317 = vmatmul.bf16.vlgmr.msra.gmra.mxu3 %v1269_v56 }
 0x383   : > { %1558 = vmatpush.bf16.msra.mxu0 %v7458_v9  ;;  %1571 = vmatpush.bf16.msra.mxu1 %v7460_v41 }
 0x384   : > { %1584 = vmatpush.bf16.msra.mxu2 %v7464_v8  ;;  %1597 = vmatpush.bf16.msra.mxu3 %v7462_v62 }
 0x387   : > { %1559 = vmatpush.bf16.msra.mxu0 %v7468_v30  ;;  %1572 = vmatpush.bf16.msra.mxu1 %v7470_v3 }
 0x388   : > { %1585 = vmatpush.bf16.msra.mxu2 %v7481_v11  ;;  %1598 = vmatpush.bf16.msra.mxu3 %v7478_v7 }
 0x38b   : > { %1560 = vmatpush.bf16.msra.mxu0 %v7489_v1  ;;  %1573 = vmatpush.bf16.msra.mxu1 %v7492_v15 }
 0x38c   : > { %1586 = vmatpush.bf16.msra.mxu2 %v7501_v17  ;;  %1599 = vmatpush.bf16.msra.mxu3 %v7497_v16 }
 0x38f   : > { %1561 = vmatpush.bf16.msra.mxu0 %v7508_v22  ;;  %1574 = vmatpush.bf16.msra.mxu1 %v7512_v25 }
 0x390   : > { %1587 = vmatpush.bf16.msra.mxu2 %v7523_v34  ;;  %1600 = vmatpush.bf16.msra.mxu3 %v7518_v33 }
 0x393   : > { %1562 = vmatpush.bf16.msra.mxu0 %v7530_v5  ;;  %1575 = vmatpush.bf16.msra.mxu1 %v7534_v10 }
 0x394   : > { %1588 = vmatpush.bf16.msra.mxu2 %v7544_v18  ;;  %1601 = vmatpush.bf16.msra.mxu3 %v7539_v2 }
 0x397   : > { %1563 = vmatpush.bf16.msra.mxu0 %v7550_v21  ;;  %1576 = vmatpush.bf16.msra.mxu1 %v7554_v26 }
 0x398   : > { %1589 = vmatpush.bf16.msra.mxu2 %v7565_v37  ;;  %1602 = vmatpush.bf16.msra.mxu3 %v7560_v29 }
 0x39b   : > { %1564 = vmatpush.bf16.msra.mxu0 %v7572_v35  ;;  %1577 = vmatpush.bf16.msra.mxu1 %v7576_v38 }
 0x39c   : > { %1590 = vmatpush.bf16.msra.mxu2 %v7586_v40  ;;  %1603 = vmatpush.bf16.msra.mxu3 %v7581_v39 }
 0x39f   : > { %1565 = vmatpush.bf16.msra.mxu0 %v7592_v20  ;;  %1578 = vmatpush.bf16.msra.mxu1 %v7596_v42 }
 0x3a0   : > { %1591 = vmatpush.bf16.msra.mxu2 %v7609_v4  ;;  %1604 = vmatpush.bf16.msra.mxu3 %v7604_v32 }
 0x3fe   : > { %v1279_v12 = vpop.f32.mrf.mxu0  ;;  %v1292_v36 = vpop.f32.mrf.mxu1 }
 0x3ff   : > { %v1322_v60 = vadd.f32 %v1279_v12, %v1264_v23  ;;  %v1323_v43 = vadd.f32 %v1292_v36, %v1265_v48 }
 0x401   : > { %v5890_v51 = vmul.f32 -1.442695, %v1322_v60  ;;  %v5891_v54 = vmul.f32 -1.442695, %v1323_v43 }
 0x403   : > { %6362 = vpow2.f32 %v5890_v51 }
 0x404   : > { %6364 = vpow2.f32 %v5891_v54 }
 0x405   : > { %v1305_v47 = vpop.f32.mrf.mxu2  ;;  %v1318_v55 = vpop.f32.mrf.mxu3 }
 0x406   : > { %v1325_v27 = vadd.f32 %v1318_v55, %v1267_v57  ;;  %v1281_v19 = vpop.f32.mrf.mxu0  ;;  %v1294_v52 = vpop.f32.mrf.mxu1  ;;  %v1324_v58 = vadd.f32 %v1305_v47, %v1266_v46 }
 0x408   : > { %v5892_v59 = vmul.f32 -1.442695, %v1325_v27 }
 0x409   : > { %v6363_v53 = vpop.eup %6362 }
 0x40a   : > { %v6365_v63 = vpop.eup %6364  ;;  %v1329_v49 = vadd.f32 1.0, %v6363_v53  ;;  %6366 = vpow2.f32 %v5892_v59 }
 0x40b   : > { %v1348_v0 = vadd.f32 1.0, %v6365_v63 }
 0x40c   : > { %6368 = vrcp.f32 %v1329_v49  ;;  %v1341_v12 = vand.u32 2147483648, %v1329_v49  ;;  %v1339_v60 = vand.u32 2147483647, %v1329_v49  ;;  %vm1335_vm6 = vweird.f32 %v1329_v49 }
 0x40d   : > { %6370 = vrcp.f32 %v1348_v0  ;;  %v1307_v6 = vpop.f32.mrf.mxu2  ;;  %v1320_v13 = vpop.f32.mrf.mxu3  ;;  %v1360_v43 = vand.u32 2147483648, %v1348_v0  ;;  %v1358_v54 = vand.u32 2147483647, %v1348_v0  ;;  %vm1354_vm8 = vweird.f32 %v1348_v0 }
 0x40e   : > { %v1342_v47 = vor.u32 1.1754944e-38, %v1341_v12  ;;  %vm1340_vm9 = vcmp.eq.f32.partialorder %v1339_v60, 8.507059e+37 }
 0x40f   : > { %v1361_v52 = vor.u32 1.1754944e-38, %v1360_v43  ;;  %vm1359_vm11 = vcmp.eq.f32.partialorder %v1358_v54, 8.507059e+37 }
 0x410   : > { %v6367_v31 = vpop.eup %6366 }
 0x411   : > { %v1368_v44 = vadd.f32 1.0, %v6367_v31  ;;  %v1259_v31 = vpop.permute.xlu2 %1258 }
 0x412   : > { %v6369_v45 = vpop.eup %6368  ;;  %vm1260_vm12 = vcmp.eq.s32.totalorder %v1259_v31, 1 }
 0x413   : > { %v6371_v56 = vpop.eup %6370  ;;  %v1331_v24 = vmul.f32 %v6369_v45, %v1329_v49  ;;  %6372 = vrcp.f32 %v1368_v44  ;;  %vm1336_vm4 = vweird.f32 %v6369_v45  ;;  %vm1374_vm14 = vweird.f32 %v1368_v44 }
 0x414   : > { %v1350_v14 = vmul.f32 %v6371_v56, %v1348_v0  ;;  %6374 = vtanh.f32 %v1324_v58  ;;  %vm1355_vm5 = vweird.f32 %v6371_v56  ;;  %vm1337_vm7 = vmor %vm1335_vm6, %vm1336_vm4  ;;  %v1380_v0 = vand.u32 2147483648, %v1368_v44 }
 0x415   : > { %v1332_v23 = vsub.f32 1.0, %v1331_v24  ;;  %vm1356_vm10 = vmor %vm1354_vm8, %vm1355_vm5 }
 0x416   : > { %v1351_v48 = vsub.f32 1.0, %v1350_v14 }
 0x417   : > { %v1333_v36 = vmul.f32 %v6369_v45, %v1332_v23 }
 0x418   : > { %v1352_v51 = vmul.f32 %v6371_v56, %v1351_v48  ;;  %v1381_v48 = vor.u32 1.1754944e-38, %v1380_v0 }
 0x419   : > { %v6373_v28 = vpop.eup %6372  ;;  %v1334_v57 = vadd.f32 %v6369_v45, %v1333_v36 }
 0x41a   : > { %v1370_v55 = vmul.f32 %v6373_v28, %v1368_v44  ;;  %v1353_v27 = vadd.f32 %v6371_v56, %v1352_v51  ;;  %v6375_v59 = vpop.eup %6374  ;;  %vm1375_vm13 = vweird.f32 %v6373_v28 }
 0x41b   : > { %v1338_v19 = vsel %vm1337_vm7, %v6369_v45, %v1334_v57  ;;  %vm1376_vm15 = vmor %vm1374_vm14, %vm1375_vm13 }
 0x41c   : > { %v1343_v53 = vsel %vm1340_vm9, %v1342_v47, %v1338_v19  ;;  %v1371_v63 = vsub.f32 1.0, %v1370_v55  ;;  %v1357_v6 = vsel %vm1356_vm10, %v6371_v56, %v1353_v27  ;;  %v1378_v56 = vand.u32 2147483647, %v1368_v44  ;;  %v5895_v27 = vld [vmem:[%s7452_s13 + $0x58] sm:$0xff] }
 0x41d   : > { %v1386_v13 = vmul.f32 %v6375_v59, %v1343_v53  ;;  %v1362_v46 = vsel %vm1359_vm11, %v1361_v52, %v1357_v6  ;;  %v1411_v59 = vunpack.c.h.bf16 %v5895_v27 }
 0x41e   : > { %v1372_v58 = vmul.f32 %v6373_v28, %v1371_v63  ;;  %v1385_v49 = vmul.f32 %v1362_v46, %v7851_v61  ;;  %vm1379_vm0 = vcmp.eq.f32.partialorder %v1378_v56, 8.507059e+37 }
 0x420   : > { %v1387_v24 = vadd.f32 %v1386_v13, %v1385_v49  ;;  %v1373_v14 = vadd.f32 %v6373_v28, %v1372_v58 }
 0x422   : > { %6376 = vtanh.f32 %v1387_v24  ;;  %v7902_v45 = vsel %vm1260_vm12, %v1387_v24, %v7851_v61  ;;  %v1377_v23 = vsel %vm1376_vm15, %v6373_v28, %v1373_v14 }
 0x423   : > { %v1382_v36 = vsel %vm1379_vm0, %v1381_v48, %v1377_v23  ;;  %v1410_v23 = vunpack.c.l.bf16 %v5895_v27 }
 0x428   : > { %v6377_v12 = vpop.eup %6376 }
 0x429   : > { %v1389_v60 = vmul.f32 %v6377_v12, %v1382_v36 }
 0x42b   : > { %v1390_v43 = vsel %vm1260_vm12, %v1389_v60, 0.0  ;;  %v7907_v51 = vsel %vm1260_vm12, %v1389_v60, %v7858_v50  ;;  %v5894_v50 = vld [vmem:[%s7452_s13 + $0x50] sm:$0xff] }
 0x42c   : > { %5893 = vst [vmem:[%s7455_s14 + $0x20] sm:$0xff] %v1390_v43  ;;  %v1413_v61 = vpack.c.bf16 %v7907_v51, %v7907_v51  ;;  %v1408_v44 = vunpack.c.l.bf16 %v5894_v50  ;;  %v1409_v54 = vunpack.c.h.bf16 %v5894_v50 }
 0x42e   : > { %1422 = vmatmul.bf16.vlgmr.msrb.gmra.mxu0 %v1413_v61  ;;  %1435 = vmatmul.bf16.vlgmr.msrb.gmra.mxu1 %v1413_v61 }
 0x42f   : > { %1448 = vmatmul.bf16.vlgmr.msrb.gmra.mxu2 %v1413_v61  ;;  %1461 = vmatmul.bf16.vlgmr.msrb.gmra.mxu3 %v1413_v61 }
 0x430   : > { %1702 = vmatpush.bf16.msrb.mxu0 %v7458_v9  ;;  %1715 = vmatpush.bf16.msrb.mxu1 %v7460_v41 }
 0x431   : > { %1728 = vmatpush.bf16.msrb.mxu2 %v7464_v8  ;;  %1741 = vmatpush.bf16.msrb.mxu3 %v7462_v62 }
 0x434   : > { %1703 = vmatpush.bf16.msrb.mxu0 %v7468_v30  ;;  %1716 = vmatpush.bf16.msrb.mxu1 %v7470_v3 }
 0x435   : > { %1729 = vmatpush.bf16.msrb.mxu2 %v7481_v11  ;;  %1742 = vmatpush.bf16.msrb.mxu3 %v7478_v7 }
 0x438   : > { %1704 = vmatpush.bf16.msrb.mxu0 %v7489_v1  ;;  %1717 = vmatpush.bf16.msrb.mxu1 %v7492_v15 }
 0x439   : > { %1730 = vmatpush.bf16.msrb.mxu2 %v7501_v17  ;;  %1743 = vmatpush.bf16.msrb.mxu3 %v7497_v16 }
 0x43c   : > { %1705 = vmatpush.bf16.msrb.mxu0 %v7508_v22  ;;  %1718 = vmatpush.bf16.msrb.mxu1 %v7512_v25 }
 0x43d   : > { %1731 = vmatpush.bf16.msrb.mxu2 %v7523_v34  ;;  %1744 = vmatpush.bf16.msrb.mxu3 %v7518_v33 }
 0x440   : > { %1706 = vmatpush.bf16.msrb.mxu0 %v7530_v5  ;;  %1719 = vmatpush.bf16.msrb.mxu1 %v7534_v10 }
 0x441   : > { %1732 = vmatpush.bf16.msrb.mxu2 %v7544_v18  ;;  %1745 = vmatpush.bf16.msrb.mxu3 %v7539_v2 }
 0x444   : > { %1707 = vmatpush.bf16.msrb.mxu0 %v7550_v21  ;;  %1720 = vmatpush.bf16.msrb.mxu1 %v7554_v26 }
 0x445   : > { %1733 = vmatpush.bf16.msrb.mxu2 %v7565_v37  ;;  %1746 = vmatpush.bf16.msrb.mxu3 %v7560_v29 }
 0x448   : > { %1708 = vmatpush.bf16.msrb.mxu0 %v7572_v35  ;;  %1721 = vmatpush.bf16.msrb.mxu1 %v7576_v38 }
 0x449   : > { %1734 = vmatpush.bf16.msrb.mxu2 %v7586_v40  ;;  %1747 = vmatpush.bf16.msrb.mxu3 %v7581_v39 }
 0x44c   : > { %1709 = vmatpush.bf16.msrb.mxu0 %v7592_v20  ;;  %1722 = vmatpush.bf16.msrb.mxu1 %v7596_v42 }
 0x44d   : > { %1735 = vmatpush.bf16.msrb.mxu2 %v7609_v4  ;;  %1748 = vmatpush.bf16.msrb.mxu3 %v7604_v32 }
 0x4ab   : > { %v1423_v28 = vpop.f32.mrf.mxu0  ;;  %v1436_v57 = vpop.f32.mrf.mxu1 }
 0x4ac   : > { %v1466_v47 = vadd.f32 %v1423_v28, %v1408_v44  ;;  %v1467_v55 = vadd.f32 %v1436_v57, %v1409_v54 }
 0x4ae   : > { %v5896_v19 = vmul.f32 -1.442695, %v1466_v47  ;;  %v5897_v52 = vmul.f32 -1.442695, %v1467_v55 }
 0x4b0   : > { %6378 = vpow2.f32 %v5896_v19 }
 0x4b1   : > { %6380 = vpow2.f32 %v5897_v52 }
 0x4b2   : > { %v1449_v53 = vpop.f32.mrf.mxu2  ;;  %v1462_v63 = vpop.f32.mrf.mxu3 }
 0x4b3   : > { %v1469_v6 = vadd.f32 %v1462_v63, %v1411_v59  ;;  %v1425_v13 = vpop.f32.mrf.mxu0  ;;  %v1438_v46 = vpop.f32.mrf.mxu1  ;;  %v1468_v60 = vadd.f32 %v1449_v53, %v1410_v23 }
 0x4b5   : > { %v5898_v31 = vmul.f32 -1.442695, %v1469_v6 }
 0x4b6   : > { %v6379_v58 = vpop.eup %6378 }
 0x4b7   : > { %v6381_v49 = vpop.eup %6380  ;;  %v1473_v24 = vadd.f32 1.0, %v6379_v58  ;;  %6382 = vpow2.f32 %v5898_v31 }
 0x4b8   : > { %v1492_v14 = vadd.f32 1.0, %v6381_v49 }
 0x4b9   : > { %6384 = vrcp.f32 %v1473_v24  ;;  %v1485_v28 = vand.u32 2147483648, %v1473_v24  ;;  %v1483_v55 = vand.u32 2147483647, %v1473_v24  ;;  %vm1479_vm3 = vweird.f32 %v1473_v24 }
 0x4ba   : > { %6386 = vrcp.f32 %v1492_v14  ;;  %v1451_v0 = vpop.f32.mrf.mxu2  ;;  %v1464_v56 = vpop.f32.mrf.mxu3  ;;  %v1504_v57 = vand.u32 2147483648, %v1492_v14  ;;  %v1502_v52 = vand.u32 2147483647, %v1492_v14  ;;  %vm1498_vm4 = vweird.f32 %v1492_v14 }
 0x4bb   : > { %v1486_v53 = vor.u32 1.1754944e-38, %v1485_v28  ;;  %vm1484_vm7 = vcmp.eq.f32.partialorder %v1483_v55, 8.507059e+37 }
 0x4bc   : > { %v1505_v13 = vor.u32 1.1754944e-38, %v1504_v57  ;;  %vm1503_vm8 = vcmp.eq.f32.partialorder %v1502_v52, 8.507059e+37 }
 0x4bd   : > { %v6383_v48 = vpop.eup %6382 }
 0x4be   : > { %v1512_v12 = vadd.f32 1.0, %v6383_v48 }
 0x4bf   : > { %v6385_v36 = vpop.eup %6384 }
 0x4c0   : > { %v6387_v43 = vpop.eup %6386  ;;  %v1475_v61 = vmul.f32 %v6385_v36, %v1473_v24  ;;  %6388 = vrcp.f32 %v1512_v12  ;;  %vm1480_vm1 = vweird.f32 %v6385_v36  ;;  %v1403_v24 = vpop.permute.xlu2 %1402  ;;  %vm1518_vm11 = vweird.f32 %v1512_v12 }
 0x4c1   : > { %v1494_v50 = vmul.f32 %v6387_v43, %v1492_v14  ;;  %6390 = vtanh.f32 %v1468_v60  ;;  %vm1499_vm2 = vweird.f32 %v6387_v43  ;;  %vm1481_vm5 = vmor %vm1479_vm3, %vm1480_vm1  ;;  %vm1404_vm9 = vcmp.eq.s32.totalorder %v1403_v24, 1 }
 0x4c2   : > { %v1476_v44 = vsub.f32 1.0, %v1475_v61  ;;  %vm1500_vm6 = vmor %vm1498_vm4, %vm1499_vm2 }
 0x4c3   : > { %v1495_v54 = vsub.f32 1.0, %v1494_v50  ;;  %v1524_v50 = vand.u32 2147483648, %v1512_v12 }
 0x4c4   : > { %v1477_v47 = vmul.f32 %v6385_v36, %v1476_v44 }
 0x4c5   : > { %v1496_v19 = vmul.f32 %v6387_v43, %v1495_v54  ;;  %v1525_v54 = vor.u32 1.1754944e-38, %v1524_v50 }
 0x4c6   : > { %v6389_v27 = vpop.eup %6388  ;;  %v1478_v59 = vadd.f32 %v6385_v36, %v1477_v47 }
 0x4c7   : > { %v1497_v63 = vadd.f32 %v6387_v43, %v1496_v19  ;;  %v1514_v6 = vmul.f32 %v6389_v27, %v1512_v12  ;;  %v6391_v31 = vpop.eup %6390  ;;  %vm1519_vm10 = vweird.f32 %v6389_v27 }
 0x4c8   : > { %v1482_v46 = vsel %vm1481_vm5, %v6385_v36, %v1478_v59  ;;  %vm1520_vm12 = vmor %vm1518_vm11, %vm1519_vm10 }
 0x4c9   : > { %v1487_v58 = vsel %vm1484_vm7, %v1486_v53, %v1482_v46  ;;  %v1501_v49 = vsel %vm1500_vm6, %v6387_v43, %v1497_v63  ;;  %v1515_v0 = vsub.f32 1.0, %v1514_v6  ;;  %v1522_v43 = vand.u32 2147483647, %v1512_v12  ;;  %v5901_v6 = vld [vmem:[%s7452_s13 + $0x68] sm:$0xff] }
 0x4ca   : > { %v1506_v56 = vsel %vm1503_vm8, %v1505_v13, %v1501_v49  ;;  %v1530_v23 = vmul.f32 %v6391_v31, %v1487_v58  ;;  %v1555_v31 = vunpack.c.h.bf16 %v5901_v6 }
 0x4cb   : > { %v1529_v48 = vmul.f32 %v1506_v56, %v7902_v45  ;;  %v1516_v60 = vmul.f32 %v6389_v27, %v1515_v0  ;;  %vm1523_vm13 = vcmp.eq.f32.partialorder %v1522_v43, 8.507059e+37 }
 0x4cd   : > { %v1531_v14 = vadd.f32 %v1530_v23, %v1529_v48  ;;  %v1517_v61 = vadd.f32 %v6389_v27, %v1516_v60 }
 0x4cf   : > { %6392 = vtanh.f32 %v1531_v14  ;;  %v7949_v36 = vsel %vm1404_vm9, %v1531_v14, %v7902_v45  ;;  %v1521_v44 = vsel %vm1520_vm12, %v6389_v27, %v1517_v61 }
 0x4d0   : > { %v1526_v57 = vsel %vm1523_vm13, %v1525_v54, %v1521_v44  ;;  %v1554_v44 = vunpack.c.l.bf16 %v5901_v6 }
 0x4d5   : > { %v6393_v28 = vpop.eup %6392 }
 0x4d6   : > { %v1533_v47 = vmul.f32 %v6393_v28, %v1526_v57 }
 0x4d8   : > { %v1534_v55 = vsel %vm1404_vm9, %v1533_v47, 0.0  ;;  %v7954_v19 = vsel %vm1404_vm9, %v1533_v47, %v7907_v51  ;;  %v5900_v51 = vld [vmem:[%s7452_s13 + $0x60] sm:$0xff] }
 0x4d9   : > { %5899 = vst [vmem:[%s7455_s14 + $0x28] sm:$0xff] %v1534_v55  ;;  %v1557_v45 = vpack.c.bf16 %v7954_v19, %v7954_v19  ;;  %v1552_v12 = vunpack.c.l.bf16 %v5900_v51  ;;  %v1553_v52 = vunpack.c.h.bf16 %v5900_v51 }
 0x4db   : > { %1566 = vmatmul.bf16.vlgmr.msra.gmra.mxu0 %v1557_v45  ;;  %1579 = vmatmul.bf16.vlgmr.msra.gmra.mxu1 %v1557_v45 }
 0x4dc   : > { %1592 = vmatmul.bf16.vlgmr.msra.gmra.mxu2 %v1557_v45  ;;  %1605 = vmatmul.bf16.vlgmr.msra.gmra.mxu3 %v1557_v45 }
 0x4dd   : > { %1846 = vmatpush.bf16.msra.mxu0 %v7458_v9  ;;  %1859 = vmatpush.bf16.msra.mxu1 %v7460_v41 }
 0x4de   : > { %1872 = vmatpush.bf16.msra.mxu2 %v7464_v8  ;;  %1885 = vmatpush.bf16.msra.mxu3 %v7462_v62 }
 0x4e1   : > { %1847 = vmatpush.bf16.msra.mxu0 %v7468_v30  ;;  %1860 = vmatpush.bf16.msra.mxu1 %v7470_v3 }
 0x4e2   : > { %1873 = vmatpush.bf16.msra.mxu2 %v7481_v11  ;;  %1886 = vmatpush.bf16.msra.mxu3 %v7478_v7 }
 0x4e5   : > { %1848 = vmatpush.bf16.msra.mxu0 %v7489_v1  ;;  %1861 = vmatpush.bf16.msra.mxu1 %v7492_v15 }
 0x4e6   : > { %1874 = vmatpush.bf16.msra.mxu2 %v7501_v17  ;;  %1887 = vmatpush.bf16.msra.mxu3 %v7497_v16 }
 0x4e9   : > { %1849 = vmatpush.bf16.msra.mxu0 %v7508_v22  ;;  %1862 = vmatpush.bf16.msra.mxu1 %v7512_v25 }
 0x4ea   : > { %1875 = vmatpush.bf16.msra.mxu2 %v7523_v34  ;;  %1888 = vmatpush.bf16.msra.mxu3 %v7518_v33 }
 0x4ed   : > { %1850 = vmatpush.bf16.msra.mxu0 %v7530_v5  ;;  %1863 = vmatpush.bf16.msra.mxu1 %v7534_v10 }
 0x4ee   : > { %1876 = vmatpush.bf16.msra.mxu2 %v7544_v18  ;;  %1889 = vmatpush.bf16.msra.mxu3 %v7539_v2 }
 0x4f1   : > { %1851 = vmatpush.bf16.msra.mxu0 %v7550_v21  ;;  %1864 = vmatpush.bf16.msra.mxu1 %v7554_v26 }
 0x4f2   : > { %1877 = vmatpush.bf16.msra.mxu2 %v7565_v37  ;;  %1890 = vmatpush.bf16.msra.mxu3 %v7560_v29 }
 0x4f5   : > { %1852 = vmatpush.bf16.msra.mxu0 %v7572_v35  ;;  %1865 = vmatpush.bf16.msra.mxu1 %v7576_v38 }
 0x4f6   : > { %1878 = vmatpush.bf16.msra.mxu2 %v7586_v40  ;;  %1891 = vmatpush.bf16.msra.mxu3 %v7581_v39 }
 0x4f9   : > { %1853 = vmatpush.bf16.msra.mxu0 %v7592_v20  ;;  %1866 = vmatpush.bf16.msra.mxu1 %v7596_v42 }
 0x4fa   : > { %1879 = vmatpush.bf16.msra.mxu2 %v7609_v4  ;;  %1892 = vmatpush.bf16.msra.mxu3 %v7604_v32 }
 0x558   : > { %v1567_v27 = vpop.f32.mrf.mxu0  ;;  %v1580_v59 = vpop.f32.mrf.mxu1 }
 0x559   : > { %v1610_v53 = vadd.f32 %v1567_v27, %v1552_v12  ;;  %v1611_v63 = vadd.f32 %v1580_v59, %v1553_v52 }
 0x55b   : > { %v5902_v13 = vmul.f32 -1.442695, %v1610_v53  ;;  %v5903_v46 = vmul.f32 -1.442695, %v1611_v63 }
 0x55d   : > { %6394 = vpow2.f32 %v5902_v13 }
 0x55e   : > { %6396 = vpow2.f32 %v5903_v46 }
 0x55f   : > { %v1593_v58 = vpop.f32.mrf.mxu2  ;;  %v1606_v49 = vpop.f32.mrf.mxu3 }
 0x560   : > { %v1613_v0 = vadd.f32 %v1606_v49, %v1555_v31  ;;  %v1569_v56 = vpop.f32.mrf.mxu0  ;;  %v1582_v23 = vpop.f32.mrf.mxu1  ;;  %v1612_v47 = vadd.f32 %v1593_v58, %v1554_v44 }
 0x562   : > { %v5904_v48 = vmul.f32 -1.442695, %v1613_v0 }
 0x563   : > { %v6395_v60 = vpop.eup %6394 }
 0x564   : > { %v6397_v24 = vpop.eup %6396  ;;  %v1617_v14 = vadd.f32 1.0, %v6395_v60  ;;  %6398 = vpow2.f32 %v5904_v48 }
 0x565   : > { %v1636_v61 = vadd.f32 1.0, %v6397_v24 }
 0x566   : > { %6400 = vrcp.f32 %v1617_v14  ;;  %v1629_v27 = vand.u32 2147483648, %v1617_v14  ;;  %v1627_v63 = vand.u32 2147483647, %v1617_v14  ;;  %vm1623_vm0 = vweird.f32 %v1617_v14 }
 0x567   : > { %6402 = vrcp.f32 %v1636_v61  ;;  %v1595_v50 = vpop.f32.mrf.mxu2  ;;  %v1608_v43 = vpop.f32.mrf.mxu3  ;;  %v1648_v59 = vand.u32 2147483648, %v1636_v61  ;;  %v1646_v46 = vand.u32 2147483647, %v1636_v61  ;;  %vm1642_vm1 = vweird.f32 %v1636_v61 }
 0x568   : > { %v1630_v58 = vor.u32 1.1754944e-38, %v1629_v27  ;;  %vm1628_vm4 = vcmp.eq.f32.partialorder %v1627_v63, 8.507059e+37 }
 0x569   : > { %v1649_v56 = vor.u32 1.1754944e-38, %v1648_v59  ;;  %vm1647_vm5 = vcmp.eq.f32.partialorder %v1646_v46, 8.507059e+37 }
 0x56a   : > { %v6399_v54 = vpop.eup %6398 }
 0x56b   : > { %v1656_v28 = vadd.f32 1.0, %v6399_v54 }
 0x56c   : > { %v6401_v57 = vpop.eup %6400 }
 0x56d   : > { %v6403_v55 = vpop.eup %6402  ;;  %v1619_v45 = vmul.f32 %v6401_v57, %v1617_v14  ;;  %6404 = vrcp.f32 %v1656_v28  ;;  %vm1624_vm14 = vweird.f32 %v6401_v57  ;;  %v1547_v14 = vpop.permute.xlu0 %1546  ;;  %vm1662_vm8 = vweird.f32 %v1656_v28 }
 0x56e   : > { %v1638_v51 = vmul.f32 %v6403_v55, %v1636_v61  ;;  %6406 = vtanh.f32 %v1612_v47  ;;  %vm1643_vm15 = vweird.f32 %v6403_v55  ;;  %vm1625_vm2 = vmor %vm1623_vm0, %vm1624_vm14  ;;  %vm1548_vm6 = vcmp.eq.s32.totalorder %v1547_v14, 1 }
 0x56f   : > { %v1620_v12 = vsub.f32 1.0, %v1619_v45  ;;  %vm1644_vm3 = vmor %vm1642_vm1, %vm1643_vm15 }
 0x570   : > { %v1639_v52 = vsub.f32 1.0, %v1638_v51  ;;  %v1668_v51 = vand.u32 2147483648, %v1656_v28 }
 0x571   : > { %v1621_v53 = vmul.f32 %v6401_v57, %v1620_v12 }
 0x572   : > { %v1640_v13 = vmul.f32 %v6403_v55, %v1639_v52  ;;  %v1669_v52 = vor.u32 1.1754944e-38, %v1668_v51 }
 0x573   : > { %v6405_v6 = vpop.eup %6404  ;;  %v1622_v31 = vadd.f32 %v6401_v57, %v1621_v53 }
 0x574   : > { %v1641_v49 = vadd.f32 %v6403_v55, %v1640_v13  ;;  %v1658_v0 = vmul.f32 %v6405_v6, %v1656_v28  ;;  %v6407_v48 = vpop.eup %6406  ;;  %vm1663_vm7 = vweird.f32 %v6405_v6 }
 0x575   : > { %v1626_v23 = vsel %vm1625_vm2, %v6401_v57, %v1622_v31  ;;  %vm1664_vm9 = vmor %vm1662_vm8, %vm1663_vm7 }
 0x576   : > { %v1631_v60 = vsel %vm1628_vm4, %v1630_v58, %v1626_v23  ;;  %v1645_v24 = vsel %vm1644_vm3, %v6403_v55, %v1641_v49  ;;  %v1659_v50 = vsub.f32 1.0, %v1658_v0  ;;  %v1666_v55 = vand.u32 2147483647, %v1656_v28  ;;  %v5907_v0 = vld [vmem:[%s7452_s13 + $0x78] sm:$0xff] }
 0x577   : > { %v1650_v43 = vsel %vm1647_vm5, %v1649_v56, %v1645_v24  ;;  %v1674_v44 = vmul.f32 %v6407_v48, %v1631_v60  ;;  %v1699_v48 = vunpack.c.h.bf16 %v5907_v0 }
 0x578   : > { %v1673_v54 = vmul.f32 %v1650_v43, %v7949_v36  ;;  %v1660_v47 = vmul.f32 %v6405_v6, %v1659_v50  ;;  %vm1667_vm10 = vcmp.eq.f32.partialorder %v1666_v55, 8.507059e+37 }
 0x57a   : > { %v1675_v61 = vadd.f32 %v1674_v44, %v1673_v54  ;;  %v1661_v45 = vadd.f32 %v6405_v6, %v1660_v47 }
 0x57c   : > { %6408 = vtanh.f32 %v1675_v61  ;;  %v7996_v57 = vsel %vm1548_vm6, %v1675_v61, %v7949_v36  ;;  %v1665_v12 = vsel %vm1664_vm9, %v6405_v6, %v1661_v45 }
 0x57d   : > { %v1670_v59 = vsel %vm1667_vm10, %v1669_v52, %v1665_v12  ;;  %v1698_v12 = vunpack.c.l.bf16 %v5907_v0 }
 0x582   : > { %v6409_v27 = vpop.eup %6408 }
 0x583   : > { %v1677_v53 = vmul.f32 %v6409_v27, %v1670_v59 }
 0x585   : > { %v1678_v63 = vsel %vm1548_vm6, %v1677_v53, 0.0  ;;  %v8001_v13 = vsel %vm1548_vm6, %v1677_v53, %v7954_v19  ;;  %v5906_v19 = vld [vmem:[%s7452_s13 + $0x70] sm:$0xff] }
 0x586   : > { %5905 = vst [vmem:[%s7455_s14 + $0x30] sm:$0xff] %v1678_v63  ;;  %v1701_v36 = vpack.c.bf16 %v8001_v13, %v8001_v13  ;;  %v1696_v28 = vunpack.c.l.bf16 %v5906_v19  ;;  %v1697_v46 = vunpack.c.h.bf16 %v5906_v19 }
 0x588   : > { %1710 = vmatmul.bf16.vlgmr.msrb.gmra.mxu0 %v1701_v36  ;;  %1723 = vmatmul.bf16.vlgmr.msrb.gmra.mxu1 %v1701_v36 }
 0x589   : > { %1736 = vmatmul.bf16.vlgmr.msrb.gmra.mxu2 %v1701_v36  ;;  %1749 = vmatmul.bf16.vlgmr.msrb.gmra.mxu3 %v1701_v36 }
 0x58a   : > { %1990 = vmatpush.bf16.msrb.mxu0 %v7458_v9  ;;  %2003 = vmatpush.bf16.msrb.mxu1 %v7460_v41 }
 0x58b   : > { %2016 = vmatpush.bf16.msrb.mxu2 %v7464_v8  ;;  %2029 = vmatpush.bf16.msrb.mxu3 %v7462_v62 }
 0x58e   : > { %1991 = vmatpush.bf16.msrb.mxu0 %v7468_v30  ;;  %2004 = vmatpush.bf16.msrb.mxu1 %v7470_v3 }
 0x58f   : > { %2017 = vmatpush.bf16.msrb.mxu2 %v7481_v11  ;;  %2030 = vmatpush.bf16.msrb.mxu3 %v7478_v7 }
 0x592   : > { %1992 = vmatpush.bf16.msrb.mxu0 %v7489_v1  ;;  %2005 = vmatpush.bf16.msrb.mxu1 %v7492_v15 }
 0x593   : > { %2018 = vmatpush.bf16.msrb.mxu2 %v7501_v17  ;;  %2031 = vmatpush.bf16.msrb.mxu3 %v7497_v16 }
 0x596   : > { %1993 = vmatpush.bf16.msrb.mxu0 %v7508_v22  ;;  %2006 = vmatpush.bf16.msrb.mxu1 %v7512_v25 }
 0x597   : > { %2019 = vmatpush.bf16.msrb.mxu2 %v7523_v34  ;;  %2032 = vmatpush.bf16.msrb.mxu3 %v7518_v33 }
 0x59a   : > { %1994 = vmatpush.bf16.msrb.mxu0 %v7530_v5  ;;  %2007 = vmatpush.bf16.msrb.mxu1 %v7534_v10 }
 0x59b   : > { %2020 = vmatpush.bf16.msrb.mxu2 %v7544_v18  ;;  %2033 = vmatpush.bf16.msrb.mxu3 %v7539_v2 }
 0x59e   : > { %1995 = vmatpush.bf16.msrb.mxu0 %v7550_v21  ;;  %2008 = vmatpush.bf16.msrb.mxu1 %v7554_v26 }
 0x59f   : > { %2021 = vmatpush.bf16.msrb.mxu2 %v7565_v37  ;;  %2034 = vmatpush.bf16.msrb.mxu3 %v7560_v29 }
 0x5a2   : > { %1996 = vmatpush.bf16.msrb.mxu0 %v7572_v35  ;;  %2009 = vmatpush.bf16.msrb.mxu1 %v7576_v38 }
 0x5a3   : > { %2022 = vmatpush.bf16.msrb.mxu2 %v7586_v40  ;;  %2035 = vmatpush.bf16.msrb.mxu3 %v7581_v39 }
 0x5a6   : > { %1997 = vmatpush.bf16.msrb.mxu0 %v7592_v20  ;;  %2010 = vmatpush.bf16.msrb.mxu1 %v7596_v42 }
 0x5a7   : > { %2023 = vmatpush.bf16.msrb.mxu2 %v7609_v4  ;;  %2036 = vmatpush.bf16.msrb.mxu3 %v7604_v32 }
 0x605   : > { %v1711_v6 = vpop.f32.mrf.mxu0  ;;  %v1724_v31 = vpop.f32.mrf.mxu1 }
 0x606   : > { %v1754_v58 = vadd.f32 %v1711_v6, %v1696_v28  ;;  %v1755_v49 = vadd.f32 %v1724_v31, %v1697_v46 }
 0x608   : > { %v5908_v56 = vmul.f32 -1.442695, %v1754_v58  ;;  %v5909_v23 = vmul.f32 -1.442695, %v1755_v49 }
 0x60a   : > { %6410 = vpow2.f32 %v5908_v56 }
 0x60b   : > { %6412 = vpow2.f32 %v5909_v23 }
 0x60c   : > { %v1737_v60 = vpop.f32.mrf.mxu2  ;;  %v1750_v24 = vpop.f32.mrf.mxu3 }
 0x60d   : > { %v1757_v50 = vadd.f32 %v1750_v24, %v1699_v48  ;;  %v1713_v43 = vpop.f32.mrf.mxu0  ;;  %v1726_v44 = vpop.f32.mrf.mxu1  ;;  %v1756_v53 = vadd.f32 %v1737_v60, %v1698_v12 }
 0x60f   : > { %v5910_v54 = vmul.f32 -1.442695, %v1757_v50 }
 0x610   : > { %v6411_v47 = vpop.eup %6410 }
 0x611   : > { %v6413_v14 = vpop.eup %6412  ;;  %v1761_v61 = vadd.f32 1.0, %v6411_v47  ;;  %6414 = vpow2.f32 %v5910_v54 }
 0x612   : > { %v1780_v45 = vadd.f32 1.0, %v6413_v14 }
 0x613   : > { %6416 = vrcp.f32 %v1761_v61  ;;  %v1773_v6 = vand.u32 2147483648, %v1761_v61  ;;  %v1771_v49 = vand.u32 2147483647, %v1761_v61  ;;  %vm1767_vm13 = vweird.f32 %v1761_v61 }
 0x614   : > { %6418 = vrcp.f32 %v1780_v45  ;;  %v1739_v51 = vpop.f32.mrf.mxu2  ;;  %v1752_v55 = vpop.f32.mrf.mxu3  ;;  %v1792_v31 = vand.u32 2147483648, %v1780_v45  ;;  %v1790_v23 = vand.u32 2147483647, %v1780_v45  ;;  %vm1786_vm14 = vweird.f32 %v1780_v45 }
 0x615   : > { %v1774_v60 = vor.u32 1.1754944e-38, %v1773_v6  ;;  %vm1772_vm1 = vcmp.eq.f32.partialorder %v1771_v49, 8.507059e+37 }
 0x616   : > { %v1793_v43 = vor.u32 1.1754944e-38, %v1792_v31  ;;  %vm1791_vm2 = vcmp.eq.f32.partialorder %v1790_v23, 8.507059e+37 }
 0x617   : > { %v6415_v52 = vpop.eup %6414 }
 0x618   : > { %v1800_v27 = vadd.f32 1.0, %v6415_v52 }
 0x619   : > { %v6417_v59 = vpop.eup %6416 }
 0x61a   : > { %v6419_v63 = vpop.eup %6418  ;;  %v1763_v36 = vmul.f32 %v6417_v59, %v1761_v61  ;;  %6420 = vrcp.f32 %v1800_v27  ;;  %vm1768_vm11 = vweird.f32 %v6417_v59  ;;  %v1691_v61 = vpop.permute.xlu1 %1690  ;;  %vm1806_vm5 = vweird.f32 %v1800_v27 }
 0x61b   : > { %v1782_v19 = vmul.f32 %v6419_v63, %v1780_v45  ;;  %6422 = vtanh.f32 %v1756_v53  ;;  %vm1787_vm12 = vweird.f32 %v6419_v63  ;;  %vm1769_vm15 = vmor %vm1767_vm13, %vm1768_vm11  ;;  %vm1692_vm3 = vcmp.eq.s32.totalorder %v1691_v61, 1 }
 0x61c   : > { %v1764_v28 = vsub.f32 1.0, %v1763_v36  ;;  %vm1788_vm0 = vmor %vm1786_vm14, %vm1787_vm12 }
 0x61d   : > { %v1783_v46 = vsub.f32 1.0, %v1782_v19  ;;  %v1812_v19 = vand.u32 2147483648, %v1800_v27 }
 0x61e   : > { %v1765_v58 = vmul.f32 %v6417_v59, %v1764_v28 }
 0x61f   : > { %v1784_v56 = vmul.f32 %v6419_v63, %v1783_v46  ;;  %v1813_v46 = vor.u32 1.1754944e-38, %v1812_v19 }
 0x620   : > { %v6421_v0 = vpop.eup %6420  ;;  %v1766_v48 = vadd.f32 %v6417_v59, %v1765_v58 }
 0x621   : > { %v1785_v24 = vadd.f32 %v6419_v63, %v1784_v56  ;;  %v1802_v50 = vmul.f32 %v6421_v0, %v1800_v27  ;;  %v6423_v54 = vpop.eup %6422  ;;  %vm1807_vm4 = vweird.f32 %v6421_v0 }
 0x622   : > { %v1770_v44 = vsel %vm1769_vm15, %v6417_v59, %v1766_v48  ;;  %vm1808_vm6 = vmor %vm1806_vm5, %vm1807_vm4 }
 0x623   : > { %v1775_v47 = vsel %vm1772_vm1, %v1774_v60, %v1770_v44  ;;  %v1789_v14 = vsel %vm1788_vm0, %v6419_v63, %v1785_v24  ;;  %v1803_v51 = vsub.f32 1.0, %v1802_v50  ;;  %v1810_v63 = vand.u32 2147483647, %v1800_v27  ;;  %v5913_v50 = vld [vmem:[%s7452_s13 + $0x88] sm:$0xff] }
 0x624   : > { %v1794_v55 = vsel %vm1791_vm2, %v1793_v43, %v1789_v14  ;;  %v1818_v12 = vmul.f32 %v6423_v54, %v1775_v47  ;;  %v1843_v54 = vunpack.c.h.bf16 %v5913_v50 }
 0x625   : > { %v1817_v52 = vmul.f32 %v1794_v55, %v7996_v57  ;;  %v1804_v53 = vmul.f32 %v6421_v0, %v1803_v51  ;;  %vm1811_vm7 = vcmp.eq.f32.partialorder %v1810_v63, 8.507059e+37 }
 0x627   : > { %v1819_v45 = vadd.f32 %v1818_v12, %v1817_v52  ;;  %v1805_v36 = vadd.f32 %v6421_v0, %v1804_v53 }
 0x629   : > { %6424 = vtanh.f32 %v1819_v45  ;;  %v8043_v59 = vsel %vm1692_vm3, %v1819_v45, %v7996_v57  ;;  %v1809_v28 = vsel %vm1808_vm6, %v6421_v0, %v1805_v36 }
 0x62a   : > { %v1814_v31 = vsel %vm1811_vm7, %v1813_v46, %v1809_v28  ;;  %v1842_v28 = vunpack.c.l.bf16 %v5913_v50 }
 0x62f   : > { %v6425_v6 = vpop.eup %6424 }
 0x630   : > { %v1821_v58 = vmul.f32 %v6425_v6, %v1814_v31 }
 0x632   : > { %v1822_v49 = vsel %vm1692_vm3, %v1821_v58, 0.0  ;;  %v8048_v56 = vsel %vm1692_vm3, %v1821_v58, %v8001_v13  ;;  %v5912_v13 = vld [vmem:[%s7452_s13 + $0x80] sm:$0xff] }
 0x633   : > { %5911 = vst [vmem:[%s7455_s14 + $0x38] sm:$0xff] %v1822_v49  ;;  %v1845_v57 = vpack.c.bf16 %v8048_v56, %v8048_v56  ;;  %v1840_v27 = vunpack.c.l.bf16 %v5912_v13  ;;  %v1841_v23 = vunpack.c.h.bf16 %v5912_v13 }
 0x635   : > { %1854 = vmatmul.bf16.vlgmr.msra.gmra.mxu0 %v1845_v57  ;;  %1867 = vmatmul.bf16.vlgmr.msra.gmra.mxu1 %v1845_v57 }
 0x636   : > { %1880 = vmatmul.bf16.vlgmr.msra.gmra.mxu2 %v1845_v57  ;;  %1893 = vmatmul.bf16.vlgmr.msra.gmra.mxu3 %v1845_v57 }
 0x637   : > { %2134 = vmatpush.bf16.msra.mxu0 %v7458_v9  ;;  %2147 = vmatpush.bf16.msra.mxu1 %v7460_v41 }
 0x638   : > { %2160 = vmatpush.bf16.msra.mxu2 %v7464_v8  ;;  %2173 = vmatpush.bf16.msra.mxu3 %v7462_v62 }
 0x63b   : > { %2135 = vmatpush.bf16.msra.mxu0 %v7468_v30  ;;  %2148 = vmatpush.bf16.msra.mxu1 %v7470_v3 }
 0x63c   : > { %2161 = vmatpush.bf16.msra.mxu2 %v7481_v11  ;;  %2174 = vmatpush.bf16.msra.mxu3 %v7478_v7 }
 0x63f   : > { %2136 = vmatpush.bf16.msra.mxu0 %v7489_v1  ;;  %2149 = vmatpush.bf16.msra.mxu1 %v7492_v15 }
 0x640   : > { %2162 = vmatpush.bf16.msra.mxu2 %v7501_v17  ;;  %2175 = vmatpush.bf16.msra.mxu3 %v7497_v16 }
 0x643   : > { %2137 = vmatpush.bf16.msra.mxu0 %v7508_v22  ;;  %2150 = vmatpush.bf16.msra.mxu1 %v7512_v25 }
 0x644   : > { %2163 = vmatpush.bf16.msra.mxu2 %v7523_v34  ;;  %2176 = vmatpush.bf16.msra.mxu3 %v7518_v33 }
 0x647   : > { %2138 = vmatpush.bf16.msra.mxu0 %v7530_v5  ;;  %2151 = vmatpush.bf16.msra.mxu1 %v7534_v10 }
 0x648   : > { %2164 = vmatpush.bf16.msra.mxu2 %v7544_v18  ;;  %2177 = vmatpush.bf16.msra.mxu3 %v7539_v2 }
 0x64b   : > { %2139 = vmatpush.bf16.msra.mxu0 %v7550_v21  ;;  %2152 = vmatpush.bf16.msra.mxu1 %v7554_v26 }
 0x64c   : > { %2165 = vmatpush.bf16.msra.mxu2 %v7565_v37  ;;  %2178 = vmatpush.bf16.msra.mxu3 %v7560_v29 }
 0x64f   : > { %2140 = vmatpush.bf16.msra.mxu0 %v7572_v35  ;;  %2153 = vmatpush.bf16.msra.mxu1 %v7576_v38 }
 0x650   : > { %2166 = vmatpush.bf16.msra.mxu2 %v7586_v40  ;;  %2179 = vmatpush.bf16.msra.mxu3 %v7581_v39 }
 0x653   : > { %2141 = vmatpush.bf16.msra.mxu0 %v7592_v20  ;;  %2154 = vmatpush.bf16.msra.mxu1 %v7596_v42 }
 0x654   : > { %2167 = vmatpush.bf16.msra.mxu2 %v7609_v4  ;;  %2180 = vmatpush.bf16.msra.mxu3 %v7604_v32 }
 0x6b2   : > { %v1855_v0 = vpop.f32.mrf.mxu0  ;;  %v1868_v48 = vpop.f32.mrf.mxu1 }
 0x6b3   : > { %v1898_v60 = vadd.f32 %v1855_v0, %v1840_v27  ;;  %v1899_v24 = vadd.f32 %v1868_v48, %v1841_v23 }
 0x6b5   : > { %v5914_v43 = vmul.f32 -1.442695, %v1898_v60  ;;  %v5915_v44 = vmul.f32 -1.442695, %v1899_v24 }
 0x6b7   : > { %6426 = vpow2.f32 %v5914_v43 }
 0x6b8   : > { %6428 = vpow2.f32 %v5915_v44 }
 0x6b9   : > { %v1881_v47 = vpop.f32.mrf.mxu2  ;;  %v1894_v14 = vpop.f32.mrf.mxu3 }
 0x6ba   : > { %v1901_v51 = vadd.f32 %v1894_v14, %v1843_v54  ;;  %v1857_v55 = vpop.f32.mrf.mxu0  ;;  %v1870_v12 = vpop.f32.mrf.mxu1  ;;  %v1900_v58 = vadd.f32 %v1881_v47, %v1842_v28 }
 0x6bc   : > { %v5916_v52 = vmul.f32 -1.442695, %v1901_v51 }
 0x6bd   : > { %v6427_v53 = vpop.eup %6426 }
 0x6be   : > { %v6429_v61 = vpop.eup %6428  ;;  %v1905_v45 = vadd.f32 1.0, %v6427_v53  ;;  %6430 = vpow2.f32 %v5916_v52 }
 0x6bf   : > { %v1924_v36 = vadd.f32 1.0, %v6429_v61 }
 0x6c0   : > { %6432 = vrcp.f32 %v1905_v45  ;;  %v1917_v0 = vand.u32 2147483648, %v1905_v45  ;;  %v1915_v24 = vand.u32 2147483647, %v1905_v45  ;;  %vm1911_vm10 = vweird.f32 %v1905_v45 }
 0x6c1   : > { %6434 = vrcp.f32 %v1924_v36  ;;  %v1883_v19 = vpop.f32.mrf.mxu2  ;;  %v1896_v63 = vpop.f32.mrf.mxu3  ;;  %v1936_v48 = vand.u32 2147483648, %v1924_v36  ;;  %v1934_v44 = vand.u32 2147483647, %v1924_v36  ;;  %vm1930_vm11 = vweird.f32 %v1924_v36 }
 0x6c2   : > { %v1918_v47 = vor.u32 1.1754944e-38, %v1917_v0  ;;  %vm1916_vm14 = vcmp.eq.f32.partialorder %v1915_v24, 8.507059e+37 }
 0x6c3   : > { %v1937_v55 = vor.u32 1.1754944e-38, %v1936_v48  ;;  %vm1935_vm15 = vcmp.eq.f32.partialorder %v1934_v44, 8.507059e+37 }
 0x6c4   : > { %v6431_v46 = vpop.eup %6430 }
 0x6c5   : > { %v1944_v6 = vadd.f32 1.0, %v6431_v46 }
 0x6c6   : > { %v6433_v31 = vpop.eup %6432 }
 0x6c7   : > { %v6435_v49 = vpop.eup %6434  ;;  %v1907_v57 = vmul.f32 %v6433_v31, %v1905_v45  ;;  %6436 = vrcp.f32 %v1944_v6  ;;  %vm1912_vm8 = vweird.f32 %v6433_v31  ;;  %v1835_v45 = vpop.permute.xlu2 %1834  ;;  %vm1950_vm2 = vweird.f32 %v1944_v6 }
 0x6c8   : > { %v1926_v13 = vmul.f32 %v6435_v49, %v1924_v36  ;;  %6438 = vtanh.f32 %v1900_v58  ;;  %vm1931_vm9 = vweird.f32 %v6435_v49  ;;  %vm1913_vm12 = vmor %vm1911_vm10, %vm1912_vm8  ;;  %vm1836_vm0 = vcmp.eq.s32.totalorder %v1835_v45, 1 }
 0x6c9   : > { %v1908_v27 = vsub.f32 1.0, %v1907_v57  ;;  %vm1932_vm13 = vmor %vm1930_vm11, %vm1931_vm9 }
 0x6ca   : > { %v1927_v23 = vsub.f32 1.0, %v1926_v13  ;;  %v1956_v13 = vand.u32 2147483648, %v1944_v6 }
 0x6cb   : > { %v1909_v60 = vmul.f32 %v6433_v31, %v1908_v27 }
 0x6cc   : > { %v1928_v43 = vmul.f32 %v6435_v49, %v1927_v23  ;;  %v1957_v23 = vor.u32 1.1754944e-38, %v1956_v13 }
 0x6cd   : > { %v6437_v50 = vpop.eup %6436  ;;  %v1910_v54 = vadd.f32 %v6433_v31, %v1909_v60 }
 0x6ce   : > { %v1929_v14 = vadd.f32 %v6435_v49, %v1928_v43  ;;  %v1946_v51 = vmul.f32 %v6437_v50, %v1944_v6  ;;  %v6439_v52 = vpop.eup %6438  ;;  %vm1951_vm1 = vweird.f32 %v6437_v50 }
 0x6cf   : > { %v1914_v12 = vsel %vm1913_vm12, %v6433_v31, %v1910_v54  ;;  %vm1952_vm3 = vmor %vm1950_vm2, %vm1951_vm1 }
 0x6d0   : > { %v1919_v53 = vsel %vm1916_vm14, %v1918_v47, %v1914_v12  ;;  %v1933_v61 = vsel %vm1932_vm13, %v6435_v49, %v1929_v14  ;;  %v1947_v19 = vsub.f32 1.0, %v1946_v51  ;;  %v1954_v49 = vand.u32 2147483647, %v1944_v6  ;;  %v5919_v51 = vld [vmem:[%s7452_s13 + $0x98] sm:$0xff] }
 0x6d1   : > { %v1938_v63 = vsel %vm1935_vm15, %v1937_v55, %v1933_v61  ;;  %v1962_v28 = vmul.f32 %v6439_v52, %v1919_v53  ;;  %v1987_v52 = vunpack.c.h.bf16 %v5919_v51 }
 0x6d2   : > { %v1961_v46 = vmul.f32 %v1938_v63, %v8043_v59  ;;  %v1948_v58 = vmul.f32 %v6437_v50, %v1947_v19  ;;  %vm1955_vm4 = vcmp.eq.f32.partialorder %v1954_v49, 8.507059e+37 }
 0x6d4   : > { %v1963_v36 = vadd.f32 %v1962_v28, %v1961_v46  ;;  %v1949_v57 = vadd.f32 %v6437_v50, %v1948_v58 }
 0x6d6   : > { %6440 = vtanh.f32 %v1963_v36  ;;  %v8090_v31 = vsel %vm1836_vm0, %v1963_v36, %v8043_v59  ;;  %v1953_v27 = vsel %vm1952_vm3, %v6437_v50, %v1949_v57 }
 0x6d7   : > { %v1958_v48 = vsel %vm1955_vm4, %v1957_v23, %v1953_v27  ;;  %v1986_v27 = vunpack.c.l.bf16 %v5919_v51 }
 0x6dc   : > { %v6441_v0 = vpop.eup %6440 }
 0x6dd   : > { %v1965_v60 = vmul.f32 %v6441_v0, %v1958_v48 }
 0x6df   : > { %v1966_v24 = vsel %vm1836_vm0, %v1965_v60, 0.0  ;;  %v8095_v43 = vsel %vm1836_vm0, %v1965_v60, %v8048_v56  ;;  %v5918_v56 = vld [vmem:[%s7452_s13 + $0x90] sm:$0xff] }
 0x6e0   : > { %5917 = vst [vmem:[%s7455_s14 + $0x40] sm:$0xff] %v1966_v24  ;;  %v1989_v59 = vpack.c.bf16 %v8095_v43, %v8095_v43  ;;  %v1984_v6 = vunpack.c.l.bf16 %v5918_v56  ;;  %v1985_v44 = vunpack.c.h.bf16 %v5918_v56 }
 0x6e2   : > { %1998 = vmatmul.bf16.vlgmr.msrb.gmra.mxu0 %v1989_v59  ;;  %2011 = vmatmul.bf16.vlgmr.msrb.gmra.mxu1 %v1989_v59 }
 0x6e3   : > { %2024 = vmatmul.bf16.vlgmr.msrb.gmra.mxu2 %v1989_v59  ;;  %2037 = vmatmul.bf16.vlgmr.msrb.gmra.mxu3 %v1989_v59 }
 0x6e4   : > { %2278 = vmatpush.bf16.msrb.mxu0 %v7458_v9  ;;  %2291 = vmatpush.bf16.msrb.mxu1 %v7460_v41 }
 0x6e5   : > { %2304 = vmatpush.bf16.msrb.mxu2 %v7464_v8  ;;  %2317 = vmatpush.bf16.msrb.mxu3 %v7462_v62 }
 0x6e8   : > { %2279 = vmatpush.bf16.msrb.mxu0 %v7468_v30  ;;  %2292 = vmatpush.bf16.msrb.mxu1 %v7470_v3 }
 0x6e9   : > { %2305 = vmatpush.bf16.msrb.mxu2 %v7481_v11  ;;  %2318 = vmatpush.bf16.msrb.mxu3 %v7478_v7 }
 0x6ec   : > { %2280 = vmatpush.bf16.msrb.mxu0 %v7489_v1  ;;  %2293 = vmatpush.bf16.msrb.mxu1 %v7492_v15 }
 0x6ed   : > { %2306 = vmatpush.bf16.msrb.mxu2 %v7501_v17  ;;  %2319 = vmatpush.bf16.msrb.mxu3 %v7497_v16 }
 0x6f0   : > { %2281 = vmatpush.bf16.msrb.mxu0 %v7508_v22  ;;  %2294 = vmatpush.bf16.msrb.mxu1 %v7512_v25 }
 0x6f1   : > { %2307 = vmatpush.bf16.msrb.mxu2 %v7523_v34  ;;  %2320 = vmatpush.bf16.msrb.mxu3 %v7518_v33 }
 0x6f4   : > { %2282 = vmatpush.bf16.msrb.mxu0 %v7530_v5  ;;  %2295 = vmatpush.bf16.msrb.mxu1 %v7534_v10 }
 0x6f5   : > { %2308 = vmatpush.bf16.msrb.mxu2 %v7544_v18  ;;  %2321 = vmatpush.bf16.msrb.mxu3 %v7539_v2 }
 0x6f8   : > { %2283 = vmatpush.bf16.msrb.mxu0 %v7550_v21  ;;  %2296 = vmatpush.bf16.msrb.mxu1 %v7554_v26 }
 0x6f9   : > { %2309 = vmatpush.bf16.msrb.mxu2 %v7565_v37  ;;  %2322 = vmatpush.bf16.msrb.mxu3 %v7560_v29 }
 0x6fc   : > { %2284 = vmatpush.bf16.msrb.mxu0 %v7572_v35  ;;  %2297 = vmatpush.bf16.msrb.mxu1 %v7576_v38 }
 0x6fd   : > { %2310 = vmatpush.bf16.msrb.mxu2 %v7586_v40  ;;  %2323 = vmatpush.bf16.msrb.mxu3 %v7581_v39 }
 0x700   : > { %2285 = vmatpush.bf16.msrb.mxu0 %v7592_v20  ;;  %2298 = vmatpush.bf16.msrb.mxu1 %v7596_v42 }
 0x701   : > { %2311 = vmatpush.bf16.msrb.mxu2 %v7609_v4  ;;  %2324 = vmatpush.bf16.msrb.mxu3 %v7604_v32 }
 0x75f   : > { %v1999_v50 = vpop.f32.mrf.mxu0  ;;  %v2012_v54 = vpop.f32.mrf.mxu1 }
 0x760   : > { %v2042_v47 = vadd.f32 %v1999_v50, %v1984_v6  ;;  %v2043_v14 = vadd.f32 %v2012_v54, %v1985_v44 }
 0x762   : > { %v5920_v55 = vmul.f32 -1.442695, %v2042_v47  ;;  %v5921_v12 = vmul.f32 -1.442695, %v2043_v14 }
 0x764   : > { %6442 = vpow2.f32 %v5920_v55 }
 0x765   : > { %6444 = vpow2.f32 %v5921_v12 }
 0x766   : > { %v2025_v53 = vpop.f32.mrf.mxu2  ;;  %v2038_v61 = vpop.f32.mrf.mxu3 }
 0x767   : > { %v2045_v19 = vadd.f32 %v2038_v61, %v1987_v52  ;;  %v2001_v63 = vpop.f32.mrf.mxu0  ;;  %v2014_v28 = vpop.f32.mrf.mxu1  ;;  %v2044_v60 = vadd.f32 %v2025_v53, %v1986_v27 }
 0x769   : > { %v5922_v46 = vmul.f32 -1.442695, %v2045_v19 }
 0x76a   : > { %v6443_v58 = vpop.eup %6442 }
 0x76b   : > { %v6445_v45 = vpop.eup %6444  ;;  %v2049_v36 = vadd.f32 1.0, %v6443_v58  ;;  %6446 = vpow2.f32 %v5922_v46 }
 0x76c   : > { %v2068_v57 = vadd.f32 1.0, %v6445_v45 }
 0x76d   : > { %6448 = vrcp.f32 %v2049_v36  ;;  %v2061_v50 = vand.u32 2147483648, %v2049_v36  ;;  %v2059_v14 = vand.u32 2147483647, %v2049_v36  ;;  %vm2055_vm7 = vweird.f32 %v2049_v36 }
 0x76e   : > { %6450 = vrcp.f32 %v2068_v57  ;;  %v2027_v13 = vpop.f32.mrf.mxu2  ;;  %v2040_v49 = vpop.f32.mrf.mxu3  ;;  %v2080_v54 = vand.u32 2147483648, %v2068_v57  ;;  %v2078_v12 = vand.u32 2147483647, %v2068_v57  ;;  %vm2074_vm8 = vweird.f32 %v2068_v57 }
 0x76f   : > { %v2062_v53 = vor.u32 1.1754944e-38, %v2061_v50  ;;  %vm2060_vm11 = vcmp.eq.f32.partialorder %v2059_v14, 8.507059e+37 }
 0x770   : > { %v2081_v63 = vor.u32 1.1754944e-38, %v2080_v54  ;;  %vm2079_vm12 = vcmp.eq.f32.partialorder %v2078_v12, 8.507059e+37 }
 0x771   : > { %v6447_v23 = vpop.eup %6446 }
 0x772   : > { %v2088_v0 = vadd.f32 1.0, %v6447_v23 }
 0x773   : > { %v6449_v48 = vpop.eup %6448 }
 0x774   : > { %v6451_v24 = vpop.eup %6450  ;;  %v2051_v59 = vmul.f32 %v6449_v48, %v2049_v36  ;;  %6452 = vrcp.f32 %v2088_v0  ;;  %vm2056_vm5 = vweird.f32 %v6449_v48  ;;  %v1979_v36 = vpop.permute.xlu0 %1978  ;;  %vm2094_vm15 = vweird.f32 %v2088_v0 }
 0x775   : > { %v2070_v56 = vmul.f32 %v6451_v24, %v2068_v57  ;;  %6454 = vtanh.f32 %v2044_v60  ;;  %vm2075_vm6 = vweird.f32 %v6451_v24  ;;  %vm2057_vm9 = vmor %vm2055_vm7, %vm2056_vm5  ;;  %vm1980_vm13 = vcmp.eq.s32.totalorder %v1979_v36, 1 }
 0x776   : > { %v2052_v6 = vsub.f32 1.0, %v2051_v59  ;;  %vm2076_vm10 = vmor %vm2074_vm8, %vm2075_vm6 }
 0x777   : > { %v2071_v44 = vsub.f32 1.0, %v2070_v56  ;;  %v2100_v56 = vand.u32 2147483648, %v2088_v0 }
 0x778   : > { %v2053_v47 = vmul.f32 %v6449_v48, %v2052_v6 }
 0x779   : > { %v2072_v55 = vmul.f32 %v6451_v24, %v2071_v44  ;;  %v2101_v44 = vor.u32 1.1754944e-38, %v2100_v56 }
 0x77a   : > { %v6453_v51 = vpop.eup %6452  ;;  %v2054_v52 = vadd.f32 %v6449_v48, %v2053_v47 }
 0x77b   : > { %v2073_v61 = vadd.f32 %v6451_v24, %v2072_v55  ;;  %v2090_v19 = vmul.f32 %v6453_v51, %v2088_v0  ;;  %v6455_v46 = vpop.eup %6454  ;;  %vm2095_vm14 = vweird.f32 %v6453_v51 }
 0x77c   : > { %v2058_v28 = vsel %vm2057_vm9, %v6449_v48, %v2054_v52  ;;  %vm2096_vm0 = vmor %vm2094_vm15, %vm2095_vm14 }
 0x77d   : > { %v2063_v58 = vsel %vm2060_vm11, %v2062_v53, %v2058_v28  ;;  %v2077_v45 = vsel %vm2076_vm10, %v6451_v24, %v2073_v61  ;;  %v2091_v13 = vsub.f32 1.0, %v2090_v19  ;;  %v2098_v24 = vand.u32 2147483647, %v2088_v0  ;;  %v5925_v19 = vld [vmem:[%s7452_s13 + $0xa8] sm:$0xff] }
 0x77e   : > { %v2082_v49 = vsel %vm2079_vm12, %v2081_v63, %v2077_v45  ;;  %v2106_v27 = vmul.f32 %v6455_v46, %v2063_v58  ;;  %v2131_v46 = vunpack.c.h.bf16 %v5925_v19 }
 0x77f   : > { %v2105_v23 = vmul.f32 %v2082_v49, %v8090_v31  ;;  %v2092_v60 = vmul.f32 %v6453_v51, %v2091_v13  ;;  %vm2099_vm1 = vcmp.eq.f32.partialorder %v2098_v24, 8.507059e+37 }
 0x781   : > { %v2107_v57 = vadd.f32 %v2106_v27, %v2105_v23  ;;  %v2093_v59 = vadd.f32 %v6453_v51, %v2092_v60 }
 0x783   : > { %6456 = vtanh.f32 %v2107_v57  ;;  %v8137_v48 = vsel %vm1980_vm13, %v2107_v57, %v8090_v31  ;;  %v2097_v6 = vsel %vm2096_vm0, %v6453_v51, %v2093_v59 }
 0x784   : > { %v2102_v54 = vsel %vm2099_vm1, %v2101_v44, %v2097_v6  ;;  %v2130_v6 = vunpack.c.l.bf16 %v5925_v19 }
 0x789   : > { %v6457_v50 = vpop.eup %6456 }
 0x78a   : > { %v2109_v47 = vmul.f32 %v6457_v50, %v2102_v54 }
 0x78c   : > { %v2110_v14 = vsel %vm1980_vm13, %v2109_v47, 0.0  ;;  %v8142_v55 = vsel %vm1980_vm13, %v2109_v47, %v8095_v43  ;;  %v5924_v43 = vld [vmem:[%s7452_s13 + $0xa0] sm:$0xff] }
 0x78d   : > { %5923 = vst [vmem:[%s7455_s14 + $0x48] sm:$0xff] %v2110_v14  ;;  %v2133_v31 = vpack.c.bf16 %v8142_v55, %v8142_v55  ;;  %v2128_v0 = vunpack.c.l.bf16 %v5924_v43  ;;  %v2129_v12 = vunpack.c.h.bf16 %v5924_v43 }
 0x78f   : > { %2142 = vmatmul.bf16.vlgmr.msra.gmra.mxu0 %v2133_v31  ;;  %2155 = vmatmul.bf16.vlgmr.msra.gmra.mxu1 %v2133_v31 }
 0x790   : > { %2168 = vmatmul.bf16.vlgmr.msra.gmra.mxu2 %v2133_v31  ;;  %2181 = vmatmul.bf16.vlgmr.msra.gmra.mxu3 %v2133_v31 }
 0x791   : > { %2422 = vmatpush.bf16.msra.mxu0 %v7458_v9  ;;  %2435 = vmatpush.bf16.msra.mxu1 %v7460_v41 }
 0x792   : > { %2448 = vmatpush.bf16.msra.mxu2 %v7464_v8  ;;  %2461 = vmatpush.bf16.msra.mxu3 %v7462_v62 }
 0x795   : > { %2423 = vmatpush.bf16.msra.mxu0 %v7468_v30  ;;  %2436 = vmatpush.bf16.msra.mxu1 %v7470_v3 }
 0x796   : > { %2449 = vmatpush.bf16.msra.mxu2 %v7481_v11  ;;  %2462 = vmatpush.bf16.msra.mxu3 %v7478_v7 }
 0x799   : > { %2424 = vmatpush.bf16.msra.mxu0 %v7489_v1  ;;  %2437 = vmatpush.bf16.msra.mxu1 %v7492_v15 }
 0x79a   : > { %2450 = vmatpush.bf16.msra.mxu2 %v7501_v17  ;;  %2463 = vmatpush.bf16.msra.mxu3 %v7497_v16 }
 0x79d   : > { %2425 = vmatpush.bf16.msra.mxu0 %v7508_v22  ;;  %2438 = vmatpush.bf16.msra.mxu1 %v7512_v25 }
 0x79e   : > { %2451 = vmatpush.bf16.msra.mxu2 %v7523_v34  ;;  %2464 = vmatpush.bf16.msra.mxu3 %v7518_v33 }
 0x7a1   : > { %2426 = vmatpush.bf16.msra.mxu0 %v7530_v5  ;;  %2439 = vmatpush.bf16.msra.mxu1 %v7534_v10 }
 0x7a2   : > { %2452 = vmatpush.bf16.msra.mxu2 %v7544_v18  ;;  %2465 = vmatpush.bf16.msra.mxu3 %v7539_v2 }
 0x7a5   : > { %2427 = vmatpush.bf16.msra.mxu0 %v7550_v21  ;;  %2440 = vmatpush.bf16.msra.mxu1 %v7554_v26 }
 0x7a6   : > { %2453 = vmatpush.bf16.msra.mxu2 %v7565_v37  ;;  %2466 = vmatpush.bf16.msra.mxu3 %v7560_v29 }
 0x7a9   : > { %2428 = vmatpush.bf16.msra.mxu0 %v7572_v35  ;;  %2441 = vmatpush.bf16.msra.mxu1 %v7576_v38 }
 0x7aa   : > { %2454 = vmatpush.bf16.msra.mxu2 %v7586_v40  ;;  %2467 = vmatpush.bf16.msra.mxu3 %v7581_v39 }
 0x7ad   : > { %2429 = vmatpush.bf16.msra.mxu0 %v7592_v20  ;;  %2442 = vmatpush.bf16.msra.mxu1 %v7596_v42 }
 0x7ae   : > { %2455 = vmatpush.bf16.msra.mxu2 %v7609_v4  ;;  %2468 = vmatpush.bf16.msra.mxu3 %v7604_v32 }
 0x80c   : > { %v2143_v51 = vpop.f32.mrf.mxu0  ;;  %v2156_v52 = vpop.f32.mrf.mxu1 }
 0x80d   : > { %v2186_v53 = vadd.f32 %v2143_v51, %v2128_v0  ;;  %v2187_v61 = vadd.f32 %v2156_v52, %v2129_v12 }
 0x80f   : > { %v5926_v63 = vmul.f32 -1.442695, %v2186_v53  ;;  %v5927_v28 = vmul.f32 -1.442695, %v2187_v61 }
 0x811   : > { %6458 = vpow2.f32 %v5926_v63 }
 0x812   : > { %6460 = vpow2.f32 %v5927_v28 }
 0x813   : > { %v2169_v58 = vpop.f32.mrf.mxu2  ;;  %v2182_v45 = vpop.f32.mrf.mxu3 }
 0x814   : > { %v2189_v13 = vadd.f32 %v2182_v45, %v2131_v46  ;;  %v2145_v49 = vpop.f32.mrf.mxu0  ;;  %v2158_v27 = vpop.f32.mrf.mxu1  ;;  %v2188_v47 = vadd.f32 %v2169_v58, %v2130_v6 }
 0x816   : > { %v5928_v23 = vmul.f32 -1.442695, %v2189_v13 }
 0x817   : > { %v6459_v60 = vpop.eup %6458 }
 0x818   : > { %v6461_v36 = vpop.eup %6460  ;;  %v2193_v57 = vadd.f32 1.0, %v6459_v60  ;;  %6462 = vpow2.f32 %v5928_v23 }
 0x819   : > { %v2212_v59 = vadd.f32 1.0, %v6461_v36 }
 0x81a   : > { %6464 = vrcp.f32 %v2193_v57  ;;  %v2205_v51 = vand.u32 2147483648, %v2193_v57  ;;  %v2203_v61 = vand.u32 2147483647, %v2193_v57  ;;  %vm2199_vm4 = vweird.f32 %v2193_v57 }
 0x81b   : > { %6466 = vrcp.f32 %v2212_v59  ;;  %v2171_v56 = vpop.f32.mrf.mxu2  ;;  %v2184_v24 = vpop.f32.mrf.mxu3  ;;  %v2224_v52 = vand.u32 2147483648, %v2212_v59  ;;  %v2222_v28 = vand.u32 2147483647, %v2212_v59  ;;  %vm2218_vm5 = vweird.f32 %v2212_v59 }
 0x81c   : > { %v2206_v58 = vor.u32 1.1754944e-38, %v2205_v51  ;;  %vm2204_vm8 = vcmp.eq.f32.partialorder %v2203_v61, 8.507059e+37 }
 0x81d   : > { %v2225_v49 = vor.u32 1.1754944e-38, %v2224_v52  ;;  %vm2223_vm9 = vcmp.eq.f32.partialorder %v2222_v28, 8.507059e+37 }
 0x81e   : > { %v6463_v44 = vpop.eup %6462 }
 0x81f   : > { %v2232_v50 = vadd.f32 1.0, %v6463_v44 }
 0x820   : > { %v6465_v54 = vpop.eup %6464 }
 0x821   : > { %v6467_v14 = vpop.eup %6466  ;;  %v2195_v31 = vmul.f32 %v6465_v54, %v2193_v57  ;;  %6468 = vrcp.f32 %v2232_v50  ;;  %vm2200_vm2 = vweird.f32 %v6465_v54  ;;  %v2123_v57 = vpop.permute.xlu1 %2122  ;;  %vm2238_vm12 = vweird.f32 %v2232_v50 }
 0x822   : > { %v2214_v43 = vmul.f32 %v6467_v14, %v2212_v59  ;;  %6470 = vtanh.f32 %v2188_v47  ;;  %vm2219_vm3 = vweird.f32 %v6467_v14  ;;  %vm2201_vm6 = vmor %vm2199_vm4, %vm2200_vm2  ;;  %vm2124_vm10 = vcmp.eq.s32.totalorder %v2123_v57, 1 }
 0x823   : > { %v2196_v0 = vsub.f32 1.0, %v2195_v31  ;;  %vm2220_vm7 = vmor %vm2218_vm5, %vm2219_vm3 }
 0x824   : > { %v2215_v12 = vsub.f32 1.0, %v2214_v43  ;;  %v2244_v43 = vand.u32 2147483648, %v2232_v50 }
 0x825   : > { %v2197_v53 = vmul.f32 %v6465_v54, %v2196_v0 }
 0x826   : > { %v2216_v63 = vmul.f32 %v6467_v14, %v2215_v12  ;;  %v2245_v12 = vor.u32 1.1754944e-38, %v2244_v43 }
 0x827   : > { %v6469_v19 = vpop.eup %6468  ;;  %v2198_v46 = vadd.f32 %v6465_v54, %v2197_v53 }
 0x828   : > { %v2217_v45 = vadd.f32 %v6467_v14, %v2216_v63  ;;  %v2234_v13 = vmul.f32 %v6469_v19, %v2232_v50  ;;  %v6471_v23 = vpop.eup %6470  ;;  %vm2239_vm11 = vweird.f32 %v6469_v19 }
 0x829   : > { %v2202_v27 = vsel %vm2201_vm6, %v6465_v54, %v2198_v46  ;;  %vm2240_vm13 = vmor %vm2238_vm12, %vm2239_vm11 }
 0x82a   : > { %v2207_v60 = vsel %vm2204_vm8, %v2206_v58, %v2202_v27  ;;  %v2221_v36 = vsel %vm2220_vm7, %v6467_v14, %v2217_v45  ;;  %v2235_v56 = vsub.f32 1.0, %v2234_v13  ;;  %v2242_v14 = vand.u32 2147483647, %v2232_v50  ;;  %v5931_v13 = vld [vmem:[%s7452_s13 + $0xb8] sm:$0xff] }
 0x82b   : > { %v2226_v24 = vsel %vm2223_vm9, %v2225_v49, %v2221_v36  ;;  %v2250_v6 = vmul.f32 %v6471_v23, %v2207_v60  ;;  %v2275_v23 = vunpack.c.h.bf16 %v5931_v13 }
 0x82c   : > { %v2249_v44 = vmul.f32 %v2226_v24, %v8137_v48  ;;  %v2236_v47 = vmul.f32 %v6469_v19, %v2235_v56  ;;  %vm2243_vm14 = vcmp.eq.f32.partialorder %v2242_v14, 8.507059e+37 }
 0x82e   : > { %v2251_v59 = vadd.f32 %v2250_v6, %v2249_v44  ;;  %v2237_v31 = vadd.f32 %v6469_v19, %v2236_v47 }
 0x830   : > { %6472 = vtanh.f32 %v2251_v59  ;;  %v8184_v54 = vsel %vm2124_vm10, %v2251_v59, %v8137_v48  ;;  %v2241_v0 = vsel %vm2240_vm13, %v6469_v19, %v2237_v31 }
 0x831   : > { %v2246_v52 = vsel %vm2243_vm14, %v2245_v12, %v2241_v0  ;;  %v2274_v0 = vunpack.c.l.bf16 %v5931_v13 }
 0x836   : > { %v6473_v51 = vpop.eup %6472 }
 0x837   : > { %v2253_v53 = vmul.f32 %v6473_v51, %v2246_v52 }
 0x839   : > { %v2254_v61 = vsel %vm2124_vm10, %v2253_v53, 0.0  ;;  %v8189_v63 = vsel %vm2124_vm10, %v2253_v53, %v8142_v55  ;;  %v5930_v55 = vld [vmem:[%s7452_s13 + $0xb0] sm:$0xff] }
 0x83a   : > { %5929 = vst [vmem:[%s7455_s14 + $0x50] sm:$0xff] %v2254_v61  ;;  %v2277_v48 = vpack.c.bf16 %v8189_v63, %v8189_v63  ;;  %v2272_v50 = vunpack.c.l.bf16 %v5930_v55  ;;  %v2273_v28 = vunpack.c.h.bf16 %v5930_v55 }
 0x83c   : > { %2286 = vmatmul.bf16.vlgmr.msrb.gmra.mxu0 %v2277_v48  ;;  %2299 = vmatmul.bf16.vlgmr.msrb.gmra.mxu1 %v2277_v48 }
 0x83d   : > { %2312 = vmatmul.bf16.vlgmr.msrb.gmra.mxu2 %v2277_v48  ;;  %2325 = vmatmul.bf16.vlgmr.msrb.gmra.mxu3 %v2277_v48 }
 0x83e   : > { %2566 = vmatpush.bf16.msrb.mxu0 %v7458_v9  ;;  %2579 = vmatpush.bf16.msrb.mxu1 %v7460_v41 }
 0x83f   : > { %2592 = vmatpush.bf16.msrb.mxu2 %v7464_v8  ;;  %2605 = vmatpush.bf16.msrb.mxu3 %v7462_v62 }
 0x842   : > { %2567 = vmatpush.bf16.msrb.mxu0 %v7468_v30  ;;  %2580 = vmatpush.bf16.msrb.mxu1 %v7470_v3 }
 0x843   : > { %2593 = vmatpush.bf16.msrb.mxu2 %v7481_v11  ;;  %2606 = vmatpush.bf16.msrb.mxu3 %v7478_v7 }
 0x846   : > { %2568 = vmatpush.bf16.msrb.mxu0 %v7489_v1  ;;  %2581 = vmatpush.bf16.msrb.mxu1 %v7492_v15 }
 0x847   : > { %2594 = vmatpush.bf16.msrb.mxu2 %v7501_v17  ;;  %2607 = vmatpush.bf16.msrb.mxu3 %v7497_v16 }
 0x84a   : > { %2569 = vmatpush.bf16.msrb.mxu0 %v7508_v22  ;;  %2582 = vmatpush.bf16.msrb.mxu1 %v7512_v25 }
 0x84b   : > { %2595 = vmatpush.bf16.msrb.mxu2 %v7523_v34  ;;  %2608 = vmatpush.bf16.msrb.mxu3 %v7518_v33 }
 0x84e   : > { %2570 = vmatpush.bf16.msrb.mxu0 %v7530_v5  ;;  %2583 = vmatpush.bf16.msrb.mxu1 %v7534_v10 }
 0x84f   : > { %2596 = vmatpush.bf16.msrb.mxu2 %v7544_v18  ;;  %2609 = vmatpush.bf16.msrb.mxu3 %v7539_v2 }
 0x852   : > { %2571 = vmatpush.bf16.msrb.mxu0 %v7550_v21  ;;  %2584 = vmatpush.bf16.msrb.mxu1 %v7554_v26 }
 0x853   : > { %2597 = vmatpush.bf16.msrb.mxu2 %v7565_v37  ;;  %2610 = vmatpush.bf16.msrb.mxu3 %v7560_v29 }
 0x856   : > { %2572 = vmatpush.bf16.msrb.mxu0 %v7572_v35  ;;  %2585 = vmatpush.bf16.msrb.mxu1 %v7576_v38 }
 0x857   : > { %2598 = vmatpush.bf16.msrb.mxu2 %v7586_v40  ;;  %2611 = vmatpush.bf16.msrb.mxu3 %v7581_v39 }
 0x85a   : > { %2573 = vmatpush.bf16.msrb.mxu0 %v7592_v20  ;;  %2586 = vmatpush.bf16.msrb.mxu1 %v7596_v42 }
 0x85b   : > { %2599 = vmatpush.bf16.msrb.mxu2 %v7609_v4  ;;  %2612 = vmatpush.bf16.msrb.mxu3 %v7604_v32 }
 0x8b9   : > { %v2287_v19 = vpop.f32.mrf.mxu0  ;;  %v2300_v46 = vpop.f32.mrf.mxu1 }
 0x8ba   : > { %v2330_v58 = vadd.f32 %v2287_v19, %v2272_v50  ;;  %v2331_v45 = vadd.f32 %v2300_v46, %v2273_v28 }
 0x8bc   : > { %v5932_v49 = vmul.f32 -1.442695, %v2330_v58  ;;  %v5933_v27 = vmul.f32 -1.442695, %v2331_v45 }
 0x8be   : > { %6474 = vpow2.f32 %v5932_v49 }
 0x8bf   : > { %6476 = vpow2.f32 %v5933_v27 }
 0x8c0   : > { %v2313_v60 = vpop.f32.mrf.mxu2  ;;  %v2326_v36 = vpop.f32.mrf.mxu3 }
 0x8c1   : > { %v2333_v56 = vadd.f32 %v2326_v36, %v2275_v23  ;;  %v2289_v24 = vpop.f32.mrf.mxu0  ;;  %v2302_v6 = vpop.f32.mrf.mxu1  ;;  %v2332_v53 = vadd.f32 %v2313_v60, %v2274_v0 }
 0x8c3   : > { %v5934_v44 = vmul.f32 -1.442695, %v2333_v56 }
 0x8c4   : > { %v6475_v47 = vpop.eup %6474 }
 0x8c5   : > { %v6477_v57 = vpop.eup %6476  ;;  %v2337_v59 = vadd.f32 1.0, %v6475_v47  ;;  %6478 = vpow2.f32 %v5934_v44 }
 0x8c6   : > { %v2356_v31 = vadd.f32 1.0, %v6477_v57 }
 0x8c7   : > { %6480 = vrcp.f32 %v2337_v59  ;;  %v2349_v19 = vand.u32 2147483648, %v2337_v59  ;;  %v2347_v45 = vand.u32 2147483647, %v2337_v59  ;;  %vm2343_vm1 = vweird.f32 %v2337_v59 }
 0x8c8   : > { %6482 = vrcp.f32 %v2356_v31  ;;  %v2315_v43 = vpop.f32.mrf.mxu2  ;;  %v2328_v14 = vpop.f32.mrf.mxu3  ;;  %v2368_v46 = vand.u32 2147483648, %v2356_v31  ;;  %v2366_v27 = vand.u32 2147483647, %v2356_v31  ;;  %vm2362_vm2 = vweird.f32 %v2356_v31 }
 0x8c9   : > { %v2350_v60 = vor.u32 1.1754944e-38, %v2349_v19  ;;  %vm2348_vm5 = vcmp.eq.f32.partialorder %v2347_v45, 8.507059e+37 }
 0x8ca   : > { %v2369_v24 = vor.u32 1.1754944e-38, %v2368_v46  ;;  %vm2367_vm6 = vcmp.eq.f32.partialorder %v2366_v27, 8.507059e+37 }
 0x8cb   : > { %v6479_v12 = vpop.eup %6478 }
 0x8cc   : > { %v2376_v51 = vadd.f32 1.0, %v6479_v12 }
 0x8cd   : > { %v6481_v52 = vpop.eup %6480 }
 0x8ce   : > { %v6483_v61 = vpop.eup %6482  ;;  %v2339_v48 = vmul.f32 %v6481_v52, %v2337_v59  ;;  %6484 = vrcp.f32 %v2376_v51  ;;  %vm2344_vm15 = vweird.f32 %v6481_v52  ;;  %v2267_v59 = vpop.permute.xlu2 %2266  ;;  %vm2382_vm9 = vweird.f32 %v2376_v51 }
 0x8cf   : > { %v2358_v55 = vmul.f32 %v6483_v61, %v2356_v31  ;;  %6486 = vtanh.f32 %v2332_v53  ;;  %vm2363_vm0 = vweird.f32 %v6483_v61  ;;  %vm2345_vm3 = vmor %vm2343_vm1, %vm2344_vm15  ;;  %vm2268_vm7 = vcmp.eq.s32.totalorder %v2267_v59, 1 }
 0x8d0   : > { %v2340_v50 = vsub.f32 1.0, %v2339_v48  ;;  %vm2364_vm4 = vmor %vm2362_vm2, %vm2363_vm0 }
 0x8d1   : > { %v2359_v28 = vsub.f32 1.0, %v2358_v55  ;;  %v2388_v55 = vand.u32 2147483648, %v2376_v51 }
 0x8d2   : > { %v2341_v58 = vmul.f32 %v6481_v52, %v2340_v50 }
 0x8d3   : > { %v2360_v49 = vmul.f32 %v6483_v61, %v2359_v28  ;;  %v2389_v28 = vor.u32 1.1754944e-38, %v2388_v55 }
 0x8d4   : > { %v6485_v13 = vpop.eup %6484  ;;  %v2342_v23 = vadd.f32 %v6481_v52, %v2341_v58 }
 0x8d5   : > { %v2361_v36 = vadd.f32 %v6483_v61, %v2360_v49  ;;  %v2378_v56 = vmul.f32 %v6485_v13, %v2376_v51  ;;  %v6487_v44 = vpop.eup %6486  ;;  %vm2383_vm8 = vweird.f32 %v6485_v13 }
 0x8d6   : > { %v2346_v6 = vsel %vm2345_vm3, %v6481_v52, %v2342_v23  ;;  %vm2384_vm10 = vmor %vm2382_vm9, %vm2383_vm8 }
 0x8d7   : > { %v2351_v47 = vsel %vm2348_vm5, %v2350_v60, %v2346_v6  ;;  %v2365_v57 = vsel %vm2364_vm4, %v6483_v61, %v2361_v36  ;;  %v2379_v43 = vsub.f32 1.0, %v2378_v56  ;;  %v2386_v61 = vand.u32 2147483647, %v2376_v51  ;;  %v5937_v56 = vld [vmem:[%s7452_s13 + $0xc8] sm:$0xff] }
 0x8d8   : > { %v2370_v14 = vsel %vm2367_vm6, %v2369_v24, %v2365_v57  ;;  %v2394_v0 = vmul.f32 %v6487_v44, %v2351_v47  ;;  %v2419_v44 = vunpack.c.h.bf16 %v5937_v56 }
 0x8d9   : > { %v2393_v12 = vmul.f32 %v2370_v14, %v8184_v54  ;;  %v2380_v53 = vmul.f32 %v6485_v13, %v2379_v43  ;;  %vm2387_vm11 = vcmp.eq.f32.partialorder %v2386_v61, 8.507059e+37 }
 0x8db   : > { %v2395_v31 = vadd.f32 %v2394_v0, %v2393_v12  ;;  %v2381_v48 = vadd.f32 %v6485_v13, %v2380_v53 }
 0x8dd   : > { %6488 = vtanh.f32 %v2395_v31  ;;  %v8231_v52 = vsel %vm2268_vm7, %v2395_v31, %v8184_v54  ;;  %v2385_v50 = vsel %vm2384_vm10, %v6485_v13, %v2381_v48 }
 0x8de   : > { %v2390_v46 = vsel %vm2387_vm11, %v2389_v28, %v2385_v50  ;;  %v2418_v50 = vunpack.c.l.bf16 %v5937_v56 }
 0x8e3   : > { %v6489_v19 = vpop.eup %6488 }
 0x8e4   : > { %v2397_v58 = vmul.f32 %v6489_v19, %v2390_v46 }
 0x8e6   : > { %v2398_v45 = vsel %vm2268_vm7, %v2397_v58, 0.0  ;;  %v8236_v49 = vsel %vm2268_vm7, %v2397_v58, %v8189_v63  ;;  %v5936_v63 = vld [vmem:[%s7452_s13 + $0xc0] sm:$0xff] }
 0x8e7   : > { %5935 = vst [vmem:[%s7455_s14 + $0x58] sm:$0xff] %v2398_v45  ;;  %v2421_v54 = vpack.c.bf16 %v8236_v49, %v8236_v49  ;;  %v2416_v51 = vunpack.c.l.bf16 %v5936_v63  ;;  %v2417_v27 = vunpack.c.h.bf16 %v5936_v63 }
 0x8e9   : > { %2430 = vmatmul.bf16.vlgmr.msra.gmra.mxu0 %v2421_v54  ;;  %2443 = vmatmul.bf16.vlgmr.msra.gmra.mxu1 %v2421_v54 }
 0x8ea   : > { %2456 = vmatmul.bf16.vlgmr.msra.gmra.mxu2 %v2421_v54  ;;  %2469 = vmatmul.bf16.vlgmr.msra.gmra.mxu3 %v2421_v54 }
 0x8eb   : > { %2710 = vmatpush.bf16.msra.mxu0 %v7458_v9  ;;  %2723 = vmatpush.bf16.msra.mxu1 %v7460_v41 }
 0x8ec   : > { %2736 = vmatpush.bf16.msra.mxu2 %v7464_v8  ;;  %2749 = vmatpush.bf16.msra.mxu3 %v7462_v62 }
 0x8ef   : > { %2711 = vmatpush.bf16.msra.mxu0 %v7468_v30  ;;  %2724 = vmatpush.bf16.msra.mxu1 %v7470_v3 }
 0x8f0   : > { %2737 = vmatpush.bf16.msra.mxu2 %v7481_v11  ;;  %2750 = vmatpush.bf16.msra.mxu3 %v7478_v7 }
 0x8f3   : > { %2712 = vmatpush.bf16.msra.mxu0 %v7489_v1  ;;  %2725 = vmatpush.bf16.msra.mxu1 %v7492_v15 }
 0x8f4   : > { %2738 = vmatpush.bf16.msra.mxu2 %v7501_v17  ;;  %2751 = vmatpush.bf16.msra.mxu3 %v7497_v16 }
 0x8f7   : > { %2713 = vmatpush.bf16.msra.mxu0 %v7508_v22  ;;  %2726 = vmatpush.bf16.msra.mxu1 %v7512_v25 }
 0x8f8   : > { %2739 = vmatpush.bf16.msra.mxu2 %v7523_v34  ;;  %2752 = vmatpush.bf16.msra.mxu3 %v7518_v33 }
 0x8fb   : > { %2714 = vmatpush.bf16.msra.mxu0 %v7530_v5  ;;  %2727 = vmatpush.bf16.msra.mxu1 %v7534_v10 }
 0x8fc   : > { %2740 = vmatpush.bf16.msra.mxu2 %v7544_v18  ;;  %2753 = vmatpush.bf16.msra.mxu3 %v7539_v2 }
 0x8ff   : > { %2715 = vmatpush.bf16.msra.mxu0 %v7550_v21  ;;  %2728 = vmatpush.bf16.msra.mxu1 %v7554_v26 }
 0x900   : > { %2741 = vmatpush.bf16.msra.mxu2 %v7565_v37  ;;  %2754 = vmatpush.bf16.msra.mxu3 %v7560_v29 }
 0x903   : > { %2716 = vmatpush.bf16.msra.mxu0 %v7572_v35  ;;  %2729 = vmatpush.bf16.msra.mxu1 %v7576_v38 }
 0x904   : > { %2742 = vmatpush.bf16.msra.mxu2 %v7586_v40  ;;  %2755 = vmatpush.bf16.msra.mxu3 %v7581_v39 }
 0x907   : > { %2717 = vmatpush.bf16.msra.mxu0 %v7592_v20  ;;  %2730 = vmatpush.bf16.msra.mxu1 %v7596_v42 }
 0x908   : > { %2743 = vmatpush.bf16.msra.mxu2 %v7609_v4  ;;  %2756 = vmatpush.bf16.msra.mxu3 %v7604_v32 }
 0x966   : > { %v2431_v13 = vpop.f32.mrf.mxu0  ;;  %v2444_v23 = vpop.f32.mrf.mxu1 }
 0x967   : > { %v2474_v60 = vadd.f32 %v2431_v13, %v2416_v51  ;;  %v2475_v36 = vadd.f32 %v2444_v23, %v2417_v27 }
 0x969   : > { %v5938_v24 = vmul.f32 -1.442695, %v2474_v60  ;;  %v5939_v6 = vmul.f32 -1.442695, %v2475_v36 }
 0x96b   : > { %6490 = vpow2.f32 %v5938_v24 }
 0x96c   : > { %6492 = vpow2.f32 %v5939_v6 }
 0x96d   : > { %v2457_v47 = vpop.f32.mrf.mxu2  ;;  %v2470_v57 = vpop.f32.mrf.mxu3 }
 0x96e   : > { %v2477_v43 = vadd.f32 %v2470_v57, %v2419_v44  ;;  %v2433_v14 = vpop.f32.mrf.mxu0  ;;  %v2446_v0 = vpop.f32.mrf.mxu1  ;;  %v2476_v58 = vadd.f32 %v2457_v47, %v2418_v50 }
 0x970   : > { %v5940_v12 = vmul.f32 -1.442695, %v2477_v43 }
 0x971   : > { %v6491_v53 = vpop.eup %6490 }
 0x972   : > { %v6493_v59 = vpop.eup %6492  ;;  %v2481_v31 = vadd.f32 1.0, %v6491_v53  ;;  %6494 = vpow2.f32 %v5940_v12 }
 0x973   : > { %v2500_v48 = vadd.f32 1.0, %v6493_v59 }
 0x974   : > { %6496 = vrcp.f32 %v2481_v31  ;;  %v2493_v13 = vand.u32 2147483648, %v2481_v31  ;;  %v2491_v36 = vand.u32 2147483647, %v2481_v31  ;;  %vm2487_vm14 = vweird.f32 %v2481_v31 }
 0x975   : > { %6498 = vrcp.f32 %v2500_v48  ;;  %v2459_v55 = vpop.f32.mrf.mxu2  ;;  %v2472_v61 = vpop.f32.mrf.mxu3  ;;  %v2512_v23 = vand.u32 2147483648, %v2500_v48  ;;  %v2510_v6 = vand.u32 2147483647, %v2500_v48  ;;  %vm2506_vm15 = vweird.f32 %v2500_v48 }
 0x976   : > { %v2494_v47 = vor.u32 1.1754944e-38, %v2493_v13  ;;  %vm2492_vm2 = vcmp.eq.f32.partialorder %v2491_v36, 8.507059e+37 }
 0x977   : > { %v2513_v14 = vor.u32 1.1754944e-38, %v2512_v23  ;;  %vm2511_vm3 = vcmp.eq.f32.partialorder %v2510_v6, 8.507059e+37 }
 0x978   : > { %v6495_v28 = vpop.eup %6494 }
 0x979   : > { %v2520_v19 = vadd.f32 1.0, %v6495_v28 }
 0x97a   : > { %v6497_v46 = vpop.eup %6496 }
 0x97b   : > { %v6499_v45 = vpop.eup %6498  ;;  %v2483_v54 = vmul.f32 %v6497_v46, %v2481_v31  ;;  %6500 = vrcp.f32 %v2520_v19  ;;  %vm2488_vm12 = vweird.f32 %v6497_v46  ;;  %v2411_v31 = vpop.permute.xlu0 %2410  ;;  %vm2526_vm6 = vweird.f32 %v2520_v19 }
 0x97c   : > { %v2502_v63 = vmul.f32 %v6499_v45, %v2500_v48  ;;  %6502 = vtanh.f32 %v2476_v58  ;;  %vm2507_vm13 = vweird.f32 %v6499_v45  ;;  %vm2489_vm0 = vmor %vm2487_vm14, %vm2488_vm12  ;;  %vm2412_vm4 = vcmp.eq.s32.totalorder %v2411_v31, 1 }
 0x97d   : > { %v2484_v51 = vsub.f32 1.0, %v2483_v54  ;;  %vm2508_vm1 = vmor %vm2506_vm15, %vm2507_vm13 }
 0x97e   : > { %v2503_v27 = vsub.f32 1.0, %v2502_v63  ;;  %v2532_v63 = vand.u32 2147483648, %v2520_v19 }
 0x97f   : > { %v2485_v60 = vmul.f32 %v6497_v46, %v2484_v51 }
 0x980   : > { %v2504_v24 = vmul.f32 %v6499_v45, %v2503_v27  ;;  %v2533_v27 = vor.u32 1.1754944e-38, %v2532_v63 }
 0x981   : > { %v6501_v56 = vpop.eup %6500  ;;  %v2486_v44 = vadd.f32 %v6497_v46, %v2485_v60 }
 0x982   : > { %v2505_v57 = vadd.f32 %v6499_v45, %v2504_v24  ;;  %v2522_v43 = vmul.f32 %v6501_v56, %v2520_v19  ;;  %v6503_v12 = vpop.eup %6502  ;;  %vm2527_vm5 = vweird.f32 %v6501_v56 }
 0x983   : > { %v2490_v0 = vsel %vm2489_vm0, %v6497_v46, %v2486_v44  ;;  %vm2528_vm7 = vmor %vm2526_vm6, %vm2527_vm5 }
 0x984   : > { %v2495_v53 = vsel %vm2492_vm2, %v2494_v47, %v2490_v0  ;;  %v2509_v59 = vsel %vm2508_vm1, %v6499_v45, %v2505_v57  ;;  %v2523_v55 = vsub.f32 1.0, %v2522_v43  ;;  %v2530_v45 = vand.u32 2147483647, %v2520_v19 }
 0x985   : > { %v2514_v61 = vsel %vm2511_vm3, %v2513_v14, %v2509_v59  ;;  %v2538_v50 = vmul.f32 %v6503_v12, %v2495_v53 }
 0x986   : > { %v2537_v28 = vmul.f32 %v2514_v61, %v8231_v52  ;;  %v2524_v58 = vmul.f32 %v6501_v56, %v2523_v55  ;;  %vm2531_vm8 = vcmp.eq.f32.partialorder %v2530_v45, 8.507059e+37 }
 0x988   : > { %v2539_v48 = vadd.f32 %v2538_v50, %v2537_v28  ;;  %v2525_v54 = vadd.f32 %v6501_v56, %v2524_v58 }
 0x98a   : > { %6504 = vtanh.f32 %v2539_v48  ;;  %v8278_v46 = vsel %vm2412_vm4, %v2539_v48, %v8231_v52  ;;  %v2529_v51 = vsel %vm2528_vm7, %v6501_v56, %v2525_v54  ;;  %v2555_v54 = vpop.permute.xlu1 %2554 }
 0x98b   : > { %v2534_v23 = vsel %vm2531_vm8, %v2533_v27, %v2529_v51  ;;  %vm2556_vm1 = vcmp.eq.s32.totalorder %v2555_v54, 1 }
 0x990   : > { %v6505_v13 = vpop.eup %6504 }
 0x991   : > { %v2541_v60 = vmul.f32 %v6505_v13, %v2534_v23 }
 0x993   : > { %v2542_v36 = vsel %vm2412_vm4, %v2541_v60, 0.0  ;;  %v8283_v24 = vsel %vm2412_vm4, %v2541_v60, %v8236_v49 }
 0x994   : > { %5941 = vst [vmem:[%s7455_s14 + $0x60] sm:$0xff] %v2542_v36  ;;  %v2565_v52 = vpack.c.bf16 %v8283_v24, %v8283_v24 }
 0x996   : > { %2574 = vmatmul.bf16.vlgmr.msrb.gmra.mxu0 %v2565_v52  ;;  %2587 = vmatmul.bf16.vlgmr.msrb.gmra.mxu1 %v2565_v52 }
 0x997   : > { %2600 = vmatmul.bf16.vlgmr.msrb.gmra.mxu2 %v2565_v52  ;;  %2613 = vmatmul.bf16.vlgmr.msrb.gmra.mxu3 %v2565_v52 }
 0x998   : > { %2854 = vmatpush.bf16.msrb.mxu0 %v7458_v9  ;;  %2867 = vmatpush.bf16.msrb.mxu1 %v7460_v41 }
 0x999   : > { %2880 = vmatpush.bf16.msrb.mxu2 %v7464_v8  ;;  %2893 = vmatpush.bf16.msrb.mxu3 %v7462_v62 }
 0x99c   : > { %2855 = vmatpush.bf16.msrb.mxu0 %v7468_v30  ;;  %2868 = vmatpush.bf16.msrb.mxu1 %v7470_v3  ;;  %v5942_v3 = vld [vmem:[%s7452_s13 + $0xd0] sm:$0xff] }
 0x99d   : > { %2881 = vmatpush.bf16.msrb.mxu2 %v7481_v11  ;;  %2894 = vmatpush.bf16.msrb.mxu3 %v7478_v7  ;;  %v2560_v8 = vunpack.c.l.bf16 %v5942_v3  ;;  %v2561_v9 = vunpack.c.h.bf16 %v5942_v3  ;;  %v5943_v11 = vld [vmem:[%s7452_s13 + $0xd8] sm:$0xff] }
 0x9a0   : > { %2856 = vmatpush.bf16.msrb.mxu0 %v7489_v1  ;;  %2869 = vmatpush.bf16.msrb.mxu1 %v7492_v15 }
 0x9a1   : > { %2882 = vmatpush.bf16.msrb.mxu2 %v7501_v17  ;;  %2895 = vmatpush.bf16.msrb.mxu3 %v7497_v16  ;;  %v2563_v16 = vunpack.c.h.bf16 %v5943_v11 }
 0x9a4   : > { %2857 = vmatpush.bf16.msrb.mxu0 %v7508_v22  ;;  %2870 = vmatpush.bf16.msrb.mxu1 %v7512_v25 }
 0x9a5   : > { %2883 = vmatpush.bf16.msrb.mxu2 %v7523_v34  ;;  %2896 = vmatpush.bf16.msrb.mxu3 %v7518_v33 }
 0x9a8   : > { %2858 = vmatpush.bf16.msrb.mxu0 %v7530_v5  ;;  %2871 = vmatpush.bf16.msrb.mxu1 %v7534_v10 }
 0x9a9   : > { %2884 = vmatpush.bf16.msrb.mxu2 %v7544_v18  ;;  %2897 = vmatpush.bf16.msrb.mxu3 %v7539_v2 }
 0x9ac   : > { %2859 = vmatpush.bf16.msrb.mxu0 %v7550_v21  ;;  %2872 = vmatpush.bf16.msrb.mxu1 %v7554_v26 }
 0x9ad   : > { %2885 = vmatpush.bf16.msrb.mxu2 %v7565_v37  ;;  %2898 = vmatpush.bf16.msrb.mxu3 %v7560_v29  ;;  %v2562_v37 = vunpack.c.l.bf16 %v5943_v11 }
 0x9b0   : > { %2860 = vmatpush.bf16.msrb.mxu0 %v7572_v35  ;;  %2873 = vmatpush.bf16.msrb.mxu1 %v7576_v38 }
 0x9b1   : > { %2886 = vmatpush.bf16.msrb.mxu2 %v7586_v40  ;;  %2899 = vmatpush.bf16.msrb.mxu3 %v7581_v39 }
 0x9b4   : > { %2861 = vmatpush.bf16.msrb.mxu0 %v7592_v20  ;;  %2874 = vmatpush.bf16.msrb.mxu1 %v7596_v42 }
 0x9b5   : > { %2887 = vmatpush.bf16.msrb.mxu2 %v7609_v4  ;;  %2900 = vmatpush.bf16.msrb.mxu3 %v7604_v32 }
 0xa13   : > { %v2575_v30 = vpop.f32.mrf.mxu0  ;;  %v2588_v41 = vpop.f32.mrf.mxu1 }
 0xa14   : > { %v2618_v62 = vadd.f32 %v2575_v30, %v2560_v8  ;;  %v2619_v7 = vadd.f32 %v2588_v41, %v2561_v9 }
 0xa16   : > { %v5944_v1 = vmul.f32 -1.442695, %v2618_v62  ;;  %v5945_v15 = vmul.f32 -1.442695, %v2619_v7  ;;  %v5948_v62 = vld [vmem:[%s7452_s13 + $0xe0] sm:$0xff] }
 0xa17   : > { %v2704_v7 = vunpack.c.l.bf16 %v5948_v62  ;;  %v2705_v11 = vunpack.c.h.bf16 %v5948_v62 }
 0xa18   : > { %6506 = vpow2.f32 %v5944_v1 }
 0xa19   : > { %6508 = vpow2.f32 %v5945_v15 }
 0xa1a   : > { %v2601_v17 = vpop.f32.mrf.mxu2  ;;  %v2614_v22 = vpop.f32.mrf.mxu3 }
 0xa1b   : > { %v2621_v25 = vadd.f32 %v2614_v22, %v2563_v16  ;;  %v2577_v33 = vpop.f32.mrf.mxu0  ;;  %v2590_v34 = vpop.f32.mrf.mxu1  ;;  %v2620_v40 = vadd.f32 %v2601_v17, %v2562_v37  ;;  %v5949_v22 = vld [vmem:[%s7452_s13 + $0xe8] sm:$0xff] }
 0xa1d   : > { %v5946_v5 = vmul.f32 -1.442695, %v2621_v25 }
 0xa1e   : > { %v6507_v10 = vpop.eup %6506 }
 0xa1f   : > { %v6509_v2 = vpop.eup %6508  ;;  %v2625_v18 = vadd.f32 1.0, %v6507_v10  ;;  %6510 = vpow2.f32 %v5946_v5 }
 0xa20   : > { %v2644_v21 = vadd.f32 1.0, %v6509_v2 }
 0xa21   : > { %6512 = vrcp.f32 %v2625_v18  ;;  %v2637_v19 = vand.u32 2147483648, %v2625_v18  ;;  %v2635_v44 = vand.u32 2147483647, %v2625_v18  ;;  %vm2631_vm11 = vweird.f32 %v2625_v18 }
 0xa22   : > { %6514 = vrcp.f32 %v2644_v21  ;;  %v2603_v26 = vpop.f32.mrf.mxu2  ;;  %v2616_v29 = vpop.f32.mrf.mxu3  ;;  %v2656_v6 = vand.u32 2147483648, %v2644_v21  ;;  %v2654_v57 = vand.u32 2147483647, %v2644_v21  ;;  %vm2650_vm12 = vweird.f32 %v2644_v21 }
 0xa23   : > { %v2638_v0 = vor.u32 1.1754944e-38, %v2637_v19  ;;  %vm2636_vm15 = vcmp.eq.f32.partialorder %v2635_v44, 8.507059e+37 }
 0xa24   : > { %v2657_v59 = vor.u32 1.1754944e-38, %v2656_v6  ;;  %vm2655_vm0 = vcmp.eq.f32.partialorder %v2654_v57, 8.507059e+37 }
 0xa25   : > { %v6511_v35 = vpop.eup %6510 }
 0xa26   : > { %v2664_v38 = vadd.f32 1.0, %v6511_v35 }
 0xa27   : > { %v6513_v39 = vpop.eup %6512 }
 0xa28   : > { %v6515_v20 = vpop.eup %6514  ;;  %v2627_v42 = vmul.f32 %v6513_v39, %v2625_v18  ;;  %6516 = vrcp.f32 %v2664_v38  ;;  %vm2632_vm9 = vweird.f32 %v6513_v39  ;;  %v2676_v23 = vand.u32 2147483648, %v2664_v38 }
 0xa29   : > { %v2646_v32 = vmul.f32 %v6515_v20, %v2644_v21  ;;  %6518 = vtanh.f32 %v2620_v40  ;;  %vm2651_vm10 = vweird.f32 %v6515_v20  ;;  %vm2633_vm13 = vmor %vm2631_vm11, %vm2632_vm9  ;;  %vm2670_vm3 = vweird.f32 %v2664_v38 }
 0xa2a   : > { %v2628_v4 = vsub.f32 1.0, %v2627_v42  ;;  %vm2652_vm14 = vmor %vm2650_vm12, %vm2651_vm10  ;;  %v2674_v60 = vand.u32 2147483647, %v2664_v38  ;;  %v2677_v52 = vor.u32 1.1754944e-38, %v2676_v23  ;;  %v2706_v40 = vunpack.c.l.bf16 %v5949_v22 }
 0xa2b   : > { %v2647_v49 = vsub.f32 1.0, %v2646_v32 }
 0xa2c   : > { %v2629_v56 = vmul.f32 %v6513_v39, %v2628_v4  ;;  %vm2675_vm5 = vcmp.eq.f32.partialorder %v2674_v60, 8.507059e+37 }
 0xa2d   : > { %v2648_v47 = vmul.f32 %v6515_v20, %v2647_v49 }
 0xa2e   : > { %v6517_v43 = vpop.eup %6516  ;;  %v2630_v14 = vadd.f32 %v6513_v39, %v2629_v56 }
 0xa2f   : > { %v2649_v12 = vadd.f32 %v6515_v20, %v2648_v47  ;;  %v2666_v53 = vmul.f32 %v6517_v43, %v2664_v38  ;;  %v6519_v61 = vpop.eup %6518  ;;  %vm2671_vm2 = vweird.f32 %v6517_v43 }
 0xa30   : > { %v2634_v55 = vsel %vm2633_vm13, %v6513_v39, %v2630_v14  ;;  %vm2672_vm4 = vmor %vm2670_vm3, %vm2671_vm2 }
 0xa31   : > { %v2639_v50 = vsel %vm2636_vm15, %v2638_v0, %v2634_v55  ;;  %v2653_v28 = vsel %vm2652_vm14, %v6515_v20, %v2649_v12  ;;  %v2667_v58 = vsub.f32 1.0, %v2666_v53 }
 0xa32   : > { %v2658_v31 = vsel %vm2655_vm0, %v2657_v59, %v2653_v28  ;;  %v2682_v48 = vmul.f32 %v6519_v61, %v2639_v50 }
 0xa33   : > { %v2681_v63 = vmul.f32 %v2658_v31, %v8278_v46  ;;  %v2668_v45 = vmul.f32 %v6517_v43, %v2667_v58 }
 0xa35   : > { %v2683_v51 = vadd.f32 %v2682_v48, %v2681_v63  ;;  %v2669_v27 = vadd.f32 %v6517_v43, %v2668_v45 }
 0xa37   : > { %6520 = vtanh.f32 %v2683_v51  ;;  %v8325_v13 = vsel %vm2556_vm1, %v2683_v51, %v8278_v46  ;;  %v2673_v36 = vsel %vm2672_vm4, %v6517_v43, %v2669_v27  ;;  %v2699_v27 = vpop.permute.xlu2 %2698 }
 0xa38   : > { %v2678_v8 = vsel %vm2675_vm5, %v2677_v52, %v2673_v36  ;;  %vm2700_vm14 = vcmp.eq.s32.totalorder %v2699_v27, 1 }
 0xa3d   : > { %v6521_v3 = vpop.eup %6520 }
 0xa3e   : > { %v2685_v9 = vmul.f32 %v6521_v3, %v2678_v8 }
 0xa40   : > { %v2686_v30 = vsel %vm2556_vm1, %v2685_v9, 0.0  ;;  %v8330_v41 = vsel %vm2556_vm1, %v2685_v9, %v8283_v24  ;;  %v2707_v24 = vunpack.c.h.bf16 %v5949_v22 }
 0xa41   : > { %5947 = vst [vmem:[%s7455_s14 + $0x68] sm:$0xff] %v2686_v30  ;;  %v2709_v46 = vpack.c.bf16 %v8330_v41, %v8330_v41 }
 0xa43   : > { %2718 = vmatmul.bf16.vlgmr.msra.gmra.mxu0 %v2709_v46  ;;  %2731 = vmatmul.bf16.vlgmr.msra.gmra.mxu1 %v2709_v46 }
 0xa44   : > { %2744 = vmatmul.bf16.vlgmr.msra.gmra.mxu2 %v2709_v46  ;;  %2757 = vmatmul.bf16.vlgmr.msra.gmra.mxu3 %v2709_v46 }
 0xac0   : > { %v2719_v1 = vpop.f32.mrf.mxu0  ;;  %v2732_v15 = vpop.f32.mrf.mxu1 }
 0xac1   : > { %v2762_v16 = vadd.f32 %v2719_v1, %v2704_v7  ;;  %v2763_v17 = vadd.f32 %v2732_v15, %v2705_v11 }
 0xac3   : > { %v5950_v25 = vmul.f32 -1.442695, %v2762_v16  ;;  %v5951_v33 = vmul.f32 -1.442695, %v2763_v17  ;;  %v5954_v16 = vld [vmem:[%s7452_s13 + $0xf0] sm:$0xff] }
 0xac4   : > { %v2848_v17 = vunpack.c.l.bf16 %v5954_v16  ;;  %v2849_v22 = vunpack.c.h.bf16 %v5954_v16 }
 0xac5   : > { %6522 = vpow2.f32 %v5950_v25 }
 0xac6   : > { %6524 = vpow2.f32 %v5951_v33 }
 0xac7   : > { %v2745_v34 = vpop.f32.mrf.mxu2  ;;  %v2758_v5 = vpop.f32.mrf.mxu3 }
 0xac8   : > { %v2765_v10 = vadd.f32 %v2758_v5, %v2707_v24  ;;  %v2721_v2 = vpop.f32.mrf.mxu0  ;;  %v2734_v18 = vpop.f32.mrf.mxu1  ;;  %v2764_v4 = vadd.f32 %v2745_v34, %v2706_v40  ;;  %v5955_v5 = vld [vmem:[%s7452_s13 + $0xf8] sm:$0xff] }
 0xaca   : > { %v5952_v21 = vmul.f32 -1.442695, %v2765_v10 }
 0xacb   : > { %v6523_v26 = vpop.eup %6522 }
 0xacc   : > { %v6525_v29 = vpop.eup %6524  ;;  %v2769_v37 = vadd.f32 1.0, %v6523_v26  ;;  %6526 = vpow2.f32 %v5952_v21 }
 0xacd   : > { %v2788_v35 = vadd.f32 1.0, %v6525_v29 }
 0xace   : > { %6528 = vrcp.f32 %v2769_v37  ;;  %v2781_v47 = vand.u32 2147483648, %v2769_v37  ;;  %v2779_v14 = vand.u32 2147483647, %v2769_v37  ;;  %vm2775_vm8 = vweird.f32 %v2769_v37 }
 0xacf   : > { %6530 = vrcp.f32 %v2788_v35  ;;  %v2747_v38 = vpop.f32.mrf.mxu2  ;;  %v2760_v39 = vpop.f32.mrf.mxu3  ;;  %v2800_v57 = vand.u32 2147483648, %v2788_v35  ;;  %v2798_v12 = vand.u32 2147483647, %v2788_v35  ;;  %vm2794_vm9 = vweird.f32 %v2788_v35 }
 0xad0   : > { %v2782_v55 = vor.u32 1.1754944e-38, %v2781_v47  ;;  %vm2780_vm12 = vcmp.eq.f32.partialorder %v2779_v14, 8.507059e+37 }
 0xad1   : > { %v2801_v28 = vor.u32 1.1754944e-38, %v2800_v57  ;;  %vm2799_vm13 = vcmp.eq.f32.partialorder %v2798_v12, 8.507059e+37 }
 0xad2   : > { %v6527_v20 = vpop.eup %6526 }
 0xad3   : > { %v2808_v42 = vadd.f32 1.0, %v6527_v20 }
 0xad4   : > { %v6529_v32 = vpop.eup %6528 }
 0xad5   : > { %v6531_v49 = vpop.eup %6530  ;;  %v2771_v19 = vmul.f32 %v6529_v32, %v2769_v37  ;;  %6532 = vrcp.f32 %v2808_v42  ;;  %vm2776_vm6 = vweird.f32 %v6529_v32  ;;  %v2820_v8 = vand.u32 2147483648, %v2808_v42 }
 0xad6   : > { %v2790_v6 = vmul.f32 %v6531_v49, %v2788_v35  ;;  %6534 = vtanh.f32 %v2764_v4  ;;  %vm2795_vm7 = vweird.f32 %v6531_v49  ;;  %vm2777_vm10 = vmor %vm2775_vm8, %vm2776_vm6  ;;  %vm2814_vm0 = vweird.f32 %v2808_v42 }
 0xad7   : > { %v2772_v56 = vsub.f32 1.0, %v2771_v19  ;;  %vm2796_vm11 = vmor %vm2794_vm9, %vm2795_vm7  ;;  %v2818_v9 = vand.u32 2147483647, %v2808_v42  ;;  %v2821_v46 = vor.u32 1.1754944e-38, %v2820_v8  ;;  %v2850_v4 = vunpack.c.l.bf16 %v5955_v5 }
 0xad8   : > { %v2791_v44 = vsub.f32 1.0, %v2790_v6 }
 0xad9   : > { %v2773_v43 = vmul.f32 %v6529_v32, %v2772_v56  ;;  %vm2819_vm2 = vcmp.eq.f32.partialorder %v2818_v9, 8.507059e+37 }
 0xada   : > { %v2792_v0 = vmul.f32 %v6531_v49, %v2791_v44 }
 0xadb   : > { %v6533_v53 = vpop.eup %6532  ;;  %v2774_v59 = vadd.f32 %v6529_v32, %v2773_v43 }
 0xadc   : > { %v2793_v61 = vadd.f32 %v6531_v49, %v2792_v0  ;;  %v2810_v50 = vmul.f32 %v6533_v53, %v2808_v42  ;;  %v6535_v31 = vpop.eup %6534  ;;  %vm2815_vm15 = vweird.f32 %v6533_v53 }
 0xadd   : > { %v2778_v58 = vsel %vm2777_vm10, %v6529_v32, %v2774_v59  ;;  %vm2816_vm1 = vmor %vm2814_vm0, %vm2815_vm15 }
 0xade   : > { %v2783_v48 = vsel %vm2780_vm12, %v2782_v55, %v2778_v58  ;;  %v2797_v54 = vsel %vm2796_vm11, %v6531_v49, %v2793_v61  ;;  %v2811_v63 = vsub.f32 1.0, %v2810_v50 }
 0xadf   : > { %v2802_v45 = vsel %vm2799_vm13, %v2801_v28, %v2797_v54  ;;  %v2826_v51 = vmul.f32 %v6535_v31, %v2783_v48 }
 0xae0   : > { %v2825_v23 = vmul.f32 %v2802_v45, %v8325_v13  ;;  %v2812_v60 = vmul.f32 %v6533_v53, %v2811_v63 }
 0xae2   : > { %v2827_v36 = vadd.f32 %v2826_v51, %v2825_v23  ;;  %v2813_v52 = vadd.f32 %v6533_v53, %v2812_v60 }
 0xae4   : > { %6536 = vtanh.f32 %v2827_v36  ;;  %v8340_v3 = vsel %vm2700_vm14, %v2827_v36, %v8325_v13  ;;  %v2817_v30 = vsel %vm2816_vm1, %v6533_v53, %v2813_v52  ;;  %v2843_v52 = vpop.permute.xlu0 %2842 }
 0xae5   : > { %v2822_v7 = vsel %vm2819_vm2, %v2821_v46, %v2817_v30  ;;  %vm2844_vm11 = vcmp.eq.s32.totalorder %v2843_v52, 1 }
 0xaea   : > { %v6537_v62 = vpop.eup %6536 }
 0xaeb   : > { %v2829_v11 = vmul.f32 %v6537_v62, %v2822_v7 }
 0xaed   : > { %v2830_v1 = vsel %vm2700_vm14, %v2829_v11, 0.0  ;;  %v8345_v15 = vsel %vm2700_vm14, %v2829_v11, %v8330_v41  ;;  %v2851_v41 = vunpack.c.h.bf16 %v5955_v5 }
 0xaee   : > { %5953 = vst [vmem:[%s7455_s14 + $0x70] sm:$0xff] %v2830_v1  ;;  %v2853_v13 = vpack.c.bf16 %v8345_v15, %v8345_v15 }
 0xaf0   : > { %2862 = vmatmul.bf16.vlgmr.msrb.gmra.mxu0 %v2853_v13  ;;  %2875 = vmatmul.bf16.vlgmr.msrb.gmra.mxu1 %v2853_v13 }
 0xaf1   : > { %2888 = vmatmul.bf16.vlgmr.msrb.gmra.mxu2 %v2853_v13  ;;  %2901 = vmatmul.bf16.vlgmr.msrb.gmra.mxu3 %v2853_v13 }
 0xb6d   : > { %v2863_v25 = vpop.f32.mrf.mxu0  ;;  %v2876_v33 = vpop.f32.mrf.mxu1 }
 0xb6e   : > { %v2906_v24 = vadd.f32 %v2863_v25, %v2848_v17  ;;  %v2907_v34 = vadd.f32 %v2876_v33, %v2849_v22 }
 0xb70   : > { %v5956_v10 = vmul.f32 -1.442695, %v2906_v24  ;;  %v5957_v2 = vmul.f32 -1.442695, %v2907_v34 }
 0xb72   : > { %6538 = vpow2.f32 %v5956_v10 }
 0xb73   : > { %6540 = vpow2.f32 %v5957_v2 }
 0xb74   : > { %v2889_v18 = vpop.f32.mrf.mxu2  ;;  %v2902_v21 = vpop.f32.mrf.mxu3 }
 0xb75   : > { %v2909_v26 = vadd.f32 %v2902_v21, %v2851_v41  ;;  %v2865_v29 = vpop.f32.mrf.mxu0  ;;  %v2878_v37 = vpop.f32.mrf.mxu1  ;;  %v2908_v56 = vadd.f32 %v2889_v18, %v2850_v4 }
 0xb77   : > { %v5958_v35 = vmul.f32 -1.442695, %v2909_v26 }
 0xb78   : > { %v6539_v38 = vpop.eup %6538 }
 0xb79   : > { %v6541_v39 = vpop.eup %6540  ;;  %v2913_v40 = vadd.f32 1.0, %v6539_v38  ;;  %6542 = vpow2.f32 %v5958_v35 }
 0xb7a   : > { %v2932_v20 = vadd.f32 1.0, %v6541_v39 }
 0xb7b   : > { %6544 = vrcp.f32 %v2913_v40  ;;  %v2925_v0 = vand.u32 2147483648, %v2913_v40  ;;  %v2923_v59 = vand.u32 2147483647, %v2913_v40  ;;  %vm2919_vm5 = vweird.f32 %v2913_v40 }
 0xb7c   : > { %6546 = vrcp.f32 %v2932_v20  ;;  %v2891_v42 = vpop.f32.mrf.mxu2  ;;  %v2904_v32 = vpop.f32.mrf.mxu3  ;;  %v2944_v12 = vand.u32 2147483648, %v2932_v20  ;;  %v2942_v61 = vand.u32 2147483647, %v2932_v20  ;;  %vm2938_vm6 = vweird.f32 %v2932_v20 }
 0xb7d   : > { %v2926_v58 = vor.u32 1.1754944e-38, %v2925_v0  ;;  %vm2924_vm9 = vcmp.eq.f32.partialorder %v2923_v59, 8.507059e+37 }
 0xb7e   : > { %v2945_v54 = vor.u32 1.1754944e-38, %v2944_v12  ;;  %vm2943_vm10 = vcmp.eq.f32.partialorder %v2942_v61, 8.507059e+37 }
 0xb7f   : > { %v6543_v49 = vpop.eup %6542 }
 0xb80   : > { %v2952_v19 = vadd.f32 1.0, %v6543_v49 }
 0xb81   : > { %v6545_v6 = vpop.eup %6544 }
 0xb82   : > { %v6547_v44 = vpop.eup %6546  ;;  %v2915_v47 = vmul.f32 %v6545_v6, %v2913_v40  ;;  %6548 = vrcp.f32 %v2952_v19  ;;  %vm2920_vm3 = vweird.f32 %v6545_v6  ;;  %v2964_v7 = vand.u32 2147483648, %v2952_v19 }
 0xb83   : > { %v2934_v57 = vmul.f32 %v6547_v44, %v2932_v20  ;;  %6550 = vtanh.f32 %v2908_v56  ;;  %vm2939_vm4 = vweird.f32 %v6547_v44  ;;  %vm2921_vm7 = vmor %vm2919_vm5, %vm2920_vm3  ;;  %vm2958_vm13 = vweird.f32 %v2952_v19 }
 0xb84   : > { %v2916_v43 = vsub.f32 1.0, %v2915_v47  ;;  %vm2940_vm8 = vmor %vm2938_vm6, %vm2939_vm4  ;;  %v2962_v11 = vand.u32 2147483647, %v2952_v19  ;;  %v2965_v13 = vor.u32 1.1754944e-38, %v2964_v7 }
 0xb85   : > { %v2935_v14 = vsub.f32 1.0, %v2934_v57 }
 0xb86   : > { %v2917_v53 = vmul.f32 %v6545_v6, %v2916_v43  ;;  %vm2963_vm15 = vcmp.eq.f32.partialorder %v2962_v11, 8.507059e+37 }
 0xb87   : > { %v2936_v55 = vmul.f32 %v6547_v44, %v2935_v14 }
 0xb88   : > { %v6549_v50 = vpop.eup %6548  ;;  %v2918_v28 = vadd.f32 %v6545_v6, %v2917_v53 }
 0xb89   : > { %v2937_v31 = vadd.f32 %v6547_v44, %v2936_v55  ;;  %v2954_v48 = vmul.f32 %v6549_v50, %v2952_v19  ;;  %v6551_v45 = vpop.eup %6550  ;;  %vm2959_vm12 = vweird.f32 %v6549_v50 }
 0xb8a   : > { %v2922_v63 = vsel %vm2921_vm7, %v6545_v6, %v2918_v28  ;;  %vm2960_vm14 = vmor %vm2958_vm13, %vm2959_vm12 }
 0xb8b   : > { %v2927_v51 = vsel %vm2924_vm9, %v2926_v58, %v2922_v63  ;;  %v2941_v27 = vsel %vm2940_vm8, %v6547_v44, %v2937_v31  ;;  %v2955_v23 = vsub.f32 1.0, %v2954_v48 }
 0xb8c   : > { %v2946_v60 = vsel %vm2943_vm10, %v2945_v54, %v2941_v27  ;;  %v2970_v36 = vmul.f32 %v6551_v45, %v2927_v51 }
 0xb8d   : > { %v2969_v8 = vmul.f32 %v2946_v60, %v8340_v3  ;;  %v2956_v9 = vmul.f32 %v6549_v50, %v2955_v23 }
 0xb8f   : > { %v2971_v30 = vadd.f32 %v2970_v36, %v2969_v8  ;;  %v2957_v46 = vadd.f32 %v6549_v50, %v2956_v9 }
 0xb91   : > { %6552 = vtanh.f32 %v2971_v30  ;;  %v2981_v62 = vsel %vm2844_vm11, %v2971_v30, %v8340_v3  ;;  %v2961_v1 = vsel %vm2960_vm14, %v6549_v50, %v2957_v46 }
 0xb92   : > { %2982 = vst [vmem:[#allocation3] sm:$0xff] %v2981_v62  ;;  %v2966_v17 = vsel %vm2963_vm15, %v2965_v13, %v2961_v1 }
 0xb97   : > { %v6553_v16 = vpop.eup %6552 }
 0xb98   : > { %v2973_v22 = vmul.f32 %v6553_v16, %v2966_v17 }
 0xb9a   : > { %v2974_v25 = vsel %vm2844_vm11, %v2973_v22, 0.0  ;;  %v2978_v33 = vsel %vm2844_vm11, %v2973_v22, %v8345_v15 }
 0xb9b   : > { %5959 = vst [vmem:[%s7455_s14 + $0x78] sm:$0xff] %v2974_v25 }
 0xb9c   : > { %2979 = vst [vmem:[#allocation2] sm:$0xff] %v2978_v33 }
 0xb9d PF: > { %p5960_p13 = scmp.ne.s32.totalorder %s6845_s20, 1 }
 0xb9f   : > { %2986 = sbr.rel (%p5960_p13) target bundleno = 5783 (0x1697), region = 90 }
 0xba4   : > { %v9406_v3 = vld [vmem:[#allocation71_spill] sm:$0xff]  ;;  %v9408_v5 = vld [vmem:[#allocation74_spill] sm:$0xff]  ;;  %v9410_v41 = vld [vmem:[#allocation76_spill] sm:$0xff]  ;;  %v6857_v44 = vmov 0  }
 0xba5   : > { %v9407_v24 = vld [vmem:[#allocation75_spill] sm:$0xff]  ;;  %v9409_v10 = vld [vmem:[#allocation70_spill] sm:$0xff]  ;;  %v9411_v18 = vld [vmem:[#allocation72_spill] sm:$0xff]  ;;  %6555 = vset.pattern.permute.xlu0 %v6857_v44  ;;  %6556 = vset.pattern.permute.xlu1 %v6857_v44 }
 0xba6   : > { %v8362_v34 = vor.u32 %v9407_v24, %v9406_v3  ;;  %v8366_v2 = vor.u32 %v9409_v10, %v9408_v5  ;;  %v8370_v21 = vor.u32 %v9411_v18, %v9410_v41  ;;  %v9412_v26 = vld [vmem:[#allocation73_spill] sm:$0xff]  ;;  %v9414_v37 = vld [vmem:[#allocation63_spill] sm:$0xff]  ;;  %v9416_v39 = vld [vmem:[#allocation66_spill] sm:$0xff]  ;;  %6557 = vset.pattern.permute.xlu2 %v6857_v44 }
 0xba7   : > { %v9413_v15 = vld [vmem:[#allocation77_spill] sm:$0xff]  ;;  %v9415_v35 = vld [vmem:[#allocation67_spill] sm:$0xff]  ;;  %v9417_v40 = vld [vmem:[#allocation62_spill] sm:$0xff] }
 0xba8   : > { %v8374_v29 = vor.u32 %v9413_v15, %v9412_v26  ;;  %3167 = vmatpush.bf16.msra.mxu0 %v8362_v34  ;;  %3180 = vmatpush.bf16.msra.mxu1 %v8366_v2  ;;  %v8380_v38 = vor.u32 %v9415_v35, %v9414_v37  ;;  %v8384_v20 = vor.u32 %v9417_v40, %v9416_v39  ;;  %v8389_v42 = vld [vmem:[%s9320_s0] sm:$0xff]  ;;  %v9418_v32 = vld [vmem:[#allocation68_spill] sm:$0xff]  ;;  %v9422_v47 = vld [vmem:[#allocation55_spill] sm:$0xff] }
 0xba9   : > { %3206 = vmatpush.bf16.msra.mxu3 %v8370_v21  ;;  %v9419_v4 = vld [vmem:[#allocation64_spill] sm:$0xff]  ;;  %v9420_v19 = vld [vmem:[#allocation65_spill] sm:$0xff]  ;;  %vm2992_vm0 = vcmp.gt.s32.totalorder %v8389_v42, 15  ;;  %v9423_v57 = vld [vmem:[#allocation59_spill] sm:$0xff]  ;;  %vm3296_vm1 = vcmp.gt.s32.totalorder %v8389_v42, 14  ;;  %vm4016_vm2 = vcmp.gt.s32.totalorder %v8389_v42, 9 }
 0xbaa   : > { %v8394_v49 = vor.u32 %v9419_v4, %v9418_v32  ;;  %3193 = vmatpush.bf16.msra.mxu2 %v8374_v29  ;;  %v9421_v6 = vld [vmem:[#allocation69_spill] sm:$0xff]  ;;  %v8408_v43 = vor.u32 %v9423_v57, %v9422_v47  ;;  %v9424_v14 = vld [vmem:[#allocation58_spill] sm:$0xff]  ;;  %v2993_v53 = vsel %vm2992_vm0, 1, %v6857_v44  ;;  %v9426_v59 = vld [vmem:[#allocation60_spill] sm:$0xff]  ;;  %v3297_v9 = vsel %vm3296_vm1, 1, %v6857_v44 }
 0xbab   : > { %v8399_v56 = vor.u32 %v9421_v6, %v9420_v19  ;;  %v9425_v0 = vld [vmem:[#allocation54_spill] sm:$0xff]  ;;  %v9427_v55 = vld [vmem:[#allocation56_spill] sm:$0xff]  ;;  %v9428_v50 = vld [vmem:[#allocation57_spill] sm:$0xff]  ;;  %2995 = vperm.xlu0 %6555, %v2993_v53   ;;  %v4017_v32 = vsel %vm4016_vm2, 1, %v6857_v44  ;;  %vm4448_vm3 = vcmp.gt.s32.totalorder %v8389_v42, 6  ;;  %vm4880_vm4 = vcmp.gt.s32.totalorder %v8389_v42, 3 }
 0xbac   : > { %3168 = vmatpush.bf16.msra.mxu0 %v8380_v38  ;;  %3181 = vmatpush.bf16.msra.mxu1 %v8384_v20  ;;  %v8412_v12 = vor.u32 %v9425_v0, %v9424_v14  ;;  %v8418_v61 = vor.u32 %v9427_v55, %v9426_v59  ;;  %v9429_v28 = vld [vmem:[#allocation61_spill] sm:$0xff]  ;;  %v9430_v31 = vld [vmem:[#allocation47_spill] sm:$0xff]  ;;  %v9432_v63 = vld [vmem:[#allocation50_spill] sm:$0xff]  ;;  %vm5312_vm5 = vcmp.gt.s32.totalorder %v8389_v42, 0 }
 0xbad   : > { %3207 = vmatpush.bf16.msra.mxu3 %v8394_v49  ;;  %v8423_v58 = vor.u32 %v9429_v28, %v9428_v50  ;;  %v9431_v48 = vld [vmem:[#allocation51_spill] sm:$0xff]  ;;  %v9433_v45 = vld [vmem:[#allocation46_spill] sm:$0xff]  ;;  %v9434_v27 = vld [vmem:[#allocation52_spill] sm:$0xff] }
 0xbae   : > { %3194 = vmatpush.bf16.msra.mxu2 %v8399_v56  ;;  %v8430_v54 = vor.u32 %v9431_v48, %v9430_v31  ;;  %v8434_v51 = vor.u32 %v9433_v45, %v9432_v63  ;;  %v9435_v23 = vld [vmem:[#allocation48_spill] sm:$0xff]  ;;  %v9436_v36 = vld [vmem:[#allocation49_spill] sm:$0xff]  ;;  %v9438_v30 = vld [vmem:[#allocation39_spill] sm:$0xff] }
 0xbaf   : > { %v8440_v60 = vor.u32 %v9435_v23, %v9434_v27  ;;  %v9437_v52 = vld [vmem:[#allocation53_spill] sm:$0xff]  ;;  %v9439_v46 = vld [vmem:[#allocation43_spill] sm:$0xff]  ;;  %v9440_v7 = vld [vmem:[#allocation42_spill] sm:$0xff] }
 0xbb0   : > { %3169 = vmatpush.bf16.msra.mxu0 %v8408_v43  ;;  %3182 = vmatpush.bf16.msra.mxu1 %v8412_v12  ;;  %v8445_v8 = vor.u32 %v9437_v52, %v9436_v36  ;;  %v8452_v62 = vor.u32 %v9439_v46, %v9438_v30  ;;  %v9441_v11 = vld [vmem:[#allocation38_spill] sm:$0xff]  ;;  %v9442_v13 = vld [vmem:[#allocation44_spill] sm:$0xff]  ;;  %v9444_v22 = vld [vmem:[#allocation41_spill] sm:$0xff] }
 0xbb1   : > { %3208 = vmatpush.bf16.msra.mxu3 %v8418_v61  ;;  %v8456_v1 = vor.u32 %v9441_v11, %v9440_v7  ;;  %v9443_v16 = vld [vmem:[#allocation40_spill] sm:$0xff]  ;;  %v9445_v25 = vld [vmem:[#allocation45_spill] sm:$0xff]  ;;  %v9446_v3 = vld [vmem:[#allocation31_spill] sm:$0xff] }
 0xbb2   : > { %3195 = vmatpush.bf16.msra.mxu2 %v8423_v58  ;;  %v8461_v17 = vor.u32 %v9443_v16, %v9442_v13  ;;  %v8466_v33 = vor.u32 %v9445_v25, %v9444_v22  ;;  %v9447_v24 = vld [vmem:[#allocation35_spill] sm:$0xff]  ;;  %v9448_v10 = vld [vmem:[#allocation34_spill] sm:$0xff]  ;;  %v9450_v26 = vld [vmem:[#allocation36_spill] sm:$0xff]  ;;  %v4449_v16 = vsel %vm4448_vm3, 1, %v6857_v44  ;;  %v4881_v22 = vsel %vm4880_vm4, 1, %v6857_v44 }
 0xbb3   : > { %3299 = vperm.xlu0 %6555, %v3297_v9   ;;  %v8472_v5 = vor.u32 %v9447_v24, %v9446_v3  ;;  %v9449_v41 = vld [vmem:[#allocation30_spill] sm:$0xff]  ;;  %v9451_v15 = vld [vmem:[#allocation32_spill] sm:$0xff]  ;;  %v9452_v35 = vld [vmem:[#allocation33_spill] sm:$0xff]  ;;  %v5313_v25 = vsel %vm5312_vm5, 1, %v6857_v44  ;;  %vm3440_vm3 = vcmp.gt.s32.totalorder %v8389_v42, 13  ;;  %vm3584_vm4 = vcmp.gt.s32.totalorder %v8389_v42, 12 }
 0xbb4   : > { %3170 = vmatpush.bf16.msra.mxu0 %v8430_v54  ;;  %3183 = vmatpush.bf16.msra.mxu1 %v8434_v51  ;;  %v8476_v18 = vor.u32 %v9449_v41, %v9448_v10  ;;  %v8482_v37 = vor.u32 %v9451_v15, %v9450_v26  ;;  %v9453_v39 = vld [vmem:[#allocation37_spill] sm:$0xff]  ;;  %v9454_v4 = vld [vmem:[#allocation23_spill] sm:$0xff]  ;;  %v9456_v47 = vld [vmem:[#allocation26_spill] sm:$0xff] }
 0xbb5   : > { %3209 = vmatpush.bf16.msra.mxu3 %v8440_v60  ;;  %v8487_v40 = vor.u32 %v9453_v39, %v9452_v35  ;;  %v9455_v19 = vld [vmem:[#allocation27_spill] sm:$0xff]  ;;  %v9457_v57 = vld [vmem:[#allocation22_spill] sm:$0xff]  ;;  %v9458_v0 = vld [vmem:[#allocation28_spill] sm:$0xff] }
 0xbb6   : > { %3196 = vmatpush.bf16.msra.mxu2 %v8445_v8  ;;  %v8494_v6 = vor.u32 %v9455_v19, %v9454_v4  ;;  %v8498_v14 = vor.u32 %v9457_v57, %v9456_v47  ;;  %v9459_v53 = vld [vmem:[#allocation24_spill] sm:$0xff]  ;;  %v9460_v55 = vld [vmem:[#allocation25_spill] sm:$0xff]  ;;  %v9463_v48 = vld [vmem:[#allocation15_spill] sm:$0xff] }
 0xbb7   : > { %v8503_v59 = vor.u32 %v9459_v53, %v9458_v0  ;;  %v9461_v50 = vld [vmem:[#allocation29_spill] sm:$0xff]  ;;  %v9462_v31 = vld [vmem:[#allocation8_spill] sm:$0xff]  ;;  %v9464_v45 = vld [vmem:[#allocation14_spill] sm:$0xff] }
 0xbb8   : > { %3171 = vmatpush.bf16.msra.mxu0 %v8452_v62  ;;  %3184 = vmatpush.bf16.msra.mxu1 %v8456_v1  ;;  %v8508_v28 = vor.u32 %v9461_v50, %v9460_v55  ;;  %v8514_v63 = vor.u32 %v9463_v48, %v9462_v31  ;;  %v9465_v27 = vld [vmem:[#allocation7_spill] sm:$0xff]  ;;  %v8520_v36 = vld [vmem:[#allocation2] sm:$0xff]  ;;  %v9466_v52 = vld [vmem:[#allocation18_spill] sm:$0xff] }
 0xbb9   : > { %3210 = vmatpush.bf16.msra.mxu3 %v8461_v17  ;;  %v8518_v23 = vor.u32 %v9465_v27, %v9464_v45  ;;  %v9467_v9 = vld [vmem:[#allocation10_spill] sm:$0xff]  ;;  %v9468_v46 = vld [vmem:[#allocation11_spill] sm:$0xff]  ;;  %v3006_v13 = vpack.c.bf16 %v8520_v36, %v8520_v36  ;;  %v5961_v3 = vld [vmem:[%s7452_s13 + $0xf0] sm:$0xff] }
 0xbba   : > { %3197 = vmatpush.bf16.msra.mxu2 %v8466_v33  ;;  %v8526_v30 = vor.u32 %v9467_v9, %v9466_v52  ;;  %v9469_v7 = vld [vmem:[#allocation19_spill] sm:$0xff]  ;;  %v3001_v24 = vunpack.c.l.bf16 %v5961_v3  ;;  %v3002_v10 = vunpack.c.h.bf16 %v5961_v3  ;;  %v5962_v39 = vld [vmem:[%s7452_s13 + $0xf8] sm:$0xff] }
 0xbbb   : > { %4019 = vperm.xlu0 %6555, %v4017_v32   ;;  %v8531_v11 = vor.u32 %v9469_v7, %v9468_v46  ;;  %v3004_v19 = vunpack.c.h.bf16 %v5962_v39  ;;  %v3003_v52 = vunpack.c.l.bf16 %v5962_v39 }
 0xbbc   : > { %3172 = vmatpush.bf16.msra.mxu0 %v8472_v5  ;;  %3185 = vmatpush.bf16.msra.mxu1 %v8476_v18 }
 0xbbd   : > { %3211 = vmatpush.bf16.msra.mxu3 %v8482_v37 }
 0xbbe   : > { %3198 = vmatpush.bf16.msra.mxu2 %v8487_v40 }
 0xbc0   : > { %3173 = vmatpush.bf16.msra.mxu0 %v8494_v6  ;;  %3186 = vmatpush.bf16.msra.mxu1 %v8498_v14 }
 0xbc1   : > { %3212 = vmatpush.bf16.msra.mxu3 %v8503_v59 }
 0xbc2   : > { %3199 = vmatpush.bf16.msra.mxu2 %v8508_v28 }
 0xbc3   : > { %4451 = vperm.xlu0 %6555, %v4449_v16  }
 0xbc4   : > { %3174 = vmatpush.bf16.msra.mxu0 %v8514_v63  ;;  %3187 = vmatpush.bf16.msra.mxu1 %v8518_v23 }
 0xbc5   : > { %3213 = vmatpush.bf16.msra.mxu3 %v8526_v30 }
 0xbc6   : > { %3200 = vmatpush.bf16.msra.mxu2 %v8531_v11 }
 0xbc7   : > { %3175 = vmatmul.bf16.vlgmr.msra.gmra.mxu0 %v3006_v13  ;;  %3188 = vmatmul.bf16.vlgmr.msra.gmra.mxu1 %v3006_v13 }
 0xbc8   : > { %3311 = vmatpush.bf16.msrb.mxu0 %v8362_v34  ;;  %3214 = vmatmul.bf16.vlgmr.msra.gmra.mxu3 %v3006_v13 }
 0xbc9   : > { %3201 = vmatmul.bf16.vlgmr.msra.gmra.mxu2 %v3006_v13  ;;  %3324 = vmatpush.bf16.msrb.mxu1 %v8366_v2 }
 0xbca   : > { %3337 = vmatpush.bf16.msrb.mxu2 %v8374_v29  ;;  %3350 = vmatpush.bf16.msrb.mxu3 %v8370_v21 }
 0xbcb   : > { %4883 = vperm.xlu0 %6555, %v4881_v22  }
 0xbcc   : > { %3312 = vmatpush.bf16.msrb.mxu0 %v8380_v38 }
 0xbcd   : > { %3325 = vmatpush.bf16.msrb.mxu1 %v8384_v20 }
 0xbce   : > { %3338 = vmatpush.bf16.msrb.mxu2 %v8399_v56  ;;  %3351 = vmatpush.bf16.msrb.mxu3 %v8394_v49 }
 0xbd0   : > { %3313 = vmatpush.bf16.msrb.mxu0 %v8408_v43 }
 0xbd1   : > { %3326 = vmatpush.bf16.msrb.mxu1 %v8412_v12 }
 0xbd2   : > { %3339 = vmatpush.bf16.msrb.mxu2 %v8423_v58  ;;  %3352 = vmatpush.bf16.msrb.mxu3 %v8418_v61 }
 0xbd3   : > { %5315 = vperm.xlu0 %6555, %v5313_v25  }
 0xbd4   : > { %3314 = vmatpush.bf16.msrb.mxu0 %v8430_v54 }
 0xbd5   : > { %3327 = vmatpush.bf16.msrb.mxu1 %v8434_v51 }
 0xbd6   : > { %3340 = vmatpush.bf16.msrb.mxu2 %v8445_v8  ;;  %3353 = vmatpush.bf16.msrb.mxu3 %v8440_v60 }
 0xbd8   : > { %3315 = vmatpush.bf16.msrb.mxu0 %v8452_v62 }
 0xbd9   : > { %3328 = vmatpush.bf16.msrb.mxu1 %v8456_v1 }
 0xbda   : > { %3341 = vmatpush.bf16.msrb.mxu2 %v8466_v33  ;;  %3354 = vmatpush.bf16.msrb.mxu3 %v8461_v17 }
 0xbdc   : > { %3316 = vmatpush.bf16.msrb.mxu0 %v8472_v5 }
 0xbdd   : > { %3329 = vmatpush.bf16.msrb.mxu1 %v8476_v18 }
 0xbde   : > { %3342 = vmatpush.bf16.msrb.mxu2 %v8487_v40  ;;  %3355 = vmatpush.bf16.msrb.mxu3 %v8482_v37 }
 0xbe0   : > { %3317 = vmatpush.bf16.msrb.mxu0 %v8494_v6 }
 0xbe1   : > { %3330 = vmatpush.bf16.msrb.mxu1 %v8498_v14 }
 0xbe2   : > { %3343 = vmatpush.bf16.msrb.mxu2 %v8508_v28  ;;  %3356 = vmatpush.bf16.msrb.mxu3 %v8503_v59 }
 0xbe4   : > { %3318 = vmatpush.bf16.msrb.mxu0 %v8514_v63 }
 0xbe5   : > { %3331 = vmatpush.bf16.msrb.mxu1 %v8518_v23 }
 0xbe6   : > { %3344 = vmatpush.bf16.msrb.mxu2 %v8531_v11  ;;  %3357 = vmatpush.bf16.msrb.mxu3 %v8526_v30 }
 0xbe8   : > { %3455 = vmatpush.bf16.msra.mxu0 %v8362_v34 }
 0xbe9   : > { %3468 = vmatpush.bf16.msra.mxu1 %v8366_v2 }
 0xbea   : > { %3481 = vmatpush.bf16.msra.mxu2 %v8374_v29  ;;  %3494 = vmatpush.bf16.msra.mxu3 %v8370_v21 }
 0xbec   : > { %3456 = vmatpush.bf16.msra.mxu0 %v8380_v38 }
 0xbed   : > { %3469 = vmatpush.bf16.msra.mxu1 %v8384_v20 }
 0xbee   : > { %3482 = vmatpush.bf16.msra.mxu2 %v8399_v56  ;;  %3495 = vmatpush.bf16.msra.mxu3 %v8394_v49 }
 0xbf0   : > { %3457 = vmatpush.bf16.msra.mxu0 %v8408_v43 }
 0xbf1   : > { %3470 = vmatpush.bf16.msra.mxu1 %v8412_v12 }
 0xbf2   : > { %3483 = vmatpush.bf16.msra.mxu2 %v8423_v58  ;;  %3496 = vmatpush.bf16.msra.mxu3 %v8418_v61 }
 0xbf4   : > { %3458 = vmatpush.bf16.msra.mxu0 %v8430_v54 }
 0xbf5   : > { %3471 = vmatpush.bf16.msra.mxu1 %v8434_v51 }
 0xbf6   : > { %3484 = vmatpush.bf16.msra.mxu2 %v8445_v8  ;;  %3497 = vmatpush.bf16.msra.mxu3 %v8440_v60 }
 0xbf8   : > { %3459 = vmatpush.bf16.msra.mxu0 %v8452_v62 }
 0xbf9   : > { %3472 = vmatpush.bf16.msra.mxu1 %v8456_v1 }
 0xbfa   : > { %3485 = vmatpush.bf16.msra.mxu2 %v8466_v33  ;;  %3498 = vmatpush.bf16.msra.mxu3 %v8461_v17 }
 0xbfc   : > { %3460 = vmatpush.bf16.msra.mxu0 %v8472_v5 }
 0xbfd   : > { %3473 = vmatpush.bf16.msra.mxu1 %v8476_v18 }
 0xbfe   : > { %3486 = vmatpush.bf16.msra.mxu2 %v8487_v40  ;;  %3499 = vmatpush.bf16.msra.mxu3 %v8482_v37 }
 0xc00   : > { %3461 = vmatpush.bf16.msra.mxu0 %v8494_v6 }
 0xc01   : > { %3474 = vmatpush.bf16.msra.mxu1 %v8498_v14 }
 0xc02   : > { %3487 = vmatpush.bf16.msra.mxu2 %v8508_v28  ;;  %3500 = vmatpush.bf16.msra.mxu3 %v8503_v59 }
 0xc04   : > { %3462 = vmatpush.bf16.msra.mxu0 %v8514_v63 }
 0xc05   : > { %3475 = vmatpush.bf16.msra.mxu1 %v8518_v23 }
 0xc06   : > { %3488 = vmatpush.bf16.msra.mxu2 %v8531_v11  ;;  %3501 = vmatpush.bf16.msra.mxu3 %v8526_v30 }
 0xc44   : > { %v3176_v41 = vpop.f32.mrf.mxu0  ;;  %v3189_v26 = vpop.f32.mrf.mxu1 }
 0xc45   : > { %v3219_v15 = vadd.f32 %v3176_v41, %v3001_v24  ;;  %v3220_v35 = vadd.f32 %v3189_v26, %v3002_v10 }
 0xc47   : > { %v6091_v32 = vmul.f32 -1.442695, %v3219_v15  ;;  %v6092_v4 = vmul.f32 -1.442695, %v3220_v35 }
 0xc49   : > { %6558 = vpow2.f32 %v6091_v32 }
 0xc4a   : > { %6560 = vpow2.f32 %v6092_v4 }
 0xc4b   : > { %v3215_v47 = vpop.f32.mrf.mxu3 }
 0xc4c   : > { %v3202_v57 = vpop.f32.mrf.mxu2  ;;  %v3222_v0 = vadd.f32 %v3215_v47, %v3004_v19  ;;  %v3178_v53 = vpop.f32.mrf.mxu0 }
 0xc4d   : > { %v3191_v55 = vpop.f32.mrf.mxu1  ;;  %v3221_v13 = vadd.f32 %v3202_v57, %v3003_v52 }
 0xc4e   : > { %v6093_v50 = vmul.f32 -1.442695, %v3222_v0 }
 0xc4f   : > { %v6559_v31 = vpop.eup %6558 }
 0xc50   : > { %v6561_v48 = vpop.eup %6560  ;;  %v3226_v45 = vadd.f32 1.0, %v6559_v31  ;;  %6562 = vpow2.f32 %v6093_v50 }
 0xc51   : > { %v3245_v27 = vadd.f32 1.0, %v6561_v48  ;;  %v3281_v48 = vld [vmem:[#allocation3] sm:$0xff] }
 0xc52   : > { %6564 = vrcp.f32 %v3226_v45  ;;  %v3238_v26 = vand.u32 2147483648, %v3226_v45  ;;  %v3236_v32 = vand.u32 2147483647, %v3226_v45  ;;  %vm3232_vm8 = vweird.f32 %v3226_v45 }
 0xc53   : > { %6566 = vrcp.f32 %v3245_v27  ;;  %v3217_v9 = vpop.f32.mrf.mxu3  ;;  %v3257_v15 = vand.u32 2147483648, %v3245_v27  ;;  %v3255_v4 = vand.u32 2147483647, %v3245_v27  ;;  %vm3251_vm9 = vweird.f32 %v3245_v27 }
 0xc54   : > { %v3204_v46 = vpop.f32.mrf.mxu2  ;;  %v3239_v53 = vor.u32 1.1754944e-38, %v3238_v26  ;;  %vm3237_vm12 = vcmp.eq.f32.partialorder %v3236_v32, 8.507059e+37 }
 0xc55   : > { %v3258_v50 = vor.u32 1.1754944e-38, %v3257_v15  ;;  %vm3256_vm13 = vcmp.eq.f32.partialorder %v3255_v4, 8.507059e+37 }
 0xc56   : > { %v6563_v7 = vpop.eup %6562 }
 0xc57   : > { %v3265_v16 = vadd.f32 1.0, %v6563_v7 }
 0xc58   : > { %v6565_v22 = vpop.eup %6564 }
 0xc59   : > { %v6567_v25 = vpop.eup %6566  ;;  %v3228_v3 = vmul.f32 %v6565_v22, %v3226_v45  ;;  %6568 = vrcp.f32 %v3265_v16  ;;  %vm3233_vm6 = vweird.f32 %v6565_v22  ;;  %vm3271_vm0 = vweird.f32 %v3265_v16 }
 0xc5a   : > { %v3247_v24 = vmul.f32 %v6567_v25, %v3245_v27  ;;  %6570 = vtanh.f32 %v3221_v13  ;;  %vm3252_vm7 = vweird.f32 %v6567_v25  ;;  %vm3234_vm10 = vmor %vm3232_vm8, %vm3233_vm6  ;;  %v3275_v26 = vand.u32 2147483647, %v3265_v16 }
 0xc5b   : > { %v3229_v10 = vsub.f32 1.0, %v3228_v3  ;;  %vm3253_vm11 = vmor %vm3251_vm9, %vm3252_vm7  ;;  %v2996_v3 = vpop.permute.xlu0 %2995 }
 0xc5c   : > { %v3248_v41 = vsub.f32 1.0, %v3247_v24  ;;  %vm2997_vm14 = vcmp.eq.s32.totalorder %v2996_v3, 1  ;;  %vm3276_vm2 = vcmp.eq.f32.partialorder %v3275_v26, 8.507059e+37 }
 0xc5d   : > { %v3230_v35 = vmul.f32 %v6565_v22, %v3229_v10 }
 0xc5e   : > { %v3249_v39 = vmul.f32 %v6567_v25, %v3248_v41  ;;  %v3277_v41 = vand.u32 2147483648, %v3265_v16 }
 0xc5f   : > { %v6569_v19 = vpop.eup %6568  ;;  %v3231_v47 = vadd.f32 %v6565_v22, %v3230_v35 }
 0xc60   : > { %v6571_v57 = vpop.eup %6570  ;;  %v3267_v0 = vmul.f32 %v6569_v19, %v3265_v16  ;;  %v3250_v55 = vadd.f32 %v6567_v25, %v3249_v39  ;;  %vm3272_vm15 = vweird.f32 %v6569_v19  ;;  %v3278_v15 = vor.u32 1.1754944e-38, %v3277_v41 }
 0xc61   : > { %v3235_v31 = vsel %vm3234_vm10, %v6565_v22, %v3231_v47  ;;  %vm3273_vm1 = vmor %vm3271_vm0, %vm3272_vm15 }
 0xc62   : > { %v3268_v52 = vsub.f32 1.0, %v3267_v0  ;;  %v3240_v9 = vsel %vm3237_vm12, %v3239_v53, %v3235_v31  ;;  %v3254_v46 = vsel %vm3253_vm11, %v6567_v25, %v3250_v55  ;;  %v6096_v31 = vld [vmem:[%s7452_s13 + $0xe8] sm:$0xff]  ;;  %vm4160_vm12 = vcmp.gt.s32.totalorder %v8389_v42, 8 }
 0xc63   : > { %v3259_v7 = vsel %vm3256_vm13, %v3258_v50, %v3254_v46  ;;  %v3283_v13 = vmul.f32 %v6571_v57, %v3240_v9  ;;  %v3308_v9 = vunpack.c.h.bf16 %v6096_v31 }
 0xc64   : > { %v3269_v24 = vmul.f32 %v6569_v19, %v3268_v52  ;;  %v3282_v45 = vmul.f32 %v3281_v48, %v3259_v7 }
 0xc66   : > { %v3284_v27 = vadd.f32 %v3283_v13, %v3282_v45  ;;  %v3270_v10 = vadd.f32 %v6569_v19, %v3269_v24 }
 0xc68   : > { %6572 = vtanh.f32 %v3284_v27  ;;  %v8611_v22 = vsel %vm2997_vm14, %v3284_v27, %v3281_v48  ;;  %v3274_v25 = vsel %vm3273_vm1, %v6569_v19, %v3270_v10  ;;  %vm4592_vm1 = vcmp.gt.s32.totalorder %v8389_v42, 5 }
 0xc69   : > { %v3279_v32 = vsel %vm3276_vm2, %v3278_v15, %v3274_v25 }
 0xc6e   : > { %v6573_v35 = vpop.eup %6572 }
 0xc6f   : > { %v3286_v39 = vmul.f32 %v6573_v35, %v3279_v32  ;;  %v3307_v35 = vunpack.c.l.bf16 %v6096_v31  ;;  %v3585_v31 = vsel %vm3584_vm4, 1, %v6857_v44  ;;  %vm5024_vm4 = vcmp.gt.s32.totalorder %v8389_v42, 2  ;;  %v6101_v42 = vld [vmem:[%s7452_s13 + $0xd0] sm:$0xff] }
 0xc71   : > { %v3287_v4 = vsel %vm2997_vm14, %v3286_v39, 0.0  ;;  %v8616_v47 = vsel %vm2997_vm14, %v3286_v39, %v8520_v36  ;;  %v6095_v36 = vld [vmem:[%s7452_s13 + $0xe0] sm:$0xff]  ;;  %v3441_v39 = vsel %vm3440_vm3, 1, %v6857_v44 }
 0xc72   : > { %6094 = vst [vmem:[%s7455_s14 + $0x78] sm:$0xff] %v3287_v4  ;;  %v3310_v57 = vpack.c.bf16 %v8616_v47, %v8616_v47  ;;  %v3305_v16 = vunpack.c.l.bf16 %v6095_v36  ;;  %v3306_v19 = vunpack.c.h.bf16 %v6095_v36  ;;  %3443 = vperm.xlu1 %6556, %v3441_v39  }
 0xc74   : > { %3319 = vmatmul.bf16.vlgmr.msrb.gmra.mxu0 %v3310_v57  ;;  %3332 = vmatmul.bf16.vlgmr.msrb.gmra.mxu1 %v3310_v57 }
 0xc75   : > { %3345 = vmatmul.bf16.vlgmr.msrb.gmra.mxu2 %v3310_v57  ;;  %3358 = vmatmul.bf16.vlgmr.msrb.gmra.mxu3 %v3310_v57 }
 0xc76   : > { %3599 = vmatpush.bf16.msrb.mxu0 %v8362_v34  ;;  %3612 = vmatpush.bf16.msrb.mxu1 %v8366_v2 }
 0xc77   : > { %3625 = vmatpush.bf16.msrb.mxu2 %v8374_v29  ;;  %3638 = vmatpush.bf16.msrb.mxu3 %v8370_v21 }
 0xc7a   : > { %3600 = vmatpush.bf16.msrb.mxu0 %v8380_v38  ;;  %3613 = vmatpush.bf16.msrb.mxu1 %v8384_v20 }
 0xc7b   : > { %3626 = vmatpush.bf16.msrb.mxu2 %v8399_v56  ;;  %3639 = vmatpush.bf16.msrb.mxu3 %v8394_v49 }
 0xc7c   : > { %3587 = vperm.xlu1 %6556, %v3585_v31  }
 0xc7e   : > { %3601 = vmatpush.bf16.msrb.mxu0 %v8408_v43  ;;  %3614 = vmatpush.bf16.msrb.mxu1 %v8412_v12 }
 0xc7f   : > { %3627 = vmatpush.bf16.msrb.mxu2 %v8423_v58  ;;  %3640 = vmatpush.bf16.msrb.mxu3 %v8418_v61 }
 0xc82   : > { %3602 = vmatpush.bf16.msrb.mxu0 %v8430_v54  ;;  %3615 = vmatpush.bf16.msrb.mxu1 %v8434_v51 }
 0xc83   : > { %3628 = vmatpush.bf16.msrb.mxu2 %v8445_v8  ;;  %3641 = vmatpush.bf16.msrb.mxu3 %v8440_v60 }
 0xc86   : > { %3603 = vmatpush.bf16.msrb.mxu0 %v8452_v62  ;;  %3616 = vmatpush.bf16.msrb.mxu1 %v8456_v1 }
 0xc87   : > { %3629 = vmatpush.bf16.msrb.mxu2 %v8466_v33  ;;  %3642 = vmatpush.bf16.msrb.mxu3 %v8461_v17 }
 0xc8a   : > { %3604 = vmatpush.bf16.msrb.mxu0 %v8472_v5  ;;  %3617 = vmatpush.bf16.msrb.mxu1 %v8476_v18 }
 0xc8b   : > { %3630 = vmatpush.bf16.msrb.mxu2 %v8487_v40  ;;  %3643 = vmatpush.bf16.msrb.mxu3 %v8482_v37 }
 0xc8e   : > { %3605 = vmatpush.bf16.msrb.mxu0 %v8494_v6  ;;  %3618 = vmatpush.bf16.msrb.mxu1 %v8498_v14 }
 0xc8f   : > { %3631 = vmatpush.bf16.msrb.mxu2 %v8508_v28  ;;  %3644 = vmatpush.bf16.msrb.mxu3 %v8503_v59 }
 0xc92   : > { %3606 = vmatpush.bf16.msrb.mxu0 %v8514_v63  ;;  %3619 = vmatpush.bf16.msrb.mxu1 %v8518_v23 }
 0xc93   : > { %3632 = vmatpush.bf16.msrb.mxu2 %v8531_v11  ;;  %3645 = vmatpush.bf16.msrb.mxu3 %v8526_v30 }
 0xcf1   : > { %v3320_v0 = vpop.f32.mrf.mxu0  ;;  %v3333_v53 = vpop.f32.mrf.mxu1 }
 0xcf2   : > { %v3363_v55 = vadd.f32 %v3320_v0, %v3305_v16  ;;  %v3364_v50 = vadd.f32 %v3333_v53, %v3306_v19 }
 0xcf4   : > { %v6097_v48 = vmul.f32 -1.442695, %v3363_v55  ;;  %v6098_v52 = vmul.f32 -1.442695, %v3364_v50 }
 0xcf6   : > { %6574 = vpow2.f32 %v6097_v48 }
 0xcf7   : > { %6576 = vpow2.f32 %v6098_v52 }
 0xcf8   : > { %v3346_v46 = vpop.f32.mrf.mxu2  ;;  %v3359_v7 = vpop.f32.mrf.mxu3 }
 0xcf9   : > { %v3366_v13 = vadd.f32 %v3359_v7, %v3308_v9  ;;  %v3322_v3 = vpop.f32.mrf.mxu0  ;;  %v3335_v24 = vpop.f32.mrf.mxu1  ;;  %v3365_v36 = vadd.f32 %v3346_v46, %v3307_v35 }
 0xcfb   : > { %v6099_v45 = vmul.f32 -1.442695, %v3366_v13 }
 0xcfc   : > { %v6575_v27 = vpop.eup %6574 }
 0xcfd   : > { %v6577_v10 = vpop.eup %6576  ;;  %v3370_v41 = vadd.f32 1.0, %v6575_v27  ;;  %6578 = vpow2.f32 %v6099_v45 }
 0xcfe   : > { %v3389_v26 = vadd.f32 1.0, %v6577_v10 }
 0xcff   : > { %6580 = vrcp.f32 %v3370_v41  ;;  %v3382_v50 = vand.u32 2147483648, %v3370_v41  ;;  %v3380_v9 = vand.u32 2147483647, %v3370_v41  ;;  %vm3376_vm7 = vweird.f32 %v3370_v41 }
 0xd00   : > { %6582 = vrcp.f32 %v3389_v26  ;;  %v3348_v25 = vpop.f32.mrf.mxu2  ;;  %v3361_v15 = vpop.f32.mrf.mxu3  ;;  %v3401_v48 = vand.u32 2147483648, %v3389_v26  ;;  %v3399_v13 = vand.u32 2147483647, %v3389_v26  ;;  %vm3395_vm8 = vweird.f32 %v3389_v26 }
 0xd01   : > { %v3383_v24 = vor.u32 1.1754944e-38, %v3382_v50  ;;  %vm3381_vm11 = vcmp.eq.f32.partialorder %v3380_v9, 8.507059e+37  ;;  %v4593_v9 = vsel %vm4592_vm1, 1, %v6857_v44 }
 0xd02   : > { %v3402_v10 = vor.u32 1.1754944e-38, %v3401_v48  ;;  %vm3400_vm13 = vcmp.eq.f32.partialorder %v3399_v13, 8.507059e+37 }
 0xd03   : > { %v6579_v32 = vpop.eup %6578 }
 0xd04   : > { %v3409_v4 = vadd.f32 1.0, %v6579_v32 }
 0xd05   : > { %v6581_v57 = vpop.eup %6580 }
 0xd06   : > { %v6583_v16 = vpop.eup %6582  ;;  %v3372_v19 = vmul.f32 %v6581_v57, %v3370_v41  ;;  %6584 = vrcp.f32 %v3409_v4  ;;  %vm3377_vm5 = vweird.f32 %v6581_v57  ;;  %vm3415_vm0 = vweird.f32 %v3409_v4 }
 0xd07   : > { %v3391_v0 = vmul.f32 %v6583_v16, %v3389_v26  ;;  %6586 = vtanh.f32 %v3365_v36  ;;  %vm3396_vm6 = vweird.f32 %v6583_v16  ;;  %vm3378_vm9 = vmor %vm3376_vm7, %vm3377_vm5  ;;  %v3419_v31 = vand.u32 2147483647, %v3409_v4 }
 0xd08   : > { %v3373_v53 = vsub.f32 1.0, %v3372_v19  ;;  %vm3397_vm10 = vmor %vm3395_vm8, %vm3396_vm6 }
 0xd09   : > { %v3392_v55 = vsub.f32 1.0, %v3391_v0  ;;  %v4161_v0 = vsel %vm4160_vm12, 1, %v6857_v44  ;;  %vm3420_vm3 = vcmp.eq.f32.partialorder %v3419_v31, 8.507059e+37 }
 0xd0a   : > { %v3374_v52 = vmul.f32 %v6581_v57, %v3373_v53  ;;  %v3300_v53 = vpop.permute.xlu0 %3299  ;;  %4163 = vperm.xlu1 %6556, %v4161_v0  }
 0xd0b   : > { %v3393_v7 = vmul.f32 %v6583_v16, %v3392_v55  ;;  %vm3301_vm14 = vcmp.eq.s32.totalorder %v3300_v53, 1 }
 0xd0c   : > { %v6585_v46 = vpop.eup %6584  ;;  %v3375_v3 = vadd.f32 %v6581_v57, %v3374_v52 }
 0xd0d   : > { %v3394_v45 = vadd.f32 %v6583_v16, %v3393_v7  ;;  %v3411_v27 = vmul.f32 %v6585_v46, %v3409_v4  ;;  %v6587_v15 = vpop.eup %6586  ;;  %vm3416_vm15 = vweird.f32 %v6585_v46 }
 0xd0e   : > { %v3379_v25 = vsel %vm3378_vm9, %v6581_v57, %v3375_v3  ;;  %vm3417_vm2 = vmor %vm3415_vm0, %vm3416_vm15 }
 0xd0f   : > { %v3384_v35 = vsel %vm3381_vm11, %v3383_v24, %v3379_v25  ;;  %v3398_v32 = vsel %vm3397_vm10, %v6583_v16, %v3394_v45  ;;  %v3412_v39 = vsub.f32 1.0, %v3411_v27  ;;  %v3421_v16 = vand.u32 2147483648, %v3409_v4 }
 0xd10   : > { %v3403_v36 = vsel %vm3400_vm13, %v3402_v10, %v3398_v32  ;;  %v3427_v19 = vmul.f32 %v6587_v15, %v3384_v35  ;;  %v3450_v45 = vunpack.c.h.bf16 %v6101_v42  ;;  %v6102_v35 = vld [vmem:[%s7452_s13 + $0xd8] sm:$0xff] }
 0xd11   : > { %v3426_v41 = vmul.f32 %v3403_v36, %v8611_v22  ;;  %v3413_v26 = vmul.f32 %v6585_v46, %v3412_v39  ;;  %v3422_v52 = vor.u32 1.1754944e-38, %v3421_v16  ;;  %v3452_v36 = vunpack.c.h.bf16 %v6102_v35 }
 0xd12   : > { %4595 = vperm.xlu1 %6556, %v4593_v9  }
 0xd13   : > { %v3428_v55 = vadd.f32 %v3427_v19, %v3426_v41  ;;  %v3414_v50 = vadd.f32 %v6585_v46, %v3413_v26 }
 0xd15   : > { %6588 = vtanh.f32 %v3428_v55  ;;  %v8664_v57 = vsel %vm3301_vm14, %v3428_v55, %v8611_v22  ;;  %v3418_v48 = vsel %vm3417_vm2, %v6585_v46, %v3414_v50  ;;  %v5025_v46 = vsel %vm5024_vm4, 1, %v6857_v44 }
 0xd16   : > { %v3423_v13 = vsel %vm3420_vm3, %v3422_v52, %v3418_v48 }
 0xd1a   : > { %5027 = vperm.xlu1 %6556, %v5025_v46  }
 0xd1b   : > { %v6589_v7 = vpop.eup %6588 }
 0xd1c   : > { %v3430_v3 = vmul.f32 %v6589_v7, %v3423_v13  ;;  %v3451_v7 = vunpack.c.l.bf16 %v6102_v35 }
 0xd1e   : > { %v3431_v24 = vsel %vm3301_vm14, %v3430_v3, 0.0  ;;  %v8671_v22 = vsel %vm3301_vm14, %v3430_v3, %v8616_v47  ;;  %v3449_v47 = vunpack.c.l.bf16 %v6101_v42 }
 0xd1f   : > { %6100 = vst [vmem:[%s7455_s14 + $0x70] sm:$0xff] %v3431_v24  ;;  %v3454_v4 = vpack.c.bf16 %v8671_v22, %v8671_v22 }
 0xd21   : > { %3463 = vmatmul.bf16.vlgmr.msra.gmra.mxu0 %v3454_v4  ;;  %3476 = vmatmul.bf16.vlgmr.msra.gmra.mxu1 %v3454_v4 }
 0xd22   : > { %3489 = vmatmul.bf16.vlgmr.msra.gmra.mxu2 %v3454_v4  ;;  %3502 = vmatmul.bf16.vlgmr.msra.gmra.mxu3 %v3454_v4 }
 0xd23   : > { %3743 = vmatpush.bf16.msra.mxu0 %v8362_v34  ;;  %3756 = vmatpush.bf16.msra.mxu1 %v8366_v2 }
 0xd24   : > { %3769 = vmatpush.bf16.msra.mxu2 %v8374_v29  ;;  %3782 = vmatpush.bf16.msra.mxu3 %v8370_v21 }
 0xd27   : > { %3744 = vmatpush.bf16.msra.mxu0 %v8380_v38  ;;  %3757 = vmatpush.bf16.msra.mxu1 %v8384_v20 }
 0xd28   : > { %3770 = vmatpush.bf16.msra.mxu2 %v8399_v56  ;;  %3783 = vmatpush.bf16.msra.mxu3 %v8394_v49 }
 0xd2b   : > { %3745 = vmatpush.bf16.msra.mxu0 %v8408_v43  ;;  %3758 = vmatpush.bf16.msra.mxu1 %v8412_v12 }
 0xd2c   : > { %3771 = vmatpush.bf16.msra.mxu2 %v8423_v58  ;;  %3784 = vmatpush.bf16.msra.mxu3 %v8418_v61 }
 0xd2f   : > { %3746 = vmatpush.bf16.msra.mxu0 %v8430_v54  ;;  %3759 = vmatpush.bf16.msra.mxu1 %v8434_v51 }
 0xd30   : > { %3772 = vmatpush.bf16.msra.mxu2 %v8445_v8  ;;  %3785 = vmatpush.bf16.msra.mxu3 %v8440_v60 }
 0xd33   : > { %3747 = vmatpush.bf16.msra.mxu0 %v8452_v62  ;;  %3760 = vmatpush.bf16.msra.mxu1 %v8456_v1 }
 0xd34   : > { %3773 = vmatpush.bf16.msra.mxu2 %v8466_v33  ;;  %3786 = vmatpush.bf16.msra.mxu3 %v8461_v17 }
 0xd37   : > { %3748 = vmatpush.bf16.msra.mxu0 %v8472_v5  ;;  %3761 = vmatpush.bf16.msra.mxu1 %v8476_v18 }
 0xd38   : > { %3774 = vmatpush.bf16.msra.mxu2 %v8487_v40  ;;  %3787 = vmatpush.bf16.msra.mxu3 %v8482_v37 }
 0xd3b   : > { %3749 = vmatpush.bf16.msra.mxu0 %v8494_v6  ;;  %3762 = vmatpush.bf16.msra.mxu1 %v8498_v14 }
 0xd3c   : > { %3775 = vmatpush.bf16.msra.mxu2 %v8508_v28  ;;  %3788 = vmatpush.bf16.msra.mxu3 %v8503_v59 }
 0xd3f   : > { %3750 = vmatpush.bf16.msra.mxu0 %v8514_v63  ;;  %3763 = vmatpush.bf16.msra.mxu1 %v8518_v23 }
 0xd40   : > { %3776 = vmatpush.bf16.msra.mxu2 %v8531_v11  ;;  %3789 = vmatpush.bf16.msra.mxu3 %v8526_v30 }
 0xd9e   : > { %v3464_v27 = vpop.f32.mrf.mxu0  ;;  %v3477_v10 = vpop.f32.mrf.mxu1 }
 0xd9f   : > { %v3507_v25 = vadd.f32 %v3464_v27, %v3449_v47  ;;  %v3508_v15 = vadd.f32 %v3477_v10, %v3450_v45 }
 0xda1   : > { %v6103_v32 = vmul.f32 -1.442695, %v3507_v25  ;;  %v6104_v39 = vmul.f32 -1.442695, %v3508_v15 }
 0xda3   : > { %6590 = vpow2.f32 %v6103_v32 }
 0xda4   : > { %6592 = vpow2.f32 %v6104_v39 }
 0xda5   : > { %v3490_v19 = vpop.f32.mrf.mxu2  ;;  %v3503_v41 = vpop.f32.mrf.mxu3 }
 0xda6   : > { %v3510_v26 = vadd.f32 %v3503_v41, %v3452_v36  ;;  %v3466_v0 = vpop.f32.mrf.mxu0  ;;  %v3479_v53 = vpop.f32.mrf.mxu1  ;;  %v3509_v4 = vadd.f32 %v3490_v19, %v3451_v7 }
 0xda8   : > { %v6105_v55 = vmul.f32 -1.442695, %v3510_v26 }
 0xda9   : > { %v6591_v50 = vpop.eup %6590 }
 0xdaa   : > { %v6593_v16 = vpop.eup %6592  ;;  %v3514_v31 = vadd.f32 1.0, %v6591_v50  ;;  %6594 = vpow2.f32 %v6105_v55 }
 0xdab   : > { %v3533_v48 = vadd.f32 1.0, %v6593_v16 }
 0xdac   : > { %6596 = vrcp.f32 %v3514_v31  ;;  %v3526_v10 = vand.u32 2147483648, %v3514_v31  ;;  %v3524_v15 = vand.u32 2147483647, %v3514_v31  ;;  %vm3520_vm7 = vweird.f32 %v3514_v31 }
 0xdad   : > { %6598 = vrcp.f32 %v3533_v48  ;;  %v3492_v52 = vpop.f32.mrf.mxu2  ;;  %v3505_v9 = vpop.f32.mrf.mxu3  ;;  %v3545_v32 = vand.u32 2147483648, %v3533_v48  ;;  %v3543_v36 = vand.u32 2147483647, %v3533_v48  ;;  %vm3539_vm9 = vweird.f32 %v3533_v48 }
 0xdae   : > { %v3527_v19 = vor.u32 1.1754944e-38, %v3526_v10  ;;  %vm3525_vm10 = vcmp.eq.f32.partialorder %v3524_v15, 8.507059e+37 }
 0xdaf   : > { %v3546_v55 = vor.u32 1.1754944e-38, %v3545_v32  ;;  %vm3544_vm12 = vcmp.eq.f32.partialorder %v3543_v36, 8.507059e+37 }
 0xdb0   : > { %v6595_v13 = vpop.eup %6594 }
 0xdb1   : > { %v3553_v3 = vadd.f32 1.0, %v6595_v13 }
 0xdb2   : > { %v6597_v24 = vpop.eup %6596 }
 0xdb3   : > { %v6599_v46 = vpop.eup %6598  ;;  %v3516_v42 = vmul.f32 %v6597_v24, %v3514_v31  ;;  %6600 = vrcp.f32 %v3553_v3  ;;  %vm3521_vm5 = vweird.f32 %v6597_v24  ;;  %vm3559_vm15 = vweird.f32 %v3553_v3 }
 0xdb4   : > { %v3535_v47 = vmul.f32 %v6599_v46, %v3533_v48  ;;  %6602 = vtanh.f32 %v3509_v4  ;;  %vm3540_vm6 = vweird.f32 %v6599_v46  ;;  %vm3522_vm8 = vmor %vm3520_vm7, %vm3521_vm5  ;;  %v3444_v4 = vpop.permute.xlu1 %3443  ;;  %v3565_v48 = vand.u32 2147483648, %v3553_v3 }
 0xdb5   : > { %v3517_v45 = vsub.f32 1.0, %v3516_v42  ;;  %vm3541_vm11 = vmor %vm3539_vm9, %vm3540_vm6  ;;  %vm3445_vm13 = vcmp.eq.s32.totalorder %v3444_v4, 1 }
 0xdb6   : > { %v3536_v27 = vsub.f32 1.0, %v3535_v47  ;;  %v3566_v10 = vor.u32 1.1754944e-38, %v3565_v48 }
 0xdb7   : > { %v3518_v25 = vmul.f32 %v6597_v24, %v3517_v45 }
 0xdb8   : > { %v3537_v39 = vmul.f32 %v6599_v46, %v3536_v27 }
 0xdb9   : > { %v6601_v35 = vpop.eup %6600  ;;  %v3519_v41 = vadd.f32 %v6597_v24, %v3518_v25 }
 0xdba   : > { %v3555_v26 = vmul.f32 %v6601_v35, %v3553_v3  ;;  %v3538_v0 = vadd.f32 %v6599_v46, %v3537_v39  ;;  %v6603_v50 = vpop.eup %6602  ;;  %vm3560_vm14 = vweird.f32 %v6601_v35 }
 0xdbb   : > { %v3523_v53 = vsel %vm3522_vm8, %v6597_v24, %v3519_v41  ;;  %vm3561_vm0 = vmor %vm3559_vm15, %vm3560_vm14 }
 0xdbc   : > { %v3528_v16 = vsel %vm3525_vm10, %v3527_v19, %v3523_v53  ;;  %v3556_v52 = vsub.f32 1.0, %v3555_v26  ;;  %v3542_v9 = vsel %vm3541_vm11, %v6599_v46, %v3538_v0  ;;  %v3563_v46 = vand.u32 2147483647, %v3553_v3  ;;  %v6108_v53 = vld [vmem:[%s7452_s13 + $0xc8] sm:$0xff] }
 0xdbd   : > { %v3571_v7 = vmul.f32 %v6603_v50, %v3528_v16  ;;  %v3547_v13 = vsel %vm3544_vm12, %v3546_v55, %v3542_v9  ;;  %v3596_v16 = vunpack.c.h.bf16 %v6108_v53 }
 0xdbe   : > { %v3557_v42 = vmul.f32 %v6601_v35, %v3556_v52  ;;  %v3570_v31 = vmul.f32 %v3547_v13, %v8664_v57  ;;  %vm3564_vm1 = vcmp.eq.f32.partialorder %v3563_v46, 8.507059e+37 }
 0xdc0   : > { %v3572_v47 = vadd.f32 %v3571_v7, %v3570_v31  ;;  %v3558_v45 = vadd.f32 %v6601_v35, %v3557_v42 }
 0xdc2   : > { %6604 = vtanh.f32 %v3572_v47  ;;  %v8715_v24 = vsel %vm3445_vm13, %v3572_v47, %v8664_v57  ;;  %v3562_v27 = vsel %vm3561_vm0, %v6601_v35, %v3558_v45 }
 0xdc3   : > { %v3567_v15 = vsel %vm3564_vm1, %v3566_v10, %v3562_v27  ;;  %v3595_v10 = vunpack.c.l.bf16 %v6108_v53 }
 0xdc8   : > { %v6605_v25 = vpop.eup %6604 }
 0xdc9   : > { %v3574_v32 = vmul.f32 %v6605_v25, %v3567_v15  ;;  %v8762_v25 = vld [vmem:[%s9320_s0] sm:$0xff] }
 0xdca   : > { %vm3728_vm2 = vcmp.gt.s32.totalorder %v8762_v25, 11  ;;  %vm3872_vm3 = vcmp.gt.s32.totalorder %v8762_v25, 10  ;;  %vm4304_vm11 = vcmp.gt.s32.totalorder %v8762_v25, 7  ;;  %vm4736_vm0 = vcmp.gt.s32.totalorder %v8762_v25, 4 }
 0xdcb   : > { %v3575_v39 = vsel %vm3445_vm13, %v3574_v32, 0.0  ;;  %v8720_v36 = vsel %vm3445_vm13, %v3574_v32, %v8671_v22  ;;  %v6107_v22 = vld [vmem:[%s7452_s13 + $0xc0] sm:$0xff]  ;;  %v3729_v32 = vsel %vm3728_vm2, 1, %v6857_v44  ;;  %v3873_v53 = vsel %vm3872_vm3, 1, %v6857_v44 }
 0xdcc   : > { %6106 = vst [vmem:[%s7455_s14 + $0x68] sm:$0xff] %v3575_v39  ;;  %v3598_v57 = vpack.c.bf16 %v8720_v36, %v8720_v36  ;;  %v3593_v3 = vunpack.c.l.bf16 %v6107_v22  ;;  %v3594_v35 = vunpack.c.h.bf16 %v6107_v22  ;;  %3731 = vperm.xlu2 %6557, %v3729_v32   ;;  %vm5168_vm3 = vcmp.gt.s32.totalorder %v8762_v25, 1 }
 0xdce   : > { %3607 = vmatmul.bf16.vlgmr.msrb.gmra.mxu0 %v3598_v57  ;;  %3620 = vmatmul.bf16.vlgmr.msrb.gmra.mxu1 %v3598_v57 }
 0xdcf   : > { %3633 = vmatmul.bf16.vlgmr.msrb.gmra.mxu2 %v3598_v57  ;;  %3646 = vmatmul.bf16.vlgmr.msrb.gmra.mxu3 %v3598_v57 }
 0xdd0   : > { %3887 = vmatpush.bf16.msrb.mxu0 %v8362_v34  ;;  %3900 = vmatpush.bf16.msrb.mxu1 %v8366_v2 }
 0xdd1   : > { %3913 = vmatpush.bf16.msrb.mxu2 %v8374_v29  ;;  %3926 = vmatpush.bf16.msrb.mxu3 %v8370_v21 }
 0xdd4   : > { %3888 = vmatpush.bf16.msrb.mxu0 %v8380_v38  ;;  %3901 = vmatpush.bf16.msrb.mxu1 %v8384_v20 }
 0xdd5   : > { %3914 = vmatpush.bf16.msrb.mxu2 %v8399_v56  ;;  %3927 = vmatpush.bf16.msrb.mxu3 %v8394_v49 }
 0xdd6   : > { %3875 = vperm.xlu2 %6557, %v3873_v53  }
 0xdd8   : > { %3889 = vmatpush.bf16.msrb.mxu0 %v8408_v43  ;;  %3902 = vmatpush.bf16.msrb.mxu1 %v8412_v12 }
 0xdd9   : > { %3915 = vmatpush.bf16.msrb.mxu2 %v8423_v58  ;;  %3928 = vmatpush.bf16.msrb.mxu3 %v8418_v61 }
 0xddc   : > { %3890 = vmatpush.bf16.msrb.mxu0 %v8430_v54  ;;  %3903 = vmatpush.bf16.msrb.mxu1 %v8434_v51 }
 0xddd   : > { %3916 = vmatpush.bf16.msrb.mxu2 %v8445_v8  ;;  %3929 = vmatpush.bf16.msrb.mxu3 %v8440_v60 }
 0xde0   : > { %3891 = vmatpush.bf16.msrb.mxu0 %v8452_v62  ;;  %3904 = vmatpush.bf16.msrb.mxu1 %v8456_v1 }
 0xde1   : > { %3917 = vmatpush.bf16.msrb.mxu2 %v8466_v33  ;;  %3930 = vmatpush.bf16.msrb.mxu3 %v8461_v17 }
 0xde4   : > { %3892 = vmatpush.bf16.msrb.mxu0 %v8472_v5  ;;  %3905 = vmatpush.bf16.msrb.mxu1 %v8476_v18 }
 0xde5   : > { %3918 = vmatpush.bf16.msrb.mxu2 %v8487_v40  ;;  %3931 = vmatpush.bf16.msrb.mxu3 %v8482_v37 }
 0xde8   : > { %3893 = vmatpush.bf16.msrb.mxu0 %v8494_v6  ;;  %3906 = vmatpush.bf16.msrb.mxu1 %v8498_v14 }
 0xde9   : > { %3919 = vmatpush.bf16.msrb.mxu2 %v8508_v28  ;;  %3932 = vmatpush.bf16.msrb.mxu3 %v8503_v59 }
 0xdec   : > { %3894 = vmatpush.bf16.msrb.mxu0 %v8514_v63  ;;  %3907 = vmatpush.bf16.msrb.mxu1 %v8518_v23 }
 0xded   : > { %3920 = vmatpush.bf16.msrb.mxu2 %v8531_v11  ;;  %3933 = vmatpush.bf16.msrb.mxu3 %v8526_v30 }
 0xe4b   : > { %v3608_v41 = vpop.f32.mrf.mxu0  ;;  %v3621_v19 = vpop.f32.mrf.mxu1 }
 0xe4c   : > { %v3651_v26 = vadd.f32 %v3608_v41, %v3593_v3  ;;  %v3652_v0 = vadd.f32 %v3621_v19, %v3594_v35 }
 0xe4e   : > { %v6109_v55 = vmul.f32 -1.442695, %v3651_v26  ;;  %v6110_v50 = vmul.f32 -1.442695, %v3652_v0 }
 0xe50   : > { %6606 = vpow2.f32 %v6109_v55 }
 0xe51   : > { %6608 = vpow2.f32 %v6110_v50 }
 0xe52   : > { %v3634_v52 = vpop.f32.mrf.mxu2  ;;  %v3647_v9 = vpop.f32.mrf.mxu3 }
 0xe53   : > { %v3654_v7 = vadd.f32 %v3647_v9, %v3596_v16  ;;  %v3610_v13 = vpop.f32.mrf.mxu0  ;;  %v3623_v4 = vpop.f32.mrf.mxu1  ;;  %v3653_v22 = vadd.f32 %v3634_v52, %v3595_v10 }
 0xe55   : > { %v6111_v42 = vmul.f32 -1.442695, %v3654_v7 }
 0xe56   : > { %v6607_v31 = vpop.eup %6606 }
 0xe57   : > { %v6609_v47 = vpop.eup %6608  ;;  %v3658_v45 = vadd.f32 1.0, %v6607_v31  ;;  %6610 = vpow2.f32 %v6111_v42 }
 0xe58   : > { %v3677_v48 = vadd.f32 1.0, %v6609_v47 }
 0xe59   : > { %6612 = vrcp.f32 %v3658_v45  ;;  %v3670_v0 = vand.u32 2147483648, %v3658_v45  ;;  %v3668_v16 = vand.u32 2147483647, %v3658_v45  ;;  %vm3664_vm6 = vweird.f32 %v3658_v45 }
 0xe5a   : > { %6614 = vrcp.f32 %v3677_v48  ;;  %v3636_v46 = vpop.f32.mrf.mxu2  ;;  %v3649_v27 = vpop.f32.mrf.mxu3  ;;  %v3689_v55 = vand.u32 2147483648, %v3677_v48  ;;  %v3687_v7 = vand.u32 2147483647, %v3677_v48  ;;  %vm3683_vm7 = vweird.f32 %v3677_v48 }
 0xe5b   : > { %v3671_v4 = vor.u32 1.1754944e-38, %v3670_v0  ;;  %vm3669_vm10 = vcmp.eq.f32.partialorder %v3668_v16, 8.507059e+37  ;;  %v4737_v16 = vsel %vm4736_vm0, 1, %v6857_v44 }
 0xe5c   : > { %v3690_v47 = vor.u32 1.1754944e-38, %v3689_v55  ;;  %vm3688_vm12 = vcmp.eq.f32.partialorder %v3687_v7, 8.507059e+37 }
 0xe5d   : > { %v6611_v15 = vpop.eup %6610 }
 0xe5e   : > { %v3697_v39 = vadd.f32 1.0, %v6611_v15 }
 0xe5f   : > { %v6613_v57 = vpop.eup %6612 }
 0xe60   : > { %v6615_v3 = vpop.eup %6614  ;;  %v3660_v35 = vmul.f32 %v6613_v57, %v3658_v45  ;;  %6616 = vrcp.f32 %v3697_v39  ;;  %vm3665_vm4 = vweird.f32 %v6613_v57  ;;  %vm3703_vm15 = vweird.f32 %v3697_v39 }
 0xe61   : > { %v3679_v41 = vmul.f32 %v6615_v3, %v3677_v48  ;;  %6618 = vtanh.f32 %v3653_v22  ;;  %vm3684_vm5 = vweird.f32 %v6615_v3  ;;  %vm3666_vm8 = vmor %vm3664_vm6, %vm3665_vm4  ;;  %v3707_v53 = vand.u32 2147483647, %v3697_v39 }
 0xe62   : > { %v3661_v19 = vsub.f32 1.0, %v3660_v35  ;;  %vm3685_vm9 = vmor %vm3683_vm7, %vm3684_vm5 }
 0xe63   : > { %v3680_v26 = vsub.f32 1.0, %v3679_v41  ;;  %v4305_v41 = vsel %vm4304_vm11, 1, %v6857_v44  ;;  %vm3708_vm2 = vcmp.eq.f32.partialorder %v3707_v53, 8.507059e+37 }
 0xe64   : > { %v3662_v50 = vmul.f32 %v6613_v57, %v3661_v19  ;;  %v3588_v19 = vpop.permute.xlu1 %3587  ;;  %4307 = vperm.xlu2 %6557, %v4305_v41  }
 0xe65   : > { %v3681_v9 = vmul.f32 %v6615_v3, %v3680_v26  ;;  %vm3589_vm13 = vcmp.eq.s32.totalorder %v3588_v19, 1 }
 0xe66   : > { %v6617_v52 = vpop.eup %6616  ;;  %v3663_v13 = vadd.f32 %v6613_v57, %v3662_v50 }
 0xe67   : > { %v3682_v42 = vadd.f32 %v6615_v3, %v3681_v9  ;;  %v3699_v31 = vmul.f32 %v6617_v52, %v3697_v39  ;;  %v6619_v27 = vpop.eup %6618  ;;  %vm3704_vm14 = vweird.f32 %v6617_v52 }
 0xe68   : > { %v3667_v46 = vsel %vm3666_vm8, %v6613_v57, %v3663_v13  ;;  %vm3705_vm1 = vmor %vm3703_vm15, %vm3704_vm14 }
 0xe69   : > { %v3672_v10 = vsel %vm3669_vm10, %v3671_v4, %v3667_v46  ;;  %v3686_v15 = vsel %vm3685_vm9, %v6615_v3, %v3682_v42  ;;  %v3700_v32 = vsub.f32 1.0, %v3699_v31  ;;  %v3709_v3 = vand.u32 2147483648, %v3697_v39 }
 0xe6a   : > { %v3691_v22 = vsel %vm3688_vm12, %v3690_v47, %v3686_v15  ;;  %v3715_v35 = vmul.f32 %v6619_v27, %v3672_v10  ;;  %v6114_v27 = vld [vmem:[%s7452_s13 + $0xb8] sm:$0xff] }
 0xe6b   : > { %v3714_v45 = vmul.f32 %v3691_v22, %v8715_v24  ;;  %v3701_v48 = vmul.f32 %v6617_v52, %v3700_v32  ;;  %v3710_v50 = vor.u32 1.1754944e-38, %v3709_v3  ;;  %v3740_v32 = vunpack.c.h.bf16 %v6114_v27 }
 0xe6c   : > { %4739 = vperm.xlu2 %6557, %v4737_v16   ;;  %v3739_v16 = vunpack.c.l.bf16 %v6114_v27 }
 0xe6d   : > { %v3716_v26 = vadd.f32 %v3715_v35, %v3714_v45  ;;  %v3702_v0 = vadd.f32 %v6617_v52, %v3701_v48 }
 0xe6f   : > { %6620 = vtanh.f32 %v3716_v26  ;;  %v8773_v57 = vsel %vm3589_vm13, %v3716_v26, %v8715_v24  ;;  %v3706_v55 = vsel %vm3705_vm1, %v6617_v52, %v3702_v0  ;;  %v5169_v52 = vsel %vm5168_vm3, 1, %v6857_v44  ;;  %v6113_v44 = vld [vmem:[%s7452_s13 + $0xb0] sm:$0xff] }
 0xe70   : > { %v3711_v7 = vsel %vm3708_vm2, %v3710_v50, %v3706_v55  ;;  %v3738_v25 = vunpack.c.h.bf16 %v6113_v44 }
 0xe74   : > { %5171 = vperm.xlu2 %6557, %v5169_v52  }
 0xe75   : > { %v6621_v9 = vpop.eup %6620 }
 0xe76   : > { %v3718_v13 = vmul.f32 %v6621_v9, %v3711_v7 }
 0xe78   : > { %v3719_v4 = vsel %vm3589_vm13, %v3718_v13, 0.0  ;;  %v8780_v24 = vsel %vm3589_vm13, %v3718_v13, %v8720_v36  ;;  %v3737_v36 = vunpack.c.l.bf16 %v6113_v44 }
 0xe79   : > { %6112 = vst [vmem:[%s7455_s14 + $0x60] sm:$0xff] %v3719_v4  ;;  %v3742_v39 = vpack.c.bf16 %v8780_v24, %v8780_v24 }
 0xe7b   : > { %3751 = vmatmul.bf16.vlgmr.msra.gmra.mxu0 %v3742_v39  ;;  %3764 = vmatmul.bf16.vlgmr.msra.gmra.mxu1 %v3742_v39 }
 0xe7c   : > { %3777 = vmatmul.bf16.vlgmr.msra.gmra.mxu2 %v3742_v39  ;;  %3790 = vmatmul.bf16.vlgmr.msra.gmra.mxu3 %v3742_v39 }
 0xe7d   : > { %4031 = vmatpush.bf16.msra.mxu0 %v8362_v34  ;;  %4044 = vmatpush.bf16.msra.mxu1 %v8366_v2 }
 0xe7e   : > { %4057 = vmatpush.bf16.msra.mxu2 %v8374_v29  ;;  %4070 = vmatpush.bf16.msra.mxu3 %v8370_v21 }
 0xe81   : > { %4032 = vmatpush.bf16.msra.mxu0 %v8380_v38  ;;  %4045 = vmatpush.bf16.msra.mxu1 %v8384_v20 }
 0xe82   : > { %4058 = vmatpush.bf16.msra.mxu2 %v8399_v56  ;;  %4071 = vmatpush.bf16.msra.mxu3 %v8394_v49 }
 0xe85   : > { %4033 = vmatpush.bf16.msra.mxu0 %v8408_v43  ;;  %4046 = vmatpush.bf16.msra.mxu1 %v8412_v12 }
 0xe86   : > { %4059 = vmatpush.bf16.msra.mxu2 %v8423_v58  ;;  %4072 = vmatpush.bf16.msra.mxu3 %v8418_v61 }
 0xe89   : > { %4034 = vmatpush.bf16.msra.mxu0 %v8430_v54  ;;  %4047 = vmatpush.bf16.msra.mxu1 %v8434_v51 }
 0xe8a   : > { %4060 = vmatpush.bf16.msra.mxu2 %v8445_v8  ;;  %4073 = vmatpush.bf16.msra.mxu3 %v8440_v60 }
 0xe8d   : > { %4035 = vmatpush.bf16.msra.mxu0 %v8452_v62  ;;  %4048 = vmatpush.bf16.msra.mxu1 %v8456_v1 }
 0xe8e   : > { %4061 = vmatpush.bf16.msra.mxu2 %v8466_v33  ;;  %4074 = vmatpush.bf16.msra.mxu3 %v8461_v17 }
 0xe91   : > { %4036 = vmatpush.bf16.msra.mxu0 %v8472_v5  ;;  %4049 = vmatpush.bf16.msra.mxu1 %v8476_v18 }
 0xe92   : > { %4062 = vmatpush.bf16.msra.mxu2 %v8487_v40  ;;  %4075 = vmatpush.bf16.msra.mxu3 %v8482_v37 }
 0xe95   : > { %4037 = vmatpush.bf16.msra.mxu0 %v8494_v6  ;;  %4050 = vmatpush.bf16.msra.mxu1 %v8498_v14 }
 0xe96   : > { %4063 = vmatpush.bf16.msra.mxu2 %v8508_v28  ;;  %4076 = vmatpush.bf16.msra.mxu3 %v8503_v59 }
 0xe99   : > { %4038 = vmatpush.bf16.msra.mxu0 %v8514_v63  ;;  %4051 = vmatpush.bf16.msra.mxu1 %v8518_v23 }
 0xe9a   : > { %4064 = vmatpush.bf16.msra.mxu2 %v8531_v11  ;;  %4077 = vmatpush.bf16.msra.mxu3 %v8526_v30 }
 0xef8   : > { %v3752_v42 = vpop.f32.mrf.mxu0  ;;  %v3765_v31 = vpop.f32.mrf.mxu1 }
 0xef9   : > { %v3795_v47 = vadd.f32 %v3752_v42, %v3737_v36  ;;  %v3796_v46 = vadd.f32 %v3765_v31, %v3738_v25 }
 0xefb   : > { %v6115_v10 = vmul.f32 -1.442695, %v3795_v47  ;;  %v6116_v15 = vmul.f32 -1.442695, %v3796_v46 }
 0xefd   : > { %6622 = vpow2.f32 %v6115_v10 }
 0xefe   : > { %6624 = vpow2.f32 %v6116_v15 }
 0xeff   : > { %v3778_v22 = vpop.f32.mrf.mxu2  ;;  %v3791_v35 = vpop.f32.mrf.mxu3 }
 0xf00   : > { %v3798_v45 = vadd.f32 %v3791_v35, %v3740_v32  ;;  %v3754_v48 = vpop.f32.mrf.mxu0  ;;  %v3767_v41 = vpop.f32.mrf.mxu1  ;;  %v3797_v4 = vadd.f32 %v3778_v22, %v3739_v16 }
 0xf02   : > { %v6117_v19 = vmul.f32 -1.442695, %v3798_v45 }
 0xf03   : > { %v6623_v26 = vpop.eup %6622 }
 0xf04   : > { %v6625_v0 = vpop.eup %6624  ;;  %v3802_v3 = vadd.f32 1.0, %v6623_v26  ;;  %6626 = vpow2.f32 %v6117_v19 }
 0xf05   : > { %v3821_v53 = vadd.f32 1.0, %v6625_v0 }
 0xf06   : > { %6628 = vrcp.f32 %v3802_v3  ;;  %v3814_v42 = vand.u32 2147483648, %v3802_v3  ;;  %v3812_v47 = vand.u32 2147483647, %v3802_v3  ;;  %vm3808_vm6 = vweird.f32 %v3802_v3 }
 0xf07   : > { %6630 = vrcp.f32 %v3821_v53  ;;  %v3780_v55 = vpop.f32.mrf.mxu2  ;;  %v3793_v50 = vpop.f32.mrf.mxu3  ;;  %v3833_v46 = vand.u32 2147483648, %v3821_v53  ;;  %v3831_v15 = vand.u32 2147483647, %v3821_v53  ;;  %vm3827_vm8 = vweird.f32 %v3821_v53 }
 0xf08   : > { %v3815_v22 = vor.u32 1.1754944e-38, %v3814_v42  ;;  %vm3813_vm9 = vcmp.eq.f32.partialorder %v3812_v47, 8.507059e+37 }
 0xf09   : > { %v3834_v41 = vor.u32 1.1754944e-38, %v3833_v46  ;;  %vm3832_vm11 = vcmp.eq.f32.partialorder %v3831_v15, 8.507059e+37 }
 0xf0a   : > { %v6627_v9 = vpop.eup %6626 }
 0xf0b   : > { %v3841_v7 = vadd.f32 1.0, %v6627_v9  ;;  %v3732_v9 = vpop.permute.xlu2 %3731 }
 0xf0c   : > { %v6629_v13 = vpop.eup %6628  ;;  %vm3733_vm12 = vcmp.eq.s32.totalorder %v3732_v9, 1 }
 0xf0d   : > { %v6631_v39 = vpop.eup %6630  ;;  %v3804_v52 = vmul.f32 %v6629_v13, %v3802_v3  ;;  %6632 = vrcp.f32 %v3841_v7  ;;  %vm3809_vm4 = vweird.f32 %v6629_v13  ;;  %vm3847_vm14 = vweird.f32 %v3841_v7 }
 0xf0e   : > { %v3823_v44 = vmul.f32 %v6631_v39, %v3821_v53  ;;  %6634 = vtanh.f32 %v3797_v4  ;;  %vm3828_vm5 = vweird.f32 %v6631_v39  ;;  %vm3810_vm7 = vmor %vm3808_vm6, %vm3809_vm4  ;;  %v3853_v53 = vand.u32 2147483648, %v3841_v7 }
 0xf0f   : > { %v3805_v36 = vsub.f32 1.0, %v3804_v52  ;;  %vm3829_vm10 = vmor %vm3827_vm8, %vm3828_vm5 }
 0xf10   : > { %v3824_v25 = vsub.f32 1.0, %v3823_v44 }
 0xf11   : > { %v3806_v31 = vmul.f32 %v6629_v13, %v3805_v36 }
 0xf12   : > { %v3825_v10 = vmul.f32 %v6631_v39, %v3824_v25  ;;  %v3854_v25 = vor.u32 1.1754944e-38, %v3853_v53 }
 0xf13   : > { %v6633_v27 = vpop.eup %6632  ;;  %v3807_v32 = vadd.f32 %v6629_v13, %v3806_v31 }
 0xf14   : > { %v3843_v35 = vmul.f32 %v6633_v27, %v3841_v7  ;;  %v3826_v45 = vadd.f32 %v6631_v39, %v3825_v10  ;;  %v6635_v19 = vpop.eup %6634  ;;  %vm3848_vm13 = vweird.f32 %v6633_v27 }
 0xf15   : > { %v3811_v48 = vsel %vm3810_vm7, %v6629_v13, %v3807_v32  ;;  %vm3849_vm15 = vmor %vm3847_vm14, %vm3848_vm13 }
 0xf16   : > { %v3816_v26 = vsel %vm3813_vm9, %v3815_v22, %v3811_v48  ;;  %v3844_v0 = vsub.f32 1.0, %v3843_v35  ;;  %v3830_v55 = vsel %vm3829_vm10, %v6631_v39, %v3826_v45  ;;  %v3851_v39 = vand.u32 2147483647, %v3841_v7  ;;  %v6120_v45 = vld [vmem:[%s7452_s13 + $0xa8] sm:$0xff] }
 0xf17   : > { %v3859_v50 = vmul.f32 %v6635_v19, %v3816_v26  ;;  %v3835_v16 = vsel %vm3832_vm11, %v3834_v41, %v3830_v55  ;;  %v3884_v19 = vunpack.c.h.bf16 %v6120_v45 }
 0xf18   : > { %v3845_v4 = vmul.f32 %v6633_v27, %v3844_v0  ;;  %v3858_v3 = vmul.f32 %v3835_v16, %v8773_v57  ;;  %vm3852_vm0 = vcmp.eq.f32.partialorder %v3851_v39, 8.507059e+37 }
 0xf1a   : > { %v3860_v52 = vadd.f32 %v3859_v50, %v3858_v3  ;;  %v3846_v44 = vadd.f32 %v6633_v27, %v3845_v4 }
 0xf1c   : > { %6636 = vtanh.f32 %v3860_v52  ;;  %v8824_v13 = vsel %vm3733_vm12, %v3860_v52, %v8773_v57  ;;  %v3850_v36 = vsel %vm3849_vm15, %v6633_v27, %v3846_v44 }
 0xf1d   : > { %v3855_v31 = vsel %vm3852_vm0, %v3854_v25, %v3850_v36  ;;  %v3883_v36 = vunpack.c.l.bf16 %v6120_v45 }
 0xf22   : > { %v6637_v42 = vpop.eup %6636 }
 0xf23   : > { %v3862_v47 = vmul.f32 %v6637_v42, %v3855_v31 }
 0xf25   : > { %v3863_v46 = vsel %vm3733_vm12, %v3862_v47, 0.0  ;;  %v8829_v10 = vsel %vm3733_vm12, %v3862_v47, %v8780_v24  ;;  %v6119_v24 = vld [vmem:[%s7452_s13 + $0xa0] sm:$0xff] }
 0xf26   : > { %6118 = vst [vmem:[%s7455_s14 + $0x58] sm:$0xff] %v3863_v46  ;;  %v3886_v57 = vpack.c.bf16 %v8829_v10, %v8829_v10  ;;  %v3881_v7 = vunpack.c.l.bf16 %v6119_v24  ;;  %v3882_v15 = vunpack.c.h.bf16 %v6119_v24 }
 0xf28   : > { %3895 = vmatmul.bf16.vlgmr.msrb.gmra.mxu0 %v3886_v57  ;;  %3908 = vmatmul.bf16.vlgmr.msrb.gmra.mxu1 %v3886_v57 }
 0xf29   : > { %3921 = vmatmul.bf16.vlgmr.msrb.gmra.mxu2 %v3886_v57  ;;  %3934 = vmatmul.bf16.vlgmr.msrb.gmra.mxu3 %v3886_v57 }
 0xf2a   : > { %4175 = vmatpush.bf16.msrb.mxu0 %v8362_v34  ;;  %4188 = vmatpush.bf16.msrb.mxu1 %v8366_v2 }
 0xf2b   : > { %4201 = vmatpush.bf16.msrb.mxu2 %v8374_v29  ;;  %4214 = vmatpush.bf16.msrb.mxu3 %v8370_v21 }
 0xf2e   : > { %4176 = vmatpush.bf16.msrb.mxu0 %v8380_v38  ;;  %4189 = vmatpush.bf16.msrb.mxu1 %v8384_v20 }
 0xf2f   : > { %4202 = vmatpush.bf16.msrb.mxu2 %v8399_v56  ;;  %4215 = vmatpush.bf16.msrb.mxu3 %v8394_v49 }
 0xf32   : > { %4177 = vmatpush.bf16.msrb.mxu0 %v8408_v43  ;;  %4190 = vmatpush.bf16.msrb.mxu1 %v8412_v12 }
 0xf33   : > { %4203 = vmatpush.bf16.msrb.mxu2 %v8423_v58  ;;  %4216 = vmatpush.bf16.msrb.mxu3 %v8418_v61 }
 0xf36   : > { %4178 = vmatpush.bf16.msrb.mxu0 %v8430_v54  ;;  %4191 = vmatpush.bf16.msrb.mxu1 %v8434_v51 }
 0xf37   : > { %4204 = vmatpush.bf16.msrb.mxu2 %v8445_v8  ;;  %4217 = vmatpush.bf16.msrb.mxu3 %v8440_v60 }
 0xf3a   : > { %4179 = vmatpush.bf16.msrb.mxu0 %v8452_v62  ;;  %4192 = vmatpush.bf16.msrb.mxu1 %v8456_v1 }
 0xf3b   : > { %4205 = vmatpush.bf16.msrb.mxu2 %v8466_v33  ;;  %4218 = vmatpush.bf16.msrb.mxu3 %v8461_v17 }
 0xf3e   : > { %4180 = vmatpush.bf16.msrb.mxu0 %v8472_v5  ;;  %4193 = vmatpush.bf16.msrb.mxu1 %v8476_v18 }
 0xf3f   : > { %4206 = vmatpush.bf16.msrb.mxu2 %v8487_v40  ;;  %4219 = vmatpush.bf16.msrb.mxu3 %v8482_v37 }
 0xf42   : > { %4181 = vmatpush.bf16.msrb.mxu0 %v8494_v6  ;;  %4194 = vmatpush.bf16.msrb.mxu1 %v8498_v14 }
 0xf43   : > { %4207 = vmatpush.bf16.msrb.mxu2 %v8508_v28  ;;  %4220 = vmatpush.bf16.msrb.mxu3 %v8503_v59 }
 0xf46   : > { %4182 = vmatpush.bf16.msrb.mxu0 %v8514_v63  ;;  %4195 = vmatpush.bf16.msrb.mxu1 %v8518_v23 }
 0xf47   : > { %4208 = vmatpush.bf16.msrb.mxu2 %v8531_v11  ;;  %4221 = vmatpush.bf16.msrb.mxu3 %v8526_v30 }
 0xfa5   : > { %v3896_v27 = vpop.f32.mrf.mxu0  ;;  %v3909_v32 = vpop.f32.mrf.mxu1 }
 0xfa6   : > { %v3939_v22 = vadd.f32 %v3896_v27, %v3881_v7  ;;  %v3940_v35 = vadd.f32 %v3909_v32, %v3882_v15 }
 0xfa8   : > { %v6121_v48 = vmul.f32 -1.442695, %v3939_v22  ;;  %v6122_v41 = vmul.f32 -1.442695, %v3940_v35 }
 0xfaa   : > { %6638 = vpow2.f32 %v6121_v48 }
 0xfab   : > { %6640 = vpow2.f32 %v6122_v41 }
 0xfac   : > { %v3922_v26 = vpop.f32.mrf.mxu2  ;;  %v3935_v0 = vpop.f32.mrf.mxu3 }
 0xfad   : > { %v3942_v55 = vadd.f32 %v3935_v0, %v3884_v19  ;;  %v3898_v50 = vpop.f32.mrf.mxu0  ;;  %v3911_v16 = vpop.f32.mrf.mxu1  ;;  %v3941_v47 = vadd.f32 %v3922_v26, %v3883_v36 }
 0xfaf   : > { %v6123_v9 = vmul.f32 -1.442695, %v3942_v55 }
 0xfb0   : > { %v6639_v4 = vpop.eup %6638 }
 0xfb1   : > { %v6641_v3 = vpop.eup %6640  ;;  %v3946_v52 = vadd.f32 1.0, %v6639_v4  ;;  %6642 = vpow2.f32 %v6123_v9 }
 0xfb2   : > { %v3965_v44 = vadd.f32 1.0, %v6641_v3 }
 0xfb3   : > { %6644 = vrcp.f32 %v3946_v52  ;;  %v3958_v27 = vand.u32 2147483648, %v3946_v52  ;;  %v3956_v35 = vand.u32 2147483647, %v3946_v52  ;;  %vm3952_vm3 = vweird.f32 %v3946_v52 }
 0xfb4   : > { %6646 = vrcp.f32 %v3965_v44  ;;  %v3924_v53 = vpop.f32.mrf.mxu2  ;;  %v3937_v39 = vpop.f32.mrf.mxu3  ;;  %v3977_v32 = vand.u32 2147483648, %v3965_v44  ;;  %v3975_v41 = vand.u32 2147483647, %v3965_v44  ;;  %vm3971_vm4 = vweird.f32 %v3965_v44 }
 0xfb5   : > { %v3959_v26 = vor.u32 1.1754944e-38, %v3958_v27  ;;  %vm3957_vm7 = vcmp.eq.f32.partialorder %v3956_v35, 8.507059e+37 }
 0xfb6   : > { %v3978_v50 = vor.u32 1.1754944e-38, %v3977_v32  ;;  %vm3976_vm8 = vcmp.eq.f32.partialorder %v3975_v41, 8.507059e+37 }
 0xfb7   : > { %v6643_v25 = vpop.eup %6642 }
 0xfb8   : > { %v3985_v42 = vadd.f32 1.0, %v6643_v25 }
 0xfb9   : > { %v6645_v31 = vpop.eup %6644 }
 0xfba   : > { %v6647_v46 = vpop.eup %6646  ;;  %v3948_v57 = vmul.f32 %v6645_v31, %v3946_v52  ;;  %6648 = vrcp.f32 %v3985_v42  ;;  %vm3953_vm1 = vweird.f32 %v6645_v31  ;;  %v3876_v52 = vpop.permute.xlu2 %3875  ;;  %vm3991_vm11 = vweird.f32 %v3985_v42 }
 0xfbb   : > { %v3967_v24 = vmul.f32 %v6647_v46, %v3965_v44  ;;  %6650 = vtanh.f32 %v3941_v47  ;;  %vm3972_vm2 = vweird.f32 %v6647_v46  ;;  %vm3954_vm5 = vmor %vm3952_vm3, %vm3953_vm1  ;;  %vm3877_vm9 = vcmp.eq.s32.totalorder %v3876_v52, 1 }
 0xfbc   : > { %v3949_v7 = vsub.f32 1.0, %v3948_v57  ;;  %vm3973_vm6 = vmor %vm3971_vm4, %vm3972_vm2 }
 0xfbd   : > { %v3968_v15 = vsub.f32 1.0, %v3967_v24  ;;  %v3997_v24 = vand.u32 2147483648, %v3985_v42 }
 0xfbe   : > { %v3950_v22 = vmul.f32 %v6645_v31, %v3949_v7 }
 0xfbf   : > { %v3969_v48 = vmul.f32 %v6647_v46, %v3968_v15  ;;  %v3998_v15 = vor.u32 1.1754944e-38, %v3997_v24 }
 0xfc0   : > { %v6649_v45 = vpop.eup %6648  ;;  %v3951_v19 = vadd.f32 %v6645_v31, %v3950_v22 }
 0xfc1   : > { %v3970_v0 = vadd.f32 %v6647_v46, %v3969_v48  ;;  %v3987_v55 = vmul.f32 %v6649_v45, %v3985_v42  ;;  %v6651_v9 = vpop.eup %6650  ;;  %vm3992_vm10 = vweird.f32 %v6649_v45 }
 0xfc2   : > { %v3955_v16 = vsel %vm3954_vm5, %v6645_v31, %v3951_v19  ;;  %vm3993_vm12 = vmor %vm3991_vm11, %vm3992_vm10 }
 0xfc3   : > { %v3960_v4 = vsel %vm3957_vm7, %v3959_v26, %v3955_v16  ;;  %v3974_v3 = vsel %vm3973_vm6, %v6647_v46, %v3970_v0  ;;  %v3988_v53 = vsub.f32 1.0, %v3987_v55  ;;  %v3995_v46 = vand.u32 2147483647, %v3985_v42  ;;  %v6126_v55 = vld [vmem:[%s7452_s13 + $0x98] sm:$0xff] }
 0xfc4   : > { %v3979_v39 = vsel %vm3976_vm8, %v3978_v50, %v3974_v3  ;;  %v4003_v36 = vmul.f32 %v6651_v9, %v3960_v4  ;;  %v4028_v9 = vunpack.c.h.bf16 %v6126_v55 }
 0xfc5   : > { %v4002_v25 = vmul.f32 %v3979_v39, %v8824_v13  ;;  %v3989_v47 = vmul.f32 %v6649_v45, %v3988_v53  ;;  %vm3996_vm13 = vcmp.eq.f32.partialorder %v3995_v46, 8.507059e+37 }
 0xfc7   : > { %v4004_v44 = vadd.f32 %v4003_v36, %v4002_v25  ;;  %v3990_v57 = vadd.f32 %v6649_v45, %v3989_v47 }
 0xfc9   : > { %6652 = vtanh.f32 %v4004_v44  ;;  %v8871_v31 = vsel %vm3877_vm9, %v4004_v44, %v8824_v13  ;;  %v3994_v7 = vsel %vm3993_vm12, %v6649_v45, %v3990_v57 }
 0xfca   : > { %v3999_v32 = vsel %vm3996_vm13, %v3998_v15, %v3994_v7  ;;  %v4027_v7 = vunpack.c.l.bf16 %v6126_v55 }
 0xfcf   : > { %v6653_v27 = vpop.eup %6652 }
 0xfd0   : > { %v4006_v22 = vmul.f32 %v6653_v27, %v3999_v32 }
 0xfd2   : > { %v4007_v35 = vsel %vm3877_vm9, %v4006_v22, 0.0  ;;  %v8876_v48 = vsel %vm3877_vm9, %v4006_v22, %v8829_v10  ;;  %v6125_v10 = vld [vmem:[%s7452_s13 + $0x90] sm:$0xff] }
 0xfd3   : > { %6124 = vst [vmem:[%s7455_s14 + $0x50] sm:$0xff] %v4007_v35  ;;  %v4030_v13 = vpack.c.bf16 %v8876_v48, %v8876_v48  ;;  %v4025_v42 = vunpack.c.l.bf16 %v6125_v10  ;;  %v4026_v41 = vunpack.c.h.bf16 %v6125_v10 }
 0xfd5   : > { %4039 = vmatmul.bf16.vlgmr.msra.gmra.mxu0 %v4030_v13  ;;  %4052 = vmatmul.bf16.vlgmr.msra.gmra.mxu1 %v4030_v13 }
 0xfd6   : > { %4065 = vmatmul.bf16.vlgmr.msra.gmra.mxu2 %v4030_v13  ;;  %4078 = vmatmul.bf16.vlgmr.msra.gmra.mxu3 %v4030_v13 }
 0xfd7   : > { %4319 = vmatpush.bf16.msra.mxu0 %v8362_v34  ;;  %4332 = vmatpush.bf16.msra.mxu1 %v8366_v2 }
 0xfd8   : > { %4345 = vmatpush.bf16.msra.mxu2 %v8374_v29  ;;  %4358 = vmatpush.bf16.msra.mxu3 %v8370_v21 }
 0xfdb   : > { %4320 = vmatpush.bf16.msra.mxu0 %v8380_v38  ;;  %4333 = vmatpush.bf16.msra.mxu1 %v8384_v20 }
 0xfdc   : > { %4346 = vmatpush.bf16.msra.mxu2 %v8399_v56  ;;  %4359 = vmatpush.bf16.msra.mxu3 %v8394_v49 }
 0xfdf   : > { %4321 = vmatpush.bf16.msra.mxu0 %v8408_v43  ;;  %4334 = vmatpush.bf16.msra.mxu1 %v8412_v12 }
 0xfe0   : > { %4347 = vmatpush.bf16.msra.mxu2 %v8423_v58  ;;  %4360 = vmatpush.bf16.msra.mxu3 %v8418_v61 }
 0xfe3   : > { %4322 = vmatpush.bf16.msra.mxu0 %v8430_v54  ;;  %4335 = vmatpush.bf16.msra.mxu1 %v8434_v51 }
 0xfe4   : > { %4348 = vmatpush.bf16.msra.mxu2 %v8445_v8  ;;  %4361 = vmatpush.bf16.msra.mxu3 %v8440_v60 }
 0xfe7   : > { %4323 = vmatpush.bf16.msra.mxu0 %v8452_v62  ;;  %4336 = vmatpush.bf16.msra.mxu1 %v8456_v1 }
 0xfe8   : > { %4349 = vmatpush.bf16.msra.mxu2 %v8466_v33  ;;  %4362 = vmatpush.bf16.msra.mxu3 %v8461_v17 }
 0xfeb   : > { %4324 = vmatpush.bf16.msra.mxu0 %v8472_v5  ;;  %4337 = vmatpush.bf16.msra.mxu1 %v8476_v18 }
 0xfec   : > { %4350 = vmatpush.bf16.msra.mxu2 %v8487_v40  ;;  %4363 = vmatpush.bf16.msra.mxu3 %v8482_v37 }
 0xfef   : > { %4325 = vmatpush.bf16.msra.mxu0 %v8494_v6  ;;  %4338 = vmatpush.bf16.msra.mxu1 %v8498_v14 }
 0xff0   : > { %4351 = vmatpush.bf16.msra.mxu2 %v8508_v28  ;;  %4364 = vmatpush.bf16.msra.mxu3 %v8503_v59 }
 0xff3   : > { %4326 = vmatpush.bf16.msra.mxu0 %v8514_v63  ;;  %4339 = vmatpush.bf16.msra.mxu1 %v8518_v23 }
 0xff4   : > { %4352 = vmatpush.bf16.msra.mxu2 %v8531_v11  ;;  %4365 = vmatpush.bf16.msra.mxu3 %v8526_v30 }
0x1052   : > { %v4040_v45 = vpop.f32.mrf.mxu0  ;;  %v4053_v19 = vpop.f32.mrf.mxu1 }
0x1053   : > { %v4083_v26 = vadd.f32 %v4040_v45, %v4025_v42  ;;  %v4084_v0 = vadd.f32 %v4053_v19, %v4026_v41 }
0x1055   : > { %v6127_v50 = vmul.f32 -1.442695, %v4083_v26  ;;  %v6128_v16 = vmul.f32 -1.442695, %v4084_v0 }
0x1057   : > { %6654 = vpow2.f32 %v6127_v50 }
0x1058   : > { %6656 = vpow2.f32 %v6128_v16 }
0x1059   : > { %v4066_v4 = vpop.f32.mrf.mxu2  ;;  %v4079_v3 = vpop.f32.mrf.mxu3 }
0x105a   : > { %v4086_v53 = vadd.f32 %v4079_v3, %v4028_v9  ;;  %v4042_v39 = vpop.f32.mrf.mxu0  ;;  %v4055_v36 = vpop.f32.mrf.mxu1  ;;  %v4085_v22 = vadd.f32 %v4066_v4, %v4027_v7 }
0x105c   : > { %v6129_v25 = vmul.f32 -1.442695, %v4086_v53 }
0x105d   : > { %v6655_v47 = vpop.eup %6654 }
0x105e   : > { %v6657_v52 = vpop.eup %6656  ;;  %v4090_v44 = vadd.f32 1.0, %v6655_v47  ;;  %6658 = vpow2.f32 %v6129_v25 }
0x105f   : > { %v4109_v57 = vadd.f32 1.0, %v6657_v52 }
0x1060   : > { %6660 = vrcp.f32 %v4090_v44  ;;  %v4102_v45 = vand.u32 2147483648, %v4090_v44  ;;  %v4100_v0 = vand.u32 2147483647, %v4090_v44  ;;  %vm4096_vm0 = vweird.f32 %v4090_v44 }
0x1061   : > { %6662 = vrcp.f32 %v4109_v57  ;;  %v4068_v24 = vpop.f32.mrf.mxu2  ;;  %v4081_v46 = vpop.f32.mrf.mxu3  ;;  %v4121_v19 = vand.u32 2147483648, %v4109_v57  ;;  %v4119_v16 = vand.u32 2147483647, %v4109_v57  ;;  %vm4115_vm1 = vweird.f32 %v4109_v57 }
0x1062   : > { %v4103_v4 = vor.u32 1.1754944e-38, %v4102_v45  ;;  %vm4101_vm4 = vcmp.eq.f32.partialorder %v4100_v0, 8.507059e+37 }
0x1063   : > { %v4122_v39 = vor.u32 1.1754944e-38, %v4121_v19  ;;  %vm4120_vm5 = vcmp.eq.f32.partialorder %v4119_v16, 8.507059e+37 }
0x1064   : > { %v6659_v15 = vpop.eup %6658 }
0x1065   : > { %v4129_v27 = vadd.f32 1.0, %v6659_v15 }
0x1066   : > { %v6661_v32 = vpop.eup %6660 }
0x1067   : > { %v6663_v35 = vpop.eup %6662  ;;  %v4092_v13 = vmul.f32 %v6661_v32, %v4090_v44  ;;  %6664 = vrcp.f32 %v4129_v27  ;;  %vm4097_vm14 = vweird.f32 %v6661_v32  ;;  %v4020_v44 = vpop.permute.xlu0 %4019  ;;  %vm4135_vm8 = vweird.f32 %v4129_v27 }
0x1068   : > { %v4111_v10 = vmul.f32 %v6663_v35, %v4109_v57  ;;  %6666 = vtanh.f32 %v4085_v22  ;;  %vm4116_vm15 = vweird.f32 %v6663_v35  ;;  %vm4098_vm2 = vmor %vm4096_vm0, %vm4097_vm14  ;;  %vm4021_vm6 = vcmp.eq.s32.totalorder %v4020_v44, 1 }
0x1069   : > { %v4093_v42 = vsub.f32 1.0, %v4092_v13  ;;  %vm4117_vm3 = vmor %vm4115_vm1, %vm4116_vm15 }
0x106a   : > { %v4112_v41 = vsub.f32 1.0, %v4111_v10  ;;  %v4141_v10 = vand.u32 2147483648, %v4129_v27 }
0x106b   : > { %v4094_v26 = vmul.f32 %v6661_v32, %v4093_v42 }
0x106c   : > { %v4113_v50 = vmul.f32 %v6663_v35, %v4112_v41  ;;  %v4142_v41 = vor.u32 1.1754944e-38, %v4141_v10 }
0x106d   : > { %v6665_v55 = vpop.eup %6664  ;;  %v4095_v9 = vadd.f32 %v6661_v32, %v4094_v26 }
0x106e   : > { %v4114_v3 = vadd.f32 %v6663_v35, %v4113_v50  ;;  %v4131_v53 = vmul.f32 %v6665_v55, %v4129_v27  ;;  %v6667_v25 = vpop.eup %6666  ;;  %vm4136_vm7 = vweird.f32 %v6665_v55 }
0x106f   : > { %v4099_v36 = vsel %vm4098_vm2, %v6661_v32, %v4095_v9  ;;  %vm4137_vm9 = vmor %vm4135_vm8, %vm4136_vm7 }
0x1070   : > { %v4104_v47 = vsel %vm4101_vm4, %v4103_v4, %v4099_v36  ;;  %v4118_v52 = vsel %vm4117_vm3, %v6663_v35, %v4114_v3  ;;  %v4132_v24 = vsub.f32 1.0, %v4131_v53  ;;  %v4139_v35 = vand.u32 2147483647, %v4129_v27  ;;  %v6132_v53 = vld [vmem:[%s7452_s13 + $0x88] sm:$0xff] }
0x1071   : > { %v4123_v46 = vsel %vm4120_vm5, %v4122_v39, %v4118_v52  ;;  %v4147_v7 = vmul.f32 %v6667_v25, %v4104_v47  ;;  %v4172_v25 = vunpack.c.h.bf16 %v6132_v53 }
0x1072   : > { %v4146_v15 = vmul.f32 %v4123_v46, %v8871_v31  ;;  %v4133_v22 = vmul.f32 %v6665_v55, %v4132_v24  ;;  %vm4140_vm10 = vcmp.eq.f32.partialorder %v4139_v35, 8.507059e+37 }
0x1074   : > { %v4148_v57 = vadd.f32 %v4147_v7, %v4146_v15  ;;  %v4134_v13 = vadd.f32 %v6665_v55, %v4133_v22 }
0x1076   : > { %6668 = vtanh.f32 %v4148_v57  ;;  %v8918_v32 = vsel %vm4021_vm6, %v4148_v57, %v8871_v31  ;;  %v4138_v42 = vsel %vm4137_vm9, %v6665_v55, %v4134_v13 }
0x1077   : > { %v4143_v19 = vsel %vm4140_vm10, %v4142_v41, %v4138_v42  ;;  %v4171_v42 = vunpack.c.l.bf16 %v6132_v53 }
0x107c   : > { %v6669_v45 = vpop.eup %6668 }
0x107d   : > { %v4150_v26 = vmul.f32 %v6669_v45, %v4143_v19 }
0x107f   : > { %v4151_v0 = vsel %vm4021_vm6, %v4150_v26, 0.0  ;;  %v8923_v50 = vsel %vm4021_vm6, %v4150_v26, %v8876_v48  ;;  %v6131_v48 = vld [vmem:[%s7452_s13 + $0x80] sm:$0xff] }
0x1080   : > { %6130 = vst [vmem:[%s7455_s14 + $0x48] sm:$0xff] %v4151_v0  ;;  %v4174_v31 = vpack.c.bf16 %v8923_v50, %v8923_v50  ;;  %v4169_v27 = vunpack.c.l.bf16 %v6131_v48  ;;  %v4170_v16 = vunpack.c.h.bf16 %v6131_v48 }
0x1082   : > { %4183 = vmatmul.bf16.vlgmr.msrb.gmra.mxu0 %v4174_v31  ;;  %4196 = vmatmul.bf16.vlgmr.msrb.gmra.mxu1 %v4174_v31 }
0x1083   : > { %4209 = vmatmul.bf16.vlgmr.msrb.gmra.mxu2 %v4174_v31  ;;  %4222 = vmatmul.bf16.vlgmr.msrb.gmra.mxu3 %v4174_v31 }
0x1084   : > { %4463 = vmatpush.bf16.msrb.mxu0 %v8362_v34  ;;  %4476 = vmatpush.bf16.msrb.mxu1 %v8366_v2 }
0x1085   : > { %4489 = vmatpush.bf16.msrb.mxu2 %v8374_v29  ;;  %4502 = vmatpush.bf16.msrb.mxu3 %v8370_v21 }
0x1088   : > { %4464 = vmatpush.bf16.msrb.mxu0 %v8380_v38  ;;  %4477 = vmatpush.bf16.msrb.mxu1 %v8384_v20 }
0x1089   : > { %4490 = vmatpush.bf16.msrb.mxu2 %v8399_v56  ;;  %4503 = vmatpush.bf16.msrb.mxu3 %v8394_v49 }
0x108c   : > { %4465 = vmatpush.bf16.msrb.mxu0 %v8408_v43  ;;  %4478 = vmatpush.bf16.msrb.mxu1 %v8412_v12 }
0x108d   : > { %4491 = vmatpush.bf16.msrb.mxu2 %v8423_v58  ;;  %4504 = vmatpush.bf16.msrb.mxu3 %v8418_v61 }
0x1090   : > { %4466 = vmatpush.bf16.msrb.mxu0 %v8430_v54  ;;  %4479 = vmatpush.bf16.msrb.mxu1 %v8434_v51 }
0x1091   : > { %4492 = vmatpush.bf16.msrb.mxu2 %v8445_v8  ;;  %4505 = vmatpush.bf16.msrb.mxu3 %v8440_v60 }
0x1094   : > { %4467 = vmatpush.bf16.msrb.mxu0 %v8452_v62  ;;  %4480 = vmatpush.bf16.msrb.mxu1 %v8456_v1 }
0x1095   : > { %4493 = vmatpush.bf16.msrb.mxu2 %v8466_v33  ;;  %4506 = vmatpush.bf16.msrb.mxu3 %v8461_v17 }
0x1098   : > { %4468 = vmatpush.bf16.msrb.mxu0 %v8472_v5  ;;  %4481 = vmatpush.bf16.msrb.mxu1 %v8476_v18 }
0x1099   : > { %4494 = vmatpush.bf16.msrb.mxu2 %v8487_v40  ;;  %4507 = vmatpush.bf16.msrb.mxu3 %v8482_v37 }
0x109c   : > { %4469 = vmatpush.bf16.msrb.mxu0 %v8494_v6  ;;  %4482 = vmatpush.bf16.msrb.mxu1 %v8498_v14 }
0x109d   : > { %4495 = vmatpush.bf16.msrb.mxu2 %v8508_v28  ;;  %4508 = vmatpush.bf16.msrb.mxu3 %v8503_v59 }
0x10a0   : > { %4470 = vmatpush.bf16.msrb.mxu0 %v8514_v63  ;;  %4483 = vmatpush.bf16.msrb.mxu1 %v8518_v23 }
0x10a1   : > { %4496 = vmatpush.bf16.msrb.mxu2 %v8531_v11  ;;  %4509 = vmatpush.bf16.msrb.mxu3 %v8526_v30 }
0x10ff   : > { %v4184_v55 = vpop.f32.mrf.mxu0  ;;  %v4197_v9 = vpop.f32.mrf.mxu1 }
0x1100   : > { %v4227_v4 = vadd.f32 %v4184_v55, %v4169_v27  ;;  %v4228_v3 = vadd.f32 %v4197_v9, %v4170_v16 }
0x1102   : > { %v6133_v39 = vmul.f32 -1.442695, %v4227_v4  ;;  %v6134_v36 = vmul.f32 -1.442695, %v4228_v3 }
0x1104   : > { %6670 = vpow2.f32 %v6133_v39 }
0x1105   : > { %6672 = vpow2.f32 %v6134_v36 }
0x1106   : > { %v4210_v47 = vpop.f32.mrf.mxu2  ;;  %v4223_v52 = vpop.f32.mrf.mxu3 }
0x1107   : > { %v4230_v24 = vadd.f32 %v4223_v52, %v4172_v25  ;;  %v4186_v46 = vpop.f32.mrf.mxu0  ;;  %v4199_v7 = vpop.f32.mrf.mxu1  ;;  %v4229_v26 = vadd.f32 %v4210_v47, %v4171_v42 }
0x1109   : > { %v6135_v15 = vmul.f32 -1.442695, %v4230_v24 }
0x110a   : > { %v6671_v22 = vpop.eup %6670 }
0x110b   : > { %v6673_v44 = vpop.eup %6672  ;;  %v4234_v57 = vadd.f32 1.0, %v6671_v22  ;;  %6674 = vpow2.f32 %v6135_v15 }
0x110c   : > { %v4253_v13 = vadd.f32 1.0, %v6673_v44 }
0x110d   : > { %6676 = vrcp.f32 %v4234_v57  ;;  %v4246_v55 = vand.u32 2147483648, %v4234_v57  ;;  %v4244_v3 = vand.u32 2147483647, %v4234_v57  ;;  %vm4240_vm13 = vweird.f32 %v4234_v57 }
0x110e   : > { %6678 = vrcp.f32 %v4253_v13  ;;  %v4212_v10 = vpop.f32.mrf.mxu2  ;;  %v4225_v35 = vpop.f32.mrf.mxu3  ;;  %v4265_v9 = vand.u32 2147483648, %v4253_v13  ;;  %v4263_v36 = vand.u32 2147483647, %v4253_v13  ;;  %vm4259_vm14 = vweird.f32 %v4253_v13 }
0x110f   : > { %v4247_v47 = vor.u32 1.1754944e-38, %v4246_v55  ;;  %vm4245_vm1 = vcmp.eq.f32.partialorder %v4244_v3, 8.507059e+37 }
0x1110   : > { %v4266_v46 = vor.u32 1.1754944e-38, %v4265_v9  ;;  %vm4264_vm2 = vcmp.eq.f32.partialorder %v4263_v36, 8.507059e+37 }
0x1111   : > { %v6675_v41 = vpop.eup %6674 }
0x1112   : > { %v4273_v45 = vadd.f32 1.0, %v6675_v41 }
0x1113   : > { %v6677_v19 = vpop.eup %6676 }
0x1114   : > { %v6679_v0 = vpop.eup %6678  ;;  %v4236_v31 = vmul.f32 %v6677_v19, %v4234_v57  ;;  %6680 = vrcp.f32 %v4273_v45  ;;  %vm4241_vm11 = vweird.f32 %v6677_v19  ;;  %v4164_v57 = vpop.permute.xlu1 %4163  ;;  %vm4279_vm5 = vweird.f32 %v4273_v45 }
0x1115   : > { %v4255_v48 = vmul.f32 %v6679_v0, %v4253_v13  ;;  %6682 = vtanh.f32 %v4229_v26  ;;  %vm4260_vm12 = vweird.f32 %v6679_v0  ;;  %vm4242_vm15 = vmor %vm4240_vm13, %vm4241_vm11  ;;  %vm4165_vm3 = vcmp.eq.s32.totalorder %v4164_v57, 1 }
0x1116   : > { %v4237_v27 = vsub.f32 1.0, %v4236_v31  ;;  %vm4261_vm0 = vmor %vm4259_vm14, %vm4260_vm12 }
0x1117   : > { %v4256_v16 = vsub.f32 1.0, %v4255_v48  ;;  %v4285_v48 = vand.u32 2147483648, %v4273_v45 }
0x1118   : > { %v4238_v4 = vmul.f32 %v6677_v19, %v4237_v27 }
0x1119   : > { %v4257_v39 = vmul.f32 %v6679_v0, %v4256_v16  ;;  %v4286_v16 = vor.u32 1.1754944e-38, %v4285_v48 }
0x111a   : > { %v6681_v53 = vpop.eup %6680  ;;  %v4239_v25 = vadd.f32 %v6677_v19, %v4238_v4 }
0x111b   : > { %v4258_v52 = vadd.f32 %v6679_v0, %v4257_v39  ;;  %v4275_v24 = vmul.f32 %v6681_v53, %v4273_v45  ;;  %v6683_v15 = vpop.eup %6682  ;;  %vm4280_vm4 = vweird.f32 %v6681_v53 }
0x111c   : > { %v4243_v7 = vsel %vm4242_vm15, %v6677_v19, %v4239_v25  ;;  %vm4281_vm6 = vmor %vm4279_vm5, %vm4280_vm4 }
0x111d   : > { %v4248_v22 = vsel %vm4245_vm1, %v4247_v47, %v4243_v7  ;;  %v4262_v44 = vsel %vm4261_vm0, %v6679_v0, %v4258_v52  ;;  %v4276_v10 = vsub.f32 1.0, %v4275_v24  ;;  %v4283_v0 = vand.u32 2147483647, %v4273_v45  ;;  %v6138_v24 = vld [vmem:[%s7452_s13 + $0x78] sm:$0xff] }
0x111e   : > { %v4267_v35 = vsel %vm4264_vm2, %v4266_v46, %v4262_v44  ;;  %v4291_v42 = vmul.f32 %v6683_v15, %v4248_v22  ;;  %v4316_v15 = vunpack.c.h.bf16 %v6138_v24 }
0x111f   : > { %v4290_v41 = vmul.f32 %v4267_v35, %v8918_v32  ;;  %v4277_v26 = vmul.f32 %v6681_v53, %v4276_v10  ;;  %vm4284_vm7 = vcmp.eq.f32.partialorder %v4283_v0, 8.507059e+37 }
0x1121   : > { %v4292_v13 = vadd.f32 %v4291_v42, %v4290_v41  ;;  %v4278_v31 = vadd.f32 %v6681_v53, %v4277_v26 }
0x1123   : > { %6684 = vtanh.f32 %v4292_v13  ;;  %v8965_v19 = vsel %vm4165_vm3, %v4292_v13, %v8918_v32  ;;  %v4282_v27 = vsel %vm4281_vm6, %v6681_v53, %v4278_v31 }
0x1124   : > { %v4287_v9 = vsel %vm4284_vm7, %v4286_v16, %v4282_v27  ;;  %v4315_v27 = vunpack.c.l.bf16 %v6138_v24 }
0x1129   : > { %v6685_v55 = vpop.eup %6684 }
0x112a   : > { %v4294_v4 = vmul.f32 %v6685_v55, %v4287_v9 }
0x112c   : > { %v4295_v3 = vsel %vm4165_vm3, %v4294_v4, 0.0  ;;  %v8970_v39 = vsel %vm4165_vm3, %v4294_v4, %v8923_v50  ;;  %v6137_v50 = vld [vmem:[%s7452_s13 + $0x70] sm:$0xff] }
0x112d   : > { %6136 = vst [vmem:[%s7455_s14 + $0x40] sm:$0xff] %v4295_v3  ;;  %v4318_v32 = vpack.c.bf16 %v8970_v39, %v8970_v39  ;;  %v4313_v45 = vunpack.c.l.bf16 %v6137_v50  ;;  %v4314_v36 = vunpack.c.h.bf16 %v6137_v50 }
0x112f   : > { %4327 = vmatmul.bf16.vlgmr.msra.gmra.mxu0 %v4318_v32  ;;  %4340 = vmatmul.bf16.vlgmr.msra.gmra.mxu1 %v4318_v32 }
0x1130   : > { %4353 = vmatmul.bf16.vlgmr.msra.gmra.mxu2 %v4318_v32  ;;  %4366 = vmatmul.bf16.vlgmr.msra.gmra.mxu3 %v4318_v32 }
0x1131   : > { %4607 = vmatpush.bf16.msra.mxu0 %v8362_v34  ;;  %4620 = vmatpush.bf16.msra.mxu1 %v8366_v2 }
0x1132   : > { %4633 = vmatpush.bf16.msra.mxu2 %v8374_v29  ;;  %4646 = vmatpush.bf16.msra.mxu3 %v8370_v21 }
0x1135   : > { %4608 = vmatpush.bf16.msra.mxu0 %v8380_v38  ;;  %4621 = vmatpush.bf16.msra.mxu1 %v8384_v20 }
0x1136   : > { %4634 = vmatpush.bf16.msra.mxu2 %v8399_v56  ;;  %4647 = vmatpush.bf16.msra.mxu3 %v8394_v49 }
0x1139   : > { %4609 = vmatpush.bf16.msra.mxu0 %v8408_v43  ;;  %4622 = vmatpush.bf16.msra.mxu1 %v8412_v12 }
0x113a   : > { %4635 = vmatpush.bf16.msra.mxu2 %v8423_v58  ;;  %4648 = vmatpush.bf16.msra.mxu3 %v8418_v61 }
0x113d   : > { %4610 = vmatpush.bf16.msra.mxu0 %v8430_v54  ;;  %4623 = vmatpush.bf16.msra.mxu1 %v8434_v51 }
0x113e   : > { %4636 = vmatpush.bf16.msra.mxu2 %v8445_v8  ;;  %4649 = vmatpush.bf16.msra.mxu3 %v8440_v60 }
0x1141   : > { %4611 = vmatpush.bf16.msra.mxu0 %v8452_v62  ;;  %4624 = vmatpush.bf16.msra.mxu1 %v8456_v1 }
0x1142   : > { %4637 = vmatpush.bf16.msra.mxu2 %v8466_v33  ;;  %4650 = vmatpush.bf16.msra.mxu3 %v8461_v17 }
0x1145   : > { %4612 = vmatpush.bf16.msra.mxu0 %v8472_v5  ;;  %4625 = vmatpush.bf16.msra.mxu1 %v8476_v18 }
0x1146   : > { %4638 = vmatpush.bf16.msra.mxu2 %v8487_v40  ;;  %4651 = vmatpush.bf16.msra.mxu3 %v8482_v37 }
0x1149   : > { %4613 = vmatpush.bf16.msra.mxu0 %v8494_v6  ;;  %4626 = vmatpush.bf16.msra.mxu1 %v8498_v14 }
0x114a   : > { %4639 = vmatpush.bf16.msra.mxu2 %v8508_v28  ;;  %4652 = vmatpush.bf16.msra.mxu3 %v8503_v59 }
0x114d   : > { %4614 = vmatpush.bf16.msra.mxu0 %v8514_v63  ;;  %4627 = vmatpush.bf16.msra.mxu1 %v8518_v23 }
0x114e   : > { %4640 = vmatpush.bf16.msra.mxu2 %v8531_v11  ;;  %4653 = vmatpush.bf16.msra.mxu3 %v8526_v30 }
0x11ac   : > { %v4328_v53 = vpop.f32.mrf.mxu0  ;;  %v4341_v25 = vpop.f32.mrf.mxu1 }
0x11ad   : > { %v4371_v47 = vadd.f32 %v4328_v53, %v4313_v45  ;;  %v4372_v52 = vadd.f32 %v4341_v25, %v4314_v36 }
0x11af   : > { %v6139_v46 = vmul.f32 -1.442695, %v4371_v47  ;;  %v6140_v7 = vmul.f32 -1.442695, %v4372_v52 }
0x11b1   : > { %6686 = vpow2.f32 %v6139_v46 }
0x11b2   : > { %6688 = vpow2.f32 %v6140_v7 }
0x11b3   : > { %v4354_v22 = vpop.f32.mrf.mxu2  ;;  %v4367_v44 = vpop.f32.mrf.mxu3 }
0x11b4   : > { %v4374_v10 = vadd.f32 %v4367_v44, %v4316_v15  ;;  %v4330_v35 = vpop.f32.mrf.mxu0  ;;  %v4343_v42 = vpop.f32.mrf.mxu1  ;;  %v4373_v4 = vadd.f32 %v4354_v22, %v4315_v27 }
0x11b6   : > { %v6141_v41 = vmul.f32 -1.442695, %v4374_v10 }
0x11b7   : > { %v6687_v26 = vpop.eup %6686 }
0x11b8   : > { %v6689_v57 = vpop.eup %6688  ;;  %v4378_v13 = vadd.f32 1.0, %v6687_v26  ;;  %6690 = vpow2.f32 %v6141_v41 }
0x11b9   : > { %v4397_v31 = vadd.f32 1.0, %v6689_v57 }
0x11ba   : > { %6692 = vrcp.f32 %v4378_v13  ;;  %v4390_v53 = vand.u32 2147483648, %v4378_v13  ;;  %v4388_v52 = vand.u32 2147483647, %v4378_v13  ;;  %vm4384_vm10 = vweird.f32 %v4378_v13 }
0x11bb   : > { %6694 = vrcp.f32 %v4397_v31  ;;  %v4356_v48 = vpop.f32.mrf.mxu2  ;;  %v4369_v0 = vpop.f32.mrf.mxu3  ;;  %v4409_v25 = vand.u32 2147483648, %v4397_v31  ;;  %v4407_v7 = vand.u32 2147483647, %v4397_v31  ;;  %vm4403_vm11 = vweird.f32 %v4397_v31 }
0x11bc   : > { %v4391_v22 = vor.u32 1.1754944e-38, %v4390_v53  ;;  %vm4389_vm14 = vcmp.eq.f32.partialorder %v4388_v52, 8.507059e+37 }
0x11bd   : > { %v4410_v35 = vor.u32 1.1754944e-38, %v4409_v25  ;;  %vm4408_vm15 = vcmp.eq.f32.partialorder %v4407_v7, 8.507059e+37 }
0x11be   : > { %v6691_v16 = vpop.eup %6690 }
0x11bf   : > { %v4417_v55 = vadd.f32 1.0, %v6691_v16 }
0x11c0   : > { %v6693_v9 = vpop.eup %6692 }
0x11c1   : > { %v6695_v3 = vpop.eup %6694  ;;  %v4380_v32 = vmul.f32 %v6693_v9, %v4378_v13  ;;  %6696 = vrcp.f32 %v4417_v55  ;;  %vm4385_vm8 = vweird.f32 %v6693_v9  ;;  %v4308_v13 = vpop.permute.xlu2 %4307  ;;  %vm4423_vm2 = vweird.f32 %v4417_v55 }
0x11c2   : > { %v4399_v50 = vmul.f32 %v6695_v3, %v4397_v31  ;;  %6698 = vtanh.f32 %v4373_v4  ;;  %vm4404_vm9 = vweird.f32 %v6695_v3  ;;  %vm4386_vm12 = vmor %vm4384_vm10, %vm4385_vm8  ;;  %vm4309_vm0 = vcmp.eq.s32.totalorder %v4308_v13, 1 }
0x11c3   : > { %v4381_v45 = vsub.f32 1.0, %v4380_v32  ;;  %vm4405_vm13 = vmor %vm4403_vm11, %vm4404_vm9 }
0x11c4   : > { %v4400_v36 = vsub.f32 1.0, %v4399_v50  ;;  %v4429_v50 = vand.u32 2147483648, %v4417_v55 }
0x11c5   : > { %v4382_v47 = vmul.f32 %v6693_v9, %v4381_v45 }
0x11c6   : > { %v4401_v46 = vmul.f32 %v6695_v3, %v4400_v36  ;;  %v4430_v36 = vor.u32 1.1754944e-38, %v4429_v50 }
0x11c7   : > { %v6697_v24 = vpop.eup %6696  ;;  %v4383_v15 = vadd.f32 %v6693_v9, %v4382_v47 }
0x11c8   : > { %v4402_v44 = vadd.f32 %v6695_v3, %v4401_v46  ;;  %v4419_v10 = vmul.f32 %v6697_v24, %v4417_v55  ;;  %v6699_v41 = vpop.eup %6698  ;;  %vm4424_vm1 = vweird.f32 %v6697_v24 }
0x11c9   : > { %v4387_v42 = vsel %vm4386_vm12, %v6693_v9, %v4383_v15  ;;  %vm4425_vm3 = vmor %vm4423_vm2, %vm4424_vm1 }
0x11ca   : > { %v4392_v26 = vsel %vm4389_vm14, %v4391_v22, %v4387_v42  ;;  %v4406_v57 = vsel %vm4405_vm13, %v6695_v3, %v4402_v44  ;;  %v4420_v48 = vsub.f32 1.0, %v4419_v10  ;;  %v4427_v3 = vand.u32 2147483647, %v4417_v55  ;;  %v6144_v10 = vld [vmem:[%s7452_s13 + $0x68] sm:$0xff] }
0x11cb   : > { %v4411_v0 = vsel %vm4408_vm15, %v4410_v35, %v4406_v57  ;;  %v4435_v27 = vmul.f32 %v6699_v41, %v4392_v26  ;;  %v4460_v41 = vunpack.c.h.bf16 %v6144_v10 }
0x11cc   : > { %v4434_v16 = vmul.f32 %v4411_v0, %v8965_v19  ;;  %v4421_v4 = vmul.f32 %v6697_v24, %v4420_v48  ;;  %vm4428_vm4 = vcmp.eq.f32.partialorder %v4427_v3, 8.507059e+37 }
0x11ce   : > { %v4436_v31 = vadd.f32 %v4435_v27, %v4434_v16  ;;  %v4422_v32 = vadd.f32 %v6697_v24, %v4421_v4 }
0x11d0   : > { %6700 = vtanh.f32 %v4436_v31  ;;  %v9012_v9 = vsel %vm4309_vm0, %v4436_v31, %v8965_v19  ;;  %v4426_v45 = vsel %vm4425_vm3, %v6697_v24, %v4422_v32 }
0x11d1   : > { %v4431_v25 = vsel %vm4428_vm4, %v4430_v36, %v4426_v45  ;;  %v4459_v45 = vunpack.c.l.bf16 %v6144_v10 }
0x11d6   : > { %v6701_v53 = vpop.eup %6700 }
0x11d7   : > { %v4438_v47 = vmul.f32 %v6701_v53, %v4431_v25 }
0x11d9   : > { %v4439_v52 = vsel %vm4309_vm0, %v4438_v47, 0.0  ;;  %v9017_v46 = vsel %vm4309_vm0, %v4438_v47, %v8970_v39  ;;  %v6143_v39 = vld [vmem:[%s7452_s13 + $0x60] sm:$0xff] }
0x11da   : > { %6142 = vst [vmem:[%s7455_s14 + $0x38] sm:$0xff] %v4439_v52  ;;  %v4462_v19 = vpack.c.bf16 %v9017_v46, %v9017_v46  ;;  %v4457_v55 = vunpack.c.l.bf16 %v6143_v39  ;;  %v4458_v7 = vunpack.c.h.bf16 %v6143_v39 }
0x11dc   : > { %4471 = vmatmul.bf16.vlgmr.msrb.gmra.mxu0 %v4462_v19  ;;  %4484 = vmatmul.bf16.vlgmr.msrb.gmra.mxu1 %v4462_v19 }
0x11dd   : > { %4497 = vmatmul.bf16.vlgmr.msrb.gmra.mxu2 %v4462_v19  ;;  %4510 = vmatmul.bf16.vlgmr.msrb.gmra.mxu3 %v4462_v19 }
0x11de   : > { %4751 = vmatpush.bf16.msrb.mxu0 %v8362_v34  ;;  %4764 = vmatpush.bf16.msrb.mxu1 %v8366_v2 }
0x11df   : > { %4777 = vmatpush.bf16.msrb.mxu2 %v8374_v29  ;;  %4790 = vmatpush.bf16.msrb.mxu3 %v8370_v21 }
0x11e2   : > { %4752 = vmatpush.bf16.msrb.mxu0 %v8380_v38  ;;  %4765 = vmatpush.bf16.msrb.mxu1 %v8384_v20 }
0x11e3   : > { %4778 = vmatpush.bf16.msrb.mxu2 %v8399_v56  ;;  %4791 = vmatpush.bf16.msrb.mxu3 %v8394_v49 }
0x11e6   : > { %4753 = vmatpush.bf16.msrb.mxu0 %v8408_v43  ;;  %4766 = vmatpush.bf16.msrb.mxu1 %v8412_v12 }
0x11e7   : > { %4779 = vmatpush.bf16.msrb.mxu2 %v8423_v58  ;;  %4792 = vmatpush.bf16.msrb.mxu3 %v8418_v61 }
0x11ea   : > { %4754 = vmatpush.bf16.msrb.mxu0 %v8430_v54  ;;  %4767 = vmatpush.bf16.msrb.mxu1 %v8434_v51 }
0x11eb   : > { %4780 = vmatpush.bf16.msrb.mxu2 %v8445_v8  ;;  %4793 = vmatpush.bf16.msrb.mxu3 %v8440_v60 }
0x11ee   : > { %4755 = vmatpush.bf16.msrb.mxu0 %v8452_v62  ;;  %4768 = vmatpush.bf16.msrb.mxu1 %v8456_v1 }
0x11ef   : > { %4781 = vmatpush.bf16.msrb.mxu2 %v8466_v33  ;;  %4794 = vmatpush.bf16.msrb.mxu3 %v8461_v17 }
0x11f2   : > { %4756 = vmatpush.bf16.msrb.mxu0 %v8472_v5  ;;  %4769 = vmatpush.bf16.msrb.mxu1 %v8476_v18 }
0x11f3   : > { %4782 = vmatpush.bf16.msrb.mxu2 %v8487_v40  ;;  %4795 = vmatpush.bf16.msrb.mxu3 %v8482_v37 }
0x11f6   : > { %4757 = vmatpush.bf16.msrb.mxu0 %v8494_v6  ;;  %4770 = vmatpush.bf16.msrb.mxu1 %v8498_v14 }
0x11f7   : > { %4783 = vmatpush.bf16.msrb.mxu2 %v8508_v28  ;;  %4796 = vmatpush.bf16.msrb.mxu3 %v8503_v59 }
0x11fa   : > { %4758 = vmatpush.bf16.msrb.mxu0 %v8514_v63  ;;  %4771 = vmatpush.bf16.msrb.mxu1 %v8518_v23 }
0x11fb   : > { %4784 = vmatpush.bf16.msrb.mxu2 %v8531_v11  ;;  %4797 = vmatpush.bf16.msrb.mxu3 %v8526_v30 }
0x1259   : > { %v4472_v24 = vpop.f32.mrf.mxu0  ;;  %v4485_v15 = vpop.f32.mrf.mxu1 }
0x125a   : > { %v4515_v22 = vadd.f32 %v4472_v24, %v4457_v55  ;;  %v4516_v44 = vadd.f32 %v4485_v15, %v4458_v7 }
0x125c   : > { %v6145_v35 = vmul.f32 -1.442695, %v4515_v22  ;;  %v6146_v42 = vmul.f32 -1.442695, %v4516_v44 }
0x125e   : > { %6702 = vpow2.f32 %v6145_v35 }
0x125f   : > { %6704 = vpow2.f32 %v6146_v42 }
0x1260   : > { %v4498_v26 = vpop.f32.mrf.mxu2  ;;  %v4511_v57 = vpop.f32.mrf.mxu3 }
0x1261   : > { %v4518_v48 = vadd.f32 %v4511_v57, %v4460_v41  ;;  %v4474_v0 = vpop.f32.mrf.mxu0  ;;  %v4487_v27 = vpop.f32.mrf.mxu1  ;;  %v4517_v47 = vadd.f32 %v4498_v26, %v4459_v45 }
0x1263   : > { %v6147_v16 = vmul.f32 -1.442695, %v4518_v48 }
0x1264   : > { %v6703_v4 = vpop.eup %6702 }
0x1265   : > { %v6705_v13 = vpop.eup %6704  ;;  %v4522_v31 = vadd.f32 1.0, %v6703_v4  ;;  %6706 = vpow2.f32 %v6147_v16 }
0x1266   : > { %v4541_v32 = vadd.f32 1.0, %v6705_v13 }
0x1267   : > { %6708 = vrcp.f32 %v4522_v31  ;;  %v4534_v24 = vand.u32 2147483648, %v4522_v31  ;;  %v4532_v44 = vand.u32 2147483647, %v4522_v31  ;;  %vm4528_vm7 = vweird.f32 %v4522_v31 }
0x1268   : > { %6710 = vrcp.f32 %v4541_v32  ;;  %v4500_v50 = vpop.f32.mrf.mxu2  ;;  %v4513_v3 = vpop.f32.mrf.mxu3  ;;  %v4553_v15 = vand.u32 2147483648, %v4541_v32  ;;  %v4551_v42 = vand.u32 2147483647, %v4541_v32  ;;  %vm4547_vm8 = vweird.f32 %v4541_v32 }
0x1269   : > { %v4535_v26 = vor.u32 1.1754944e-38, %v4534_v24  ;;  %vm4533_vm11 = vcmp.eq.f32.partialorder %v4532_v44, 8.507059e+37 }
0x126a   : > { %v4554_v0 = vor.u32 1.1754944e-38, %v4553_v15  ;;  %vm4552_vm12 = vcmp.eq.f32.partialorder %v4551_v42, 8.507059e+37 }
0x126b   : > { %v6707_v36 = vpop.eup %6706 }
0x126c   : > { %v4561_v53 = vadd.f32 1.0, %v6707_v36 }
0x126d   : > { %v6709_v25 = vpop.eup %6708 }
0x126e   : > { %v6711_v52 = vpop.eup %6710  ;;  %v4524_v19 = vmul.f32 %v6709_v25, %v4522_v31  ;;  %6712 = vrcp.f32 %v4561_v53  ;;  %vm4529_vm5 = vweird.f32 %v6709_v25  ;;  %v4452_v31 = vpop.permute.xlu0 %4451  ;;  %vm4567_vm15 = vweird.f32 %v4561_v53 }
0x126f   : > { %v4543_v39 = vmul.f32 %v6711_v52, %v4541_v32  ;;  %6714 = vtanh.f32 %v4517_v47  ;;  %vm4548_vm6 = vweird.f32 %v6711_v52  ;;  %vm4530_vm9 = vmor %vm4528_vm7, %vm4529_vm5  ;;  %vm4453_vm13 = vcmp.eq.s32.totalorder %v4452_v31, 1 }
0x1270   : > { %v4525_v55 = vsub.f32 1.0, %v4524_v19  ;;  %vm4549_vm10 = vmor %vm4547_vm8, %vm4548_vm6 }
0x1271   : > { %v4544_v7 = vsub.f32 1.0, %v4543_v39  ;;  %v4573_v39 = vand.u32 2147483648, %v4561_v53 }
0x1272   : > { %v4526_v22 = vmul.f32 %v6709_v25, %v4525_v55 }
0x1273   : > { %v4545_v35 = vmul.f32 %v6711_v52, %v4544_v7  ;;  %v4574_v7 = vor.u32 1.1754944e-38, %v4573_v39 }
0x1274   : > { %v6713_v10 = vpop.eup %6712  ;;  %v4527_v41 = vadd.f32 %v6709_v25, %v4526_v22 }
0x1275   : > { %v4546_v57 = vadd.f32 %v6711_v52, %v4545_v35  ;;  %v4563_v48 = vmul.f32 %v6713_v10, %v4561_v53  ;;  %v6715_v16 = vpop.eup %6714  ;;  %vm4568_vm14 = vweird.f32 %v6713_v10 }
0x1276   : > { %v4531_v27 = vsel %vm4530_vm9, %v6709_v25, %v4527_v41  ;;  %vm4569_vm0 = vmor %vm4567_vm15, %vm4568_vm14 }
0x1277   : > { %v4536_v4 = vsel %vm4533_vm11, %v4535_v26, %v4531_v27  ;;  %v4550_v13 = vsel %vm4549_vm10, %v6711_v52, %v4546_v57  ;;  %v4564_v50 = vsub.f32 1.0, %v4563_v48  ;;  %v4571_v52 = vand.u32 2147483647, %v4561_v53  ;;  %v6150_v48 = vld [vmem:[%s7452_s13 + $0x58] sm:$0xff] }
0x1278   : > { %v4555_v3 = vsel %vm4552_vm12, %v4554_v0, %v4550_v13  ;;  %v4579_v45 = vmul.f32 %v6715_v16, %v4536_v4  ;;  %v4604_v16 = vunpack.c.h.bf16 %v6150_v48 }
0x1279   : > { %v4578_v36 = vmul.f32 %v4555_v3, %v9012_v9  ;;  %v4565_v47 = vmul.f32 %v6713_v10, %v4564_v50  ;;  %vm4572_vm1 = vcmp.eq.f32.partialorder %v4571_v52, 8.507059e+37 }
0x127b   : > { %v4580_v32 = vadd.f32 %v4579_v45, %v4578_v36  ;;  %v4566_v19 = vadd.f32 %v6713_v10, %v4565_v47 }
0x127d   : > { %6716 = vtanh.f32 %v4580_v32  ;;  %v9059_v25 = vsel %vm4453_vm13, %v4580_v32, %v9012_v9  ;;  %v4570_v55 = vsel %vm4569_vm0, %v6713_v10, %v4566_v19 }
0x127e   : > { %v4575_v15 = vsel %vm4572_vm1, %v4574_v7, %v4570_v55  ;;  %v4603_v55 = vunpack.c.l.bf16 %v6150_v48 }
0x1283   : > { %v6717_v24 = vpop.eup %6716 }
0x1284   : > { %v4582_v22 = vmul.f32 %v6717_v24, %v4575_v15 }
0x1286   : > { %v4583_v44 = vsel %vm4453_vm13, %v4582_v22, 0.0  ;;  %v9064_v35 = vsel %vm4453_vm13, %v4582_v22, %v9017_v46  ;;  %v6149_v46 = vld [vmem:[%s7452_s13 + $0x50] sm:$0xff] }
0x1287   : > { %6148 = vst [vmem:[%s7455_s14 + $0x30] sm:$0xff] %v4583_v44  ;;  %v4606_v9 = vpack.c.bf16 %v9064_v35, %v9064_v35  ;;  %v4601_v53 = vunpack.c.l.bf16 %v6149_v46  ;;  %v4602_v42 = vunpack.c.h.bf16 %v6149_v46 }
0x1289   : > { %4615 = vmatmul.bf16.vlgmr.msra.gmra.mxu0 %v4606_v9  ;;  %4628 = vmatmul.bf16.vlgmr.msra.gmra.mxu1 %v4606_v9 }
0x128a   : > { %4641 = vmatmul.bf16.vlgmr.msra.gmra.mxu2 %v4606_v9  ;;  %4654 = vmatmul.bf16.vlgmr.msra.gmra.mxu3 %v4606_v9 }
0x128b   : > { %4895 = vmatpush.bf16.msra.mxu0 %v8362_v34  ;;  %4908 = vmatpush.bf16.msra.mxu1 %v8366_v2 }
0x128c   : > { %4921 = vmatpush.bf16.msra.mxu2 %v8374_v29  ;;  %4934 = vmatpush.bf16.msra.mxu3 %v8370_v21 }
0x128f   : > { %4896 = vmatpush.bf16.msra.mxu0 %v8380_v38  ;;  %4909 = vmatpush.bf16.msra.mxu1 %v8384_v20 }
0x1290   : > { %4922 = vmatpush.bf16.msra.mxu2 %v8399_v56  ;;  %4935 = vmatpush.bf16.msra.mxu3 %v8394_v49 }
0x1293   : > { %4897 = vmatpush.bf16.msra.mxu0 %v8408_v43  ;;  %4910 = vmatpush.bf16.msra.mxu1 %v8412_v12 }
0x1294   : > { %4923 = vmatpush.bf16.msra.mxu2 %v8423_v58  ;;  %4936 = vmatpush.bf16.msra.mxu3 %v8418_v61 }
0x1297   : > { %4898 = vmatpush.bf16.msra.mxu0 %v8430_v54  ;;  %4911 = vmatpush.bf16.msra.mxu1 %v8434_v51 }
0x1298   : > { %4924 = vmatpush.bf16.msra.mxu2 %v8445_v8  ;;  %4937 = vmatpush.bf16.msra.mxu3 %v8440_v60 }
0x129b   : > { %4899 = vmatpush.bf16.msra.mxu0 %v8452_v62  ;;  %4912 = vmatpush.bf16.msra.mxu1 %v8456_v1 }
0x129c   : > { %4925 = vmatpush.bf16.msra.mxu2 %v8466_v33  ;;  %4938 = vmatpush.bf16.msra.mxu3 %v8461_v17 }
0x129f   : > { %4900 = vmatpush.bf16.msra.mxu0 %v8472_v5  ;;  %4913 = vmatpush.bf16.msra.mxu1 %v8476_v18 }
0x12a0   : > { %4926 = vmatpush.bf16.msra.mxu2 %v8487_v40  ;;  %4939 = vmatpush.bf16.msra.mxu3 %v8482_v37 }
0x12a3   : > { %4901 = vmatpush.bf16.msra.mxu0 %v8494_v6  ;;  %4914 = vmatpush.bf16.msra.mxu1 %v8498_v14 }
0x12a4   : > { %4927 = vmatpush.bf16.msra.mxu2 %v8508_v28  ;;  %4940 = vmatpush.bf16.msra.mxu3 %v8503_v59 }
0x12a7   : > { %4902 = vmatpush.bf16.msra.mxu0 %v8514_v63  ;;  %4915 = vmatpush.bf16.msra.mxu1 %v8518_v23 }
0x12a8   : > { %4928 = vmatpush.bf16.msra.mxu2 %v8531_v11  ;;  %4941 = vmatpush.bf16.msra.mxu3 %v8526_v30 }
0x1306   : > { %v4616_v10 = vpop.f32.mrf.mxu0  ;;  %v4629_v41 = vpop.f32.mrf.mxu1 }
0x1307   : > { %v4659_v26 = vadd.f32 %v4616_v10, %v4601_v53  ;;  %v4660_v57 = vadd.f32 %v4629_v41, %v4602_v42 }
0x1309   : > { %v6151_v0 = vmul.f32 -1.442695, %v4659_v26  ;;  %v6152_v27 = vmul.f32 -1.442695, %v4660_v57 }
0x130b   : > { %6718 = vpow2.f32 %v6151_v0 }
0x130c   : > { %6720 = vpow2.f32 %v6152_v27 }
0x130d   : > { %v4642_v4 = vpop.f32.mrf.mxu2  ;;  %v4655_v13 = vpop.f32.mrf.mxu3 }
0x130e   : > { %v4662_v50 = vadd.f32 %v4655_v13, %v4604_v16  ;;  %v4618_v3 = vpop.f32.mrf.mxu0  ;;  %v4631_v45 = vpop.f32.mrf.mxu1  ;;  %v4661_v22 = vadd.f32 %v4642_v4, %v4603_v55 }
0x1310   : > { %v6153_v36 = vmul.f32 -1.442695, %v4662_v50 }
0x1311   : > { %v6719_v47 = vpop.eup %6718 }
0x1312   : > { %v6721_v31 = vpop.eup %6720  ;;  %v4666_v32 = vadd.f32 1.0, %v6719_v47  ;;  %6722 = vpow2.f32 %v6153_v36 }
0x1313   : > { %v4685_v19 = vadd.f32 1.0, %v6721_v31 }
0x1314   : > { %6724 = vrcp.f32 %v4666_v32  ;;  %v4678_v10 = vand.u32 2147483648, %v4666_v32  ;;  %v4676_v57 = vand.u32 2147483647, %v4666_v32  ;;  %vm4672_vm4 = vweird.f32 %v4666_v32 }
0x1315   : > { %6726 = vrcp.f32 %v4685_v19  ;;  %v4644_v39 = vpop.f32.mrf.mxu2  ;;  %v4657_v52 = vpop.f32.mrf.mxu3  ;;  %v4697_v41 = vand.u32 2147483648, %v4685_v19  ;;  %v4695_v27 = vand.u32 2147483647, %v4685_v19  ;;  %vm4691_vm5 = vweird.f32 %v4685_v19 }
0x1316   : > { %v4679_v4 = vor.u32 1.1754944e-38, %v4678_v10  ;;  %vm4677_vm8 = vcmp.eq.f32.partialorder %v4676_v57, 8.507059e+37 }
0x1317   : > { %v4698_v3 = vor.u32 1.1754944e-38, %v4697_v41  ;;  %vm4696_vm9 = vcmp.eq.f32.partialorder %v4695_v27, 8.507059e+37 }
0x1318   : > { %v6723_v7 = vpop.eup %6722 }
0x1319   : > { %v4705_v24 = vadd.f32 1.0, %v6723_v7 }
0x131a   : > { %v6725_v15 = vpop.eup %6724 }
0x131b   : > { %v6727_v44 = vpop.eup %6726  ;;  %v4668_v9 = vmul.f32 %v6725_v15, %v4666_v32  ;;  %6728 = vrcp.f32 %v4705_v24  ;;  %vm4673_vm2 = vweird.f32 %v6725_v15  ;;  %v4596_v32 = vpop.permute.xlu1 %4595  ;;  %vm4711_vm12 = vweird.f32 %v4705_v24 }
0x131c   : > { %v4687_v46 = vmul.f32 %v6727_v44, %v4685_v19  ;;  %6730 = vtanh.f32 %v4661_v22  ;;  %vm4692_vm3 = vweird.f32 %v6727_v44  ;;  %vm4674_vm6 = vmor %vm4672_vm4, %vm4673_vm2  ;;  %vm4597_vm10 = vcmp.eq.s32.totalorder %v4596_v32, 1 }
0x131d   : > { %v4669_v53 = vsub.f32 1.0, %v4668_v9  ;;  %vm4693_vm7 = vmor %vm4691_vm5, %vm4692_vm3 }
0x131e   : > { %v4688_v42 = vsub.f32 1.0, %v4687_v46  ;;  %v4717_v46 = vand.u32 2147483648, %v4705_v24 }
0x131f   : > { %v4670_v26 = vmul.f32 %v6725_v15, %v4669_v53 }
0x1320   : > { %v4689_v0 = vmul.f32 %v6727_v44, %v4688_v42  ;;  %v4718_v42 = vor.u32 1.1754944e-38, %v4717_v46 }
0x1321   : > { %v6729_v48 = vpop.eup %6728  ;;  %v4671_v16 = vadd.f32 %v6725_v15, %v4670_v26 }
0x1322   : > { %v4690_v13 = vadd.f32 %v6727_v44, %v4689_v0  ;;  %v4707_v50 = vmul.f32 %v6729_v48, %v4705_v24  ;;  %v6731_v36 = vpop.eup %6730  ;;  %vm4712_vm11 = vweird.f32 %v6729_v48 }
0x1323   : > { %v4675_v45 = vsel %vm4674_vm6, %v6725_v15, %v4671_v16  ;;  %vm4713_vm13 = vmor %vm4711_vm12, %vm4712_vm11 }
0x1324   : > { %v4680_v47 = vsel %vm4677_vm8, %v4679_v4, %v4675_v45  ;;  %v4694_v31 = vsel %vm4693_vm7, %v6727_v44, %v4690_v13  ;;  %v4708_v39 = vsub.f32 1.0, %v4707_v50  ;;  %v4715_v44 = vand.u32 2147483647, %v4705_v24  ;;  %v6156_v50 = vld [vmem:[%s7452_s13 + $0x48] sm:$0xff] }
0x1325   : > { %v4699_v52 = vsel %vm4696_vm9, %v4698_v3, %v4694_v31  ;;  %v4723_v55 = vmul.f32 %v6731_v36, %v4680_v47  ;;  %v4748_v36 = vunpack.c.h.bf16 %v6156_v50 }
0x1326   : > { %v4722_v7 = vmul.f32 %v4699_v52, %v9059_v25  ;;  %v4709_v22 = vmul.f32 %v6729_v48, %v4708_v39  ;;  %vm4716_vm14 = vcmp.eq.f32.partialorder %v4715_v44, 8.507059e+37 }
0x1328   : > { %v4724_v19 = vadd.f32 %v4723_v55, %v4722_v7  ;;  %v4710_v9 = vadd.f32 %v6729_v48, %v4709_v22 }
0x132a   : > { %6732 = vtanh.f32 %v4724_v19  ;;  %v9106_v15 = vsel %vm4597_vm10, %v4724_v19, %v9059_v25  ;;  %v4714_v53 = vsel %vm4713_vm13, %v6729_v48, %v4710_v9 }
0x132b   : > { %v4719_v41 = vsel %vm4716_vm14, %v4718_v42, %v4714_v53  ;;  %v4747_v53 = vunpack.c.l.bf16 %v6156_v50 }
0x1330   : > { %v6733_v10 = vpop.eup %6732 }
0x1331   : > { %v4726_v26 = vmul.f32 %v6733_v10, %v4719_v41 }
0x1333   : > { %v4727_v57 = vsel %vm4597_vm10, %v4726_v26, 0.0  ;;  %v9111_v0 = vsel %vm4597_vm10, %v4726_v26, %v9064_v35  ;;  %v6155_v35 = vld [vmem:[%s7452_s13 + $0x40] sm:$0xff] }
0x1334   : > { %6154 = vst [vmem:[%s7455_s14 + $0x28] sm:$0xff] %v4727_v57  ;;  %v4750_v25 = vpack.c.bf16 %v9111_v0, %v9111_v0  ;;  %v4745_v24 = vunpack.c.l.bf16 %v6155_v35  ;;  %v4746_v27 = vunpack.c.h.bf16 %v6155_v35 }
0x1336   : > { %4759 = vmatmul.bf16.vlgmr.msrb.gmra.mxu0 %v4750_v25  ;;  %4772 = vmatmul.bf16.vlgmr.msrb.gmra.mxu1 %v4750_v25 }
0x1337   : > { %4785 = vmatmul.bf16.vlgmr.msrb.gmra.mxu2 %v4750_v25  ;;  %4798 = vmatmul.bf16.vlgmr.msrb.gmra.mxu3 %v4750_v25 }
0x1338   : > { %5039 = vmatpush.bf16.msrb.mxu0 %v8362_v34  ;;  %5052 = vmatpush.bf16.msrb.mxu1 %v8366_v2 }
0x1339   : > { %5065 = vmatpush.bf16.msrb.mxu2 %v8374_v29  ;;  %5078 = vmatpush.bf16.msrb.mxu3 %v8370_v21 }
0x133c   : > { %5040 = vmatpush.bf16.msrb.mxu0 %v8380_v38  ;;  %5053 = vmatpush.bf16.msrb.mxu1 %v8384_v20 }
0x133d   : > { %5066 = vmatpush.bf16.msrb.mxu2 %v8399_v56  ;;  %5079 = vmatpush.bf16.msrb.mxu3 %v8394_v49 }
0x1340   : > { %5041 = vmatpush.bf16.msrb.mxu0 %v8408_v43  ;;  %5054 = vmatpush.bf16.msrb.mxu1 %v8412_v12 }
0x1341   : > { %5067 = vmatpush.bf16.msrb.mxu2 %v8423_v58  ;;  %5080 = vmatpush.bf16.msrb.mxu3 %v8418_v61 }
0x1344   : > { %5042 = vmatpush.bf16.msrb.mxu0 %v8430_v54  ;;  %5055 = vmatpush.bf16.msrb.mxu1 %v8434_v51 }
0x1345   : > { %5068 = vmatpush.bf16.msrb.mxu2 %v8445_v8  ;;  %5081 = vmatpush.bf16.msrb.mxu3 %v8440_v60 }
0x1348   : > { %5043 = vmatpush.bf16.msrb.mxu0 %v8452_v62  ;;  %5056 = vmatpush.bf16.msrb.mxu1 %v8456_v1 }
0x1349   : > { %5069 = vmatpush.bf16.msrb.mxu2 %v8466_v33  ;;  %5082 = vmatpush.bf16.msrb.mxu3 %v8461_v17 }
0x134c   : > { %5044 = vmatpush.bf16.msrb.mxu0 %v8472_v5  ;;  %5057 = vmatpush.bf16.msrb.mxu1 %v8476_v18 }
0x134d   : > { %5070 = vmatpush.bf16.msrb.mxu2 %v8487_v40  ;;  %5083 = vmatpush.bf16.msrb.mxu3 %v8482_v37 }
0x1350   : > { %5045 = vmatpush.bf16.msrb.mxu0 %v8494_v6  ;;  %5058 = vmatpush.bf16.msrb.mxu1 %v8498_v14 }
0x1351   : > { %5071 = vmatpush.bf16.msrb.mxu2 %v8508_v28  ;;  %5084 = vmatpush.bf16.msrb.mxu3 %v8503_v59 }
0x1354   : > { %5046 = vmatpush.bf16.msrb.mxu0 %v8514_v63  ;;  %5059 = vmatpush.bf16.msrb.mxu1 %v8518_v23 }
0x1355   : > { %5072 = vmatpush.bf16.msrb.mxu2 %v8531_v11  ;;  %5085 = vmatpush.bf16.msrb.mxu3 %v8526_v30 }
0x13b3   : > { %v4760_v48 = vpop.f32.mrf.mxu0  ;;  %v4773_v16 = vpop.f32.mrf.mxu1 }
0x13b4   : > { %v4803_v4 = vadd.f32 %v4760_v48, %v4745_v24  ;;  %v4804_v13 = vadd.f32 %v4773_v16, %v4746_v27 }
0x13b6   : > { %v6157_v3 = vmul.f32 -1.442695, %v4803_v4  ;;  %v6158_v45 = vmul.f32 -1.442695, %v4804_v13 }
0x13b8   : > { %6734 = vpow2.f32 %v6157_v3 }
0x13b9   : > { %6736 = vpow2.f32 %v6158_v45 }
0x13ba   : > { %v4786_v47 = vpop.f32.mrf.mxu2  ;;  %v4799_v31 = vpop.f32.mrf.mxu3 }
0x13bb   : > { %v4806_v39 = vadd.f32 %v4799_v31, %v4748_v36  ;;  %v4762_v52 = vpop.f32.mrf.mxu0  ;;  %v4775_v55 = vpop.f32.mrf.mxu1  ;;  %v4805_v26 = vadd.f32 %v4786_v47, %v4747_v53 }
0x13bd   : > { %v6159_v7 = vmul.f32 -1.442695, %v4806_v39 }
0x13be   : > { %v6735_v22 = vpop.eup %6734 }
0x13bf   : > { %v6737_v32 = vpop.eup %6736  ;;  %v4810_v19 = vadd.f32 1.0, %v6735_v22  ;;  %6738 = vpow2.f32 %v6159_v7 }
0x13c0   : > { %v4829_v9 = vadd.f32 1.0, %v6737_v32 }
0x13c1   : > { %6740 = vrcp.f32 %v4810_v19  ;;  %v4822_v48 = vand.u32 2147483648, %v4810_v19  ;;  %v4820_v13 = vand.u32 2147483647, %v4810_v19  ;;  %vm4816_vm1 = vweird.f32 %v4810_v19 }
0x13c2   : > { %6742 = vrcp.f32 %v4829_v9  ;;  %v4788_v46 = vpop.f32.mrf.mxu2  ;;  %v4801_v44 = vpop.f32.mrf.mxu3  ;;  %v4841_v16 = vand.u32 2147483648, %v4829_v9  ;;  %v4839_v45 = vand.u32 2147483647, %v4829_v9  ;;  %vm4835_vm2 = vweird.f32 %v4829_v9 }
0x13c3   : > { %v4823_v47 = vor.u32 1.1754944e-38, %v4822_v48  ;;  %vm4821_vm5 = vcmp.eq.f32.partialorder %v4820_v13, 8.507059e+37 }
0x13c4   : > { %v4842_v52 = vor.u32 1.1754944e-38, %v4841_v16  ;;  %vm4840_vm6 = vcmp.eq.f32.partialorder %v4839_v45, 8.507059e+37 }
0x13c5   : > { %v6739_v42 = vpop.eup %6738 }
0x13c6   : > { %v4849_v10 = vadd.f32 1.0, %v6739_v42 }
0x13c7   : > { %v6741_v41 = vpop.eup %6740 }
0x13c8   : > { %v6743_v57 = vpop.eup %6742  ;;  %v4812_v25 = vmul.f32 %v6741_v41, %v4810_v19  ;;  %6744 = vrcp.f32 %v4849_v10  ;;  %vm4817_vm15 = vweird.f32 %v6741_v41  ;;  %v4740_v19 = vpop.permute.xlu2 %4739  ;;  %vm4855_vm9 = vweird.f32 %v4849_v10 }
0x13c9   : > { %v4831_v35 = vmul.f32 %v6743_v57, %v4829_v9  ;;  %6746 = vtanh.f32 %v4805_v26  ;;  %vm4836_vm0 = vweird.f32 %v6743_v57  ;;  %vm4818_vm3 = vmor %vm4816_vm1, %vm4817_vm15  ;;  %vm4741_vm7 = vcmp.eq.s32.totalorder %v4740_v19, 1 }
0x13ca   : > { %v4813_v24 = vsub.f32 1.0, %v4812_v25  ;;  %vm4837_vm4 = vmor %vm4835_vm2, %vm4836_vm0 }
0x13cb   : > { %v4832_v27 = vsub.f32 1.0, %v4831_v35  ;;  %v4861_v35 = vand.u32 2147483648, %v4849_v10 }
0x13cc   : > { %v4814_v4 = vmul.f32 %v6741_v41, %v4813_v24 }
0x13cd   : > { %v4833_v3 = vmul.f32 %v6743_v57, %v4832_v27  ;;  %v4862_v27 = vor.u32 1.1754944e-38, %v4861_v35 }
0x13ce   : > { %v6745_v50 = vpop.eup %6744  ;;  %v4815_v36 = vadd.f32 %v6741_v41, %v4814_v4 }
0x13cf   : > { %v4834_v31 = vadd.f32 %v6743_v57, %v4833_v3  ;;  %v4851_v39 = vmul.f32 %v6745_v50, %v4849_v10  ;;  %v6747_v7 = vpop.eup %6746  ;;  %vm4856_vm8 = vweird.f32 %v6745_v50 }
0x13d0   : > { %v4819_v55 = vsel %vm4818_vm3, %v6741_v41, %v4815_v36  ;;  %vm4857_vm10 = vmor %vm4855_vm9, %vm4856_vm8 }
0x13d1   : > { %v4824_v22 = vsel %vm4821_vm5, %v4823_v47, %v4819_v55  ;;  %v4838_v32 = vsel %vm4837_vm4, %v6743_v57, %v4834_v31  ;;  %v4852_v46 = vsub.f32 1.0, %v4851_v39  ;;  %v4859_v57 = vand.u32 2147483647, %v4849_v10  ;;  %v6162_v39 = vld [vmem:[%s7452_s13 + $0x38] sm:$0xff] }
0x13d2   : > { %v4843_v44 = vsel %vm4840_vm6, %v4842_v52, %v4838_v32  ;;  %v4867_v53 = vmul.f32 %v6747_v7, %v4824_v22  ;;  %v4892_v7 = vunpack.c.h.bf16 %v6162_v39 }
0x13d3   : > { %v4866_v42 = vmul.f32 %v4843_v44, %v9106_v15  ;;  %v4853_v26 = vmul.f32 %v6745_v50, %v4852_v46  ;;  %vm4860_vm11 = vcmp.eq.f32.partialorder %v4859_v57, 8.507059e+37 }
0x13d5   : > { %v4868_v9 = vadd.f32 %v4867_v53, %v4866_v42  ;;  %v4854_v25 = vadd.f32 %v6745_v50, %v4853_v26 }
0x13d7   : > { %6748 = vtanh.f32 %v4868_v9  ;;  %v9153_v41 = vsel %vm4741_vm7, %v4868_v9, %v9106_v15  ;;  %v4858_v24 = vsel %vm4857_vm10, %v6745_v50, %v4854_v25 }
0x13d8   : > { %v4863_v16 = vsel %vm4860_vm11, %v4862_v27, %v4858_v24  ;;  %v4891_v24 = vunpack.c.l.bf16 %v6162_v39 }
0x13dd   : > { %v6749_v48 = vpop.eup %6748 }
0x13de   : > { %v4870_v4 = vmul.f32 %v6749_v48, %v4863_v16 }
0x13e0   : > { %v4871_v13 = vsel %vm4741_vm7, %v4870_v4, 0.0  ;;  %v9158_v3 = vsel %vm4741_vm7, %v4870_v4, %v9111_v0  ;;  %v6161_v0 = vld [vmem:[%s7452_s13 + $0x30] sm:$0xff] }
0x13e1   : > { %6160 = vst [vmem:[%s7455_s14 + $0x20] sm:$0xff] %v4871_v13  ;;  %v4894_v15 = vpack.c.bf16 %v9158_v3, %v9158_v3  ;;  %v4889_v10 = vunpack.c.l.bf16 %v6161_v0  ;;  %v4890_v45 = vunpack.c.h.bf16 %v6161_v0 }
0x13e3   : > { %4903 = vmatmul.bf16.vlgmr.msra.gmra.mxu0 %v4894_v15  ;;  %4916 = vmatmul.bf16.vlgmr.msra.gmra.mxu1 %v4894_v15 }
0x13e4   : > { %4929 = vmatmul.bf16.vlgmr.msra.gmra.mxu2 %v4894_v15  ;;  %4942 = vmatmul.bf16.vlgmr.msra.gmra.mxu3 %v4894_v15 }
0x13e5   : > { %5183 = vmatpush.bf16.msra.mxu0 %v8362_v34  ;;  %5196 = vmatpush.bf16.msra.mxu1 %v8366_v2 }
0x13e6   : > { %5209 = vmatpush.bf16.msra.mxu2 %v8374_v29  ;;  %5222 = vmatpush.bf16.msra.mxu3 %v8370_v21 }
0x13e9   : > { %5184 = vmatpush.bf16.msra.mxu0 %v8380_v38  ;;  %5197 = vmatpush.bf16.msra.mxu1 %v8384_v20 }
0x13ea   : > { %5210 = vmatpush.bf16.msra.mxu2 %v8399_v56  ;;  %5223 = vmatpush.bf16.msra.mxu3 %v8394_v49 }
0x13ed   : > { %5185 = vmatpush.bf16.msra.mxu0 %v8408_v43  ;;  %5198 = vmatpush.bf16.msra.mxu1 %v8412_v12 }
0x13ee   : > { %5211 = vmatpush.bf16.msra.mxu2 %v8423_v58  ;;  %5224 = vmatpush.bf16.msra.mxu3 %v8418_v61 }
0x13f1   : > { %5186 = vmatpush.bf16.msra.mxu0 %v8430_v54  ;;  %5199 = vmatpush.bf16.msra.mxu1 %v8434_v51 }
0x13f2   : > { %5212 = vmatpush.bf16.msra.mxu2 %v8445_v8  ;;  %5225 = vmatpush.bf16.msra.mxu3 %v8440_v60 }
0x13f5   : > { %5187 = vmatpush.bf16.msra.mxu0 %v8452_v62  ;;  %5200 = vmatpush.bf16.msra.mxu1 %v8456_v1 }
0x13f6   : > { %5213 = vmatpush.bf16.msra.mxu2 %v8466_v33  ;;  %5226 = vmatpush.bf16.msra.mxu3 %v8461_v17 }
0x13f9   : > { %5188 = vmatpush.bf16.msra.mxu0 %v8472_v5  ;;  %5201 = vmatpush.bf16.msra.mxu1 %v8476_v18 }
0x13fa   : > { %5214 = vmatpush.bf16.msra.mxu2 %v8487_v40  ;;  %5227 = vmatpush.bf16.msra.mxu3 %v8482_v37 }
0x13fd   : > { %5189 = vmatpush.bf16.msra.mxu0 %v8494_v6  ;;  %5202 = vmatpush.bf16.msra.mxu1 %v8498_v14 }
0x13fe   : > { %5215 = vmatpush.bf16.msra.mxu2 %v8508_v28  ;;  %5228 = vmatpush.bf16.msra.mxu3 %v8503_v59 }
0x1401   : > { %5190 = vmatpush.bf16.msra.mxu0 %v8514_v63  ;;  %5203 = vmatpush.bf16.msra.mxu1 %v8518_v23 }
0x1402   : > { %5216 = vmatpush.bf16.msra.mxu2 %v8531_v11  ;;  %5229 = vmatpush.bf16.msra.mxu3 %v8526_v30 }
0x1460   : > { %v4904_v50 = vpop.f32.mrf.mxu0  ;;  %v4917_v36 = vpop.f32.mrf.mxu1 }
0x1461   : > { %v4947_v47 = vadd.f32 %v4904_v50, %v4889_v10  ;;  %v4948_v31 = vadd.f32 %v4917_v36, %v4890_v45 }
0x1463   : > { %v6163_v52 = vmul.f32 -1.442695, %v4947_v47  ;;  %v6164_v55 = vmul.f32 -1.442695, %v4948_v31 }
0x1465   : > { %6750 = vpow2.f32 %v6163_v52 }
0x1466   : > { %6752 = vpow2.f32 %v6164_v55 }
0x1467   : > { %v4930_v22 = vpop.f32.mrf.mxu2  ;;  %v4943_v32 = vpop.f32.mrf.mxu3 }
0x1468   : > { %v4950_v46 = vadd.f32 %v4943_v32, %v4892_v7  ;;  %v4906_v44 = vpop.f32.mrf.mxu0  ;;  %v4919_v53 = vpop.f32.mrf.mxu1  ;;  %v4949_v4 = vadd.f32 %v4930_v22, %v4891_v24 }
0x146a   : > { %v6165_v42 = vmul.f32 -1.442695, %v4950_v46 }
0x146b   : > { %v6751_v26 = vpop.eup %6750 }
0x146c   : > { %v6753_v19 = vpop.eup %6752  ;;  %v4954_v9 = vadd.f32 1.0, %v6751_v26  ;;  %6754 = vpow2.f32 %v6165_v42 }
0x146d   : > { %v4973_v25 = vadd.f32 1.0, %v6753_v19 }
0x146e   : > { %6756 = vrcp.f32 %v4954_v9  ;;  %v4966_v50 = vand.u32 2147483648, %v4954_v9  ;;  %v4964_v31 = vand.u32 2147483647, %v4954_v9  ;;  %vm4960_vm14 = vweird.f32 %v4954_v9 }
0x146f   : > { %6758 = vrcp.f32 %v4973_v25  ;;  %v4932_v35 = vpop.f32.mrf.mxu2  ;;  %v4945_v57 = vpop.f32.mrf.mxu3  ;;  %v4985_v36 = vand.u32 2147483648, %v4973_v25  ;;  %v4983_v55 = vand.u32 2147483647, %v4973_v25  ;;  %vm4979_vm15 = vweird.f32 %v4973_v25 }
0x1470   : > { %v4967_v22 = vor.u32 1.1754944e-38, %v4966_v50  ;;  %vm4965_vm2 = vcmp.eq.f32.partialorder %v4964_v31, 8.507059e+37 }
0x1471   : > { %v4986_v44 = vor.u32 1.1754944e-38, %v4985_v36  ;;  %vm4984_vm3 = vcmp.eq.f32.partialorder %v4983_v55, 8.507059e+37 }
0x1472   : > { %v6755_v27 = vpop.eup %6754 }
0x1473   : > { %v4993_v48 = vadd.f32 1.0, %v6755_v27 }
0x1474   : > { %v6757_v16 = vpop.eup %6756 }
0x1475   : > { %v6759_v13 = vpop.eup %6758  ;;  %v4956_v15 = vmul.f32 %v6757_v16, %v4954_v9  ;;  %6760 = vrcp.f32 %v4993_v48  ;;  %vm4961_vm12 = vweird.f32 %v6757_v16  ;;  %v4884_v9 = vpop.permute.xlu0 %4883  ;;  %vm4999_vm6 = vweird.f32 %v4993_v48 }
0x1476   : > { %v4975_v0 = vmul.f32 %v6759_v13, %v4973_v25  ;;  %6762 = vtanh.f32 %v4949_v4  ;;  %vm4980_vm13 = vweird.f32 %v6759_v13  ;;  %vm4962_vm0 = vmor %vm4960_vm14, %vm4961_vm12  ;;  %vm4885_vm4 = vcmp.eq.s32.totalorder %v4884_v9, 1 }
0x1477   : > { %v4957_v10 = vsub.f32 1.0, %v4956_v15  ;;  %vm4981_vm1 = vmor %vm4979_vm15, %vm4980_vm13 }
0x1478   : > { %v4976_v45 = vsub.f32 1.0, %v4975_v0  ;;  %v5005_v0 = vand.u32 2147483648, %v4993_v48 }
0x1479   : > { %v4958_v47 = vmul.f32 %v6757_v16, %v4957_v10 }
0x147a   : > { %v4977_v52 = vmul.f32 %v6759_v13, %v4976_v45  ;;  %v5006_v45 = vor.u32 1.1754944e-38, %v5005_v0 }
0x147b   : > { %v6761_v39 = vpop.eup %6760  ;;  %v4959_v7 = vadd.f32 %v6757_v16, %v4958_v47 }
0x147c   : > { %v4978_v32 = vadd.f32 %v6759_v13, %v4977_v52  ;;  %v4995_v46 = vmul.f32 %v6761_v39, %v4993_v48  ;;  %v6763_v42 = vpop.eup %6762  ;;  %vm5000_vm5 = vweird.f32 %v6761_v39 }
0x147d   : > { %v4963_v53 = vsel %vm4962_vm0, %v6757_v16, %v4959_v7  ;;  %vm5001_vm7 = vmor %vm4999_vm6, %vm5000_vm5 }
0x147e   : > { %v4968_v26 = vsel %vm4965_vm2, %v4967_v22, %v4963_v53  ;;  %v4982_v19 = vsel %vm4981_vm1, %v6759_v13, %v4978_v32  ;;  %v4996_v35 = vsub.f32 1.0, %v4995_v46  ;;  %v5003_v13 = vand.u32 2147483647, %v4993_v48 }
0x147f   : > { %v4987_v57 = vsel %vm4984_vm3, %v4986_v44, %v4982_v19  ;;  %v5011_v24 = vmul.f32 %v6763_v42, %v4968_v26 }
0x1480   : > { %v5010_v27 = vmul.f32 %v4987_v57, %v9153_v41  ;;  %v4997_v4 = vmul.f32 %v6761_v39, %v4996_v35  ;;  %vm5004_vm8 = vcmp.eq.f32.partialorder %v5003_v13, 8.507059e+37 }
0x1482   : > { %v5012_v25 = vadd.f32 %v5011_v24, %v5010_v27  ;;  %v4998_v15 = vadd.f32 %v6761_v39, %v4997_v4 }
0x1484   : > { %6764 = vtanh.f32 %v5012_v25  ;;  %v9200_v16 = vsel %vm4885_vm4, %v5012_v25, %v9153_v41  ;;  %v5002_v10 = vsel %vm5001_vm7, %v6761_v39, %v4998_v15  ;;  %v5028_v15 = vpop.permute.xlu1 %5027 }
0x1485   : > { %v5007_v36 = vsel %vm5004_vm8, %v5006_v45, %v5002_v10  ;;  %vm5029_vm1 = vcmp.eq.s32.totalorder %v5028_v15, 1 }
0x148a   : > { %v6765_v50 = vpop.eup %6764 }
0x148b   : > { %v5014_v47 = vmul.f32 %v6765_v50, %v5007_v36 }
0x148d   : > { %v5015_v31 = vsel %vm4885_vm4, %v5014_v47, 0.0  ;;  %v9205_v52 = vsel %vm4885_vm4, %v5014_v47, %v9158_v3 }
0x148e   : > { %6166 = vst [vmem:[%s7455_s14 + $0x18] sm:$0xff] %v5015_v31  ;;  %v5038_v41 = vpack.c.bf16 %v9205_v52, %v9205_v52 }
0x1490   : > { %5047 = vmatmul.bf16.vlgmr.msrb.gmra.mxu0 %v5038_v41  ;;  %5060 = vmatmul.bf16.vlgmr.msrb.gmra.mxu1 %v5038_v41 }
0x1491   : > { %5073 = vmatmul.bf16.vlgmr.msrb.gmra.mxu2 %v5038_v41  ;;  %5086 = vmatmul.bf16.vlgmr.msrb.gmra.mxu3 %v5038_v41 }
0x1492   : > { %5326 = vmatpush.bf16.msrb.mxu0 %v8362_v34  ;;  %5339 = vmatpush.bf16.msrb.mxu1 %v8366_v2  ;;  %v6167_v34 = vld [vmem:[%s7452_s13 + $0x20] sm:$0xff] }
0x1493   : > { %5352 = vmatpush.bf16.msrb.mxu2 %v8374_v29  ;;  %5365 = vmatpush.bf16.msrb.mxu3 %v8370_v21  ;;  %v5033_v2 = vunpack.c.l.bf16 %v6167_v34  ;;  %v5034_v21 = vunpack.c.h.bf16 %v6167_v34 }
0x1496   : > { %5327 = vmatpush.bf16.msrb.mxu0 %v8380_v38  ;;  %5340 = vmatpush.bf16.msrb.mxu1 %v8384_v20 }
0x1497   : > { %5353 = vmatpush.bf16.msrb.mxu2 %v8399_v56  ;;  %5366 = vmatpush.bf16.msrb.mxu3 %v8394_v49  ;;  %v6168_v56 = vld [vmem:[%s7452_s13 + $0x28] sm:$0xff] }
0x149a   : > { %5328 = vmatpush.bf16.msrb.mxu0 %v8408_v43  ;;  %5341 = vmatpush.bf16.msrb.mxu1 %v8412_v12 }
0x149b   : > { %5354 = vmatpush.bf16.msrb.mxu2 %v8423_v58  ;;  %5367 = vmatpush.bf16.msrb.mxu3 %v8418_v61  ;;  %v5036_v61 = vunpack.c.h.bf16 %v6168_v56 }
0x149e   : > { %5329 = vmatpush.bf16.msrb.mxu0 %v8430_v54  ;;  %5342 = vmatpush.bf16.msrb.mxu1 %v8434_v51 }
0x149f   : > { %5355 = vmatpush.bf16.msrb.mxu2 %v8445_v8  ;;  %5368 = vmatpush.bf16.msrb.mxu3 %v8440_v60 }
0x14a2   : > { %5330 = vmatpush.bf16.msrb.mxu0 %v8452_v62  ;;  %5343 = vmatpush.bf16.msrb.mxu1 %v8456_v1 }
0x14a3   : > { %5356 = vmatpush.bf16.msrb.mxu2 %v8466_v33  ;;  %5369 = vmatpush.bf16.msrb.mxu3 %v8461_v17 }
0x14a6   : > { %5331 = vmatpush.bf16.msrb.mxu0 %v8472_v5  ;;  %5344 = vmatpush.bf16.msrb.mxu1 %v8476_v18 }
0x14a7   : > { %5357 = vmatpush.bf16.msrb.mxu2 %v8487_v40  ;;  %5370 = vmatpush.bf16.msrb.mxu3 %v8482_v37  ;;  %v5035_v40 = vunpack.c.l.bf16 %v6168_v56 }
0x14aa   : > { %5332 = vmatpush.bf16.msrb.mxu0 %v8494_v6  ;;  %5345 = vmatpush.bf16.msrb.mxu1 %v8498_v14 }
0x14ab   : > { %5358 = vmatpush.bf16.msrb.mxu2 %v8508_v28  ;;  %5371 = vmatpush.bf16.msrb.mxu3 %v8503_v59 }
0x14ae   : > { %5333 = vmatpush.bf16.msrb.mxu0 %v8514_v63  ;;  %5346 = vmatpush.bf16.msrb.mxu1 %v8518_v23 }
0x14af   : > { %5359 = vmatpush.bf16.msrb.mxu2 %v8531_v11  ;;  %5372 = vmatpush.bf16.msrb.mxu3 %v8526_v30 }
0x150d   : > { %v5048_v29 = vpop.f32.mrf.mxu0  ;;  %v5061_v38 = vpop.f32.mrf.mxu1 }
0x150e   : > { %v5091_v20 = vadd.f32 %v5048_v29, %v5033_v2  ;;  %v5092_v49 = vadd.f32 %v5061_v38, %v5034_v21 }
0x1510   : > { %v6169_v43 = vmul.f32 -1.442695, %v5091_v20  ;;  %v6170_v12 = vmul.f32 -1.442695, %v5092_v49  ;;  %v6173_v20 = vld [vmem:[%s7452_s13 + $0x10] sm:$0xff] }
0x1511   : > { %v5177_v49 = vunpack.c.l.bf16 %v6173_v20  ;;  %v5178_v56 = vunpack.c.h.bf16 %v6173_v20 }
0x1512   : > { %6766 = vpow2.f32 %v6169_v43 }
0x1513   : > { %6768 = vpow2.f32 %v6170_v12 }
0x1514   : > { %v5074_v58 = vpop.f32.mrf.mxu2  ;;  %v5087_v54 = vpop.f32.mrf.mxu3 }
0x1515   : > { %v5094_v51 = vadd.f32 %v5087_v54, %v5036_v61  ;;  %v5050_v60 = vpop.f32.mrf.mxu0  ;;  %v5063_v8 = vpop.f32.mrf.mxu1  ;;  %v5093_v28 = vadd.f32 %v5074_v58, %v5035_v40  ;;  %v6174_v54 = vld [vmem:[%s7452_s13 + $0x18] sm:$0xff] }
0x1517   : > { %v6171_v62 = vmul.f32 -1.442695, %v5094_v51 }
0x1518   : > { %v6767_v1 = vpop.eup %6766 }
0x1519   : > { %v6769_v17 = vpop.eup %6768  ;;  %v5098_v33 = vadd.f32 1.0, %v6767_v1  ;;  %6770 = vpow2.f32 %v6171_v62 }
0x151a   : > { %v5117_v5 = vadd.f32 1.0, %v6769_v17 }
0x151b   : > { %6772 = vrcp.f32 %v5098_v33  ;;  %v5110_v48 = vand.u32 2147483648, %v5098_v33  ;;  %v5108_v7 = vand.u32 2147483647, %v5098_v33  ;;  %vm5104_vm11 = vweird.f32 %v5098_v33 }
0x151c   : > { %6774 = vrcp.f32 %v5117_v5  ;;  %v5076_v18 = vpop.f32.mrf.mxu2  ;;  %v5089_v37 = vpop.f32.mrf.mxu3  ;;  %v5129_v55 = vand.u32 2147483648, %v5117_v5  ;;  %v5127_v32 = vand.u32 2147483647, %v5117_v5  ;;  %vm5123_vm12 = vweird.f32 %v5117_v5 }
0x151d   : > { %v5111_v53 = vor.u32 1.1754944e-38, %v5110_v48  ;;  %vm5109_vm15 = vcmp.eq.f32.partialorder %v5108_v7, 8.507059e+37 }
0x151e   : > { %v5130_v19 = vor.u32 1.1754944e-38, %v5129_v55  ;;  %vm5128_vm0 = vcmp.eq.f32.partialorder %v5127_v32, 8.507059e+37 }
0x151f   : > { %v6771_v6 = vpop.eup %6770 }
0x1520   : > { %v5137_v14 = vadd.f32 1.0, %v6771_v6 }
0x1521   : > { %v6773_v59 = vpop.eup %6772 }
0x1522   : > { %v6775_v63 = vpop.eup %6774  ;;  %v5100_v23 = vmul.f32 %v6773_v59, %v5098_v33  ;;  %6776 = vrcp.f32 %v5137_v14  ;;  %vm5105_vm9 = vweird.f32 %v6773_v59  ;;  %v5149_v36 = vand.u32 2147483648, %v5137_v14 }
0x1523   : > { %v5119_v30 = vmul.f32 %v6775_v63, %v5117_v5  ;;  %6778 = vtanh.f32 %v5093_v28  ;;  %vm5124_vm10 = vweird.f32 %v6775_v63  ;;  %vm5106_vm13 = vmor %vm5104_vm11, %vm5105_vm9  ;;  %vm5143_vm3 = vweird.f32 %v5137_v14 }
0x1524   : > { %v5101_v11 = vsub.f32 1.0, %v5100_v23  ;;  %vm5125_vm14 = vmor %vm5123_vm12, %vm5124_vm10  ;;  %v5147_v47 = vand.u32 2147483647, %v5137_v14  ;;  %v5150_v41 = vor.u32 1.1754944e-38, %v5149_v36  ;;  %v5179_v28 = vunpack.c.l.bf16 %v6174_v54 }
0x1525   : > { %v5120_v3 = vsub.f32 1.0, %v5119_v30 }
0x1526   : > { %v5102_v39 = vmul.f32 %v6773_v59, %v5101_v11  ;;  %vm5148_vm5 = vcmp.eq.f32.partialorder %v5147_v47, 8.507059e+37 }
0x1527   : > { %v5121_v22 = vmul.f32 %v6775_v63, %v5120_v3 }
0x1528   : > { %v6777_v46 = vpop.eup %6776  ;;  %v5103_v44 = vadd.f32 %v6773_v59, %v5102_v39 }
0x1529   : > { %v5122_v42 = vadd.f32 %v6775_v63, %v5121_v22  ;;  %v5139_v26 = vmul.f32 %v6777_v46, %v5137_v14  ;;  %v6779_v57 = vpop.eup %6778  ;;  %vm5144_vm2 = vweird.f32 %v6777_v46 }
0x152a   : > { %v5107_v35 = vsel %vm5106_vm13, %v6773_v59, %v5103_v44  ;;  %vm5145_vm4 = vmor %vm5143_vm3, %vm5144_vm2 }
0x152b   : > { %v5112_v24 = vsel %vm5109_vm15, %v5111_v53, %v5107_v35  ;;  %v5126_v27 = vsel %vm5125_vm14, %v6775_v63, %v5122_v42  ;;  %v5140_v4 = vsub.f32 1.0, %v5139_v26 }
0x152c   : > { %v5131_v9 = vsel %vm5128_vm0, %v5130_v19, %v5126_v27  ;;  %v5155_v25 = vmul.f32 %v6779_v57, %v5112_v24 }
0x152d   : > { %v5154_v0 = vmul.f32 %v5131_v9, %v9200_v16  ;;  %v5141_v13 = vmul.f32 %v6777_v46, %v5140_v4 }
0x152f   : > { %v5156_v10 = vadd.f32 %v5155_v25, %v5154_v0  ;;  %v5142_v45 = vadd.f32 %v6777_v46, %v5141_v13 }
0x1531   : > { %6780 = vtanh.f32 %v5156_v10  ;;  %v9247_v50 = vsel %vm5029_vm1, %v5156_v10, %v9200_v16  ;;  %v5146_v31 = vsel %vm5145_vm4, %v6777_v46, %v5142_v45  ;;  %v5172_v45 = vpop.permute.xlu2 %5171 }
0x1532   : > { %v5151_v2 = vsel %vm5148_vm5, %v5150_v41, %v5146_v31  ;;  %vm5173_vm14 = vcmp.eq.s32.totalorder %v5172_v45, 1 }
0x1537   : > { %v6781_v34 = vpop.eup %6780 }
0x1538   : > { %v5158_v21 = vmul.f32 %v6781_v34, %v5151_v2 }
0x153a   : > { %v5159_v29 = vsel %vm5029_vm1, %v5158_v21, 0.0  ;;  %v9252_v38 = vsel %vm5029_vm1, %v5158_v21, %v9205_v52  ;;  %v5180_v52 = vunpack.c.h.bf16 %v6174_v54 }
0x153b   : > { %6172 = vst [vmem:[%s7455_s14 + $0x10] sm:$0xff] %v5159_v29  ;;  %v5182_v16 = vpack.c.bf16 %v9252_v38, %v9252_v38 }
0x153d   : > { %5191 = vmatmul.bf16.vlgmr.msra.gmra.mxu0 %v5182_v16  ;;  %5204 = vmatmul.bf16.vlgmr.msra.gmra.mxu1 %v5182_v16 }
0x153e   : > { %5217 = vmatmul.bf16.vlgmr.msra.gmra.mxu2 %v5182_v16  ;;  %5230 = vmatmul.bf16.vlgmr.msra.gmra.mxu3 %v5182_v16 }
0x15ba   : > { %v5192_v43 = vpop.f32.mrf.mxu0  ;;  %v5205_v12 = vpop.f32.mrf.mxu1 }
0x15bb   : > { %v5235_v61 = vadd.f32 %v5192_v43, %v5177_v49  ;;  %v5236_v58 = vadd.f32 %v5205_v12, %v5178_v56 }
0x15bd   : > { %v6175_v51 = vmul.f32 -1.442695, %v5235_v61  ;;  %v6176_v60 = vmul.f32 -1.442695, %v5236_v58  ;;  %v5318_v61 = vld [vmem:[%s7452_s13] sm:$0xff] }
0x15be   : > { %v5320_v58 = vunpack.c.l.bf16 %v5318_v61  ;;  %v5321_v54 = vunpack.c.h.bf16 %v5318_v61 }
0x15bf   : > { %6782 = vpow2.f32 %v6175_v51 }
0x15c0   : > { %6784 = vpow2.f32 %v6176_v60 }
0x15c1   : > { %v5218_v8 = vpop.f32.mrf.mxu2  ;;  %v5231_v62 = vpop.f32.mrf.mxu3 }
0x15c2   : > { %v5238_v1 = vadd.f32 %v5231_v62, %v5180_v52  ;;  %v5194_v17 = vpop.f32.mrf.mxu0  ;;  %v5207_v33 = vpop.f32.mrf.mxu1  ;;  %v5237_v11 = vadd.f32 %v5218_v8, %v5179_v28  ;;  %v5319_v62 = vld [vmem:[%s7452_s13 + $0x8] sm:$0xff] }
0x15c4   : > { %v6177_v5 = vmul.f32 -1.442695, %v5238_v1 }
0x15c5   : > { %v6783_v18 = vpop.eup %6782 }
0x15c6   : > { %v6785_v37 = vpop.eup %6784  ;;  %v5242_v40 = vadd.f32 1.0, %v6783_v18  ;;  %6786 = vpow2.f32 %v6177_v5 }
0x15c7   : > { %v5261_v6 = vadd.f32 1.0, %v6785_v37 }
0x15c8   : > { %6788 = vrcp.f32 %v5242_v40  ;;  %v5254_v22 = vand.u32 2147483648, %v5242_v40  ;;  %v5252_v44 = vand.u32 2147483647, %v5242_v40  ;;  %vm5248_vm8 = vweird.f32 %v5242_v40 }
0x15c9   : > { %6790 = vrcp.f32 %v5261_v6  ;;  %v5220_v14 = vpop.f32.mrf.mxu2  ;;  %v5233_v59 = vpop.f32.mrf.mxu3  ;;  %v5273_v32 = vand.u32 2147483648, %v5261_v6  ;;  %v5271_v42 = vand.u32 2147483647, %v5261_v6  ;;  %vm5267_vm9 = vweird.f32 %v5261_v6 }
0x15ca   : > { %v5255_v35 = vor.u32 1.1754944e-38, %v5254_v22  ;;  %vm5253_vm12 = vcmp.eq.f32.partialorder %v5252_v44, 8.507059e+37 }
0x15cb   : > { %v5274_v27 = vor.u32 1.1754944e-38, %v5273_v32  ;;  %vm5272_vm13 = vcmp.eq.f32.partialorder %v5271_v42, 8.507059e+37 }
0x15cc   : > { %v6787_v63 = vpop.eup %6786 }
0x15cd   : > { %v5281_v23 = vadd.f32 1.0, %v6787_v63 }
0x15ce   : > { %v6789_v30 = vpop.eup %6788 }
0x15cf   : > { %v6791_v3 = vpop.eup %6790  ;;  %v5244_v48 = vmul.f32 %v6789_v30, %v5242_v40  ;;  %6792 = vrcp.f32 %v5281_v23  ;;  %vm5249_vm6 = vweird.f32 %v6789_v30  ;;  %v5293_v2 = vand.u32 2147483648, %v5281_v23 }
0x15d0   : > { %v5263_v55 = vmul.f32 %v6791_v3, %v5261_v6  ;;  %6794 = vtanh.f32 %v5237_v11  ;;  %vm5268_vm7 = vweird.f32 %v6791_v3  ;;  %vm5250_vm10 = vmor %vm5248_vm8, %vm5249_vm6  ;;  %vm5287_vm0 = vweird.f32 %v5281_v23 }
0x15d1   : > { %v5245_v39 = vsub.f32 1.0, %v5244_v48  ;;  %vm5269_vm11 = vmor %vm5267_vm9, %vm5268_vm7  ;;  %v5291_v21 = vand.u32 2147483647, %v5281_v23  ;;  %v5294_v16 = vor.u32 1.1754944e-38, %v5293_v2  ;;  %v5322_v11 = vunpack.c.l.bf16 %v5319_v62 }
0x15d2   : > { %v5264_v7 = vsub.f32 1.0, %v5263_v55 }
0x15d3   : > { %v5246_v46 = vmul.f32 %v6789_v30, %v5245_v39  ;;  %vm5292_vm2 = vcmp.eq.f32.partialorder %v5291_v21, 8.507059e+37 }
0x15d4   : > { %v5265_v53 = vmul.f32 %v6791_v3, %v5264_v7 }
0x15d5   : > { %v6793_v26 = vpop.eup %6792  ;;  %v5247_v19 = vadd.f32 %v6789_v30, %v5246_v46 }
0x15d6   : > { %v5266_v57 = vadd.f32 %v6791_v3, %v5265_v53  ;;  %v5283_v24 = vmul.f32 %v6793_v26, %v5281_v23  ;;  %v6795_v9 = vpop.eup %6794  ;;  %vm5288_vm15 = vweird.f32 %v6793_v26 }
0x15d7   : > { %v5251_v4 = vsel %vm5250_vm10, %v6789_v30, %v5247_v19  ;;  %vm5289_vm1 = vmor %vm5287_vm0, %vm5288_vm15 }
0x15d8   : > { %v5256_v25 = vsel %vm5253_vm12, %v5255_v35, %v5251_v4  ;;  %v5270_v15 = vsel %vm5269_vm11, %v6791_v3, %v5266_v57  ;;  %v5284_v0 = vsub.f32 1.0, %v5283_v24 }
0x15d9   : > { %v5275_v13 = vsel %vm5272_vm13, %v5274_v27, %v5270_v15  ;;  %v5299_v10 = vmul.f32 %v6795_v9, %v5256_v25 }
0x15da   : > { %v5298_v36 = vmul.f32 %v5275_v13, %v9247_v50  ;;  %v5285_v47 = vmul.f32 %v6793_v26, %v5284_v0 }
0x15dc   : > { %v5300_v31 = vadd.f32 %v5299_v10, %v5298_v36  ;;  %v5286_v41 = vadd.f32 %v6793_v26, %v5285_v47 }
0x15de   : > { %6796 = vtanh.f32 %v5300_v31  ;;  %v9262_v34 = vsel %vm5173_vm14, %v5300_v31, %v9247_v50  ;;  %v5290_v29 = vsel %vm5289_vm1, %v6793_v26, %v5286_v41  ;;  %v5316_v41 = vpop.permute.xlu0 %5315 }
0x15df   : > { %v5295_v49 = vsel %vm5292_vm2, %v5294_v16, %v5290_v29  ;;  %vm5317_vm11 = vcmp.eq.s32.totalorder %v5316_v41, 1 }
0x15e4   : > { %v6797_v20 = vpop.eup %6796 }
0x15e5   : > { %v5302_v56 = vmul.f32 %v6797_v20, %v5295_v49 }
0x15e7   : > { %v5303_v43 = vsel %vm5173_vm14, %v5302_v56, 0.0  ;;  %v9267_v12 = vsel %vm5173_vm14, %v5302_v56, %v9252_v38  ;;  %v5323_v38 = vunpack.c.h.bf16 %v5319_v62 }
0x15e8   : > { %6178 = vst [vmem:[%s7455_s14 + $0x8] sm:$0xff] %v5303_v43  ;;  %v5325_v50 = vpack.c.bf16 %v9267_v12, %v9267_v12 }
0x15ea   : > { %5334 = vmatmul.bf16.vlgmr.msrb.gmra.mxu0 %v5325_v50  ;;  %5347 = vmatmul.bf16.vlgmr.msrb.gmra.mxu1 %v5325_v50 }
0x15eb   : > { %5360 = vmatmul.bf16.vlgmr.msrb.gmra.mxu2 %v5325_v50  ;;  %5373 = vmatmul.bf16.vlgmr.msrb.gmra.mxu3 %v5325_v50 }
0x1667   : > { %v5335_v51 = vpop.f32.mrf.mxu0  ;;  %v5348_v60 = vpop.f32.mrf.mxu1 }
0x1668   : > { %v5378_v52 = vadd.f32 %v5335_v51, %v5320_v58  ;;  %v5379_v8 = vadd.f32 %v5348_v60, %v5321_v54 }
0x166a   : > { %v6179_v1 = vmul.f32 -1.442695, %v5378_v52  ;;  %v6180_v17 = vmul.f32 -1.442695, %v5379_v8 }
0x166c   : > { %6798 = vpow2.f32 %v6179_v1 }
0x166d   : > { %6800 = vpow2.f32 %v6180_v17 }
0x166e   : > { %v5361_v33 = vpop.f32.mrf.mxu2  ;;  %v5374_v5 = vpop.f32.mrf.mxu3 }
0x166f   : > { %v5381_v18 = vadd.f32 %v5374_v5, %v5323_v38  ;;  %v5337_v37 = vpop.f32.mrf.mxu0  ;;  %v5350_v40 = vpop.f32.mrf.mxu1  ;;  %v5380_v39 = vadd.f32 %v5361_v33, %v5322_v11 }
0x1671   : > { %v6181_v6 = vmul.f32 -1.442695, %v5381_v18 }
0x1672   : > { %v6799_v14 = vpop.eup %6798 }
0x1673   : > { %v6801_v59 = vpop.eup %6800  ;;  %v5385_v28 = vadd.f32 1.0, %v6799_v14  ;;  %6802 = vpow2.f32 %v6181_v6 }
0x1674   : > { %v5404_v63 = vadd.f32 1.0, %v6801_v59 }
0x1675   : > { %6804 = vrcp.f32 %v5385_v28  ;;  %v5397_v53 = vand.u32 2147483648, %v5385_v28  ;;  %v5395_v19 = vand.u32 2147483647, %v5385_v28  ;;  %vm5391_vm5 = vweird.f32 %v5385_v28 }
0x1676   : > { %6806 = vrcp.f32 %v5404_v63  ;;  %v5363_v23 = vpop.f32.mrf.mxu2  ;;  %v5376_v30 = vpop.f32.mrf.mxu3  ;;  %v5416_v42 = vand.u32 2147483648, %v5404_v63  ;;  %v5414_v57 = vand.u32 2147483647, %v5404_v63  ;;  %vm5410_vm6 = vweird.f32 %v5404_v63 }
0x1677   : > { %v5398_v4 = vor.u32 1.1754944e-38, %v5397_v53  ;;  %vm5396_vm9 = vcmp.eq.f32.partialorder %v5395_v19, 8.507059e+37 }
0x1678   : > { %v5417_v15 = vor.u32 1.1754944e-38, %v5416_v42  ;;  %vm5415_vm10 = vcmp.eq.f32.partialorder %v5414_v57, 8.507059e+37 }
0x1679   : > { %v6803_v3 = vpop.eup %6802 }
0x167a   : > { %v5424_v48 = vadd.f32 1.0, %v6803_v3 }
0x167b   : > { %v6805_v55 = vpop.eup %6804 }
0x167c   : > { %v6807_v7 = vpop.eup %6806  ;;  %v5387_v22 = vmul.f32 %v6805_v55, %v5385_v28  ;;  %6808 = vrcp.f32 %v5424_v48  ;;  %vm5392_vm3 = vweird.f32 %v6805_v55  ;;  %v5436_v49 = vand.u32 2147483648, %v5424_v48 }
0x167d   : > { %v5406_v32 = vmul.f32 %v6807_v7, %v5404_v63  ;;  %6810 = vtanh.f32 %v5380_v39  ;;  %vm5411_vm4 = vweird.f32 %v6807_v7  ;;  %vm5393_vm7 = vmor %vm5391_vm5, %vm5392_vm3  ;;  %vm5430_vm13 = vweird.f32 %v5424_v48 }
0x167e   : > { %v5388_v46 = vsub.f32 1.0, %v5387_v22  ;;  %vm5412_vm8 = vmor %vm5410_vm6, %vm5411_vm4  ;;  %v5434_v56 = vand.u32 2147483647, %v5424_v48  ;;  %v5437_v50 = vor.u32 1.1754944e-38, %v5436_v49 }
0x167f   : > { %v5407_v44 = vsub.f32 1.0, %v5406_v32 }
0x1680   : > { %v5389_v26 = vmul.f32 %v6805_v55, %v5388_v46  ;;  %vm5435_vm15 = vcmp.eq.f32.partialorder %v5434_v56, 8.507059e+37 }
0x1681   : > { %v5408_v35 = vmul.f32 %v6807_v7, %v5407_v44 }
0x1682   : > { %v6809_v24 = vpop.eup %6808  ;;  %v5390_v27 = vadd.f32 %v6805_v55, %v5389_v26 }
0x1683   : > { %v5409_v9 = vadd.f32 %v6807_v7, %v5408_v35  ;;  %v5426_v25 = vmul.f32 %v6809_v24, %v5424_v48  ;;  %v6811_v13 = vpop.eup %6810  ;;  %vm5431_vm12 = vweird.f32 %v6809_v24 }
0x1684   : > { %v5394_v0 = vsel %vm5393_vm7, %v6805_v55, %v5390_v27  ;;  %vm5432_vm14 = vmor %vm5430_vm13, %vm5431_vm12 }
0x1685   : > { %v5399_v10 = vsel %vm5396_vm9, %v5398_v4, %v5394_v0  ;;  %v5413_v45 = vsel %vm5412_vm8, %v6807_v7, %v5409_v9  ;;  %v5427_v36 = vsub.f32 1.0, %v5426_v25 }
0x1686   : > { %v5418_v47 = vsel %vm5415_vm10, %v5417_v15, %v5413_v45  ;;  %v5442_v31 = vmul.f32 %v6811_v13, %v5399_v10 }
0x1687   : > { %v5441_v2 = vmul.f32 %v5418_v47, %v9262_v34  ;;  %v5428_v21 = vmul.f32 %v6809_v24, %v5427_v36 }
0x1689   : > { %v5443_v29 = vadd.f32 %v5442_v31, %v5441_v2  ;;  %v5429_v16 = vadd.f32 %v6809_v24, %v5428_v21 }
0x168b   : > { %6812 = vtanh.f32 %v5443_v29  ;;  %v5452_v20 = vsel %vm5317_vm11, %v5443_v29, %v9262_v34  ;;  %v5433_v43 = vsel %vm5432_vm14, %v6809_v24, %v5429_v16 }
0x168c   : > { %5453 = vst [vmem:[#allocation3] sm:$0xff] %v5452_v20  ;;  %v5438_v58 = vsel %vm5435_vm15, %v5437_v50, %v5433_v43 }
0x1691   : > { %v6813_v61 = vpop.eup %6812 }
0x1692   : > { %v5445_v54 = vmul.f32 %v6813_v61, %v5438_v58 }
0x1694   : > { %v5446_v51 = vsel %vm5317_vm11, %v5445_v54, 0.0  ;;  %v5449_v60 = vsel %vm5317_vm11, %v5445_v54, %v9267_v12 }
0x1695   : > { %5447 = vst [vmem:[%s7455_s14] sm:$0xff] %v5446_v51 }
0x1696   : > { %5450 = vst [vmem:[#allocation2] sm:$0xff] %v5449_v60 }
0x1697 PF: > { %v5459_v52 = vld [vmem:[#allocation3] sm:$0xff]  ;;  %s6183_s18 = sshll.u32 (%p6927_p6), %s6845_s20, 3  ;;  %v5545_v8 = vld [vmem:[%s7455_s14 + $0x8] sm:$0xff] (%p6927_p6)  ;;  %v5547_v62 = vld [vmem:[%s7455_s14 + $0x10] sm:$0xff] (%p6927_p6) }
0x1698   : > { %5460 = vst [vmem:[%s7132_s12] sm:$0xff] %v5459_v52  ;;  %s5484_s8 = scalar_lea.vmem (%p6927_p6), %s9323_s3, %s6183_s18  ;;  %v5549_v1 = vld [vmem:[%s7455_s14 + $0x18] sm:$0xff] (%p6927_p6)  ;;  %v5551_v17 = vld [vmem:[%s7455_s14 + $0x20] sm:$0xff] (%p6927_p6)  ;;  %v5553_v38 = vld [vmem:[%s7455_s14 + $0x28] sm:$0xff] (%p6927_p6) }
0x1699   : > { %5546 = vst [vmem:[%s5484_s8 + $0x10] sm:$0xff] (%p6927_p6), %v5545_v8  ;;  %v5555_v33 = vld [vmem:[%s7455_s14 + $0x30] sm:$0xff] (%p6927_p6)  ;;  %v5557_v5 = vld [vmem:[%s7455_s14 + $0x38] sm:$0xff] (%p6927_p6)  ;;  %v5559_v18 = vld [vmem:[%s7455_s14 + $0x40] sm:$0xff] (%p6927_p6) }
0x169a   : > { %5475 = sbr.rel (!%p6927_p6) target bundleno = 5802 (0x16aa), region = 98  ;;  %5548 = vst [vmem:[%s5484_s8 + $0x20] sm:$0xff] (%p6927_p6), %v5547_v62  ;;  %v5561_v37 = vld [vmem:[%s7455_s14 + $0x48] sm:$0xff] (%p6927_p6)  ;;  %v5563_v40 = vld [vmem:[%s7455_s14 + $0x50] sm:$0xff] (%p6927_p6)  ;;  %v5565_v6 = vld [vmem:[%s7455_s14 + $0x58] sm:$0xff] (%p6927_p6) }
0x169b   : > { %5550 = vst [vmem:[%s5484_s8 + $0x30] sm:$0xff] (%p6927_p6), %v5549_v1  ;;  %v5567_v14 = vld [vmem:[%s7455_s14 + $0x60] sm:$0xff] (%p6927_p6)  ;;  %v5569_v59 = vld [vmem:[%s7455_s14 + $0x68] sm:$0xff] (%p6927_p6)  ;;  %v5571_v28 = vld [vmem:[%s7455_s14 + $0x70] sm:$0xff] (%p6927_p6) }
0x169c   : > { %v5543_v12 = vld [vmem:[%s7455_s14] sm:$0xff] (%p6927_p6)  ;;  %5552 = vst [vmem:[%s5484_s8 + $0x40] sm:$0xff] (%p6927_p6), %v5551_v17  ;;  %v5573_v63 = vld [vmem:[%s7455_s14 + $0x78] sm:$0xff] (%p6927_p6) }
0x169d   : > { %v5457_v34 = vld [vmem:[#allocation2] sm:$0xff]  ;;  %5544 = vst [vmem:[%s5484_s8] sm:$0xff] (%p6927_p6), %v5543_v12 }
0x169e   : > { %5458 = vst [vmem:[%s7127_s9] sm:$0xff] %v5457_v34 }
0x169f   : > { %5554 = vst [vmem:[%s5484_s8 + $0x50] sm:$0xff] %v5553_v38 }
0x16a0   : > { %5556 = vst [vmem:[%s5484_s8 + $0x60] sm:$0xff] %v5555_v33 }
0x16a1   : > { %5558 = vst [vmem:[%s5484_s8 + $0x70] sm:$0xff] %v5557_v5 }
0x16a2   : > { %5560 = vst [vmem:[%s5484_s8 + $0x80] sm:$0xff] %v5559_v18 }
0x16a3   : > { %5562 = vst [vmem:[%s5484_s8 + $0x90] sm:$0xff] %v5561_v37 }
0x16a4   : > { %5564 = vst [vmem:[%s5484_s8 + $0xa0] sm:$0xff] %v5563_v40 }
0x16a5   : > { %5566 = vst [vmem:[%s5484_s8 + $0xb0] sm:$0xff] %v5565_v6 }
0x16a6   : > { %5568 = vst [vmem:[%s5484_s8 + $0xc0] sm:$0xff] %v5567_v14 }
0x16a7   : > { %5570 = vst [vmem:[%s5484_s8 + $0xd0] sm:$0xff] %v5569_v59 }
0x16a8   : > { %5572 = vst [vmem:[%s5484_s8 + $0xe0] sm:$0xff] %v5571_v28 }
0x16a9   : > { %5574 = vst [vmem:[%s5484_s8 + $0xf0] sm:$0xff] %v5573_v63 }
0x16aa PF: > { %s16_s22 = sadd.s32 1, %s6853_s22   ;;  %s9470_s18 = smov %s6841_s19 }
0x16ab   : > { %p13_p0 = scmp.ge.s32.totalorder %s16_s22, 4   ;;  %s9471_s19 = smov %s6932_s29 }
0x16ac   : > { %s9472_s20 = smov %s6849_s21  ;;  %s9473_s21 = smov %s9475_s23 }
0x16ad   :  { %15 = sbr.rel (!%p13_p0) target bundleno = 3 (0x3), region = 259 }

</bundles_post_ra>
